<compile_context>
chip_gen: v7x
topology: tpu7x:2x2x1
jax: 0.10.0
libtpu: 0.0.40
codegen_flags: <defaults>
</compile_context>

<pallas_src>
import functools

import jax
import jax.numpy as jnp
from jax.experimental import pallas as pl
from jax.experimental.pallas import tpu as pltpu

_CPARAMS = pltpu.CompilerParams(dimension_semantics=("parallel",))


# ----------------------------------------------------------------------------
# Wrapper-side weight transforms (plain JAX, tiny, run under jit)
# ----------------------------------------------------------------------------
def _band_conv3_weights(w_torch, w_in):
    """Conv2d weight (Cout, Cin, 3, 3) -> banded (3, w_in*Cin, (w_in-2)*Cout) bf16."""
    cout, cin = w_torch.shape[0], w_torch.shape[1]
    w = jnp.transpose(w_torch, (2, 3, 1, 0)).astype(jnp.float32)   # (dy, dx, c, m)
    w_out = w_in - 2
    a = jnp.arange(w_in)[:, None, None]
    dx = jnp.arange(3)[None, :, None]
    j = jnp.arange(w_out)[None, None, :]
    sel = (a == j + dx).astype(jnp.float32)                        # (w_in, 3, w_out)
    wb = jnp.einsum("axj,yxcm->yacjm", sel, w)
    return wb.reshape(3, w_in * cin, w_out * cout).astype(jnp.bfloat16)


def _band_upconv_weights(w_torch, w_x):
    """ConvTranspose2d weight (Cin, Cout, 2, 2) -> (2, w_x*Cin, 2*w_x*Cout) bf16.

    Output row 2i+dy of the upsampled map is  x[i, :] @ Wup[dy]  with
    Wup[dy][j*Cin + c, (2j+dx)*Cout + m] = w_torch[c, m, dy, dx].
    """
    cin, cout = w_torch.shape[0], w_torch.shape[1]
    w = jnp.transpose(w_torch, (2, 3, 0, 1)).astype(jnp.float32)   # (dy, dx, c, m)
    j = jnp.arange(w_x)[:, None, None]
    dx = jnp.arange(2)[None, :, None]
    k = jnp.arange(2 * w_x)[None, None, :]
    sel = (k == 2 * j + dx).astype(jnp.float32)                    # (w_x, 2, 2*w_x)
    wb = jnp.einsum("jxk,yxcm->yjckm", sel, w)
    return wb.reshape(2, w_x * cin, 2 * w_x * cout).astype(jnp.bfloat16)


def _blockdiag_1x1(w_torch, w_sp):
    """1x1 Conv2d weight (Cout, Cin, 1, 1) -> block-diag (w_sp*Cin, w_sp*Cout) bf16."""
    wh = jnp.transpose(w_torch[:, :, 0, 0], (1, 0)).astype(jnp.float32)   # (Cin, Cout)
    eye = jnp.eye(w_sp, dtype=jnp.float32)
    big = jnp.einsum("jk,mt->jmkt", eye, wh)
    return big.reshape(w_sp * wh.shape[0], w_sp * wh.shape[1]).astype(jnp.bfloat16)


def _bias_row(b, w_sp):
    """(C,) bias -> (1, w_sp*C) f32 row (b[m] at lane j*C + m)."""
    return jnp.tile(b, w_sp)[None, :].astype(jnp.float32)


def _pool_rowsel(h_in):
    """(h_in//2, h_in-1) 0/1 selector: picks rows 0, 2, ... of an adjacent-row max."""
    hp = h_in // 2
    return (jnp.arange(h_in - 1)[None, :] == 2 * jnp.arange(hp)[:, None]).astype(jnp.float32)


def _pool_colsel(w_in, c):
    """((w_in-1)*c, (w_in//2)*c) 0/1 selector: picks channel blocks 0, 2, ...."""
    wp = w_in // 2
    selj = (jnp.arange(w_in - 1)[:, None] == 2 * jnp.arange(wp)[None, :]).astype(jnp.float32)
    cs = jnp.einsum("jk,cd->jckd", selj, jnp.eye(c, dtype=jnp.float32))
    return cs.reshape((w_in - 1) * c, wp * c)


# ----------------------------------------------------------------------------
# In-kernel helpers
# ----------------------------------------------------------------------------
def _band_conv(act, w_ref):
    """act: (H, K) f32 value; w_ref: (3, K, N) bf16 banded weights -> (H-2, N) f32."""
    ho = act.shape[0] - 2
    acc = jnp.dot(act[0:ho].astype(jnp.bfloat16), w_ref[0],
                  preferred_element_type=jnp.float32)
    acc = acc + jnp.dot(act[1:ho + 1].astype(jnp.bfloat16), w_ref[1],
                        preferred_element_type=jnp.float32)
    acc = acc + jnp.dot(act[2:ho + 2].astype(jnp.bfloat16), w_ref[2],
                        preferred_element_type=jnp.float32)
    return acc


# ----------------------------------------------------------------------------
# Fused encoder stage: [maxpool2x2 (optional)] -> conv3x3 + ReLU -> conv3x3
# ----------------------------------------------------------------------------
def _enc_stage_kernel(*refs, pool, cin):
    if pool:
        x_ref, rowsel_ref, colsel_ref, w1_ref, b1_ref, w2_ref, b2_ref, f_ref = refs
    else:
        x_ref, w1_ref, b1_ref, w2_ref, b2_ref, f_ref = refs

    x = x_ref[0]                                        # (Hin, Win*cin) f32
    if pool:
        hin, lanes = x.shape
        rmax = jnp.maximum(x[0:hin - 1, :], x[1:hin, :])            # adjacent rows
        pr = jnp.dot(rowsel_ref[...], rmax, preferred_element_type=jnp.float32)
        lmax = jnp.maximum(pr[:, 0:lanes - cin], pr[:, cin:lanes])  # adjacent cols
        act = jnp.dot(lmax, colsel_ref[...], preferred_element_type=jnp.float32)
    else:
        act = x

    h1 = jnp.maximum(_band_conv(act, w1_ref) + b1_ref[...], 0.0)    # conv1 + ReLU
    f = _band_conv(h1, w2_ref) + b2_ref[...]                        # conv2
    f_ref[0] = f.astype(f_ref.dtype)


def encoder_stage(x2, w1, b1, w2, b2, *, pool):
    """x2: (N, Hin, Win*Cin) f32.  Returns the stage feature (N, Hout, Wout*Cout)."""
    n, hin, lanes = x2.shape
    cin = w1.shape[1]
    win = lanes // cin
    if pool:
        h0, w0 = hin // 2, win // 2
        rowsel = _pool_rowsel(hin)
        colsel = _pool_colsel(win, cin)
    else:
        h0, w0 = hin, win
    c1, c2 = w1.shape[0], w2.shape[0]
    w1b = _band_conv3_weights(w1, w0)
    b1r = _bias_row(b1, w0 - 2)
    w2b = _band_conv3_weights(w2, w0 - 2)
    b2r = _bias_row(b2, w0 - 4)
    h_out, l_out = h0 - 4, (w0 - 4) * c2

    kern = functools.partial(_enc_stage_kernel, pool=pool, cin=cin)
    in_arrays = [x2]
    in_specs = [pl.BlockSpec((1, hin, lanes), lambda i: (i, 0, 0))]
    if pool:
        in_arrays += [rowsel, colsel]
        in_specs += [pl.BlockSpec(rowsel.shape, lambda i: (0, 0)),
                     pl.BlockSpec(colsel.shape, lambda i: (0, 0))]
    in_arrays += [w1b, b1r, w2b, b2r]
    in_specs += [pl.BlockSpec(w1b.shape, lambda i: (0, 0, 0)),
                 pl.BlockSpec(b1r.shape, lambda i: (0, 0)),
                 pl.BlockSpec(w2b.shape, lambda i: (0, 0, 0)),
                 pl.BlockSpec(b2r.shape, lambda i: (0, 0))]

    return pl.pallas_call(
        kern,
        out_shape=jax.ShapeDtypeStruct((n, h_out, l_out), jnp.float32),
        grid=(n,),
        in_specs=in_specs,
        out_specs=pl.BlockSpec((1, h_out, l_out), lambda i: (i, 0, 0)),
        compiler_params=_CPARAMS,
    )(*in_arrays)


# ----------------------------------------------------------------------------
# Fused decoder stage: upconv2x2 -> crop+concat skip -> conv3x3+ReLU -> conv3x3
# (optionally followed by the fused 1x1 head conv)
# ----------------------------------------------------------------------------
def _dec_stage_kernel(*refs, crop, head):
    if head:
        (x_ref, e_ref, ee_ref, eo_ref, wu_ref, bu_ref,
         w1u_ref, w1e_ref, b1_ref, w2_ref, b2_ref, wh_ref, bh_ref, o_ref) = refs
    else:
        (x_ref, e_ref, ee_ref, eo_ref, wu_ref, bu_ref,
         w1u_ref, w1e_ref, b1_ref, w2_ref, b2_ref, o_ref) = refs
    top, hu, lane0, lanes = crop

    # Transposed conv (k=2, s=2): two interleaved output rows per input row.
    xb = x_ref[0].astype(jnp.bfloat16)                              # (Hx, Wx*Cin)
    r0 = jnp.dot(xb, wu_ref[0], preferred_element_type=jnp.float32)  # even rows
    r1 = jnp.dot(xb, wu_ref[1], preferred_element_type=jnp.float32)  # odd rows
    u2 = (jnp.dot(ee_ref[...], r0, preferred_element_type=jnp.float32)
          + jnp.dot(eo_ref[...], r1, preferred_element_type=jnp.float32)
          + bu_ref[...])                                            # (Hu, Wu*Cmid) f32

    # Center-cropped skip feature (static slice of the full skip block).
    e = e_ref[0, top:top + hu, lane0:lane0 + lanes]                 # (Hu, Wu*Cskip)

    # conv1 on concat([u, skip], channel) == conv(u, w1u) + conv(skip, w1e).
    acc1 = _band_conv(u2, w1u_ref) + _band_conv(e, w1e_ref) + b1_ref[...]
    h1 = jnp.maximum(acc1, 0.0)
    acc2 = _band_conv(h1, w2_ref) + b2_ref[...]                     # conv2 (no ReLU)

    if head:
        y = jnp.dot(acc2.astype(jnp.bfloat16), wh_ref[...],
                    preferred_element_type=jnp.float32) + bh_ref[...]
        o_ref[0] = y.astype(o_ref.dtype)
    else:
        o_ref[0] = acc2.astype(o_ref.dtype)


def decoder_stage(x2, skip2, wu, bu, w1, b1, w2, b2, *, head=None):
    """x2: (N, Hx, Wx*Cin); skip2: (N, He, We*Cskip) full (uncropped) skip feature."""
    n, hx, lx = x2.shape
    cin, cmid = wu.shape[0], wu.shape[1]
    wx = lx // cin
    cskip = w1.shape[1] - cmid
    he, le = skip2.shape[1], skip2.shape[2]
    we = le // cskip
    hu, wu_sp = 2 * hx, 2 * wx
    top, left = (he - hu) // 2, (we - wu_sp) // 2     # CenterCrop (even diffs here)
    c1, c2 = w1.shape[0], w2.shape[0]

    wub = _band_upconv_weights(wu, wx)                              # (2, Wx*Cin, Wu*Cmid)
    bur = _bias_row(bu, wu_sp)
    ee = (jnp.arange(hu)[:, None] == 2 * jnp.arange(hx)[None, :]).astype(jnp.float32)
    eo = (jnp.arange(hu)[:, None] == 2 * jnp.arange(hx)[None, :] + 1).astype(jnp.float32)

    w1ub = _band_conv3_weights(w1[:, :cmid], wu_sp)                 # upconv part
    w1eb = _band_conv3_weights(w1[:, cmid:], wu_sp)                 # skip part
    b1r = _bias_row(b1, wu_sp - 2)
    w2b = _band_conv3_weights(w2, wu_sp - 2)
    b2r = _bias_row(b2, wu_sp - 4)

    h_out, w_out = hu - 4, wu_sp - 4
    crop = (top, hu, left * cskip, wu_sp * cskip)

    in_arrays = [x2, skip2, ee, eo, wub, bur, w1ub, w1eb, b1r, w2b, b2r]
    in_specs = [
        pl.BlockSpec((1, hx, lx), lambda i: (i, 0, 0)),
        pl.BlockSpec((1, he, le), lambda i: (i, 0, 0)),
        pl.BlockSpec(ee.shape, lambda i: (0, 0)),
        pl.BlockSpec(eo.shape, lambda i: (0, 0)),
        pl.BlockSpec(wub.shape, lambda i: (0, 0, 0)),
        pl.BlockSpec(bur.shape, lambda i: (0, 0)),
        pl.BlockSpec(w1ub.shape, lambda i: (0, 0, 0)),
        pl.BlockSpec(w1eb.shape, lambda i: (0, 0, 0)),
        pl.BlockSpec(b1r.shape, lambda i: (0, 0)),
        pl.BlockSpec(w2b.shape, lambda i: (0, 0, 0)),
        pl.BlockSpec(b2r.shape, lambda i: (0, 0)),
    ]
    if head is not None:
        wh_t, bh = head
        nc = wh_t.shape[0]
        whb = _blockdiag_1x1(wh_t, w_out)
        bhr = _bias_row(bh, w_out)
        in_arrays += [whb, bhr]
        in_specs += [pl.BlockSpec(whb.shape, lambda i: (0, 0)),
                     pl.BlockSpec(bhr.shape, lambda i: (0, 0))]
        out_c = nc
    else:
        out_c = c2

    kern = functools.partial(_dec_stage_kernel, crop=crop, head=head is not None)
    return pl.pallas_call(
        kern,
        out_shape=jax.ShapeDtypeStruct((n, h_out, w_out * out_c), jnp.float32),
        grid=(n,),
        in_specs=in_specs,
        out_specs=pl.BlockSpec((1, h_out, w_out * out_c), lambda i: (i, 0, 0)),
        compiler_params=_CPARAMS,
    )(*in_arrays)


# ----------------------------------------------------------------------------
# Parameters (PyTorch layouts) + forward pass
# ----------------------------------------------------------------------------
def init_params(key, enc_chs, dec_chs, num_class):
    params = {"enc": [], "up": [], "dec": [], "head": None}

    def nxt():
        nonlocal key
        key, sub = jax.random.split(key)
        return sub

    def conv_w(cout, cin, k):
        return jax.random.normal(nxt(), (cout, cin, k, k), jnp.float32) * 0.1

    def bias(c):
        return jax.random.normal(nxt(), (c,), jnp.float32) * 0.1

    for i in range(len(enc_chs) - 1):
        ci, co = enc_chs[i], enc_chs[i + 1]
        params["enc"].append((conv_w(co, ci, 3), bias(co), conv_w(co, co, 3), bias(co)))
    for i in range(len(dec_chs) - 1):
        ci, co = dec_chs[i], dec_chs[i + 1]
        # ConvTranspose2d weight layout: (in_ch, out_ch, kH, kW)
        params["up"].append(
            (jax.random.normal(nxt(), (ci, co, 2, 2), jnp.float32) * 0.1, bias(co)))
        params["dec"].append((conv_w(co, ci, 3), bias(co), conv_w(co, co, 3), bias(co)))
    params["head"] = (
        jax.random.normal(nxt(), (num_class, dec_chs[-1], 1, 1), jnp.float32) * 0.1,
        bias(num_class))
    return params


def unet_forward(x_nchw, params):
    n, c, h, w = x_nchw.shape
    # NCHW -> (N, H, W*C) row-major lane layout (channels innermost).
    x2 = jnp.transpose(x_nchw, (0, 2, 3, 1)).astype(jnp.float32).reshape(n, h, w * c)

    # ---- Encoder: each stage pools its *input* (except stage 0), so the
    #      pooled map never hits HBM; stage outputs double as skip features.
    feats = []
    cur = x2
    for i, (w1, b1, w2, b2) in enumerate(params["enc"]):
        cur = encoder_stage(cur, w1, b1, w2, b2, pool=(i > 0))
        feats.append(cur)
    # (The torch module's pool after the last block is computed but unused.)

    # ---- Decoder (head fused into the last stage) ----
    skips = feats[:-1][::-1]
    cur = feats[-1]
    n_dec = len(params["dec"])
    for i, ((wu, bu), (w1, b1, w2, b2)) in enumerate(zip(params["up"], params["dec"])):
        head = params["head"] if i == n_dec - 1 else None
        cur = decoder_stage(cur, skips[i], wu, bu, w1, b1, w2, b2, head=head)

    # (N, Ho, Wo*nc) -> NCHW
    nc = params["head"][0].shape[0]
    _, ho, lo = cur.shape
    wo = lo // nc
    out = cur.reshape(n, ho, wo, nc).transpose(0, 3, 1, 2)
    # TODO(synk): retain_dim=True path (F.interpolate to out_sz) not implemented; module default is False.
    return out


if __name__ == "__main__":
    # Small, module-consistent config: 3 encoder stages, 2 decoder stages.
    enc_chs = (3, 8, 16, 32)
    dec_chs = (32, 16, 8)
    num_class = 1

    key = jax.random.PRNGKey(0)
    kp, kx = jax.random.split(key)
    params = init_params(kp, enc_chs, dec_chs, num_class)

    # NCHW input like the PyTorch module: 48x48 so all valid convs/pools fit.
    x = jax.random.normal(kx, (2, 3, 48, 48), jnp.float32)

    fwd = jax.jit(lambda inp: unet_forward(inp, params))
    out = jax.block_until_ready(fwd(x))
    assert out.shape == (2, num_class, 8, 8), out.shape
    assert bool(jnp.all(jnp.isfinite(out)))
    print("KERNEL_OK")
</pallas_src>

<mosaic_0001>
module attributes {stable_mosaic.version = 11 : i64} {
  func.func @_enc_stage_kernel(%arg0: i32, %arg1: memref<1x48x144xf32, #tpu.memory_space<vmem>>, %arg2: memref<3x144x368xbf16, #tpu.memory_space<vmem>>, %arg3: memref<1x368xf32, #tpu.memory_space<vmem>>, %arg4: memref<3x368x352xbf16, #tpu.memory_space<vmem>>, %arg5: memref<1x352xf32, #tpu.memory_space<vmem>>, %arg6: memref<1x44x352xf32, #tpu.memory_space<vmem>>) attributes {dimension_semantics = [#tpu.dimension_semantics<parallel>], iteration_bounds = array<i64: 2>, scalar_prefetch = 0 : i64, scratch_operands = 0 : i64, tpu.core_type = #tpu.core_type<tc>, window_params = [{transform_indices = @transform_0, window_bounds = array<i64: 1, 48, 144>}, {pipeline_mode = #tpu.pipeline_mode<synchronous>, transform_indices = @transform_1, window_bounds = array<i64: 3, 144, 368>}, {pipeline_mode = #tpu.pipeline_mode<synchronous>, transform_indices = @transform_2, window_bounds = array<i64: 1, 368>}, {pipeline_mode = #tpu.pipeline_mode<synchronous>, transform_indices = @transform_3, window_bounds = array<i64: 3, 368, 352>}, {pipeline_mode = #tpu.pipeline_mode<synchronous>, transform_indices = @transform_4, window_bounds = array<i64: 1, 352>}, {transform_indices = @transform_5, window_bounds = array<i64: 1, 44, 352>}]} {
    %c0 = arith.constant 0 : index
    %c0_0 = arith.constant 0 : index
    %c0_1 = arith.constant 0 : index
    %0 = vector.load %arg1[%c0, %c0_0, %c0_1] : memref<1x48x144xf32, #tpu.memory_space<vmem>>, vector<1x48x144xf32>
    %1 = vector.shape_cast %0 : vector<1x48x144xf32> to vector<48x144xf32>
    %2 = vector.extract_strided_slice %1 {offsets = [0, 0], sizes = [46, 144], strides = [1, 1]} : vector<48x144xf32> to vector<46x144xf32>
    %3 = arith.truncf %2 : vector<46x144xf32> to vector<46x144xbf16>
    %c0_2 = arith.constant 0 : index
    %c0_3 = arith.constant 0 : index
    %c0_4 = arith.constant 0 : index
    %4 = vector.load %arg2[%c0_2, %c0_3, %c0_4] : memref<3x144x368xbf16, #tpu.memory_space<vmem>>, vector<1x144x368xbf16>
    %5 = vector.shape_cast %4 : vector<1x144x368xbf16> to vector<144x368xbf16>
    %cst = arith.constant dense<0.000000e+00> : vector<46x368xf32>
    %6 = tpu.matmul %3, %5, %cst {dimension_numbers = #tpu.dot_dimension_numbers<[1], [0], [0], [1], [0, 0, 1, 1], [], []>} : vector<46x144xbf16>, vector<144x368xbf16>, vector<46x368xf32> -> vector<46x368xf32>
    %7 = vector.extract_strided_slice %1 {offsets = [1, 0], sizes = [46, 144], strides = [1, 1]} : vector<48x144xf32> to vector<46x144xf32>
    %8 = arith.truncf %7 : vector<46x144xf32> to vector<46x144xbf16>
    %c1 = arith.constant 1 : index
    %c0_5 = arith.constant 0 : index
    %c0_6 = arith.constant 0 : index
    %9 = vector.load %arg2[%c1, %c0_5, %c0_6] : memref<3x144x368xbf16, #tpu.memory_space<vmem>>, vector<1x144x368xbf16>
    %10 = vector.shape_cast %9 : vector<1x144x368xbf16> to vector<144x368xbf16>
    %cst_7 = arith.constant dense<0.000000e+00> : vector<46x368xf32>
    %11 = tpu.matmul %8, %10, %cst_7 {dimension_numbers = #tpu.dot_dimension_numbers<[1], [0], [0], [1], [0, 0, 1, 1], [], []>} : vector<46x144xbf16>, vector<144x368xbf16>, vector<46x368xf32> -> vector<46x368xf32>
    %12 = arith.addf %6, %11 : vector<46x368xf32>
    %13 = vector.extract_strided_slice %1 {offsets = [2, 0], sizes = [46, 144], strides = [1, 1]} : vector<48x144xf32> to vector<46x144xf32>
    %14 = arith.truncf %13 : vector<46x144xf32> to vector<46x144xbf16>
    %c2 = arith.constant 2 : index
    %c0_8 = arith.constant 0 : index
    %c0_9 = arith.constant 0 : index
    %15 = vector.load %arg2[%c2, %c0_8, %c0_9] : memref<3x144x368xbf16, #tpu.memory_space<vmem>>, vector<1x144x368xbf16>
    %16 = vector.shape_cast %15 : vector<1x144x368xbf16> to vector<144x368xbf16>
    %cst_10 = arith.constant dense<0.000000e+00> : vector<46x368xf32>
    %17 = tpu.matmul %14, %16, %cst_10 {dimension_numbers = #tpu.dot_dimension_numbers<[1], [0], [0], [1], [0, 0, 1, 1], [], []>} : vector<46x144xbf16>, vector<144x368xbf16>, vector<46x368xf32> -> vector<46x368xf32>
    %18 = arith.addf %12, %17 : vector<46x368xf32>
    %c0_11 = arith.constant 0 : index
    %c0_12 = arith.constant 0 : index
    %19 = vector.load %arg3[%c0_11, %c0_12] : memref<1x368xf32, #tpu.memory_space<vmem>>, vector<1x368xf32>
    %20 = vector.broadcast %19 : vector<1x368xf32> to vector<46x368xf32>
    %21 = arith.addf %18, %20 : vector<46x368xf32>
    %cst_13 = arith.constant 0.000000e+00 : f32
    %22 = vector.broadcast %cst_13 : f32 to vector<46x368xf32>
    %23 = arith.maximumf %21, %22 : vector<46x368xf32>
    %24 = vector.extract_strided_slice %23 {offsets = [0, 0], sizes = [44, 368], strides = [1, 1]} : vector<46x368xf32> to vector<44x368xf32>
    %25 = arith.truncf %24 : vector<44x368xf32> to vector<44x368xbf16>
    %c0_14 = arith.constant 0 : index
    %c0_15 = arith.constant 0 : index
    %c0_16 = arith.constant 0 : index
    %26 = vector.load %arg4[%c0_14, %c0_15, %c0_16] : memref<3x368x352xbf16, #tpu.memory_space<vmem>>, vector<1x368x352xbf16>
    %27 = vector.shape_cast %26 : vector<1x368x352xbf16> to vector<368x352xbf16>
    %cst_17 = arith.constant dense<0.000000e+00> : vector<44x352xf32>
    %28 = tpu.matmul %25, %27, %cst_17 {dimension_numbers = #tpu.dot_dimension_numbers<[1], [0], [0], [1], [0, 0, 1, 1], [], []>} : vector<44x368xbf16>, vector<368x352xbf16>, vector<44x352xf32> -> vector<44x352xf32>
    %29 = vector.extract_strided_slice %23 {offsets = [1, 0], sizes = [44, 368], strides = [1, 1]} : vector<46x368xf32> to vector<44x368xf32>
    %30 = arith.truncf %29 : vector<44x368xf32> to vector<44x368xbf16>
    %c1_18 = arith.constant 1 : index
    %c0_19 = arith.constant 0 : index
    %c0_20 = arith.constant 0 : index
    %31 = vector.load %arg4[%c1_18, %c0_19, %c0_20] : memref<3x368x352xbf16, #tpu.memory_space<vmem>>, vector<1x368x352xbf16>
    %32 = vector.shape_cast %31 : vector<1x368x352xbf16> to vector<368x352xbf16>
    %cst_21 = arith.constant dense<0.000000e+00> : vector<44x352xf32>
    %33 = tpu.matmul %30, %32, %cst_21 {dimension_numbers = #tpu.dot_dimension_numbers<[1], [0], [0], [1], [0, 0, 1, 1], [], []>} : vector<44x368xbf16>, vector<368x352xbf16>, vector<44x352xf32> -> vector<44x352xf32>
    %34 = arith.addf %28, %33 : vector<44x352xf32>
    %35 = vector.extract_strided_slice %23 {offsets = [2, 0], sizes = [44, 368], strides = [1, 1]} : vector<46x368xf32> to vector<44x368xf32>
    %36 = arith.truncf %35 : vector<44x368xf32> to vector<44x368xbf16>
    %c2_22 = arith.constant 2 : index
    %c0_23 = arith.constant 0 : index
    %c0_24 = arith.constant 0 : index
    %37 = vector.load %arg4[%c2_22, %c0_23, %c0_24] : memref<3x368x352xbf16, #tpu.memory_space<vmem>>, vector<1x368x352xbf16>
    %38 = vector.shape_cast %37 : vector<1x368x352xbf16> to vector<368x352xbf16>
    %cst_25 = arith.constant dense<0.000000e+00> : vector<44x352xf32>
    %39 = tpu.matmul %36, %38, %cst_25 {dimension_numbers = #tpu.dot_dimension_numbers<[1], [0], [0], [1], [0, 0, 1, 1], [], []>} : vector<44x368xbf16>, vector<368x352xbf16>, vector<44x352xf32> -> vector<44x352xf32>
    %40 = arith.addf %34, %39 : vector<44x352xf32>
    %c0_26 = arith.constant 0 : index
    %c0_27 = arith.constant 0 : index
    %41 = vector.load %arg5[%c0_26, %c0_27] : memref<1x352xf32, #tpu.memory_space<vmem>>, vector<1x352xf32>
    %42 = vector.broadcast %41 : vector<1x352xf32> to vector<44x352xf32>
    %43 = arith.addf %40, %42 : vector<44x352xf32>
    %c0_28 = arith.constant 0 : index
    %c0_29 = arith.constant 0 : index
    %c0_30 = arith.constant 0 : index
    %44 = vector.load %arg6[%c0_28, %c0_29, %c0_30] : memref<1x44x352xf32, #tpu.memory_space<vmem>>, vector<1x44x352xf32>
    %45 = vector.shape_cast %44 : vector<1x44x352xf32> to vector<44x352xf32>
    %46 = vector.shape_cast %43 : vector<44x352xf32> to vector<1x44x352xf32>
    tpu.vector_store %arg6[%c0_28, %c0_29, %c0_30], %46 {strides = array<i32>} : memref<1x44x352xf32, #tpu.memory_space<vmem>>, vector<1x44x352xf32>,
    return
  }
  func.func @transform_0(%arg0: i32) -> (i32, i32, i32) {
    %c0_i32 = arith.constant 0 : i32
    %c0_i32_0 = arith.constant 0 : i32
    %c0_i32_1 = arith.constant 0 : i32
    return %arg0, %c0_i32, %c0_i32_0 : i32, i32, i32
  }
  func.func @transform_1(%arg0: i32) -> (i32, i32, i32) {
    %c0_i32 = arith.constant 0 : i32
    %c0_i32_0 = arith.constant 0 : i32
    %c0_i32_1 = arith.constant 0 : i32
    %c0_i32_2 = arith.constant 0 : i32
    return %c0_i32, %c0_i32_0, %c0_i32_1 : i32, i32, i32
  }
  func.func @transform_2(%arg0: i32) -> (i32, i32) {
    %c0_i32 = arith.constant 0 : i32
    %c0_i32_0 = arith.constant 0 : i32
    %c0_i32_1 = arith.constant 0 : i32
    return %c0_i32, %c0_i32_0 : i32, i32
  }
  func.func @transform_3(%arg0: i32) -> (i32, i32, i32) {
    %c0_i32 = arith.constant 0 : i32
    %c0_i32_0 = arith.constant 0 : i32
    %c0_i32_1 = arith.constant 0 : i32
    %c0_i32_2 = arith.constant 0 : i32
    return %c0_i32, %c0_i32_0, %c0_i32_1 : i32, i32, i32
  }
  func.func @transform_4(%arg0: i32) -> (i32, i32) {
    %c0_i32 = arith.constant 0 : i32
    %c0_i32_0 = arith.constant 0 : i32
    %c0_i32_1 = arith.constant 0 : i32
    return %c0_i32, %c0_i32_0 : i32, i32
  }
  func.func @transform_5(%arg0: i32) -> (i32, i32, i32) {
    %c0_i32 = arith.constant 0 : i32
    %c0_i32_0 = arith.constant 0 : i32
    %c0_i32_1 = arith.constant 0 : i32
    return %arg0, %c0_i32, %c0_i32_0 : i32, i32, i32
  }
}

module attributes {stable_mosaic.version = 11 : i64} {
  func.func @_enc_stage_kernel(%arg0: i32, %arg1: memref<1x44x352xf32, #tpu.memory_space<vmem>>, %arg2: memref<22x43xf32, #tpu.memory_space<vmem>>, %arg3: memref<344x176xf32, #tpu.memory_space<vmem>>, %arg4: memref<3x176x320xbf16, #tpu.memory_space<vmem>>, %arg5: memref<1x320xf32, #tpu.memory_space<vmem>>, %arg6: memref<3x320x288xbf16, #tpu.memory_space<vmem>>, %arg7: memref<1x288xf32, #tpu.memory_space<vmem>>, %arg8: memref<1x18x288xf32, #tpu.memory_space<vmem>>) attributes {dimension_semantics = [#tpu.dimension_semantics<parallel>], iteration_bounds = array<i64: 2>, scalar_prefetch = 0 : i64, scratch_operands = 0 : i64, tpu.core_type = #tpu.core_type<tc>, window_params = [{transform_indices = @transform_0, window_bounds = array<i64: 1, 44, 352>}, {pipeline_mode = #tpu.pipeline_mode<synchronous>, transform_indices = @transform_1, window_bounds = array<i64: 22, 43>}, {pipeline_mode = #tpu.pipeline_mode<synchronous>, transform_indices = @transform_2, window_bounds = array<i64: 344, 176>}, {pipeline_mode = #tpu.pipeline_mode<synchronous>, transform_indices = @transform_3, window_bounds = array<i64: 3, 176, 320>}, {pipeline_mode = #tpu.pipeline_mode<synchronous>, transform_indices = @transform_4, window_bounds = array<i64: 1, 320>}, {pipeline_mode = #tpu.pipeline_mode<synchronous>, transform_indices = @transform_5, window_bounds = array<i64: 3, 320, 288>}, {pipeline_mode = #tpu.pipeline_mode<synchronous>, transform_indices = @transform_6, window_bounds = array<i64: 1, 288>}, {transform_indices = @transform_7, window_bounds = array<i64: 1, 18, 288>}]} {
    %c0 = arith.constant 0 : index
    %c0_0 = arith.constant 0 : index
    %c0_1 = arith.constant 0 : index
    %0 = vector.load %arg1[%c0, %c0_0, %c0_1] : memref<1x44x352xf32, #tpu.memory_space<vmem>>, vector<1x44x352xf32>
    %1 = vector.shape_cast %0 : vector<1x44x352xf32> to vector<44x352xf32>
    %2 = vector.extract_strided_slice %1 {offsets = [0, 0], sizes = [43, 352], strides = [1, 1]} : vector<44x352xf32> to vector<43x352xf32>
    %3 = vector.extract_strided_slice %1 {offsets = [1, 0], sizes = [43, 352], strides = [1, 1]} : vector<44x352xf32> to vector<43x352xf32>
    %4 = arith.maximumf %2, %3 : vector<43x352xf32>
    %c0_2 = arith.constant 0 : index
    %c0_3 = arith.constant 0 : index
    %5 = vector.load %arg2[%c0_2, %c0_3] : memref<22x43xf32, #tpu.memory_space<vmem>>, vector<22x43xf32>
    %cst = arith.constant dense<0.000000e+00> : vector<22x352xf32>
    %6 = tpu.matmul %5, %4, %cst {dimension_numbers = #tpu.dot_dimension_numbers<[1], [0], [0], [1], [0, 0, 1, 1], [], []>} : vector<22x43xf32>, vector<43x352xf32>, vector<22x352xf32> -> vector<22x352xf32>
    %7 = vector.extract_strided_slice %6 {offsets = [0, 0], sizes = [22, 344], strides = [1, 1]} : vector<22x352xf32> to vector<22x344xf32>
    %8 = vector.extract_strided_slice %6 {offsets = [0, 8], sizes = [22, 344], strides = [1, 1]} : vector<22x352xf32> to vector<22x344xf32>
    %9 = arith.maximumf %7, %8 : vector<22x344xf32>
    %c0_4 = arith.constant 0 : index
    %c0_5 = arith.constant 0 : index
    %10 = vector.load %arg3[%c0_4, %c0_5] : memref<344x176xf32, #tpu.memory_space<vmem>>, vector<344x176xf32>
    %cst_6 = arith.constant dense<0.000000e+00> : vector<22x176xf32>
    %11 = tpu.matmul %9, %10, %cst_6 {dimension_numbers = #tpu.dot_dimension_numbers<[1], [0], [0], [1], [0, 0, 1, 1], [], []>} : vector<22x344xf32>, vector<344x176xf32>, vector<22x176xf32> -> vector<22x176xf32>
    %12 = vector.extract_strided_slice %11 {offsets = [0, 0], sizes = [20, 176], strides = [1, 1]} : vector<22x176xf32> to vector<20x176xf32>
    %13 = arith.truncf %12 : vector<20x176xf32> to vector<20x176xbf16>
    %c0_7 = arith.constant 0 : index
    %c0_8 = arith.constant 0 : index
    %c0_9 = arith.constant 0 : index
    %14 = vector.load %arg4[%c0_7, %c0_8, %c0_9] : memref<3x176x320xbf16, #tpu.memory_space<vmem>>, vector<1x176x320xbf16>
    %15 = vector.shape_cast %14 : vector<1x176x320xbf16> to vector<176x320xbf16>
    %cst_10 = arith.constant dense<0.000000e+00> : vector<20x320xf32>
    %16 = tpu.matmul %13, %15, %cst_10 {dimension_numbers = #tpu.dot_dimension_numbers<[1], [0], [0], [1], [0, 0, 1, 1], [], []>} : vector<20x176xbf16>, vector<176x320xbf16>, vector<20x320xf32> -> vector<20x320xf32>
    %17 = vector.extract_strided_slice %11 {offsets = [1, 0], sizes = [20, 176], strides = [1, 1]} : vector<22x176xf32> to vector<20x176xf32>
    %18 = arith.truncf %17 : vector<20x176xf32> to vector<20x176xbf16>
    %c1 = arith.constant 1 : index
    %c0_11 = arith.constant 0 : index
    %c0_12 = arith.constant 0 : index
    %19 = vector.load %arg4[%c1, %c0_11, %c0_12] : memref<3x176x320xbf16, #tpu.memory_space<vmem>>, vector<1x176x320xbf16>
    %20 = vector.shape_cast %19 : vector<1x176x320xbf16> to vector<176x320xbf16>
    %cst_13 = arith.constant dense<0.000000e+00> : vector<20x320xf32>
    %21 = tpu.matmul %18, %20, %cst_13 {dimension_numbers = #tpu.dot_dimension_numbers<[1], [0], [0], [1], [0, 0, 1, 1], [], []>} : vector<20x176xbf16>, vector<176x320xbf16>, vector<20x320xf32> -> vector<20x320xf32>
    %22 = arith.addf %16, %21 : vector<20x320xf32>
    %23 = vector.extract_strided_slice %11 {offsets = [2, 0], sizes = [20, 176], strides = [1, 1]} : vector<22x176xf32> to vector<20x176xf32>
    %24 = arith.truncf %23 : vector<20x176xf32> to vector<20x176xbf16>
    %c2 = arith.constant 2 : index
    %c0_14 = arith.constant 0 : index
    %c0_15 = arith.constant 0 : index
    %25 = vector.load %arg4[%c2, %c0_14, %c0_15] : memref<3x176x320xbf16, #tpu.memory_space<vmem>>, vector<1x176x320xbf16>
    %26 = vector.shape_cast %25 : vector<1x176x320xbf16> to vector<176x320xbf16>
    %cst_16 = arith.constant dense<0.000000e+00> : vector<20x320xf32>
    %27 = tpu.matmul %24, %26, %cst_16 {dimension_numbers = #tpu.dot_dimension_numbers<[1], [0], [0], [1], [0, 0, 1, 1], [], []>} : vector<20x176xbf16>, vector<176x320xbf16>, vector<20x320xf32> -> vector<20x320xf32>
    %28 = arith.addf %22, %27 : vector<20x320xf32>
    %c0_17 = arith.constant 0 : index
    %c0_18 = arith.constant 0 : index
    %29 = vector.load %arg5[%c0_17, %c0_18] : memref<1x320xf32, #tpu.memory_space<vmem>>, vector<1x320xf32>
    %30 = vector.broadcast %29 : vector<1x320xf32> to vector<20x320xf32>
    %31 = arith.addf %28, %30 : vector<20x320xf32>
    %cst_19 = arith.constant 0.000000e+00 : f32
    %32 = vector.broadcast %cst_19 : f32 to vector<20x320xf32>
    %33 = arith.maximumf %31, %32 : vector<20x320xf32>
    %34 = vector.extract_strided_slice %33 {offsets = [0, 0], sizes = [18, 320], strides = [1, 1]} : vector<20x320xf32> to vector<18x320xf32>
    %35 = arith.truncf %34 : vector<18x320xf32> to vector<18x320xbf16>
    %c0_20 = arith.constant 0 : index
    %c0_21 = arith.constant 0 : index
    %c0_22 = arith.constant 0 : index
    %36 = vector.load %arg6[%c0_20, %c0_21, %c0_22] : memref<3x320x288xbf16, #tpu.memory_space<vmem>>, vector<1x320x288xbf16>
    %37 = vector.shape_cast %36 : vector<1x320x288xbf16> to vector<320x288xbf16>
    %cst_23 = arith.constant dense<0.000000e+00> : vector<18x288xf32>
    %38 = tpu.matmul %35, %37, %cst_23 {dimension_numbers = #tpu.dot_dimension_numbers<[1], [0], [0], [1], [0, 0, 1, 1], [], []>} : vector<18x320xbf16>, vector<320x288xbf16>, vector<18x288xf32> -> vector<18x288xf32>
    %39 = vector.extract_strided_slice %33 {offsets = [1, 0], sizes = [18, 320], strides = [1, 1]} : vector<20x320xf32> to vector<18x320xf32>
    %40 = arith.truncf %39 : vector<18x320xf32> to vector<18x320xbf16>
    %c1_24 = arith.constant 1 : index
    %c0_25 = arith.constant 0 : index
    %c0_26 = arith.constant 0 : index
    %41 = vector.load %arg6[%c1_24, %c0_25, %c0_26] : memref<3x320x288xbf16, #tpu.memory_space<vmem>>, vector<1x320x288xbf16>
    %42 = vector.shape_cast %41 : vector<1x320x288xbf16> to vector<320x288xbf16>
    %cst_27 = arith.constant dense<0.000000e+00> : vector<18x288xf32>
    %43 = tpu.matmul %40, %42, %cst_27 {dimension_numbers = #tpu.dot_dimension_numbers<[1], [0], [0], [1], [0, 0, 1, 1], [], []>} : vector<18x320xbf16>, vector<320x288xbf16>, vector<18x288xf32> -> vector<18x288xf32>
    %44 = arith.addf %38, %43 : vector<18x288xf32>
    %45 = vector.extract_strided_slice %33 {offsets = [2, 0], sizes = [18, 320], strides = [1, 1]} : vector<20x320xf32> to vector<18x320xf32>
    %46 = arith.truncf %45 : vector<18x320xf32> to vector<18x320xbf16>
    %c2_28 = arith.constant 2 : index
    %c0_29 = arith.constant 0 : index
    %c0_30 = arith.constant 0 : index
    %47 = vector.load %arg6[%c2_28, %c0_29, %c0_30] : memref<3x320x288xbf16, #tpu.memory_space<vmem>>, vector<1x320x288xbf16>
    %48 = vector.shape_cast %47 : vector<1x320x288xbf16> to vector<320x288xbf16>
    %cst_31 = arith.constant dense<0.000000e+00> : vector<18x288xf32>
    %49 = tpu.matmul %46, %48, %cst_31 {dimension_numbers = #tpu.dot_dimension_numbers<[1], [0], [0], [1], [0, 0, 1, 1], [], []>} : vector<18x320xbf16>, vector<320x288xbf16>, vector<18x288xf32> -> vector<18x288xf32>
    %50 = arith.addf %44, %49 : vector<18x288xf32>
    %c0_32 = arith.constant 0 : index
    %c0_33 = arith.constant 0 : index
    %51 = vector.load %arg7[%c0_32, %c0_33] : memref<1x288xf32, #tpu.memory_space<vmem>>, vector<1x288xf32>
    %52 = vector.broadcast %51 : vector<1x288xf32> to vector<18x288xf32>
    %53 = arith.addf %50, %52 : vector<18x288xf32>
    %c0_34 = arith.constant 0 : index
    %c0_35 = arith.constant 0 : index
    %c0_36 = arith.constant 0 : index
    %54 = vector.load %arg8[%c0_34, %c0_35, %c0_36] : memref<1x18x288xf32, #tpu.memory_space<vmem>>, vector<1x18x288xf32>
    %55 = vector.shape_cast %54 : vector<1x18x288xf32> to vector<18x288xf32>
    %56 = vector.shape_cast %53 : vector<18x288xf32> to vector<1x18x288xf32>
    tpu.vector_store %arg8[%c0_34, %c0_35, %c0_36], %56 {strides = array<i32>} : memref<1x18x288xf32, #tpu.memory_space<vmem>>, vector<1x18x288xf32>,
    return
  }
  func.func @transform_0(%arg0: i32) -> (i32, i32, i32) {
    %c0_i32 = arith.constant 0 : i32
    %c0_i32_0 = arith.constant 0 : i32
    %c0_i32_1 = arith.constant 0 : i32
    return %arg0, %c0_i32, %c0_i32_0 : i32, i32, i32
  }
  func.func @transform_1(%arg0: i32) -> (i32, i32) {
    %c0_i32 = arith.constant 0 : i32
    %c0_i32_0 = arith.constant 0 : i32
    %c0_i32_1 = arith.constant 0 : i32
    return %c0_i32, %c0_i32_0 : i32, i32
  }
  func.func @transform_2(%arg0: i32) -> (i32, i32) {
    %c0_i32 = arith.constant 0 : i32
    %c0_i32_0 = arith.constant 0 : i32
    %c0_i32_1 = arith.constant 0 : i32
    return %c0_i32, %c0_i32_0 : i32, i32
  }
  func.func @transform_3(%arg0: i32) -> (i32, i32, i32) {
    %c0_i32 = arith.constant 0 : i32
    %c0_i32_0 = arith.constant 0 : i32
    %c0_i32_1 = arith.constant 0 : i32
    %c0_i32_2 = arith.constant 0 : i32
    return %c0_i32, %c0_i32_0, %c0_i32_1 : i32, i32, i32
  }
  func.func @transform_4(%arg0: i32) -> (i32, i32) {
    %c0_i32 = arith.constant 0 : i32
    %c0_i32_0 = arith.constant 0 : i32
    %c0_i32_1 = arith.constant 0 : i32
    return %c0_i32, %c0_i32_0 : i32, i32
  }
  func.func @transform_5(%arg0: i32) -> (i32, i32, i32) {
    %c0_i32 = arith.constant 0 : i32
    %c0_i32_0 = arith.constant 0 : i32
    %c0_i32_1 = arith.constant 0 : i32
    %c0_i32_2 = arith.constant 0 : i32
    return %c0_i32, %c0_i32_0, %c0_i32_1 : i32, i32, i32
  }
  func.func @transform_6(%arg0: i32) -> (i32, i32) {
    %c0_i32 = arith.constant 0 : i32
    %c0_i32_0 = arith.constant 0 : i32
    %c0_i32_1 = arith.constant 0 : i32
    return %c0_i32, %c0_i32_0 : i32, i32
  }
  func.func @transform_7(%arg0: i32) -> (i32, i32, i32) {
    %c0_i32 = arith.constant 0 : i32
    %c0_i32_0 = arith.constant 0 : i32
    %c0_i32_1 = arith.constant 0 : i32
    return %arg0, %c0_i32, %c0_i32_0 : i32, i32, i32
  }
}

module attributes {stable_mosaic.version = 11 : i64} {
  func.func @_enc_stage_kernel(%arg0: i32, %arg1: memref<1x18x288xf32, #tpu.memory_space<vmem>>, %arg2: memref<9x17xf32, #tpu.memory_space<vmem>>, %arg3: memref<272x144xf32, #tpu.memory_space<vmem>>, %arg4: memref<3x144x224xbf16, #tpu.memory_space<vmem>>, %arg5: memref<1x224xf32, #tpu.memory_space<vmem>>, %arg6: memref<3x224x160xbf16, #tpu.memory_space<vmem>>, %arg7: memref<1x160xf32, #tpu.memory_space<vmem>>, %arg8: memref<1x5x160xf32, #tpu.memory_space<vmem>>) attributes {dimension_semantics = [#tpu.dimension_semantics<parallel>], iteration_bounds = array<i64: 2>, scalar_prefetch = 0 : i64, scratch_operands = 0 : i64, tpu.core_type = #tpu.core_type<tc>, window_params = [{transform_indices = @transform_0, window_bounds = array<i64: 1, 18, 288>}, {pipeline_mode = #tpu.pipeline_mode<synchronous>, transform_indices = @transform_1, window_bounds = array<i64: 9, 17>}, {pipeline_mode = #tpu.pipeline_mode<synchronous>, transform_indices = @transform_2, window_bounds = array<i64: 272, 144>}, {pipeline_mode = #tpu.pipeline_mode<synchronous>, transform_indices = @transform_3, window_bounds = array<i64: 3, 144, 224>}, {pipeline_mode = #tpu.pipeline_mode<synchronous>, transform_indices = @transform_4, window_bounds = array<i64: 1, 224>}, {pipeline_mode = #tpu.pipeline_mode<synchronous>, transform_indices = @transform_5, window_bounds = array<i64: 3, 224, 160>}, {pipeline_mode = #tpu.pipeline_mode<synchronous>, transform_indices = @transform_6, window_bounds = array<i64: 1, 160>}, {transform_indices = @transform_7, window_bounds = array<i64: 1, 5, 160>}]} {
    %c0 = arith.constant 0 : index
    %c0_0 = arith.constant 0 : index
    %c0_1 = arith.constant 0 : index
    %0 = vector.load %arg1[%c0, %c0_0, %c0_1] : memref<1x18x288xf32, #tpu.memory_space<vmem>>, vector<1x18x288xf32>
    %1 = vector.shape_cast %0 : vector<1x18x288xf32> to vector<18x288xf32>
    %2 = vector.extract_strided_slice %1 {offsets = [0, 0], sizes = [17, 288], strides = [1, 1]} : vector<18x288xf32> to vector<17x288xf32>
    %3 = vector.extract_strided_slice %1 {offsets = [1, 0], sizes = [17, 288], strides = [1, 1]} : vector<18x288xf32> to vector<17x288xf32>
    %4 = arith.maximumf %2, %3 : vector<17x288xf32>
    %c0_2 = arith.constant 0 : index
    %c0_3 = arith.constant 0 : index
    %5 = vector.load %arg2[%c0_2, %c0_3] : memref<9x17xf32, #tpu.memory_space<vmem>>, vector<9x17xf32>
    %cst = arith.constant dense<0.000000e+00> : vector<9x288xf32>
    %6 = tpu.matmul %5, %4, %cst {dimension_numbers = #tpu.dot_dimension_numbers<[1], [0], [0], [1], [0, 0, 1, 1], [], []>} : vector<9x17xf32>, vector<17x288xf32>, vector<9x288xf32> -> vector<9x288xf32>
    %7 = vector.extract_strided_slice %6 {offsets = [0, 0], sizes = [9, 272], strides = [1, 1]} : vector<9x288xf32> to vector<9x272xf32>
    %8 = vector.extract_strided_slice %6 {offsets = [0, 16], sizes = [9, 272], strides = [1, 1]} : vector<9x288xf32> to vector<9x272xf32>
    %9 = arith.maximumf %7, %8 : vector<9x272xf32>
    %c0_4 = arith.constant 0 : index
    %c0_5 = arith.constant 0 : index
    %10 = vector.load %arg3[%c0_4, %c0_5] : memref<272x144xf32, #tpu.memory_space<vmem>>, vector<272x144xf32>
    %cst_6 = arith.constant dense<0.000000e+00> : vector<9x144xf32>
    %11 = tpu.matmul %9, %10, %cst_6 {dimension_numbers = #tpu.dot_dimension_numbers<[1], [0], [0], [1], [0, 0, 1, 1], [], []>} : vector<9x272xf32>, vector<272x144xf32>, vector<9x144xf32> -> vector<9x144xf32>
    %12 = vector.extract_strided_slice %11 {offsets = [0, 0], sizes = [7, 144], strides = [1, 1]} : vector<9x144xf32> to vector<7x144xf32>
    %13 = arith.truncf %12 : vector<7x144xf32> to vector<7x144xbf16>
    %c0_7 = arith.constant 0 : index
    %c0_8 = arith.constant 0 : index
    %c0_9 = arith.constant 0 : index
    %14 = vector.load %arg4[%c0_7, %c0_8, %c0_9] : memref<3x144x224xbf16, #tpu.memory_space<vmem>>, vector<1x144x224xbf16>
    %15 = vector.shape_cast %14 : vector<1x144x224xbf16> to vector<144x224xbf16>
    %cst_10 = arith.constant dense<0.000000e+00> : vector<7x224xf32>
    %16 = tpu.matmul %13, %15, %cst_10 {dimension_numbers = #tpu.dot_dimension_numbers<[1], [0], [0], [1], [0, 0, 1, 1], [], []>} : vector<7x144xbf16>, vector<144x224xbf16>, vector<7x224xf32> -> vector<7x224xf32>
    %17 = vector.extract_strided_slice %11 {offsets = [1, 0], sizes = [7, 144], strides = [1, 1]} : vector<9x144xf32> to vector<7x144xf32>
    %18 = arith.truncf %17 : vector<7x144xf32> to vector<7x144xbf16>
    %c1 = arith.constant 1 : index
    %c0_11 = arith.constant 0 : index
    %c0_12 = arith.constant 0 : index
    %19 = vector.load %arg4[%c1, %c0_11, %c0_12] : memref<3x144x224xbf16, #tpu.memory_space<vmem>>, vector<1x144x224xbf16>
    %20 = vector.shape_cast %19 : vector<1x144x224xbf16> to vector<144x224xbf16>
    %cst_13 = arith.constant dense<0.000000e+00> : vector<7x224xf32>
    %21 = tpu.matmul %18, %20, %cst_13 {dimension_numbers = #tpu.dot_dimension_numbers<[1], [0], [0], [1], [0, 0, 1, 1], [], []>} : vector<7x144xbf16>, vector<144x224xbf16>, vector<7x224xf32> -> vector<7x224xf32>
    %22 = arith.addf %16, %21 : vector<7x224xf32>
    %23 = vector.extract_strided_slice %11 {offsets = [2, 0], sizes = [7, 144], strides = [1, 1]} : vector<9x144xf32> to vector<7x144xf32>
    %24 = arith.truncf %23 : vector<7x144xf32> to vector<7x144xbf16>
    %c2 = arith.constant 2 : index
    %c0_14 = arith.constant 0 : index
    %c0_15 = arith.constant 0 : index
    %25 = vector.load %arg4[%c2, %c0_14, %c0_15] : memref<3x144x224xbf16, #tpu.memory_space<vmem>>, vector<1x144x224xbf16>
    %26 = vector.shape_cast %25 : vector<1x144x224xbf16> to vector<144x224xbf16>
    %cst_16 = arith.constant dense<0.000000e+00> : vector<7x224xf32>
    %27 = tpu.matmul %24, %26, %cst_16 {dimension_numbers = #tpu.dot_dimension_numbers<[1], [0], [0], [1], [0, 0, 1, 1], [], []>} : vector<7x144xbf16>, vector<144x224xbf16>, vector<7x224xf32> -> vector<7x224xf32>
    %28 = arith.addf %22, %27 : vector<7x224xf32>
    %c0_17 = arith.constant 0 : index
    %c0_18 = arith.constant 0 : index
    %29 = vector.load %arg5[%c0_17, %c0_18] : memref<1x224xf32, #tpu.memory_space<vmem>>, vector<1x224xf32>
    %30 = vector.broadcast %29 : vector<1x224xf32> to vector<7x224xf32>
    %31 = arith.addf %28, %30 : vector<7x224xf32>
    %cst_19 = arith.constant 0.000000e+00 : f32
    %32 = vector.broadcast %cst_19 : f32 to vector<7x224xf32>
    %33 = arith.maximumf %31, %32 : vector<7x224xf32>
    %34 = vector.extract_strided_slice %33 {offsets = [0, 0], sizes = [5, 224], strides = [1, 1]} : vector<7x224xf32> to vector<5x224xf32>
    %35 = arith.truncf %34 : vector<5x224xf32> to vector<5x224xbf16>
    %c0_20 = arith.constant 0 : index
    %c0_21 = arith.constant 0 : index
    %c0_22 = arith.constant 0 : index
    %36 = vector.load %arg6[%c0_20, %c0_21, %c0_22] : memref<3x224x160xbf16, #tpu.memory_space<vmem>>, vector<1x224x160xbf16>
    %37 = vector.shape_cast %36 : vector<1x224x160xbf16> to vector<224x160xbf16>
    %cst_23 = arith.constant dense<0.000000e+00> : vector<5x160xf32>
    %38 = tpu.matmul %35, %37, %cst_23 {dimension_numbers = #tpu.dot_dimension_numbers<[1], [0], [0], [1], [0, 0, 1, 1], [], []>} : vector<5x224xbf16>, vector<224x160xbf16>, vector<5x160xf32> -> vector<5x160xf32>
    %39 = vector.extract_strided_slice %33 {offsets = [1, 0], sizes = [5, 224], strides = [1, 1]} : vector<7x224xf32> to vector<5x224xf32>
    %40 = arith.truncf %39 : vector<5x224xf32> to vector<5x224xbf16>
    %c1_24 = arith.constant 1 : index
    %c0_25 = arith.constant 0 : index
    %c0_26 = arith.constant 0 : index
    %41 = vector.load %arg6[%c1_24, %c0_25, %c0_26] : memref<3x224x160xbf16, #tpu.memory_space<vmem>>, vector<1x224x160xbf16>
    %42 = vector.shape_cast %41 : vector<1x224x160xbf16> to vector<224x160xbf16>
    %cst_27 = arith.constant dense<0.000000e+00> : vector<5x160xf32>
    %43 = tpu.matmul %40, %42, %cst_27 {dimension_numbers = #tpu.dot_dimension_numbers<[1], [0], [0], [1], [0, 0, 1, 1], [], []>} : vector<5x224xbf16>, vector<224x160xbf16>, vector<5x160xf32> -> vector<5x160xf32>
    %44 = arith.addf %38, %43 : vector<5x160xf32>
    %45 = vector.extract_strided_slice %33 {offsets = [2, 0], sizes = [5, 224], strides = [1, 1]} : vector<7x224xf32> to vector<5x224xf32>
    %46 = arith.truncf %45 : vector<5x224xf32> to vector<5x224xbf16>
    %c2_28 = arith.constant 2 : index
    %c0_29 = arith.constant 0 : index
    %c0_30 = arith.constant 0 : index
    %47 = vector.load %arg6[%c2_28, %c0_29, %c0_30] : memref<3x224x160xbf16, #tpu.memory_space<vmem>>, vector<1x224x160xbf16>
    %48 = vector.shape_cast %47 : vector<1x224x160xbf16> to vector<224x160xbf16>
    %cst_31 = arith.constant dense<0.000000e+00> : vector<5x160xf32>
    %49 = tpu.matmul %46, %48, %cst_31 {dimension_numbers = #tpu.dot_dimension_numbers<[1], [0], [0], [1], [0, 0, 1, 1], [], []>} : vector<5x224xbf16>, vector<224x160xbf16>, vector<5x160xf32> -> vector<5x160xf32>
    %50 = arith.addf %44, %49 : vector<5x160xf32>
    %c0_32 = arith.constant 0 : index
    %c0_33 = arith.constant 0 : index
    %51 = vector.load %arg7[%c0_32, %c0_33] : memref<1x160xf32, #tpu.memory_space<vmem>>, vector<1x160xf32>
    %52 = vector.broadcast %51 : vector<1x160xf32> to vector<5x160xf32>
    %53 = arith.addf %50, %52 : vector<5x160xf32>
    %c0_34 = arith.constant 0 : index
    %c0_35 = arith.constant 0 : index
    %c0_36 = arith.constant 0 : index
    %54 = vector.load %arg8[%c0_34, %c0_35, %c0_36] : memref<1x5x160xf32, #tpu.memory_space<vmem>>, vector<1x5x160xf32>
    %55 = vector.shape_cast %54 : vector<1x5x160xf32> to vector<5x160xf32>
    %56 = vector.shape_cast %53 : vector<5x160xf32> to vector<1x5x160xf32>
    tpu.vector_store %arg8[%c0_34, %c0_35, %c0_36], %56 {strides = array<i32>} : memref<1x5x160xf32, #tpu.memory_space<vmem>>, vector<1x5x160xf32>,
    return
  }
  func.func @transform_0(%arg0: i32) -> (i32, i32, i32) {
    %c0_i32 = arith.constant 0 : i32
    %c0_i32_0 = arith.constant 0 : i32
    %c0_i32_1 = arith.constant 0 : i32
    return %arg0, %c0_i32, %c0_i32_0 : i32, i32, i32
  }
  func.func @transform_1(%arg0: i32) -> (i32, i32) {
    %c0_i32 = arith.constant 0 : i32
    %c0_i32_0 = arith.constant 0 : i32
    %c0_i32_1 = arith.constant 0 : i32
    return %c0_i32, %c0_i32_0 : i32, i32
  }
  func.func @transform_2(%arg0: i32) -> (i32, i32) {
    %c0_i32 = arith.constant 0 : i32
    %c0_i32_0 = arith.constant 0 : i32
    %c0_i32_1 = arith.constant 0 : i32
    return %c0_i32, %c0_i32_0 : i32, i32
  }
  func.func @transform_3(%arg0: i32) -> (i32, i32, i32) {
    %c0_i32 = arith.constant 0 : i32
    %c0_i32_0 = arith.constant 0 : i32
    %c0_i32_1 = arith.constant 0 : i32
    %c0_i32_2 = arith.constant 0 : i32
    return %c0_i32, %c0_i32_0, %c0_i32_1 : i32, i32, i32
  }
  func.func @transform_4(%arg0: i32) -> (i32, i32) {
    %c0_i32 = arith.constant 0 : i32
    %c0_i32_0 = arith.constant 0 : i32
    %c0_i32_1 = arith.constant 0 : i32
    return %c0_i32, %c0_i32_0 : i32, i32
  }
  func.func @transform_5(%arg0: i32) -> (i32, i32, i32) {
    %c0_i32 = arith.constant 0 : i32
    %c0_i32_0 = arith.constant 0 : i32
    %c0_i32_1 = arith.constant 0 : i32
    %c0_i32_2 = arith.constant 0 : i32
    return %c0_i32, %c0_i32_0, %c0_i32_1 : i32, i32, i32
  }
  func.func @transform_6(%arg0: i32) -> (i32, i32) {
    %c0_i32 = arith.constant 0 : i32
    %c0_i32_0 = arith.constant 0 : i32
    %c0_i32_1 = arith.constant 0 : i32
    return %c0_i32, %c0_i32_0 : i32, i32
  }
  func.func @transform_7(%arg0: i32) -> (i32, i32, i32) {
    %c0_i32 = arith.constant 0 : i32
    %c0_i32_0 = arith.constant 0 : i32
    %c0_i32_1 = arith.constant 0 : i32
    return %arg0, %c0_i32, %c0_i32_0 : i32, i32, i32
  }
}

module attributes {stable_mosaic.version = 11 : i64} {
  func.func @_dec_stage_kernel(%arg0: i32, %arg1: memref<1x5x160xf32, #tpu.memory_space<vmem>>, %arg2: memref<1x18x288xf32, #tpu.memory_space<vmem>>, %arg3: memref<10x5xf32, #tpu.memory_space<vmem>>, %arg4: memref<10x5xf32, #tpu.memory_space<vmem>>, %arg5: memref<2x160x160xbf16, #tpu.memory_space<vmem>>, %arg6: memref<1x160xf32, #tpu.memory_space<vmem>>, %arg7: memref<3x160x128xbf16, #tpu.memory_space<vmem>>, %arg8: memref<3x160x128xbf16, #tpu.memory_space<vmem>>, %arg9: memref<1x128xf32, #tpu.memory_space<vmem>>, %arg10: memref<3x128x96xbf16, #tpu.memory_space<vmem>>, %arg11: memref<1x96xf32, #tpu.memory_space<vmem>>, %arg12: memref<1x6x96xf32, #tpu.memory_space<vmem>>) attributes {dimension_semantics = [#tpu.dimension_semantics<parallel>], iteration_bounds = array<i64: 2>, scalar_prefetch = 0 : i64, scratch_operands = 0 : i64, tpu.core_type = #tpu.core_type<tc>, window_params = [{transform_indices = @transform_0, window_bounds = array<i64: 1, 5, 160>}, {transform_indices = @transform_1, window_bounds = array<i64: 1, 18, 288>}, {pipeline_mode = #tpu.pipeline_mode<synchronous>, transform_indices = @transform_2, window_bounds = array<i64: 10, 5>}, {pipeline_mode = #tpu.pipeline_mode<synchronous>, transform_indices = @transform_3, window_bounds = array<i64: 10, 5>}, {pipeline_mode = #tpu.pipeline_mode<synchronous>, transform_indices = @transform_4, window_bounds = array<i64: 2, 160, 160>}, {pipeline_mode = #tpu.pipeline_mode<synchronous>, transform_indices = @transform_5, window_bounds = array<i64: 1, 160>}, {pipeline_mode = #tpu.pipeline_mode<synchronous>, transform_indices = @transform_6, window_bounds = array<i64: 3, 160, 128>}, {pipeline_mode = #tpu.pipeline_mode<synchronous>, transform_indices = @transform_7, window_bounds = array<i64: 3, 160, 128>}, {pipeline_mode = #tpu.pipeline_mode<synchronous>, transform_indices = @transform_8, window_bounds = array<i64: 1, 128>}, {pipeline_mode = #tpu.pipeline_mode<synchronous>, transform_indices = @transform_9, window_bounds = array<i64: 3, 128, 96>}, {pipeline_mode = #tpu.pipeline_mode<synchronous>, transform_indices = @transform_10, window_bounds = array<i64: 1, 96>}, {transform_indices = @transform_11, window_bounds = array<i64: 1, 6, 96>}]} {
    %c0 = arith.constant 0 : index
    %c0_0 = arith.constant 0 : index
    %c0_1 = arith.constant 0 : index
    %0 = vector.load %arg1[%c0, %c0_0, %c0_1] : memref<1x5x160xf32, #tpu.memory_space<vmem>>, vector<1x5x160xf32>
    %1 = vector.shape_cast %0 : vector<1x5x160xf32> to vector<5x160xf32>
    %2 = arith.truncf %1 : vector<5x160xf32> to vector<5x160xbf16>
    %c0_2 = arith.constant 0 : index
    %c0_3 = arith.constant 0 : index
    %c0_4 = arith.constant 0 : index
    %3 = vector.load %arg5[%c0_2, %c0_3, %c0_4] : memref<2x160x160xbf16, #tpu.memory_space<vmem>>, vector<1x160x160xbf16>
    %4 = vector.shape_cast %3 : vector<1x160x160xbf16> to vector<160x160xbf16>
    %cst = arith.constant dense<0.000000e+00> : vector<5x160xf32>
    %5 = tpu.matmul %2, %4, %cst {dimension_numbers = #tpu.dot_dimension_numbers<[1], [0], [0], [1], [0, 0, 1, 1], [], []>} : vector<5x160xbf16>, vector<160x160xbf16>, vector<5x160xf32> -> vector<5x160xf32>
    %c1 = arith.constant 1 : index
    %c0_5 = arith.constant 0 : index
    %c0_6 = arith.constant 0 : index
    %6 = vector.load %arg5[%c1, %c0_5, %c0_6] : memref<2x160x160xbf16, #tpu.memory_space<vmem>>, vector<1x160x160xbf16>
    %7 = vector.shape_cast %6 : vector<1x160x160xbf16> to vector<160x160xbf16>
    %cst_7 = arith.constant dense<0.000000e+00> : vector<5x160xf32>
    %8 = tpu.matmul %2, %7, %cst_7 {dimension_numbers = #tpu.dot_dimension_numbers<[1], [0], [0], [1], [0, 0, 1, 1], [], []>} : vector<5x160xbf16>, vector<160x160xbf16>, vector<5x160xf32> -> vector<5x160xf32>
    %c0_8 = arith.constant 0 : index
    %c0_9 = arith.constant 0 : index
    %9 = vector.load %arg3[%c0_8, %c0_9] : memref<10x5xf32, #tpu.memory_space<vmem>>, vector<10x5xf32>
    %cst_10 = arith.constant dense<0.000000e+00> : vector<10x160xf32>
    %10 = tpu.matmul %9, %5, %cst_10 {dimension_numbers = #tpu.dot_dimension_numbers<[1], [0], [0], [1], [0, 0, 1, 1], [], []>} : vector<10x5xf32>, vector<5x160xf32>, vector<10x160xf32> -> vector<10x160xf32>
    %c0_11 = arith.constant 0 : index
    %c0_12 = arith.constant 0 : index
    %11 = vector.load %arg4[%c0_11, %c0_12] : memref<10x5xf32, #tpu.memory_space<vmem>>, vector<10x5xf32>
    %cst_13 = arith.constant dense<0.000000e+00> : vector<10x160xf32>
    %12 = tpu.matmul %11, %8, %cst_13 {dimension_numbers = #tpu.dot_dimension_numbers<[1], [0], [0], [1], [0, 0, 1, 1], [], []>} : vector<10x5xf32>, vector<5x160xf32>, vector<10x160xf32> -> vector<10x160xf32>
    %13 = arith.addf %10, %12 : vector<10x160xf32>
    %c0_14 = arith.constant 0 : index
    %c0_15 = arith.constant 0 : index
    %14 = vector.load %arg6[%c0_14, %c0_15] : memref<1x160xf32, #tpu.memory_space<vmem>>, vector<1x160xf32>
    %15 = vector.broadcast %14 : vector<1x160xf32> to vector<10x160xf32>
    %16 = arith.addf %13, %15 : vector<10x160xf32>
    %c0_16 = arith.constant 0 : index
    %c4 = arith.constant 4 : index
    %c64 = arith.constant 64 : index
    %17 = vector.load %arg2[%c0_16, %c4, %c64] : memref<1x18x288xf32, #tpu.memory_space<vmem>>, vector<1x10x160xf32>
    %18 = vector.shape_cast %17 : vector<1x10x160xf32> to vector<10x160xf32>
    %19 = vector.extract_strided_slice %16 {offsets = [0, 0], sizes = [8, 160], strides = [1, 1]} : vector<10x160xf32> to vector<8x160xf32>
    %20 = arith.truncf %19 : vector<8x160xf32> to vector<8x160xbf16>
    %c0_17 = arith.constant 0 : index
    %c0_18 = arith.constant 0 : index
    %c0_19 = arith.constant 0 : index
    %21 = vector.load %arg7[%c0_17, %c0_18, %c0_19] : memref<3x160x128xbf16, #tpu.memory_space<vmem>>, vector<1x160x128xbf16>
    %22 = vector.shape_cast %21 : vector<1x160x128xbf16> to vector<160x128xbf16>
    %cst_20 = arith.constant dense<0.000000e+00> : vector<8x128xf32>
    %23 = tpu.matmul %20, %22, %cst_20 {dimension_numbers = #tpu.dot_dimension_numbers<[1], [0], [0], [1], [0, 0, 1, 1], [], []>} : vector<8x160xbf16>, vector<160x128xbf16>, vector<8x128xf32> -> vector<8x128xf32>
    %24 = vector.extract_strided_slice %16 {offsets = [1, 0], sizes = [8, 160], strides = [1, 1]} : vector<10x160xf32> to vector<8x160xf32>
    %25 = arith.truncf %24 : vector<8x160xf32> to vector<8x160xbf16>
    %c1_21 = arith.constant 1 : index
    %c0_22 = arith.constant 0 : index
    %c0_23 = arith.constant 0 : index
    %26 = vector.load %arg7[%c1_21, %c0_22, %c0_23] : memref<3x160x128xbf16, #tpu.memory_space<vmem>>, vector<1x160x128xbf16>
    %27 = vector.shape_cast %26 : vector<1x160x128xbf16> to vector<160x128xbf16>
    %cst_24 = arith.constant dense<0.000000e+00> : vector<8x128xf32>
    %28 = tpu.matmul %25, %27, %cst_24 {dimension_numbers = #tpu.dot_dimension_numbers<[1], [0], [0], [1], [0, 0, 1, 1], [], []>} : vector<8x160xbf16>, vector<160x128xbf16>, vector<8x128xf32> -> vector<8x128xf32>
    %29 = arith.addf %23, %28 : vector<8x128xf32>
    %30 = vector.extract_strided_slice %16 {offsets = [2, 0], sizes = [8, 160], strides = [1, 1]} : vector<10x160xf32> to vector<8x160xf32>
    %31 = arith.truncf %30 : vector<8x160xf32> to vector<8x160xbf16>
    %c2 = arith.constant 2 : index
    %c0_25 = arith.constant 0 : index
    %c0_26 = arith.constant 0 : index
    %32 = vector.load %arg7[%c2, %c0_25, %c0_26] : memref<3x160x128xbf16, #tpu.memory_space<vmem>>, vector<1x160x128xbf16>
    %33 = vector.shape_cast %32 : vector<1x160x128xbf16> to vector<160x128xbf16>
    %cst_27 = arith.constant dense<0.000000e+00> : vector<8x128xf32>
    %34 = tpu.matmul %31, %33, %cst_27 {dimension_numbers = #tpu.dot_dimension_numbers<[1], [0], [0], [1], [0, 0, 1, 1], [], []>} : vector<8x160xbf16>, vector<160x128xbf16>, vector<8x128xf32> -> vector<8x128xf32>
    %35 = arith.addf %29, %34 : vector<8x128xf32>
    %36 = vector.extract_strided_slice %18 {offsets = [0, 0], sizes = [8, 160], strides = [1, 1]} : vector<10x160xf32> to vector<8x160xf32>
    %37 = arith.truncf %36 : vector<8x160xf32> to vector<8x160xbf16>
    %c0_28 = arith.constant 0 : index
    %c0_29 = arith.constant 0 : index
    %c0_30 = arith.constant 0 : index
    %38 = vector.load %arg8[%c0_28, %c0_29, %c0_30] : memref<3x160x128xbf16, #tpu.memory_space<vmem>>, vector<1x160x128xbf16>
    %39 = vector.shape_cast %38 : vector<1x160x128xbf16> to vector<160x128xbf16>
    %cst_31 = arith.constant dense<0.000000e+00> : vector<8x128xf32>
    %40 = tpu.matmul %37, %39, %cst_31 {dimension_numbers = #tpu.dot_dimension_numbers<[1], [0], [0], [1], [0, 0, 1, 1], [], []>} : vector<8x160xbf16>, vector<160x128xbf16>, vector<8x128xf32> -> vector<8x128xf32>
    %41 = vector.extract_strided_slice %18 {offsets = [1, 0], sizes = [8, 160], strides = [1, 1]} : vector<10x160xf32> to vector<8x160xf32>
    %42 = arith.truncf %41 : vector<8x160xf32> to vector<8x160xbf16>
    %c1_32 = arith.constant 1 : index
    %c0_33 = arith.constant 0 : index
    %c0_34 = arith.constant 0 : index
    %43 = vector.load %arg8[%c1_32, %c0_33, %c0_34] : memref<3x160x128xbf16, #tpu.memory_space<vmem>>, vector<1x160x128xbf16>
    %44 = vector.shape_cast %43 : vector<1x160x128xbf16> to vector<160x128xbf16>
    %cst_35 = arith.constant dense<0.000000e+00> : vector<8x128xf32>
    %45 = tpu.matmul %42, %44, %cst_35 {dimension_numbers = #tpu.dot_dimension_numbers<[1], [0], [0], [1], [0, 0, 1, 1], [], []>} : vector<8x160xbf16>, vector<160x128xbf16>, vector<8x128xf32> -> vector<8x128xf32>
    %46 = arith.addf %40, %45 : vector<8x128xf32>
    %47 = vector.extract_strided_slice %18 {offsets = [2, 0], sizes = [8, 160], strides = [1, 1]} : vector<10x160xf32> to vector<8x160xf32>
    %48 = arith.truncf %47 : vector<8x160xf32> to vector<8x160xbf16>
    %c2_36 = arith.constant 2 : index
    %c0_37 = arith.constant 0 : index
    %c0_38 = arith.constant 0 : index
    %49 = vector.load %arg8[%c2_36, %c0_37, %c0_38] : memref<3x160x128xbf16, #tpu.memory_space<vmem>>, vector<1x160x128xbf16>
    %50 = vector.shape_cast %49 : vector<1x160x128xbf16> to vector<160x128xbf16>
    %cst_39 = arith.constant dense<0.000000e+00> : vector<8x128xf32>
    %51 = tpu.matmul %48, %50, %cst_39 {dimension_numbers = #tpu.dot_dimension_numbers<[1], [0], [0], [1], [0, 0, 1, 1], [], []>} : vector<8x160xbf16>, vector<160x128xbf16>, vector<8x128xf32> -> vector<8x128xf32>
    %52 = arith.addf %46, %51 : vector<8x128xf32>
    %53 = arith.addf %35, %52 : vector<8x128xf32>
    %c0_40 = arith.constant 0 : index
    %c0_41 = arith.constant 0 : index
    %54 = vector.load %arg9[%c0_40, %c0_41] : memref<1x128xf32, #tpu.memory_space<vmem>>, vector<1x128xf32>
    %55 = vector.broadcast %54 : vector<1x128xf32> to vector<8x128xf32>
    %56 = arith.addf %53, %55 : vector<8x128xf32>
    %cst_42 = arith.constant 0.000000e+00 : f32
    %57 = vector.broadcast %cst_42 : f32 to vector<8x128xf32>
    %58 = arith.maximumf %56, %57 : vector<8x128xf32>
    %59 = vector.extract_strided_slice %58 {offsets = [0, 0], sizes = [6, 128], strides = [1, 1]} : vector<8x128xf32> to vector<6x128xf32>
    %60 = arith.truncf %59 : vector<6x128xf32> to vector<6x128xbf16>
    %c0_43 = arith.constant 0 : index
    %c0_44 = arith.constant 0 : index
    %c0_45 = arith.constant 0 : index
    %61 = vector.load %arg10[%c0_43, %c0_44, %c0_45] : memref<3x128x96xbf16, #tpu.memory_space<vmem>>, vector<1x128x96xbf16>
    %62 = vector.shape_cast %61 : vector<1x128x96xbf16> to vector<128x96xbf16>
    %cst_46 = arith.constant dense<0.000000e+00> : vector<6x96xf32>
    %63 = tpu.matmul %60, %62, %cst_46 {dimension_numbers = #tpu.dot_dimension_numbers<[1], [0], [0], [1], [0, 0, 1, 1], [], []>} : vector<6x128xbf16>, vector<128x96xbf16>, vector<6x96xf32> -> vector<6x96xf32>
    %64 = vector.extract_strided_slice %58 {offsets = [1, 0], sizes = [6, 128], strides = [1, 1]} : vector<8x128xf32> to vector<6x128xf32>
    %65 = arith.truncf %64 : vector<6x128xf32> to vector<6x128xbf16>
    %c1_47 = arith.constant 1 : index
    %c0_48 = arith.constant 0 : index
    %c0_49 = arith.constant 0 : index
    %66 = vector.load %arg10[%c1_47, %c0_48, %c0_49] : memref<3x128x96xbf16, #tpu.memory_space<vmem>>, vector<1x128x96xbf16>
    %67 = vector.shape_cast %66 : vector<1x128x96xbf16> to vector<128x96xbf16>
    %cst_50 = arith.constant dense<0.000000e+00> : vector<6x96xf32>
    %68 = tpu.matmul %65, %67, %cst_50 {dimension_numbers = #tpu.dot_dimension_numbers<[1], [0], [0], [1], [0, 0, 1, 1], [], []>} : vector<6x128xbf16>, vector<128x96xbf16>, vector<6x96xf32> -> vector<6x96xf32>
    %69 = arith.addf %63, %68 : vector<6x96xf32>
    %70 = vector.extract_strided_slice %58 {offsets = [2, 0], sizes = [6, 128], strides = [1, 1]} : vector<8x128xf32> to vector<6x128xf32>
    %71 = arith.truncf %70 : vector<6x128xf32> to vector<6x128xbf16>
    %c2_51 = arith.constant 2 : index
    %c0_52 = arith.constant 0 : index
    %c0_53 = arith.constant 0 : index
    %72 = vector.load %arg10[%c2_51, %c0_52, %c0_53] : memref<3x128x96xbf16, #tpu.memory_space<vmem>>, vector<1x128x96xbf16>
    %73 = vector.shape_cast %72 : vector<1x128x96xbf16> to vector<128x96xbf16>
    %cst_54 = arith.constant dense<0.000000e+00> : vector<6x96xf32>
    %74 = tpu.matmul %71, %73, %cst_54 {dimension_numbers = #tpu.dot_dimension_numbers<[1], [0], [0], [1], [0, 0, 1, 1], [], []>} : vector<6x128xbf16>, vector<128x96xbf16>, vector<6x96xf32> -> vector<6x96xf32>
    %75 = arith.addf %69, %74 : vector<6x96xf32>
    %c0_55 = arith.constant 0 : index
    %c0_56 = arith.constant 0 : index
    %76 = vector.load %arg11[%c0_55, %c0_56] : memref<1x96xf32, #tpu.memory_space<vmem>>, vector<1x96xf32>
    %77 = vector.broadcast %76 : vector<1x96xf32> to vector<6x96xf32>
    %78 = arith.addf %75, %77 : vector<6x96xf32>
    %c0_57 = arith.constant 0 : index
    %c0_58 = arith.constant 0 : index
    %c0_59 = arith.constant 0 : index
    %79 = vector.load %arg12[%c0_57, %c0_58, %c0_59] : memref<1x6x96xf32, #tpu.memory_space<vmem>>, vector<1x6x96xf32>
    %80 = vector.shape_cast %79 : vector<1x6x96xf32> to vector<6x96xf32>
    %81 = vector.shape_cast %78 : vector<6x96xf32> to vector<1x6x96xf32>
    tpu.vector_store %arg12[%c0_57, %c0_58, %c0_59], %81 {strides = array<i32>} : memref<1x6x96xf32, #tpu.memory_space<vmem>>, vector<1x6x96xf32>,
    return
  }
  func.func @transform_0(%arg0: i32) -> (i32, i32, i32) {
    %c0_i32 = arith.constant 0 : i32
    %c0_i32_0 = arith.constant 0 : i32
    %c0_i32_1 = arith.constant 0 : i32
    return %arg0, %c0_i32, %c0_i32_0 : i32, i32, i32
  }
  func.func @transform_1(%arg0: i32) -> (i32, i32, i32) {
    %c0_i32 = arith.constant 0 : i32
    %c0_i32_0 = arith.constant 0 : i32
    %c0_i32_1 = arith.constant 0 : i32
    return %arg0, %c0_i32, %c0_i32_0 : i32, i32, i32
  }
  func.func @transform_2(%arg0: i32) -> (i32, i32) {
    %c0_i32 = arith.constant 0 : i32
    %c0_i32_0 = arith.constant 0 : i32
    %c0_i32_1 = arith.constant 0 : i32
    return %c0_i32, %c0_i32_0 : i32, i32
  }
  func.func @transform_3(%arg0: i32) -> (i32, i32) {
    %c0_i32 = arith.constant 0 : i32
    %c0_i32_0 = arith.constant 0 : i32
    %c0_i32_1 = arith.constant 0 : i32
    return %c0_i32, %c0_i32_0 : i32, i32
  }
  func.func @transform_4(%arg0: i32) -> (i32, i32, i32) {
    %c0_i32 = arith.constant 0 : i32
    %c0_i32_0 = arith.constant 0 : i32
    %c0_i32_1 = arith.constant 0 : i32
    %c0_i32_2 = arith.constant 0 : i32
    return %c0_i32, %c0_i32_0, %c0_i32_1 : i32, i32, i32
  }
  func.func @transform_5(%arg0: i32) -> (i32, i32) {
    %c0_i32 = arith.constant 0 : i32
    %c0_i32_0 = arith.constant 0 : i32
    %c0_i32_1 = arith.constant 0 : i32
    return %c0_i32, %c0_i32_0 : i32, i32
  }
  func.func @transform_6(%arg0: i32) -> (i32, i32, i32) {
    %c0_i32 = arith.constant 0 : i32
    %c0_i32_0 = arith.constant 0 : i32
    %c0_i32_1 = arith.constant 0 : i32
    %c0_i32_2 = arith.constant 0 : i32
    return %c0_i32, %c0_i32_0, %c0_i32_1 : i32, i32, i32
  }
  func.func @transform_7(%arg0: i32) -> (i32, i32, i32) {
    %c0_i32 = arith.constant 0 : i32
    %c0_i32_0 = arith.constant 0 : i32
    %c0_i32_1 = arith.constant 0 : i32
    %c0_i32_2 = arith.constant 0 : i32
    return %c0_i32, %c0_i32_0, %c0_i32_1 : i32, i32, i32
  }
  func.func @transform_8(%arg0: i32) -> (i32, i32) {
    %c0_i32 = arith.constant 0 : i32
    %c0_i32_0 = arith.constant 0 : i32
    %c0_i32_1 = arith.constant 0 : i32
    return %c0_i32, %c0_i32_0 : i32, i32
  }
  func.func @transform_9(%arg0: i32) -> (i32, i32, i32) {
    %c0_i32 = arith.constant 0 : i32
    %c0_i32_0 = arith.constant 0 : i32
    %c0_i32_1 = arith.constant 0 : i32
    %c0_i32_2 = arith.constant 0 : i32
    return %c0_i32, %c0_i32_0, %c0_i32_1 : i32, i32, i32
  }
  func.func @transform_10(%arg0: i32) -> (i32, i32) {
    %c0_i32 = arith.constant 0 : i32
    %c0_i32_0 = arith.constant 0 : i32
    %c0_i32_1 = arith.constant 0 : i32
    return %c0_i32, %c0_i32_0 : i32, i32
  }
  func.func @transform_11(%arg0: i32) -> (i32, i32, i32) {
    %c0_i32 = arith.constant 0 : i32
    %c0_i32_0 = arith.constant 0 : i32
    %c0_i32_1 = arith.constant 0 : i32
    return %arg0, %c0_i32, %c0_i32_0 : i32, i32, i32
  }
}

module attributes {stable_mosaic.version = 11 : i64} {
  func.func @_dec_stage_kernel(%arg0: i32, %arg1: memref<1x6x96xf32, #tpu.memory_space<vmem>>, %arg2: memref<1x44x352xf32, #tpu.memory_space<vmem>>, %arg3: memref<12x6xf32, #tpu.memory_space<vmem>>, %arg4: memref<12x6xf32, #tpu.memory_space<vmem>>, %arg5: memref<2x96x96xbf16, #tpu.memory_space<vmem>>, %arg6: memref<1x96xf32, #tpu.memory_space<vmem>>, %arg7: memref<3x96x80xbf16, #tpu.memory_space<vmem>>, %arg8: memref<3x96x80xbf16, #tpu.memory_space<vmem>>, %arg9: memref<1x80xf32, #tpu.memory_space<vmem>>, %arg10: memref<3x80x64xbf16, #tpu.memory_space<vmem>>, %arg11: memref<1x64xf32, #tpu.memory_space<vmem>>, %arg12: memref<64x8xbf16, #tpu.memory_space<vmem>>, %arg13: memref<1x8xf32, #tpu.memory_space<vmem>>, %arg14: memref<1x8x8xf32, #tpu.memory_space<vmem>>) attributes {dimension_semantics = [#tpu.dimension_semantics<parallel>], iteration_bounds = array<i64: 2>, scalar_prefetch = 0 : i64, scratch_operands = 0 : i64, tpu.core_type = #tpu.core_type<tc>, window_params = [{transform_indices = @transform_0, window_bounds = array<i64: 1, 6, 96>}, {transform_indices = @transform_1, window_bounds = array<i64: 1, 44, 352>}, {pipeline_mode = #tpu.pipeline_mode<synchronous>, transform_indices = @transform_2, window_bounds = array<i64: 12, 6>}, {pipeline_mode = #tpu.pipeline_mode<synchronous>, transform_indices = @transform_3, window_bounds = array<i64: 12, 6>}, {pipeline_mode = #tpu.pipeline_mode<synchronous>, transform_indices = @transform_4, window_bounds = array<i64: 2, 96, 96>}, {pipeline_mode = #tpu.pipeline_mode<synchronous>, transform_indices = @transform_5, window_bounds = array<i64: 1, 96>}, {pipeline_mode = #tpu.pipeline_mode<synchronous>, transform_indices = @transform_6, window_bounds = array<i64: 3, 96, 80>}, {pipeline_mode = #tpu.pipeline_mode<synchronous>, transform_indices = @transform_7, window_bounds = array<i64: 3, 96, 80>}, {pipeline_mode = #tpu.pipeline_mode<synchronous>, transform_indices = @transform_8, window_bounds = array<i64: 1, 80>}, {pipeline_mode = #tpu.pipeline_mode<synchronous>, transform_indices = @transform_9, window_bounds = array<i64: 3, 80, 64>}, {pipeline_mode = #tpu.pipeline_mode<synchronous>, transform_indices = @transform_10, window_bounds = array<i64: 1, 64>}, {pipeline_mode = #tpu.pipeline_mode<synchronous>, transform_indices = @transform_11, window_bounds = array<i64: 64, 8>}, {pipeline_mode = #tpu.pipeline_mode<synchronous>, transform_indices = @transform_12, window_bounds = array<i64: 1, 8>}, {transform_indices = @transform_13, window_bounds = array<i64: 1, 8, 8>}]} {
    %c0 = arith.constant 0 : index
    %c0_0 = arith.constant 0 : index
    %c0_1 = arith.constant 0 : index
    %0 = vector.load %arg1[%c0, %c0_0, %c0_1] : memref<1x6x96xf32, #tpu.memory_space<vmem>>, vector<1x6x96xf32>
    %1 = vector.shape_cast %0 : vector<1x6x96xf32> to vector<6x96xf32>
    %2 = arith.truncf %1 : vector<6x96xf32> to vector<6x96xbf16>
    %c0_2 = arith.constant 0 : index
    %c0_3 = arith.constant 0 : index
    %c0_4 = arith.constant 0 : index
    %3 = vector.load %arg5[%c0_2, %c0_3, %c0_4] : memref<2x96x96xbf16, #tpu.memory_space<vmem>>, vector<1x96x96xbf16>
    %4 = vector.shape_cast %3 : vector<1x96x96xbf16> to vector<96x96xbf16>
    %cst = arith.constant dense<0.000000e+00> : vector<6x96xf32>
    %5 = tpu.matmul %2, %4, %cst {dimension_numbers = #tpu.dot_dimension_numbers<[1], [0], [0], [1], [0, 0, 1, 1], [], []>} : vector<6x96xbf16>, vector<96x96xbf16>, vector<6x96xf32> -> vector<6x96xf32>
    %c1 = arith.constant 1 : index
    %c0_5 = arith.constant 0 : index
    %c0_6 = arith.constant 0 : index
    %6 = vector.load %arg5[%c1, %c0_5, %c0_6] : memref<2x96x96xbf16, #tpu.memory_space<vmem>>, vector<1x96x96xbf16>
    %7 = vector.shape_cast %6 : vector<1x96x96xbf16> to vector<96x96xbf16>
    %cst_7 = arith.constant dense<0.000000e+00> : vector<6x96xf32>
    %8 = tpu.matmul %2, %7, %cst_7 {dimension_numbers = #tpu.dot_dimension_numbers<[1], [0], [0], [1], [0, 0, 1, 1], [], []>} : vector<6x96xbf16>, vector<96x96xbf16>, vector<6x96xf32> -> vector<6x96xf32>
    %c0_8 = arith.constant 0 : index
    %c0_9 = arith.constant 0 : index
    %9 = vector.load %arg3[%c0_8, %c0_9] : memref<12x6xf32, #tpu.memory_space<vmem>>, vector<12x6xf32>
    %cst_10 = arith.constant dense<0.000000e+00> : vector<12x96xf32>
    %10 = tpu.matmul %9, %5, %cst_10 {dimension_numbers = #tpu.dot_dimension_numbers<[1], [0], [0], [1], [0, 0, 1, 1], [], []>} : vector<12x6xf32>, vector<6x96xf32>, vector<12x96xf32> -> vector<12x96xf32>
    %c0_11 = arith.constant 0 : index
    %c0_12 = arith.constant 0 : index
    %11 = vector.load %arg4[%c0_11, %c0_12] : memref<12x6xf32, #tpu.memory_space<vmem>>, vector<12x6xf32>
    %cst_13 = arith.constant dense<0.000000e+00> : vector<12x96xf32>
    %12 = tpu.matmul %11, %8, %cst_13 {dimension_numbers = #tpu.dot_dimension_numbers<[1], [0], [0], [1], [0, 0, 1, 1], [], []>} : vector<12x6xf32>, vector<6x96xf32>, vector<12x96xf32> -> vector<12x96xf32>
    %13 = arith.addf %10, %12 : vector<12x96xf32>
    %c0_14 = arith.constant 0 : index
    %c0_15 = arith.constant 0 : index
    %14 = vector.load %arg6[%c0_14, %c0_15] : memref<1x96xf32, #tpu.memory_space<vmem>>, vector<1x96xf32>
    %15 = vector.broadcast %14 : vector<1x96xf32> to vector<12x96xf32>
    %16 = arith.addf %13, %15 : vector<12x96xf32>
    %c0_16 = arith.constant 0 : index
    %c16 = arith.constant 16 : index
    %c128 = arith.constant 128 : index
    %17 = vector.load %arg2[%c0_16, %c16, %c128] : memref<1x44x352xf32, #tpu.memory_space<vmem>>, vector<1x12x96xf32>
    %18 = vector.shape_cast %17 : vector<1x12x96xf32> to vector<12x96xf32>
    %19 = vector.extract_strided_slice %16 {offsets = [0, 0], sizes = [10, 96], strides = [1, 1]} : vector<12x96xf32> to vector<10x96xf32>
    %20 = arith.truncf %19 : vector<10x96xf32> to vector<10x96xbf16>
    %c0_17 = arith.constant 0 : index
    %c0_18 = arith.constant 0 : index
    %c0_19 = arith.constant 0 : index
    %21 = vector.load %arg7[%c0_17, %c0_18, %c0_19] : memref<3x96x80xbf16, #tpu.memory_space<vmem>>, vector<1x96x80xbf16>
    %22 = vector.shape_cast %21 : vector<1x96x80xbf16> to vector<96x80xbf16>
    %cst_20 = arith.constant dense<0.000000e+00> : vector<10x80xf32>
    %23 = tpu.matmul %20, %22, %cst_20 {dimension_numbers = #tpu.dot_dimension_numbers<[1], [0], [0], [1], [0, 0, 1, 1], [], []>} : vector<10x96xbf16>, vector<96x80xbf16>, vector<10x80xf32> -> vector<10x80xf32>
    %24 = vector.extract_strided_slice %16 {offsets = [1, 0], sizes = [10, 96], strides = [1, 1]} : vector<12x96xf32> to vector<10x96xf32>
    %25 = arith.truncf %24 : vector<10x96xf32> to vector<10x96xbf16>
    %c1_21 = arith.constant 1 : index
    %c0_22 = arith.constant 0 : index
    %c0_23 = arith.constant 0 : index
    %26 = vector.load %arg7[%c1_21, %c0_22, %c0_23] : memref<3x96x80xbf16, #tpu.memory_space<vmem>>, vector<1x96x80xbf16>
    %27 = vector.shape_cast %26 : vector<1x96x80xbf16> to vector<96x80xbf16>
    %cst_24 = arith.constant dense<0.000000e+00> : vector<10x80xf32>
    %28 = tpu.matmul %25, %27, %cst_24 {dimension_numbers = #tpu.dot_dimension_numbers<[1], [0], [0], [1], [0, 0, 1, 1], [], []>} : vector<10x96xbf16>, vector<96x80xbf16>, vector<10x80xf32> -> vector<10x80xf32>
    %29 = arith.addf %23, %28 : vector<10x80xf32>
    %30 = vector.extract_strided_slice %16 {offsets = [2, 0], sizes = [10, 96], strides = [1, 1]} : vector<12x96xf32> to vector<10x96xf32>
    %31 = arith.truncf %30 : vector<10x96xf32> to vector<10x96xbf16>
    %c2 = arith.constant 2 : index
    %c0_25 = arith.constant 0 : index
    %c0_26 = arith.constant 0 : index
    %32 = vector.load %arg7[%c2, %c0_25, %c0_26] : memref<3x96x80xbf16, #tpu.memory_space<vmem>>, vector<1x96x80xbf16>
    %33 = vector.shape_cast %32 : vector<1x96x80xbf16> to vector<96x80xbf16>
    %cst_27 = arith.constant dense<0.000000e+00> : vector<10x80xf32>
    %34 = tpu.matmul %31, %33, %cst_27 {dimension_numbers = #tpu.dot_dimension_numbers<[1], [0], [0], [1], [0, 0, 1, 1], [], []>} : vector<10x96xbf16>, vector<96x80xbf16>, vector<10x80xf32> -> vector<10x80xf32>
    %35 = arith.addf %29, %34 : vector<10x80xf32>
    %36 = vector.extract_strided_slice %18 {offsets = [0, 0], sizes = [10, 96], strides = [1, 1]} : vector<12x96xf32> to vector<10x96xf32>
    %37 = arith.truncf %36 : vector<10x96xf32> to vector<10x96xbf16>
    %c0_28 = arith.constant 0 : index
    %c0_29 = arith.constant 0 : index
    %c0_30 = arith.constant 0 : index
    %38 = vector.load %arg8[%c0_28, %c0_29, %c0_30] : memref<3x96x80xbf16, #tpu.memory_space<vmem>>, vector<1x96x80xbf16>
    %39 = vector.shape_cast %38 : vector<1x96x80xbf16> to vector<96x80xbf16>
    %cst_31 = arith.constant dense<0.000000e+00> : vector<10x80xf32>
    %40 = tpu.matmul %37, %39, %cst_31 {dimension_numbers = #tpu.dot_dimension_numbers<[1], [0], [0], [1], [0, 0, 1, 1], [], []>} : vector<10x96xbf16>, vector<96x80xbf16>, vector<10x80xf32> -> vector<10x80xf32>
    %41 = vector.extract_strided_slice %18 {offsets = [1, 0], sizes = [10, 96], strides = [1, 1]} : vector<12x96xf32> to vector<10x96xf32>
    %42 = arith.truncf %41 : vector<10x96xf32> to vector<10x96xbf16>
    %c1_32 = arith.constant 1 : index
    %c0_33 = arith.constant 0 : index
    %c0_34 = arith.constant 0 : index
    %43 = vector.load %arg8[%c1_32, %c0_33, %c0_34] : memref<3x96x80xbf16, #tpu.memory_space<vmem>>, vector<1x96x80xbf16>
    %44 = vector.shape_cast %43 : vector<1x96x80xbf16> to vector<96x80xbf16>
    %cst_35 = arith.constant dense<0.000000e+00> : vector<10x80xf32>
    %45 = tpu.matmul %42, %44, %cst_35 {dimension_numbers = #tpu.dot_dimension_numbers<[1], [0], [0], [1], [0, 0, 1, 1], [], []>} : vector<10x96xbf16>, vector<96x80xbf16>, vector<10x80xf32> -> vector<10x80xf32>
    %46 = arith.addf %40, %45 : vector<10x80xf32>
    %47 = vector.extract_strided_slice %18 {offsets = [2, 0], sizes = [10, 96], strides = [1, 1]} : vector<12x96xf32> to vector<10x96xf32>
    %48 = arith.truncf %47 : vector<10x96xf32> to vector<10x96xbf16>
    %c2_36 = arith.constant 2 : index
    %c0_37 = arith.constant 0 : index
    %c0_38 = arith.constant 0 : index
    %49 = vector.load %arg8[%c2_36, %c0_37, %c0_38] : memref<3x96x80xbf16, #tpu.memory_space<vmem>>, vector<1x96x80xbf16>
    %50 = vector.shape_cast %49 : vector<1x96x80xbf16> to vector<96x80xbf16>
    %cst_39 = arith.constant dense<0.000000e+00> : vector<10x80xf32>
    %51 = tpu.matmul %48, %50, %cst_39 {dimension_numbers = #tpu.dot_dimension_numbers<[1], [0], [0], [1], [0, 0, 1, 1], [], []>} : vector<10x96xbf16>, vector<96x80xbf16>, vector<10x80xf32> -> vector<10x80xf32>
    %52 = arith.addf %46, %51 : vector<10x80xf32>
    %53 = arith.addf %35, %52 : vector<10x80xf32>
    %c0_40 = arith.constant 0 : index
    %c0_41 = arith.constant 0 : index
    %54 = vector.load %arg9[%c0_40, %c0_41] : memref<1x80xf32, #tpu.memory_space<vmem>>, vector<1x80xf32>
    %55 = vector.broadcast %54 : vector<1x80xf32> to vector<10x80xf32>
    %56 = arith.addf %53, %55 : vector<10x80xf32>
    %cst_42 = arith.constant 0.000000e+00 : f32
    %57 = vector.broadcast %cst_42 : f32 to vector<10x80xf32>
    %58 = arith.maximumf %56, %57 : vector<10x80xf32>
    %59 = vector.extract_strided_slice %58 {offsets = [0, 0], sizes = [8, 80], strides = [1, 1]} : vector<10x80xf32> to vector<8x80xf32>
    %60 = arith.truncf %59 : vector<8x80xf32> to vector<8x80xbf16>
    %c0_43 = arith.constant 0 : index
    %c0_44 = arith.constant 0 : index
    %c0_45 = arith.constant 0 : index
    %61 = vector.load %arg10[%c0_43, %c0_44, %c0_45] : memref<3x80x64xbf16, #tpu.memory_space<vmem>>, vector<1x80x64xbf16>
    %62 = vector.shape_cast %61 : vector<1x80x64xbf16> to vector<80x64xbf16>
    %cst_46 = arith.constant dense<0.000000e+00> : vector<8x64xf32>
    %63 = tpu.matmul %60, %62, %cst_46 {dimension_numbers = #tpu.dot_dimension_numbers<[1], [0], [0], [1], [0, 0, 1, 1], [], []>} : vector<8x80xbf16>, vector<80x64xbf16>, vector<8x64xf32> -> vector<8x64xf32>
    %64 = vector.extract_strided_slice %58 {offsets = [1, 0], sizes = [8, 80], strides = [1, 1]} : vector<10x80xf32> to vector<8x80xf32>
    %65 = arith.truncf %64 : vector<8x80xf32> to vector<8x80xbf16>
    %c1_47 = arith.constant 1 : index
    %c0_48 = arith.constant 0 : index
    %c0_49 = arith.constant 0 : index
    %66 = vector.load %arg10[%c1_47, %c0_48, %c0_49] : memref<3x80x64xbf16, #tpu.memory_space<vmem>>, vector<1x80x64xbf16>
    %67 = vector.shape_cast %66 : vector<1x80x64xbf16> to vector<80x64xbf16>
    %cst_50 = arith.constant dense<0.000000e+00> : vector<8x64xf32>
    %68 = tpu.matmul %65, %67, %cst_50 {dimension_numbers = #tpu.dot_dimension_numbers<[1], [0], [0], [1], [0, 0, 1, 1], [], []>} : vector<8x80xbf16>, vector<80x64xbf16>, vector<8x64xf32> -> vector<8x64xf32>
    %69 = arith.addf %63, %68 : vector<8x64xf32>
    %70 = vector.extract_strided_slice %58 {offsets = [2, 0], sizes = [8, 80], strides = [1, 1]} : vector<10x80xf32> to vector<8x80xf32>
    %71 = arith.truncf %70 : vector<8x80xf32> to vector<8x80xbf16>
    %c2_51 = arith.constant 2 : index
    %c0_52 = arith.constant 0 : index
    %c0_53 = arith.constant 0 : index
    %72 = vector.load %arg10[%c2_51, %c0_52, %c0_53] : memref<3x80x64xbf16, #tpu.memory_space<vmem>>, vector<1x80x64xbf16>
    %73 = vector.shape_cast %72 : vector<1x80x64xbf16> to vector<80x64xbf16>
    %cst_54 = arith.constant dense<0.000000e+00> : vector<8x64xf32>
    %74 = tpu.matmul %71, %73, %cst_54 {dimension_numbers = #tpu.dot_dimension_numbers<[1], [0], [0], [1], [0, 0, 1, 1], [], []>} : vector<8x80xbf16>, vector<80x64xbf16>, vector<8x64xf32> -> vector<8x64xf32>
    %75 = arith.addf %69, %74 : vector<8x64xf32>
    %c0_55 = arith.constant 0 : index
    %c0_56 = arith.constant 0 : index
    %76 = vector.load %arg11[%c0_55, %c0_56] : memref<1x64xf32, #tpu.memory_space<vmem>>, vector<1x64xf32>
    %77 = vector.broadcast %76 : vector<1x64xf32> to vector<8x64xf32>
    %78 = arith.addf %75, %77 : vector<8x64xf32>
    %79 = arith.truncf %78 : vector<8x64xf32> to vector<8x64xbf16>
    %c0_57 = arith.constant 0 : index
    %c0_58 = arith.constant 0 : index
    %80 = vector.load %arg12[%c0_57, %c0_58] : memref<64x8xbf16, #tpu.memory_space<vmem>>, vector<64x8xbf16>
    %cst_59 = arith.constant dense<0.000000e+00> : vector<8x8xf32>
    %81 = tpu.matmul %79, %80, %cst_59 {dimension_numbers = #tpu.dot_dimension_numbers<[1], [0], [0], [1], [0, 0, 1, 1], [], []>} : vector<8x64xbf16>, vector<64x8xbf16>, vector<8x8xf32> -> vector<8x8xf32>
    %c0_60 = arith.constant 0 : index
    %c0_61 = arith.constant 0 : index
    %82 = vector.load %arg13[%c0_60, %c0_61] : memref<1x8xf32, #tpu.memory_space<vmem>>, vector<1x8xf32>
    %83 = vector.broadcast %82 : vector<1x8xf32> to vector<8x8xf32>
    %84 = arith.addf %81, %83 : vector<8x8xf32>
    %c0_62 = arith.constant 0 : index
    %c0_63 = arith.constant 0 : index
    %c0_64 = arith.constant 0 : index
    %85 = vector.load %arg14[%c0_62, %c0_63, %c0_64] : memref<1x8x8xf32, #tpu.memory_space<vmem>>, vector<1x8x8xf32>
    %86 = vector.shape_cast %85 : vector<1x8x8xf32> to vector<8x8xf32>
    %87 = vector.shape_cast %84 : vector<8x8xf32> to vector<1x8x8xf32>
    tpu.vector_store %arg14[%c0_62, %c0_63, %c0_64], %87 {strides = array<i32>} : memref<1x8x8xf32, #tpu.memory_space<vmem>>, vector<1x8x8xf32>,
    return
  }
  func.func @transform_0(%arg0: i32) -> (i32, i32, i32) {
    %c0_i32 = arith.constant 0 : i32
    %c0_i32_0 = arith.constant 0 : i32
    %c0_i32_1 = arith.constant 0 : i32
    return %arg0, %c0_i32, %c0_i32_0 : i32, i32, i32
  }
  func.func @transform_1(%arg0: i32) -> (i32, i32, i32) {
    %c0_i32 = arith.constant 0 : i32
    %c0_i32_0 = arith.constant 0 : i32
    %c0_i32_1 = arith.constant 0 : i32
    return %arg0, %c0_i32, %c0_i32_0 : i32, i32, i32
  }
  func.func @transform_2(%arg0: i32) -> (i32, i32) {
    %c0_i32 = arith.constant 0 : i32
    %c0_i32_0 = arith.constant 0 : i32
    %c0_i32_1 = arith.constant 0 : i32
    return %c0_i32, %c0_i32_0 : i32, i32
  }
  func.func @transform_3(%arg0: i32) -> (i32, i32) {
    %c0_i32 = arith.constant 0 : i32
    %c0_i32_0 = arith.constant 0 : i32
    %c0_i32_1 = arith.constant 0 : i32
    return %c0_i32, %c0_i32_0 : i32, i32
  }
  func.func @transform_4(%arg0: i32) -> (i32, i32, i32) {
    %c0_i32 = arith.constant 0 : i32
    %c0_i32_0 = arith.constant 0 : i32
    %c0_i32_1 = arith.constant 0 : i32
    %c0_i32_2 = arith.constant 0 : i32
    return %c0_i32, %c0_i32_0, %c0_i32_1 : i32, i32, i32
  }
  func.func @transform_5(%arg0: i32) -> (i32, i32) {
    %c0_i32 = arith.constant 0 : i32
    %c0_i32_0 = arith.constant 0 : i32
    %c0_i32_1 = arith.constant 0 : i32
    return %c0_i32, %c0_i32_0 : i32, i32
  }
  func.func @transform_6(%arg0: i32) -> (i32, i32, i32) {
    %c0_i32 = arith.constant 0 : i32
    %c0_i32_0 = arith.constant 0 : i32
    %c0_i32_1 = arith.constant 0 : i32
    %c0_i32_2 = arith.constant 0 : i32
    return %c0_i32, %c0_i32_0, %c0_i32_1 : i32, i32, i32
  }
  func.func @transform_7(%arg0: i32) -> (i32, i32, i32) {
    %c0_i32 = arith.constant 0 : i32
    %c0_i32_0 = arith.constant 0 : i32
    %c0_i32_1 = arith.constant 0 : i32
    %c0_i32_2 = arith.constant 0 : i32
    return %c0_i32, %c0_i32_0, %c0_i32_1 : i32, i32, i32
  }
  func.func @transform_8(%arg0: i32) -> (i32, i32) {
    %c0_i32 = arith.constant 0 : i32
    %c0_i32_0 = arith.constant 0 : i32
    %c0_i32_1 = arith.constant 0 : i32
    return %c0_i32, %c0_i32_0 : i32, i32
  }
  func.func @transform_9(%arg0: i32) -> (i32, i32, i32) {
    %c0_i32 = arith.constant 0 : i32
    %c0_i32_0 = arith.constant 0 : i32
    %c0_i32_1 = arith.constant 0 : i32
    %c0_i32_2 = arith.constant 0 : i32
    return %c0_i32, %c0_i32_0, %c0_i32_1 : i32, i32, i32
  }
  func.func @transform_10(%arg0: i32) -> (i32, i32) {
    %c0_i32 = arith.constant 0 : i32
    %c0_i32_0 = arith.constant 0 : i32
    %c0_i32_1 = arith.constant 0 : i32
    return %c0_i32, %c0_i32_0 : i32, i32
  }
  func.func @transform_11(%arg0: i32) -> (i32, i32) {
    %c0_i32 = arith.constant 0 : i32
    %c0_i32_0 = arith.constant 0 : i32
    %c0_i32_1 = arith.constant 0 : i32
    return %c0_i32, %c0_i32_0 : i32, i32
  }
  func.func @transform_12(%arg0: i32) -> (i32, i32) {
    %c0_i32 = arith.constant 0 : i32
    %c0_i32_0 = arith.constant 0 : i32
    %c0_i32_1 = arith.constant 0 : i32
    return %c0_i32, %c0_i32_0 : i32, i32
  }
  func.func @transform_13(%arg0: i32) -> (i32, i32, i32) {
    %c0_i32 = arith.constant 0 : i32
    %c0_i32_0 = arith.constant 0 : i32
    %c0_i32_1 = arith.constant 0 : i32
    return %arg0, %c0_i32, %c0_i32_0 : i32, i32, i32
  }
}

</mosaic_0001>

<bundles_post_ra>
// kernel: tile.50
= control target key start
LH: loop header
LB: loop body
LE: loop exit
PB: predicated region body
PF: predicated region fallthrough
CT: control target
= control target key end

     0   :  { %s52_s0 = inlined_call_operand.vmem [shape: f32[8], index: 0, kind: input, shape index: {}]   ;;  %s53_s1 = inlined_call_operand.vmem [shape: f32[46,8], index: 1, kind: output, shape index: {}]  }
   0x1   :  { %v4_v0 = vld [vmem:[%s52_s0] ss:$0 sm:$0xff] }
   0x2   :  { %5 = vst [vmem:[%s53_s1] sm:$0xff] %v4_v0  ;;  %16 = vst [vmem:[%s53_s1 + $0x8] sm:$0xff] %v4_v0 }
   0x3   :  { %17 = vst [vmem:[%s53_s1 + $0x10] sm:$0xff] %v4_v0  ;;  %18 = vst [vmem:[%s53_s1 + $0x18] sm:$0xff] %v4_v0 }
   0x4   :  { %19 = vst [vmem:[%s53_s1 + $0x20] sm:$0xff] %v4_v0  ;;  %20 = vst [vmem:[%s53_s1 + $0x28] sm:$0xff] %v4_v0 }

// kernel: tile.51
= control target key start
LH: loop header
LB: loop body
LE: loop exit
PB: predicated region body
PF: predicated region fallthrough
CT: control target
= control target key end

     0   :  { %s11_s6 = smov 3  ;;  %vm6_vm0 = vcmask 1042434   ;;  %s25_s11 = smov 3  ;;  %vm8_vm1 = vcmask 64512   ;;  %vm15_vm2 = vcmask 1048512   ;;  %vm22_vm3 = vcmask 982912   ;;  %s369_s0 = inlined_call_operand.vmem [shape: f32[46,8], index: 0, kind: input, shape index: {}]   ;;  %s370_s1 = inlined_call_operand.vmem [shape: f32[1,368], index: 1, kind: output, shape index: {}]  }
   0x1   :  { %v189_v0 = vld [vmem:[%s369_s0 + $0x2b] sm:$0x4]   ;;  %v186_v1 = vld [vmem:[%s369_s0 + $0xf] ss:$16 sm:%s11_s6]   ;;  %s231_s12 = smov 120   ;;  %s18_s15 = smov 3 }
   0x2   :  { %13 = vrot.lane.b32.xlu0 %v186_v1, %s231_s12  ;;  %v188_v2 = vld [vmem:[%s369_s0 + $0xd] ss:$16 sm:%s25_s11]   ;;  %v191_v3 = vld [vmem:[%s369_s0 + $0x2a] sm:$0x4]   ;;  %s36_s20 = smov 3  ;;  %s232_s21 = smov 104  }
   0x3   :  { %v30_v4 = vsel %vm6_vm0, %v189_v0, %v188_v2  ;;  %v187_v5 = vld [vmem:[%s369_s0 + $0xe] ss:$16 sm:%s18_s15]   ;;  %v190_v6 = vld [vmem:[%s369_s0 + $0xc] ss:$16 sm:%s36_s20]   ;;  %s47_s24 = smov 3  ;;  %s58_s29 = smov 3 }
   0x4   :  { %31 = vrot.lane.b32.xlu1 %v30_v4, %s232_s21  ;;  %v193_v7 = vld [vmem:[%s369_s0 + $0x29] sm:$0x4]   ;;  %v41_v8 = vsel %vm6_vm0, %v191_v3, %v190_v6  ;;  %s233_s30 = smov 112   ;;  %v194_v10 = vld [vmem:[%s369_s0 + $0xa] ss:$16 sm:%s58_s29]   ;;  %s69_s6 = smov 3 }
   0x5   :  { %v192_v9 = vld [vmem:[%s369_s0 + $0xb] ss:$16 sm:%s47_s24]   ;;  %v195_v11 = vld [vmem:[%s369_s0 + $0x28] sm:$0x4]   ;;  %s80_s7 = smov 3  ;;  %s234_s8 = smov 96  }
   0x6   :  { %20 = vrot.lane.b32.xlu0 %v187_v5, %s233_s30  ;;  %v52_v12 = vsel %vm6_vm0, %v193_v7, %v192_v9  ;;  %v196_v13 = vld [vmem:[%s369_s0 + $0x9] ss:$16 sm:%s69_s6]   ;;  %v63_v15 = vsel %vm6_vm0, %v195_v11, %v194_v10  ;;  %s91_s13 = smov 3  ;;  %s235_s14 = smov 88   ;;  %v199_v17 = vld [vmem:[%s369_s0 + $0x26] sm:$0x4]  }
   0x7   :  { %v197_v14 = vld [vmem:[%s369_s0 + $0x27] sm:$0x4]   ;;  %v198_v16 = vld [vmem:[%s369_s0 + $0x8] ss:$16 sm:%s80_s7]   ;;  %s102_s19 = smov 3  ;;  %s236_s20 = smov 80  }
   0x8   :  { %42 = vrot.lane.b32.xlu1 %v41_v8, %s234_s8  ;;  %v74_v18 = vsel %vm6_vm0, %v197_v14, %v196_v13  ;;  %v200_v19 = vld [vmem:[%s369_s0 + $0x7] ss:$16 sm:%s91_s13]   ;;  %s113_s25 = smov 3  ;;  %v85_v21 = vsel %vm6_vm0, %v199_v17, %v198_v16  ;;  %v203_v22 = vld [vmem:[%s369_s0 + $0x24] sm:$0x4]   ;;  %s237_s28 = smov 72  }
   0x9   :  { %v201_v20 = vld [vmem:[%s369_s0 + $0x25] sm:$0x4]   ;;  %v202_v23 = vld [vmem:[%s369_s0 + $0x6] ss:$16 sm:%s102_s19]   ;;  %v185_v24 = vld [vmem:[%s369_s0 + $0x1e] sm:$0x4]  }
   0xa   :  { %53 = vrot.lane.b32.xlu0 %v52_v12, %s235_s14  ;;  %v96_v25 = vsel %vm6_vm0, %v201_v20, %v200_v19  ;;  %v204_v26 = vld [vmem:[%s369_s0 + $0x5] ss:$16 sm:%s113_s25]   ;;  %s124_s6 = smov 3  ;;  %s2_s7 = smov 3  ;;  %v107_v29 = vsel %vm6_vm0, %v203_v22, %v202_v23  ;;  %v207_v32 = vld [vmem:[%s369_s0 + $0x22] sm:$0x4]  }
   0xb   :  { %s238_s8 = smov 64   ;;  %v205_v27 = vld [vmem:[%s369_s0 + $0x23] sm:$0x4]   ;;  %v3_v28 = vld [vmem:[%s369_s0] ss:$16 sm:%s2_s7]   ;;  %s135_s13 = smov 3 }
   0xc   :  { %64 = vrot.lane.b32.xlu1 %v63_v15, %s236_s20  ;;  %v7_v30 = vsel %vm6_vm0, %v185_v24, %v3_v28  ;;  %s239_s14 = smov 56   ;;  %v206_v31 = vld [vmem:[%s369_s0 + $0x4] ss:$16 sm:%s124_s6]   ;;  %v118_v33 = vsel %vm6_vm0, %v205_v27, %v204_v26  ;;  %s146_s19 = smov 3  ;;  %v209_v35 = vld [vmem:[%s369_s0 + $0x21] sm:$0x4]  }
   0xd   :  { %9 = vst.msk [vmem:[#allocation0] ss:$8 sm:$0x7] %vm8_vm1, %v7_v30   ;;  %s240_s20 = smov 48   ;;  %v208_v34 = vld [vmem:[%s369_s0 + $0x3] ss:$16 sm:%s135_s13]   ;;  %v129_v36 = vsel %vm6_vm0, %v207_v32, %v206_v31 }
   0xe   :  { %75 = vrot.lane.b32.xlu0 %v74_v18, %s237_s28  ;;  %s157_s25 = smov 3  ;;  %s241_s26 = smov 40   ;;  %v210_v37 = vld [vmem:[%s369_s0 + $0x2] ss:$16 sm:%s146_s19]   ;;  %v140_v39 = vsel %vm6_vm0, %v209_v35, %v208_v34  ;;  %v213_v41 = vld [vmem:[%s369_s0 + $0x1f] sm:$0x4]  }
   0xf   :  { %v211_v38 = vld [vmem:[%s369_s0 + $0x20] sm:$0x4]   ;;  %s242_s2 = smov 32   ;;  %v212_v40 = vld [vmem:[%s369_s0 + $0x1] ss:$16 sm:%s157_s25]   ;;  %s243_s0 = smov 24  }
  0x10   :  { %86 = vrot.lane.b32.xlu1 %v85_v21, %s238_s8  ;;  %v151_v42 = vsel %vm6_vm0, %v211_v38, %v210_v37  ;;  %v162_v43 = vsel %vm6_vm0, %v213_v41, %v212_v40  ;;  %s244_s7 = smov 16   ;;  %s245_s8 = smov 8   ;;  %vm33_vm4 = vcmask 917312   ;;  %vm44_vm5 = vcmask 851712  }
  0x11   :  { %vm55_vm6 = vcmask 786112   ;;  %vm66_vm7 = vcmask 720512   ;;  %vm77_vm8 = vcmask 654912   ;;  %vm88_vm9 = vcmask 589312  }
  0x12   :  { %97 = vrot.lane.b32.xlu0 %v96_v25, %s239_s14  ;;  %vm99_vm10 = vcmask 523712   ;;  %vm110_vm11 = vcmask 458112   ;;  %vm121_vm12 = vcmask 392512   ;;  %vm132_vm13 = vcmask 326912  }
  0x13   :  { %vm143_vm14 = vcmask 261312   ;;  %vm154_vm15 = vcmask 195712   ;;  %vm165_vm0 = vcmask 130112  }
  0x14   :  { %108 = vrot.lane.b32.xlu1 %v107_v29, %s240_s20 }
  0x16   :  { %119 = vrot.lane.b32.xlu0 %v118_v33, %s241_s26 }
  0x18   :  { %130 = vrot.lane.b32.xlu1 %v129_v36, %s242_s2 }
  0x1a   :  { %141 = vrot.lane.b32.xlu0 %v140_v39, %s243_s0 }
  0x1c   :  { %152 = vrot.lane.b32.xlu1 %v151_v42, %s244_s7 }
  0x1e   :  { %163 = vrot.lane.b32.xlu0 %v162_v43, %s245_s8 }
  0x74   :  { %v14_v44 = vpop.permute.xlu0 %13  }
  0x75   :  { %16 = vst.msk [vmem:[#allocation0] ss:$8 sm:$0x3] %vm15_vm2, %v14_v44  }
  0x76   :  { %v32_v45 = vpop.permute.xlu1 %31  }
  0x78   :  { %v21_v46 = vpop.permute.xlu0 %20  }
  0x79   :  { %23 = vst.msk [vmem:[#allocation0] ss:$8 sm:$0x3] %vm22_vm3, %v21_v46  }
  0x7a   :  { %34 = vst.msk [vmem:[#allocation0] ss:$8 sm:$0x7] %vm33_vm4, %v32_v45   ;;  %v43_v47 = vpop.permute.xlu1 %42  }
  0x7b   :  { %45 = vst.msk [vmem:[#allocation0] ss:$8 sm:$0x7] %vm44_vm5, %v43_v47  }
  0x7c   :  { %v54_v48 = vpop.permute.xlu0 %53  }
  0x7d   :  { %56 = vst.msk [vmem:[#allocation0] ss:$8 sm:$0x7] %vm55_vm6, %v54_v48  }
  0x7e   :  { %v65_v49 = vpop.permute.xlu1 %64  }
  0x7f   :  { %67 = vst.msk [vmem:[#allocation0] ss:$8 sm:$0x7] %vm66_vm7, %v65_v49  }
  0x80   :  { %v76_v50 = vpop.permute.xlu0 %75  }
  0x81   :  { %78 = vst.msk [vmem:[#allocation0] ss:$8 sm:$0x7] %vm77_vm8, %v76_v50  }
  0x82   :  { %v87_v51 = vpop.permute.xlu1 %86  }
  0x83   :  { %89 = vst.msk [vmem:[#allocation0] ss:$8 sm:$0x7] %vm88_vm9, %v87_v51  }
  0x84   :  { %v98_v52 = vpop.permute.xlu0 %97  }
  0x85   :  { %100 = vst.msk [vmem:[#allocation0] ss:$8 sm:$0x7] %vm99_vm10, %v98_v52  }
  0x86   :  { %v109_v53 = vpop.permute.xlu1 %108  }
  0x87   :  { %111 = vst.msk [vmem:[#allocation0] ss:$8 sm:$0x7] %vm110_vm11, %v109_v53  }
  0x88   :  { %v120_v54 = vpop.permute.xlu0 %119  }
  0x89   :  { %122 = vst.msk [vmem:[#allocation0] ss:$8 sm:$0x7] %vm121_vm12, %v120_v54  }
  0x8a   :  { %v131_v55 = vpop.permute.xlu1 %130  }
  0x8b   :  { %133 = vst.msk [vmem:[#allocation0] ss:$8 sm:$0x7] %vm132_vm13, %v131_v55  }
  0x8c   :  { %v142_v56 = vpop.permute.xlu0 %141  }
  0x8d   :  { %144 = vst.msk [vmem:[#allocation0] ss:$8 sm:$0x7] %vm143_vm14, %v142_v56  }
  0x8e   :  { %v153_v57 = vpop.permute.xlu1 %152  }
  0x8f   :  { %155 = vst.msk [vmem:[#allocation0] ss:$8 sm:$0x7] %vm154_vm15, %v153_v57  }
  0x90   :  { %v164_v58 = vpop.permute.xlu0 %163  }
  0x91   :  { %166 = vst.msk [vmem:[#allocation0] ss:$8 sm:$0x7] %vm165_vm0, %v164_v58  }
  0x98   :  { %v170_v59 = vld [vmem:[#allocation0] sm:$0x1]  ;;  %v174_v60 = vld [vmem:[#allocation0 + $0x8] sm:$0x1]  ;;  %v179_v61 = vld [vmem:[#allocation0 + $0x10] sm:$0x1] }
  0x99   :  { %172 = vst [vmem:[%s370_s1] sm:$0x1] %v170_v59  ;;  %214 = vst [vmem:[%s370_s1 + $0x1] sm:$0x1] %v174_v60 }
  0x9a   :  { %215 = vst [vmem:[%s370_s1 + $0x2] sm:$0x1] %v179_v61 }

// kernel: tile.54
= control target key start
LH: loop header
LB: loop body
LE: loop exit
PB: predicated region body
PF: predicated region fallthrough
CT: control target
= control target key end

     0   :  { %s52_s0 = inlined_call_operand.vmem [shape: f32[8], index: 0, kind: input, shape index: {}]   ;;  %s53_s1 = inlined_call_operand.vmem [shape: f32[44,8], index: 1, kind: output, shape index: {}]  }
   0x1   :  { %v4_v0 = vld [vmem:[%s52_s0] ss:$0 sm:$0xff] }
   0x2   :  { %5 = vst [vmem:[%s53_s1] sm:$0xff] %v4_v0  ;;  %16 = vst [vmem:[%s53_s1 + $0x8] sm:$0xff] %v4_v0 }
   0x3   :  { %17 = vst [vmem:[%s53_s1 + $0x10] sm:$0xff] %v4_v0  ;;  %18 = vst [vmem:[%s53_s1 + $0x18] sm:$0xff] %v4_v0 }
   0x4   :  { %19 = vst [vmem:[%s53_s1 + $0x20] sm:$0xff] %v4_v0  ;;  %20 = vst [vmem:[%s53_s1 + $0x28] sm:$0xff] %v4_v0 }

// kernel: tile.55
= control target key start
LH: loop header
LB: loop body
LE: loop exit
PB: predicated region body
PF: predicated region fallthrough
CT: control target
= control target key end

     0   :  { %s11_s6 = smov 3  ;;  %s25_s9 = smov 3  ;;  %vm6_vm0 = vcmask 1042434   ;;  %vm8_vm1 = vcmask 64512   ;;  %vm15_vm2 = vcmask 1048512   ;;  %vm22_vm3 = vcmask 982912   ;;  %s351_s0 = inlined_call_operand.vmem [shape: f32[44,8], index: 0, kind: input, shape index: {}]   ;;  %s352_s1 = inlined_call_operand.vmem [shape: f32[1,352], index: 1, kind: output, shape index: {}]  }
   0x1   :  { %v178_v0 = vld [vmem:[%s351_s0 + $0xf] ss:$16 sm:%s11_s6]   ;;  %s221_s10 = smov 120   ;;  %v180_v1 = vld [vmem:[%s351_s0 + $0xd] ss:$16 sm:%s25_s9]   ;;  %s18_s13 = smov 3 }
   0x2   :  { %13 = vrot.lane.b32.xlu0 %v178_v0, %s221_s10  ;;  %s222_s14 = smov 104   ;;  %v179_v2 = vld [vmem:[%s351_s0 + $0xe] ss:$16 sm:%s18_s13]   ;;  %s32_s17 = smov 3  ;;  %v183_v4 = vld [vmem:[%s351_s0 + $0x29] sm:$0x4]  }
   0x3   :  { %27 = vrot.lane.b32.xlu1 %v180_v1, %s222_s14  ;;  %v181_v3 = vld [vmem:[%s351_s0 + $0xc] ss:$16 sm:%s32_s17]   ;;  %s39_s20 = smov 3  ;;  %s50_s25 = smov 3  ;;  %v185_v6 = vld [vmem:[%s351_s0 + $0x28] sm:$0x4]  }
   0x4   :  { %v182_v5 = vld [vmem:[%s351_s0 + $0xb] ss:$16 sm:%s39_s20]   ;;  %s223_s28 = smov 112   ;;  %v184_v7 = vld [vmem:[%s351_s0 + $0xa] ss:$16 sm:%s50_s25]   ;;  %s61_s2 = smov 3 }
   0x5   :  { %s224_s3 = smov 96   ;;  %v44_v8 = vsel %vm6_vm0, %v183_v4, %v182_v5  ;;  %s72_s4 = smov 3  ;;  %v55_v9 = vsel %vm6_vm0, %v185_v6, %v184_v7  ;;  %v186_v10 = vld [vmem:[%s351_s0 + $0x9] ss:$16 sm:%s61_s2]   ;;  %v189_v13 = vld [vmem:[%s351_s0 + $0x26] sm:$0x4]  }
   0x6   :  { %20 = vrot.lane.b32.xlu0 %v179_v2, %s223_s28  ;;  %v187_v11 = vld [vmem:[%s351_s0 + $0x27] sm:$0x4]   ;;  %v188_v12 = vld [vmem:[%s351_s0 + $0x8] ss:$16 sm:%s72_s4]   ;;  %s83_s13 = smov 3  ;;  %s225_s14 = smov 88  }
   0x7   :  { %34 = vrot.lane.b32.xlu1 %v181_v3, %s224_s3  ;;  %s94_s15 = smov 3  ;;  %s226_s16 = smov 80   ;;  %v66_v14 = vsel %vm6_vm0, %v187_v11, %v186_v10  ;;  %v77_v15 = vsel %vm6_vm0, %v189_v13, %v188_v12  ;;  %v190_v16 = vld [vmem:[%s351_s0 + $0x7] ss:$16 sm:%s83_s13]   ;;  %v193_v19 = vld [vmem:[%s351_s0 + $0x24] sm:$0x4]  }
   0x8   :  { %v191_v17 = vld [vmem:[%s351_s0 + $0x25] sm:$0x4]   ;;  %v192_v18 = vld [vmem:[%s351_s0 + $0x6] ss:$16 sm:%s94_s15]   ;;  %s105_s25 = smov 3  ;;  %s227_s26 = smov 72  }
   0x9   :  { %s116_s27 = smov 3  ;;  %v177_v20 = vld [vmem:[%s351_s0 + $0x1e] sm:$0x4]   ;;  %s228_s30 = smov 64   ;;  %v88_v21 = vsel %vm6_vm0, %v191_v17, %v190_v16  ;;  %v195_v22 = vld [vmem:[%s351_s0 + $0x23] sm:$0x4]   ;;  %v99_v23 = vsel %vm6_vm0, %v193_v19, %v192_v18 }
   0xa   :  { %45 = vrot.lane.b32.xlu0 %v44_v8, %s225_s14  ;;  %s2_s4 = smov 3  ;;  %v194_v24 = vld [vmem:[%s351_s0 + $0x5] ss:$16 sm:%s105_s25]   ;;  %v197_v27 = vld [vmem:[%s351_s0 + $0x22] sm:$0x4]   ;;  %s127_s13 = smov 3 }
   0xb   :  { %56 = vrot.lane.b32.xlu1 %v55_v9, %s226_s16  ;;  %v3_v25 = vld [vmem:[%s351_s0] ss:$16 sm:%s2_s4]   ;;  %s229_s14 = smov 56   ;;  %s138_s15 = smov 3  ;;  %v110_v29 = vsel %vm6_vm0, %v195_v22, %v194_v24  ;;  %v199_v32 = vld [vmem:[%s351_s0 + $0x21] sm:$0x4]  }
   0xc   :  { %v196_v26 = vld [vmem:[%s351_s0 + $0x4] ss:$16 sm:%s116_s27]   ;;  %v7_v28 = vsel %vm6_vm0, %v177_v20, %v3_v25  ;;  %s230_s16 = smov 48   ;;  %v198_v31 = vld [vmem:[%s351_s0 + $0x3] ss:$16 sm:%s127_s13]   ;;  %s149_s25 = smov 3 }
   0xd   :  { %9 = vst.msk [vmem:[#allocation0] ss:$8 sm:$0x7] %vm8_vm1, %v7_v28   ;;  %v121_v30 = vsel %vm6_vm0, %v197_v27, %v196_v26  ;;  %v200_v33 = vld [vmem:[%s351_s0 + $0x2] ss:$16 sm:%s138_s15]   ;;  %s232_s27 = smov 32   ;;  %v132_v35 = vsel %vm6_vm0, %v199_v32, %v198_v31 }
   0xe   :  { %67 = vrot.lane.b32.xlu0 %v66_v14, %s227_s26  ;;  %v201_v34 = vld [vmem:[%s351_s0 + $0x20] sm:$0x4]   ;;  %s231_s26 = smov 40   ;;  %v202_v37 = vld [vmem:[%s351_s0 + $0x1] ss:$16 sm:%s149_s25]   ;;  %s234_s3 = smov 16  }
   0xf   :  { %78 = vrot.lane.b32.xlu1 %v77_v15, %s228_s30  ;;  %v143_v36 = vsel %vm6_vm0, %v201_v34, %v200_v33  ;;  %v203_v38 = vld [vmem:[%s351_s0 + $0x1f] sm:$0x4]   ;;  %s233_s0 = smov 24   ;;  %s235_s4 = smov 8   ;;  %vm29_vm4 = vcmask 917312   ;;  %vm36_vm5 = vcmask 851712  }
  0x10   :  { %v154_v39 = vsel %vm6_vm0, %v203_v38, %v202_v37  ;;  %vm47_vm6 = vcmask 786112   ;;  %vm58_vm7 = vcmask 720512   ;;  %vm69_vm8 = vcmask 654912  }
  0x11   :  { %vm80_vm9 = vcmask 589312   ;;  %vm91_vm10 = vcmask 523712   ;;  %vm102_vm11 = vcmask 458112   ;;  %vm113_vm12 = vcmask 392512  }
  0x12   :  { %89 = vrot.lane.b32.xlu0 %v88_v21, %s229_s14  ;;  %vm124_vm13 = vcmask 326912   ;;  %vm135_vm14 = vcmask 261312   ;;  %vm146_vm15 = vcmask 195712   ;;  %vm157_vm0 = vcmask 130112  }
  0x13   :  { %100 = vrot.lane.b32.xlu1 %v99_v23, %s230_s16 }
  0x16   :  { %111 = vrot.lane.b32.xlu0 %v110_v29, %s231_s26 }
  0x17   :  { %122 = vrot.lane.b32.xlu1 %v121_v30, %s232_s27 }
  0x1a   :  { %133 = vrot.lane.b32.xlu0 %v132_v35, %s233_s0 }
  0x1b   :  { %144 = vrot.lane.b32.xlu1 %v143_v36, %s234_s3 }
  0x1e   :  { %155 = vrot.lane.b32.xlu0 %v154_v39, %s235_s4 }
  0x74   :  { %v14_v40 = vpop.permute.xlu0 %13  }
  0x75   :  { %16 = vst.msk [vmem:[#allocation0] ss:$8 sm:$0x3] %vm15_vm2, %v14_v40   ;;  %v28_v41 = vpop.permute.xlu1 %27  }
  0x78   :  { %v21_v42 = vpop.permute.xlu0 %20  }
  0x79   :  { %23 = vst.msk [vmem:[#allocation0] ss:$8 sm:$0x3] %vm22_vm3, %v21_v42   ;;  %v35_v43 = vpop.permute.xlu1 %34  }
  0x7a   :  { %30 = vst.msk [vmem:[#allocation0] ss:$8 sm:$0x3] %vm29_vm4, %v28_v41  }
  0x7b   :  { %37 = vst.msk [vmem:[#allocation0] ss:$8 sm:$0x3] %vm36_vm5, %v35_v43  }
  0x7c   :  { %v46_v44 = vpop.permute.xlu0 %45  }
  0x7d   :  { %48 = vst.msk [vmem:[#allocation0] ss:$8 sm:$0x7] %vm47_vm6, %v46_v44   ;;  %v57_v45 = vpop.permute.xlu1 %56  }
  0x7e   :  { %59 = vst.msk [vmem:[#allocation0] ss:$8 sm:$0x7] %vm58_vm7, %v57_v45  }
  0x80   :  { %v68_v46 = vpop.permute.xlu0 %67  }
  0x81   :  { %70 = vst.msk [vmem:[#allocation0] ss:$8 sm:$0x7] %vm69_vm8, %v68_v46   ;;  %v79_v47 = vpop.permute.xlu1 %78  }
  0x82   :  { %81 = vst.msk [vmem:[#allocation0] ss:$8 sm:$0x7] %vm80_vm9, %v79_v47  }
  0x84   :  { %v90_v48 = vpop.permute.xlu0 %89  }
  0x85   :  { %92 = vst.msk [vmem:[#allocation0] ss:$8 sm:$0x7] %vm91_vm10, %v90_v48   ;;  %v101_v49 = vpop.permute.xlu1 %100  }
  0x86   :  { %103 = vst.msk [vmem:[#allocation0] ss:$8 sm:$0x7] %vm102_vm11, %v101_v49  }
  0x88   :  { %v112_v50 = vpop.permute.xlu0 %111  }
  0x89   :  { %114 = vst.msk [vmem:[#allocation0] ss:$8 sm:$0x7] %vm113_vm12, %v112_v50   ;;  %v123_v51 = vpop.permute.xlu1 %122  }
  0x8a   :  { %125 = vst.msk [vmem:[#allocation0] ss:$8 sm:$0x7] %vm124_vm13, %v123_v51  }
  0x8c   :  { %v134_v52 = vpop.permute.xlu0 %133  }
  0x8d   :  { %136 = vst.msk [vmem:[#allocation0] ss:$8 sm:$0x7] %vm135_vm14, %v134_v52   ;;  %v145_v53 = vpop.permute.xlu1 %144  }
  0x8e   :  { %147 = vst.msk [vmem:[#allocation0] ss:$8 sm:$0x7] %vm146_vm15, %v145_v53  }
  0x90   :  { %v156_v54 = vpop.permute.xlu0 %155  }
  0x91   :  { %158 = vst.msk [vmem:[#allocation0] ss:$8 sm:$0x7] %vm157_vm0, %v156_v54  }
  0x98   :  { %v162_v55 = vld [vmem:[#allocation0] sm:$0x1]  ;;  %v166_v56 = vld [vmem:[#allocation0 + $0x8] sm:$0x1]  ;;  %v171_v57 = vld [vmem:[#allocation0 + $0x10] sm:$0x1] }
  0x99   :  { %164 = vst [vmem:[%s352_s1] sm:$0x1] %v162_v55  ;;  %204 = vst [vmem:[%s352_s1 + $0x1] sm:$0x1] %v166_v56 }
  0x9a   :  { %205 = vst [vmem:[%s352_s1 + $0x2] sm:$0x1] %v171_v57 }

// kernel: _lambda_.5
= control target key start
LH: loop header
LB: loop body
LE: loop exit
PB: predicated region body
PF: predicated region fallthrough
CT: control target
= control target key end

     0   :  { %s5002_s18 = smov 0   ;;  %s6329_s0 = inlined_call_operand.vmem [shape: f32[2,48,144], index: 0, kind: input, shape index: {}]   ;;  %s6330_s1 = inlined_call_operand.vmem [shape: bf16[3,144,368], index: 1, kind: input, shape index: {}]   ;;  %s6331_s2 = inlined_call_operand.vmem [shape: f32[1,368], index: 2, kind: input, shape index: {}]   ;;  %s6332_s3 = inlined_call_operand.vmem [shape: bf16[3,368,352], index: 3, kind: input, shape index: {}]   ;;  %s6333_s4 = inlined_call_operand.vmem [shape: f32[1,352], index: 4, kind: input, shape index: {}]   ;;  %s6334_s5 = inlined_call_operand.vmem [shape: f32[2,44,352], index: 5, kind: output, shape index: {}]  }
   0x1 LB: > { %s3681_s19 = sadd.s32 4294967295, %s4967_s18   ;;  %p3685_p0 = scmp.ge.s32.totalorder %s4967_s18, 1  ;;  %s4967_s18 = sphi %s5002_s18, %s15_s18  }
   0x2   : > { %p187_p1 = scmp.lt.s32.totalorder %s4967_s18, 3 }
   0x4   : > { %p188_p2 = pnand %p3685_p0, %p187_p1 }
   0x5   : > { %v4577_v0 = vld [vmem:[%s6330_s1 + $0xdc] ss:$12 sps:$4 sm:$0xff] (!%p188_p2)   ;;  %v4579_v1 = vld [vmem:[%s6330_s1 + $0x4] ss:$12 sps:$4 sm:$0xff] (!%p188_p2)   ;;  %v4582_v3 = vld [vmem:[%s6330_s1] ss:$12 sps:$4 sm:$0xff] (!%p188_p2)  }
   0x6   : > { %191 = sbr.rel (%p188_p2) target bundleno = 803 (0x323), region = 40  ;;  %521 = vmatprep.subr.bf16.mxu1 (!%p188_p2), %v4577_v0  ;;  %v4581_v2 = vld [vmem:[%s6330_s1 + $0xd8] ss:$12 sps:$4 sm:$0xff] (!%p188_p2)   ;;  %791 = vmatprep.subr.bf16.mxu0 (!%p188_p2), %v4579_v1  ;;  %v4583_v4 = vld [vmem:[%s6330_s1 + $0xf4] ss:$12 sps:$4 sm:$0xff] (!%p188_p2)   ;;  %p215_p3 = scmp.lt.s32.totalorder (!%p188_p2), %s3681_s19, 1 }
   0x7   : > { %522 = vmatpush1.bf16.msra.mxu1 (!%p188_p2), %v4581_v2  ;;  %792 = vmatpush1.bf16.msra.mxu0 (!%p188_p2), %v4582_v3  ;;  %v4585_v5 = vld [vmem:[%s6330_s1 + $0x1c] ss:$12 sps:$4 sm:$0xff] (!%p188_p2)   ;;  %v4588_v7 = vld [vmem:[%s6330_s1 + $0x18] ss:$12 sps:$4 sm:$0xff] (!%p188_p2)   ;;  %v4591_v9 = vld [vmem:[%s6330_s1 + $0x34] ss:$12 sps:$4 sm:$0xff] (!%p188_p2)  }
   0x8   : > { %v4587_v6 = vld [vmem:[%s6330_s1 + $0xf0] ss:$12 sps:$4 sm:$0xff] (!%p188_p2)   ;;  %523 = vmatprep.subr.bf16.mxu1 (!%p188_p2), %v4583_v4  ;;  %793 = vmatprep.subr.bf16.mxu0 (!%p188_p2), %v4585_v5  ;;  %v4589_v8 = vld [vmem:[%s6330_s1 + $0x10c] ss:$12 sps:$4 sm:$0xff] (!%p188_p2)   ;;  %v4593_v10 = vld [vmem:[%s6330_s1 + $0x108] ss:$12 sps:$4 sm:$0xff] (!%p188_p2)  }
   0x9   : > { %v4594_v11 = vld [vmem:[%s6330_s1 + $0x30] ss:$12 sps:$4 sm:$0xff] (!%p188_p2)   ;;  %v4597_v13 = vld [vmem:[%s6330_s1 + $0x4c] ss:$12 sps:$4 sm:$0xff] (!%p188_p2)   ;;  %v4600_v15 = vld [vmem:[%s6330_s1 + $0x48] ss:$12 sps:$4 sm:$0xff] (!%p188_p2)  }
   0xa   : > { %v4595_v12 = vld [vmem:[%s6330_s1 + $0x124] ss:$12 sps:$4 sm:$0xff] (!%p188_p2)   ;;  %v4599_v14 = vld [vmem:[%s6330_s1 + $0x120] ss:$12 sps:$4 sm:$0xff] (!%p188_p2)   ;;  %v4601_v16 = vld [vmem:[%s6330_s1 + $0x13c] ss:$12 sps:$4 sm:$0xff] (!%p188_p2)  }
   0xb   : > { %524 = vmatpush1.bf16.msra.mxu1 (!%p188_p2), %v4587_v6  ;;  %794 = vmatpush1.bf16.msra.mxu0 (!%p188_p2), %v4588_v7  ;;  %v4603_v17 = vld [vmem:[%s6330_s1 + $0x64] ss:$12 sps:$4 sm:$0xff] (!%p188_p2)   ;;  %v4606_v19 = vld [vmem:[%s6330_s1 + $0x60] ss:$12 sps:$4 sm:$0xff] (!%p188_p2)   ;;  %v4609_v21 = vld [vmem:[%s6330_s1 + $0x7c] ss:$12 sps:$4 sm:$0xff] (!%p188_p2)  }
   0xc   : > { %525 = vmatprep.subr.bf16.mxu1 (!%p188_p2), %v4589_v8  ;;  %795 = vmatprep.subr.bf16.mxu0 (!%p188_p2), %v4591_v9  ;;  %v4605_v18 = vld [vmem:[%s6330_s1 + $0x138] ss:$12 sps:$4 sm:$0xff] (!%p188_p2)   ;;  %v4607_v20 = vld [vmem:[%s6330_s1 + $0x154] ss:$12 sps:$4 sm:$0xff] (!%p188_p2)   ;;  %v4611_v22 = vld [vmem:[%s6330_s1 + $0x150] ss:$12 sps:$4 sm:$0xff] (!%p188_p2)  }
   0xd   : > { %s6336_s19 = smov (!%p215_p3, %s3681_s19), 1  ;;  %v4612_v23 = vld [vmem:[%s6330_s1 + $0x78] ss:$12 sps:$4 sm:$0xff]   ;;  %v4615_v25 = vld [vmem:[%s6330_s1 + $0x94] ss:$12 sps:$4 sm:$0xff]   ;;  %vm511_vm0 = vcmask 130048  }
   0xe   : > { %s4564_s16 = smul.u32 96, %s6336_s19  ;;  %v4613_v24 = vld [vmem:[%s6330_s1 + $0x16c] ss:$12 sps:$4 sm:$0xff]   ;;  %v4617_v26 = vld [vmem:[%s6330_s1 + $0x168] ss:$12 sps:$4 sm:$0xff]   ;;  %v4969_v2 = vmov 0  }
   0xf   : > { %526 = vmatpush1.bf16.msra.mxu1 %v4593_v10  ;;  %796 = vmatpush1.bf16.msra.mxu0 %v4594_v11  ;;  %v4618_v27 = vld [vmem:[%s6330_s1 + $0x90] ss:$12 sps:$4 sm:$0xff]   ;;  %v4621_v29 = vld [vmem:[%s6330_s1 + $0xac] ss:$12 sps:$4 sm:$0xff]   ;;  %v4624_v38 = vld [vmem:[%s6330_s1 + $0xa8] ss:$12 sps:$4 sm:$0xff]  }
  0x10   : > { %527 = vmatprep.subr.bf16.mxu1 %v4595_v12  ;;  %797 = vmatprep.subr.bf16.mxu0 %v4597_v13  ;;  %s5098_s29 = scalar_lea.vmem %s6329_s0, %s4564_s16  ;;  %v4619_v28 = vld [vmem:[%s6330_s1 + $0x184] ss:$12 sps:$4 sm:$0xff]   ;;  %v4623_v37 = vld [vmem:[%s6330_s1 + $0x180] ss:$12 sps:$4 sm:$0xff]   ;;  %v4625_v43 = vld [vmem:[%s6330_s1 + $0x19c] ss:$12 sps:$4 sm:$0xff]  }
  0x11   : > { %v227_v30 = vld [vmem:[%s5098_s29 + $0x8] sm:$0xff]  ;;  %v229_v31 = vld [vmem:[%s5098_s29 + $0x18] sm:$0xff]  ;;  %v226_v35 = vld [vmem:[%s5098_s29] sm:$0xff]  ;;  %vm317_vm1 = vsmask.f32 7424  ;;  %vm954_vm2 = vcmask 1046528  }
  0x12   : > { %v231_v32 = vld [vmem:[%s5098_s29 + $0x28] sm:$0xff]  ;;  %v233_v33 = vld [vmem:[%s5098_s29 + $0x38] sm:$0xff]  ;;  %v5116_v34 = vpack.c.bf16 %v229_v31, %v227_v30  ;;  %v228_v36 = vld [vmem:[%s5098_s29 + $0x10] sm:$0xff]  ;;  %vm4971_vm3 = vmmov 0   ;;  %vm1949_vm4 = vcmask 916480   ;;  %s4565_s30 = smul.u32 144, %s6336_s19 }
  0x13   : > { %528 = vmatpush1.bf16.msra.mxu1 %v4599_v14  ;;  %798 = vmatpush1.bf16.msra.mxu0 %v4600_v15  ;;  %v5126_v39 = vpack.c.bf16 %v233_v33, %v231_v32  ;;  %v230_v40 = vld [vmem:[%s5098_s29 + $0x20] sm:$0xff]  ;;  %v232_v41 = vld [vmem:[%s5098_s29 + $0x30] sm:$0xff]  ;;  %v5130_v42 = vpack.c.bf16 %v228_v36, %v226_v35  ;;  %v4637_v3 = vld [vmem:[%s6330_s1 + $0x1cc] ss:$12 sps:$4 sm:$0xff]   ;;  %vm3608_vm5 = vcmask 785408   ;;  %vm3624_vm6 = vcmask 781312  }
  0x14   : > { %529 = vmatprep.subr.bf16.mxu1 %v4601_v16  ;;  %799 = vmatprep.subr.bf16.mxu0 %v4603_v17  ;;  %v331_v44 = vshrl.u32 %v5116_v34, 16  ;;  %v333_v45 = vshll.u32 %v5116_v34, 16  ;;  %v5137_v46 = vpack.c.bf16 %v232_v41, %v230_v40  ;;  %v4627_v47 = vld [vmem:[%s6330_s1 + $0xc4] ss:$12 sps:$4 sm:$0xff]   ;;  %v4630_v56 = vld [vmem:[%s6330_s1 + $0xc0] ss:$12 sps:$4 sm:$0xff]   ;;  %s6297_s8 = scalar_lea.vmem %s6334_s5, %s4565_s30 }
  0x15   : > { %3784 = vmatprep.mubr.msk.bf16.mxu0 %vm511_vm0, %v5116_v34  ;;  %v338_v48 = vshll.u32 %v5126_v39, 16  ;;  %v319_v49 = vshrl.u32 %v5130_v42, 16  ;;  %v321_v50 = vshll.u32 %v5130_v42, 16  ;;  %v4629_v55 = vld [vmem:[%s6330_s1 + $0x198] ss:$12 sps:$4 sm:$0xff]   ;;  %v350_v1 = vshrl.u32 %v5126_v39, 16 }
  0x16   : > { %v335_v51 = vrot.slane %v333_v45, 1  ;;  %v326_v52 = vshll.u32 %v5137_v46, 16  ;;  %v4633_v61 = vld [vmem:[%s6330_s1 + $0x1b4] ss:$12 sps:$4 sm:$0xff]   ;;  %v4631_v62 = vld [vmem:[%s6330_s1 + $0x1b0] ss:$12 sps:$4 sm:$0xff]  }
  0x17   : > { %530 = vmatpush1.bf16.msra.mxu1 %v4605_v18  ;;  %800 = vmatpush1.bf16.msra.mxu0 %v4606_v19  ;;  %v340_v53 = vrot.slane %v338_v48, 1  ;;  %v323_v54 = vrot.slane %v321_v50, 1  ;;  %v4634_v0 = vld [vmem:[%s6330_s1 + $0xe0] ss:$12 sps:$4 sm:$0xff]   ;;  %v4635_v4 = vld [vmem:[%s6330_s1 + $0x1c8] ss:$12 sps:$4 sm:$0xff]  }
  0x18   : > { %531 = vmatprep.subr.bf16.mxu1 %v4607_v20  ;;  %801 = vmatprep.subr.bf16.mxu0 %v4609_v21  ;;  %v336_v57 = vor.u32 %v335_v51, %v331_v44  ;;  %v328_v59 = vrot.slane %v326_v52, 1  ;;  %v4638_v5 = vld [vmem:[%s6330_s1 + $0xf8] ss:$12 sps:$4 sm:$0xff]   ;;  %v235_v6 = vld [vmem:[%s5098_s29 + $0x48] sm:$0xff]  ;;  %v342_v9 = vshrl.u32 %v5137_v46, 16  ;;  %v236_v11 = vld [vmem:[%s5098_s29 + $0x50] sm:$0xff] }
  0x19   : > { %v324_v58 = vor.u32 %v323_v54, %v319_v49  ;;  %v237_v7 = vld [vmem:[%s5098_s29 + $0x58] sm:$0xff]  ;;  %v234_v10 = vld [vmem:[%s5098_s29 + $0x40] sm:$0xff]  ;;  %v352_v12 = vor.u32 %v350_v1, %v340_v53  ;;  %v958_v32 = vrot.slane %v5116_v34, 1  ;;  %v959_v33 = vrot.slane %v5126_v39, 1  ;;  %v4662_v49 = vld [vmem:[%s6330_s1 + $0x188] ss:$12 sps:$4 sm:$0xff]  }
  0x1a   : > { %v5155_v60 = vsel %vm317_vm1, %v336_v57, %v340_v53  ;;  %v5186_v8 = vpack.c.bf16 %v237_v7, %v235_v6  ;;  %v4641_v13 = vld [vmem:[%s6330_s1 + $0x1e4] ss:$12 sps:$4 sm:$0xff]   ;;  %v5196_v15 = vpack.c.bf16 %v236_v11, %v234_v10  ;;  %v4639_v16 = vld [vmem:[%s6330_s1 + $0x1e0] ss:$12 sps:$4 sm:$0xff]   ;;  %v344_v18 = vor.u32 %v342_v9, %v328_v59  ;;  %v4667_v57 = vld [vmem:[%s6330_s1 + $0x8] ss:$12 sps:$4 sm:$0xff]  }
  0x1b   : > { %532 = vmatpush1.bf16.msra.mxu1 %v4611_v22  ;;  %802 = vmatpush1.bf16.msra.mxu0 %v4612_v23  ;;  %v5166_v63 = vsel %vm317_vm1, %v324_v58, %v328_v59  ;;  %v4642_v20 = vld [vmem:[%s6330_s1 + $0x110] ss:$12 sps:$4 sm:$0xff]   ;;  %v4650_v35 = vld [vmem:[%s6330_s1 + $0x140] ss:$12 sps:$4 sm:$0xff]   ;;  %v5258_v40 = vsel %vm954_vm2, %v958_v32, %v959_v33  ;;  %v4654_v41 = vld [vmem:[%s6330_s1 + $0x158] ss:$12 sps:$4 sm:$0xff]  }
  0x1c   : > { %533 = vmatprep.subr.bf16.mxu1 %v4613_v24  ;;  %803 = vmatprep.subr.bf16.mxu0 %v4615_v25  ;;  %v354_v14 = vshll.u32 %v5186_v8, 16  ;;  %v346_v19 = vshll.u32 %v5196_v15, 16  ;;  %v361_v21 = vshrl.u32 %v5186_v8, 16  ;;  %v4645_v22 = vld [vmem:[%s6330_s1 + $0x1fc] ss:$12 sps:$4 sm:$0xff]   ;;  %v358_v31 = vshrl.u32 %v5196_v15, 16 }
  0x1d   : > { %3751 = vmatprep.mubr.msk.bf16.mxu1 %vm511_vm0, %v5155_v60  ;;  %v4643_v25 = vld [vmem:[%s6330_s1 + $0x1f8] ss:$12 sps:$4 sm:$0xff]   ;;  %v4647_v30 = vld [vmem:[%s6330_s1 + $0x210] ss:$12 sps:$4 sm:$0xff]   ;;  %v4655_v44 = vld [vmem:[%s6330_s1 + $0x240] ss:$12 sps:$4 sm:$0xff]  }
  0x1e   : > { %v356_v17 = vrot.slane %v354_v14, 1  ;;  %v348_v24 = vrot.slane %v346_v19, 1  ;;  %v4653_v36 = vld [vmem:[%s6330_s1 + $0x22c] ss:$12 sps:$4 sm:$0xff]   ;;  %v4658_v45 = vld [vmem:[%s6330_s1 + $0x170] ss:$12 sps:$4 sm:$0xff]  }
  0x1f   : > { %534 = vmatpush1.bf16.msra.mxu1 %v4617_v26  ;;  %804 = vmatpush1.bf16.msra.mxu0 %v4618_v27  ;;  %v4659_v48 = vld [vmem:[%s6330_s1 + $0x258] ss:$12 sps:$4 sm:$0xff]   ;;  %v4665_v50 = vld [vmem:[%s6330_s1 + $0x274] ss:$12 sps:$4 sm:$0xff]   ;;  %v4663_v51 = vld [vmem:[%s6330_s1 + $0x270] ss:$12 sps:$4 sm:$0xff]  }
  0x20   : > { %535 = vmatprep.subr.bf16.mxu1 %v4619_v28  ;;  %805 = vmatprep.subr.bf16.mxu0 %v4621_v29  ;;  %v5213_v23 = vsel %vm317_vm1, %v352_v12, %v356_v17  ;;  %v5221_v26 = vsel %vm317_vm1, %v344_v18, %v348_v24  ;;  %v5224_v27 = vor.u32 %v361_v21, %v356_v17  ;;  %v4646_v28 = vld [vmem:[%s6330_s1 + $0x128] ss:$12 sps:$4 sm:$0xff]   ;;  %v4666_v52 = vld [vmem:[%s6330_s1 + $0x1a0] ss:$12 sps:$4 sm:$0xff]   ;;  %v955_v53 = vrot.slane %v5130_v42, 1 }
  0x21   : > { %v4649_v29 = vld [vmem:[%s6330_s1 + $0x214] ss:$12 sps:$4 sm:$0xff]   ;;  %v956_v54 = vrot.slane %v5137_v46, 1  ;;  %v4670_v1 = vld [vmem:[%s6330_s1 + $0x50] ss:$12 sps:$4 sm:$0xff]  }
  0x22   : > { %v4685_v59 = vld [vmem:[%s6332_s3 + $0x228] ss:$12 sps:$4 sm:$0xff]   ;;  %v4674_v6 = vld [vmem:[%s6330_s1 + $0xb0] ss:$12 sps:$4 sm:$0xff]   ;;  %v4676_v7 = vld [vmem:[%s6330_s1 + $0x1b8] ss:$12 sps:$4 sm:$0xff]  }
  0x23   : > { %536 = vmatpush1.bf16.msra.mxu1 %v4623_v37  ;;  %806 = vmatpush1.bf16.msra.mxu0 %v4624_v38  ;;  %v5251_v37 = vor.u32 %v358_v31, %v348_v24  ;;  %v4651_v38 = vld [vmem:[%s6330_s1 + $0x228] ss:$12 sps:$4 sm:$0xff]   ;;  %v5311_v58 = vsel %vm954_vm2, %v955_v53, %v956_v54  ;;  %v4677_v9 = vld [vmem:[%s6330_s1 + $0x1d0] ss:$12 sps:$4 sm:$0xff]   ;;  %v4679_v11 = vld [vmem:[%s6330_s1 + $0x200] ss:$12 sps:$4 sm:$0xff]  }
  0x24   : > { %537 = vmatprep.subr.bf16.mxu1 %v4625_v43  ;;  %807 = vmatprep.subr.bf16.mxu0 %v4627_v47  ;;  %v4657_v43 = vld [vmem:[%s6330_s1 + $0x244] ss:$12 sps:$4 sm:$0xff]   ;;  %v4661_v47 = vld [vmem:[%s6330_s1 + $0x25c] ss:$12 sps:$4 sm:$0xff]   ;;  %v4688_v12 = vld [vmem:[%s6332_s3 + $0x240] ss:$12 sps:$4 sm:$0xff]  }
  0x25   : > { %v4678_v10 = vld [vmem:[%s6330_s1 + $0x1e8] ss:$12 sps:$4 sm:$0xff]   ;;  %v4699_v17 = vld [vmem:[%s6332_s3 + $0x28c] ss:$12 sps:$4 sm:$0xff]   ;;  %v4702_v19 = vld [vmem:[%s6332_s3 + $0x2a4] ss:$12 sps:$4 sm:$0xff]  }
  0x26   : > { %v4696_v14 = vld [vmem:[%s6332_s3 + $0x274] ss:$12 sps:$4 sm:$0xff]   ;;  %v4703_v24 = vld [vmem:[%s6332_s3 + $0x2b8] ss:$12 sps:$4 sm:$0xff]  }
  0x27   : > { %538 = vmatpush1.bf16.msra.mxu1 %v4629_v55  ;;  %808 = vmatpush1.bf16.msra.mxu0 %v4630_v56  ;;  %v5302_v55 = vrot.slane %v5186_v8, 1  ;;  %v4687_v56 = vld [vmem:[%s6332_s3 + $0x22c] ss:$12 sps:$4 sm:$0xff]   ;;  %v4697_v18 = vld [vmem:[%s6332_s3 + $0x288] ss:$12 sps:$4 sm:$0xff]  }
  0x28   : > { %584 = vmatprep.subr.bf16.mxu1 %v4969_v2  ;;  %1121 = vmatprep.subr.bf16.mxu0 %v4633_v61  ;;  %v4668_v61 = vld [vmem:[%s6330_s1 + $0x20] ss:$12 sps:$4 sm:$0xff]   ;;  %v4718_v31 = vld [vmem:[%s6332_s3 + $0x248] ss:$12 sps:$4 sm:$0xff]  }
  0x29   : > { %v4700_v21 = vld [vmem:[%s6332_s3 + $0x2a0] ss:$12 sps:$4 sm:$0xff]   ;;  %v4709_v32 = vld [vmem:[%s6332_s3 + $0x2e8] ss:$12 sps:$4 sm:$0xff]  }
  0x2a   : > { %554 = vmatmul.mubr.bf16.vlgmr.msra.gmra.mrb[0].mxu1 %v5166_v63  ;;  %824 = vmatmul.mubr.bf16.vlgmr.msra.gmra.mrb[0].mxu0 %v5130_v42  ;;  %v4734_v53 = vld [vmem:[%s6332_s3 + $0x360] ss:$12 sps:$4 sm:$0xff]  }
  0x2b   : > { %585 = vmatpush1.bf16.msra.mxu1 %v4634_v0  ;;  %1122 = vmatpush1.bf16.msra.mxu0 %v4631_v62  ;;  %v5329_v62 = vrot.slane %v5196_v15, 1  ;;  %v4669_v0 = vld [vmem:[%s6330_s1 + $0x38] ss:$12 sps:$4 sm:$0xff]  }
  0x2c   : > { %586 = vmatprep.subr.bf16.mxu1 %v4969_v2  ;;  %1123 = vmatprep.subr.bf16.mxu0 %v4637_v3  ;;  %v4671_v3 = vld [vmem:[%s6330_s1 + $0x68] ss:$12 sps:$4 sm:$0xff]  }
  0x2d   : > { %3785 = vmatprep.mubr.msk.bf16.mxu0 %vm511_vm0, %v5126_v39  ;;  %3752 = vmatprep.mubr.msk.bf16.mxu1 %vm511_vm0, %v5213_v23 }
  0x2f   : > { %587 = vmatpush1.bf16.msra.mxu1 %v4638_v5  ;;  %1124 = vmatpush1.bf16.msra.mxu0 %v4635_v4  ;;  %v4672_v4 = vld [vmem:[%s6330_s1 + $0x80] ss:$12 sps:$4 sm:$0xff]   ;;  %v4673_v5 = vld [vmem:[%s6330_s1 + $0x98] ss:$12 sps:$4 sm:$0xff]  }
  0x30   : > { %588 = vmatprep.subr.bf16.mxu1 %v4969_v2  ;;  %1125 = vmatprep.subr.bf16.mxu0 %v4641_v13  ;;  %v4681_v13 = vld [vmem:[%s6330_s1 + $0x230] ss:$12 sps:$4 sm:$0xff]  }
  0x32   : > { %834 = vmatmul.mubr.bf16.gmra.mrb[4].mxu0 %v5137_v46  ;;  %564 = vmatmul.mubr.bf16.gmra.mrb[4].mxu1 %v5221_v26 }
  0x33   : > { %589 = vmatpush1.bf16.msra.mxu1 %v4642_v20  ;;  %1126 = vmatpush1.bf16.msra.mxu0 %v4639_v16  ;;  %v4694_v16 = vld [vmem:[%s6332_s3 + $0x270] ss:$12 sps:$4 sm:$0xff]   ;;  %v4683_v20 = vld [vmem:[%s6330_s1 + $0x260] ss:$12 sps:$4 sm:$0xff]  }
  0x34   : > { %590 = vmatprep.subr.bf16.mxu1 %v4969_v2  ;;  %1127 = vmatprep.subr.bf16.mxu0 %v4645_v22  ;;  %v4705_v22 = vld [vmem:[%s6332_s3 + $0x2bc] ss:$12 sps:$4 sm:$0xff]  }
  0x35   : > { %3786 = vmatprep.mubr.msk.bf16.mxu0 %vm511_vm0, %v5186_v8  ;;  %3753 = vmatprep.mubr.msk.bf16.mxu1 %vm511_vm0, %v5224_v27 }
  0x37   : > { %591 = vmatpush1.bf16.msra.mxu1 %v4646_v28  ;;  %1128 = vmatpush1.bf16.msra.mxu0 %v4643_v25  ;;  %v4708_v25 = vld [vmem:[%s6332_s3 + $0x2d4] ss:$12 sps:$4 sm:$0xff]   ;;  %v4711_v28 = vld [vmem:[%s6332_s3 + $0x2ec] ss:$12 sps:$4 sm:$0xff]  }
  0x38   : > { %592 = vmatprep.subr.bf16.mxu1 %v4969_v2  ;;  %1129 = vmatprep.subr.bf16.mxu0 %v4649_v29  ;;  %v4713_v29 = vld [vmem:[%s6332_s3 + $0x230] ss:$12 sps:$4 sm:$0xff]  }
  0x3a   : > { %844 = vmatmul.mubr.bf16.gmra.mrb[8].mxu0 %v5196_v15  ;;  %574 = vmatmul.mubr.bf16.gmra.mrb[8].mxu1 %v5251_v37 }
  0x3b   : > { %593 = vmatpush1.bf16.msra.mxu1 %v4650_v35  ;;  %1130 = vmatpush1.bf16.msra.mxu0 %v4647_v30  ;;  %v4717_v30 = vld [vmem:[%s6332_s3 + $0x308] ss:$12 sps:$4 sm:$0xff]   ;;  %v4714_v35 = vld [vmem:[%s6332_s3 + $0x300] ss:$12 sps:$4 sm:$0xff]  }
  0x3c   : > { %594 = vmatprep.subr.bf16.mxu1 %v4969_v2  ;;  %1131 = vmatprep.subr.bf16.mxu0 %v4653_v36  ;;  %v4721_v36 = vld [vmem:[%s6332_s3 + $0x31c] ss:$12 sps:$4 sm:$0xff]  }
  0x3d   : > { %3853 = vmatprep.mubr.msk.bf16.mxu0 %vm511_vm0, %v5258_v40  ;;  %3754 = vmatprep.mubr.msk.bf16.mxu1 %vm511_vm0, %v5155_v60  ;;  %v5319_v60 = vsel %vm954_vm2, %v959_v33, %v5302_v55  ;;  %v4716_v33 = vld [vmem:[%s6332_s3 + $0x304] ss:$12 sps:$4 sm:$0xff]  }
  0x3f   : > { %595 = vmatpush1.bf16.msra.mxu1 %v4654_v41  ;;  %1132 = vmatpush1.bf16.msra.mxu0 %v4651_v38  ;;  %v4722_v38 = vld [vmem:[%s6332_s3 + $0x320] ss:$12 sps:$4 sm:$0xff]  }
  0x40   : > { %596 = vmatprep.subr.bf16.mxu1 %v4969_v2  ;;  %1133 = vmatprep.subr.bf16.mxu0 %v4657_v43  ;;  %v4726_v41 = vld [vmem:[%s6332_s3 + $0x334] ss:$12 sps:$4 sm:$0xff]   ;;  %v4727_v43 = vld [vmem:[%s6332_s3 + $0x338] ss:$12 sps:$4 sm:$0xff]  }
  0x43   : > { %597 = vmatpush1.bf16.msra.mxu1 %v4658_v45  ;;  %1134 = vmatpush1.bf16.msra.mxu0 %v4655_v44  ;;  %v4724_v44 = vld [vmem:[%s6332_s3 + $0x330] ss:$12 sps:$4 sm:$0xff]   ;;  %v4728_v45 = vld [vmem:[%s6332_s3 + $0x278] ss:$12 sps:$4 sm:$0xff]  }
  0x44   : > { %598 = vmatprep.subr.bf16.mxu1 %v4969_v2  ;;  %1135 = vmatprep.subr.bf16.mxu0 %v4661_v47  ;;  %v4731_v47 = vld [vmem:[%s6332_s3 + $0x34c] ss:$12 sps:$4 sm:$0xff]  }
  0x47   : > { %599 = vmatpush1.bf16.msra.mxu1 %v4662_v49  ;;  %1136 = vmatpush1.bf16.msra.mxu0 %v4659_v48  ;;  %v4732_v48 = vld [vmem:[%s6332_s3 + $0x350] ss:$12 sps:$4 sm:$0xff]   ;;  %v4729_v49 = vld [vmem:[%s6332_s3 + $0x348] ss:$12 sps:$4 sm:$0xff]  }
  0x48   : > { %600 = vmatprep.subr.bf16.mxu1 %v4969_v2  ;;  %1137 = vmatprep.subr.bf16.mxu0 %v4665_v50  ;;  %v4733_v50 = vld [vmem:[%s6332_s3 + $0x290] ss:$12 sps:$4 sm:$0xff]  }
  0x4b   : > { %601 = vmatpush1.bf16.msra.mxu1 %v4666_v52  ;;  %1138 = vmatpush1.bf16.msra.mxu0 %v4663_v51  ;;  %v4736_v51 = vld [vmem:[%s6332_s3 + $0x364] ss:$12 sps:$4 sm:$0xff]   ;;  %v4737_v52 = vld [vmem:[%s6332_s3 + $0x368] ss:$12 sps:$4 sm:$0xff]  }
  0x4c   : > { %854 = vmatprep.subr.bf16.mxu1 %v4969_v2  ;;  %1959 = vmatprep.subr.bf16.mxu0 %v4687_v56  ;;  %v4742_v56 = vld [vmem:[%s6332_s3 + $0x380] ss:$12 sps:$4 sm:$0xff]  }
  0x4e   : > { %617 = vmatmul.mubr.bf16.vlgmr.msra.gmra.mrb[12].mxu1 %v5166_v63  ;;  %1154 = vmatmul.mubr.bf16.vlgmr.msra.gmra.mrb[0].mxu0 %v5311_v58  ;;  %v5339_v63 = vsel %vm954_vm2, %v956_v54, %v5329_v62  ;;  %v4738_v54 = vld [vmem:[%s6332_s3 + $0x2a8] ss:$12 sps:$4 sm:$0xff]  }
  0x4f   : > { %855 = vmatpush1.bf16.msra.mxu1 %v4667_v57  ;;  %3854 = vmatprep.mubr.msk.bf16.mxu0 %vm511_vm0, %v5319_v60  ;;  %v4739_v57 = vld [vmem:[%s6332_s3 + $0x378] ss:$12 sps:$4 sm:$0xff]  }
  0x50   : > { %856 = vmatprep.subr.bf16.mxu1 %v4969_v2  ;;  %3755 = vmatprep.mubr.msk.bf16.mxu1 %vm511_vm0, %v5213_v23  ;;  %v4684_v23 = vld [vmem:[%s6330_s1 + $0x278] ss:$12 sps:$4 sm:$0xff]  }
  0x51   : > { %1960 = vmatpush1.bf16.msra.mxu0 %v4685_v59  ;;  %v4746_v59 = vld [vmem:[%s6332_s3 + $0x394] ss:$12 sps:$4 sm:$0xff]  }
  0x53   : > { %857 = vmatpush1.bf16.msra.mxu1 %v4668_v61  ;;  %v4744_v61 = vld [vmem:[%s6332_s3 + $0x390] ss:$12 sps:$4 sm:$0xff]  }
  0x54   : > { %858 = vmatprep.subr.bf16.mxu1 %v4969_v2 }
  0x56   : > { %1164 = vmatmul.mubr.bf16.gmra.mrb[4].mxu0 %v5339_v63  ;;  %625 = vmatmul.mubr.bf16.gmra.mrb[16].mxu1 %v5221_v26  ;;  %v4712_v26 = vld [vmem:[%s6332_s3 + $0x2f0] ss:$12 sps:$4 sm:$0xff]  }
  0x57   : > { %859 = vmatpush1.bf16.msra.mxu1 %v4669_v0  ;;  %3855 = vmatprep.mubr.msk.bf16.mxu0 %vm511_vm0, %v5302_v55  ;;  %v4751_v0 = vld [vmem:[%s6332_s3 + $0x3ac] ss:$12 sps:$4 sm:$0xff]  }
  0x58   : > { %860 = vmatprep.subr.bf16.mxu1 %v4969_v2  ;;  %3756 = vmatprep.mubr.msk.bf16.mxu1 %vm511_vm0, %v5224_v27  ;;  %v4706_v27 = vld [vmem:[%s6332_s3 + $0x2d0] ss:$12 sps:$4 sm:$0xff]  }
  0x5b   : > { %861 = vmatpush1.bf16.msra.mxu1 %v4670_v1 }
  0x5c   : > { %862 = vmatprep.subr.bf16.mxu1 %v4969_v2 }
  0x5e   : > { %1174 = vmatmul.mubr.bf16.gmra.mrb[8].mxu0 %v5329_v62  ;;  %633 = vmatmul.mubr.bf16.gmra.mrb[20].mxu1 %v5251_v37  ;;  %v4719_v37 = vld [vmem:[%s6332_s3 + $0x318] ss:$12 sps:$4 sm:$0xff]  }
  0x5f   : > { %863 = vmatpush1.bf16.msra.mxu1 %v4671_v3  ;;  %3787 = vmatprep.mubr.msk.bf16.mxu1 %vm511_vm0, %v5116_v34  ;;  %v4675_v34 = vld [vmem:[%s6330_s1 + $0xc8] ss:$12 sps:$4 sm:$0xff]  }
  0x60   : > { %864 = vmatprep.subr.bf16.mxu1 %v4969_v2 }
  0x63   : > { %865 = vmatpush1.bf16.msra.mxu1 %v4672_v4 }
  0x64   : > { %866 = vmatprep.subr.bf16.mxu1 %v4969_v2 }
  0x67   : > { %867 = vmatpush1.bf16.msra.mxu1 %v4673_v5 }
  0x68   : > { %868 = vmatprep.subr.bf16.mxu1 %v4969_v2 }
  0x6b   : > { %869 = vmatpush1.bf16.msra.mxu1 %v4674_v6 }
  0x6c   : > { %870 = vmatprep.subr.bf16.mxu1 %v4969_v2 }
  0x6f   : > { %871 = vmatpush1.bf16.msra.mxu1 %v4675_v34 }
  0x70   : > { %1184 = vmatprep.subr.bf16.mxu1 %v4969_v2 }
  0x72   : > { %887 = vmatmul.mubr.bf16.vlgmr.msra.gmra.mrb[24].mxu1 %v5130_v42  ;;  %v4690_v42 = vld [vmem:[%s6332_s3 + $0x244] ss:$12 sps:$4 sm:$0xff]  }
  0x73   : > { %1185 = vmatpush1.bf16.msra.mxu1 %v4676_v7  ;;  %3788 = vmatprep.mubr.msk.bf16.mxu1 %vm511_vm0, %v5126_v39  ;;  %v4680_v39 = vld [vmem:[%s6330_s1 + $0x218] ss:$12 sps:$4 sm:$0xff]  }
  0x74   : > { %1186 = vmatprep.subr.bf16.mxu1 %v4969_v2  ;;  %1961 = vmatprep.subr.bf16.mxu0 %v4690_v42 }
  0x75   : > { %1962 = vmatpush1.bf16.msra.mxu0 %v4688_v12  ;;  %v1261_v12 = vlaneseq }
  0x77   : > { %1187 = vmatpush1.bf16.msra.mxu1 %v4677_v9 }
  0x78   : > { %1188 = vmatprep.subr.bf16.mxu1 %v4969_v2 }
  0x7a   : > { %895 = vmatmul.mubr.bf16.gmra.mrb[28].mxu1 %v5137_v46  ;;  %v4691_v46 = vld [vmem:[%s6332_s3 + $0x258] ss:$12 sps:$4 sm:$0xff]  }
  0x7b   : > { %1189 = vmatpush1.bf16.msra.mxu1 %v4678_v10  ;;  %3789 = vmatprep.mubr.msk.bf16.mxu1 %vm511_vm0, %v5186_v8  ;;  %v4693_v8 = vld [vmem:[%s6332_s3 + $0x25c] ss:$12 sps:$4 sm:$0xff]  }
  0x7c   : > { %1190 = vmatprep.subr.bf16.mxu1 %v4969_v2  ;;  %1963 = vmatprep.subr.bf16.mxu0 %v4693_v8 }
  0x7d   : > { %1964 = vmatpush1.bf16.msra.mxu0 %v4691_v46  ;;  %v5574_v46 = vshrl.u32 %v1261_v12, 7 }
  0x7e   : > { %1965 = vmatprep.subr.bf16.mxu0 %v4696_v14 }
  0x7f   : > { %1191 = vmatpush1.bf16.msra.mxu1 %v4679_v11  ;;  %v1263_v8 = vsub.s32 0, %v5574_v46  ;;  %v1267_v14 = vsub.s32 1, %v5574_v46 }
  0x80   : > { %1192 = vmatprep.subr.bf16.mxu1 %v4969_v2 }
  0x81   : > { %1966 = vmatpush1.bf16.msra.mxu0 %v4694_v16 }
  0x82   : > { %903 = vmatmul.mubr.bf16.gmra.mrb[32].mxu1 %v5196_v15  ;;  %v4682_v15 = vld [vmem:[%s6330_s1 + $0x248] ss:$12 sps:$4 sm:$0xff]   ;;  %1967 = vmatprep.subr.bf16.mxu0 %v4699_v17 }
  0x83   : > { %1193 = vmatpush1.bf16.msra.mxu1 %v4680_v39  ;;  %3856 = vmatprep.mubr.msk.bf16.mxu1 %vm511_vm0, %v5258_v40  ;;  %v4723_v40 = vld [vmem:[%s6332_s3 + $0x260] ss:$12 sps:$4 sm:$0xff]  }
  0x84   : > { %1194 = vmatprep.subr.bf16.mxu1 %v4969_v2 }
  0x85   : > { %1968 = vmatpush1.bf16.msra.mxu0 %v4697_v18 }
  0x86   : > { %1969 = vmatprep.subr.bf16.mxu0 %v4702_v19 }
  0x87   : > { %1195 = vmatpush1.bf16.msra.mxu1 %v4681_v13  ;;  %v5580_v13 = vld [vmem:[%s6331_s2] sm:$0x7] }
  0x88   : > { %1196 = vmatprep.subr.bf16.mxu1 %v4969_v2  ;;  %v5586_v16 = vrot.slane %v5580_v13, %v1263_v8  ;;  %v5593_v18 = vrot.slane %v5580_v13, %v1267_v14 }
  0x89   : > { %1970 = vmatpush1.bf16.msra.mxu0 %v4700_v21 }
  0x8a   : > { %1971 = vmatprep.subr.bf16.mxu0 %v4705_v22 }
  0x8b   : > { %1197 = vmatpush1.bf16.msra.mxu1 %v4682_v15 }
  0x8c   : > { %1198 = vmatprep.subr.bf16.mxu1 %v4969_v2 }
  0x8d   : > { %1972 = vmatpush1.bf16.msra.mxu0 %v4703_v24 }
  0x8e   : > { %1973 = vmatprep.subr.bf16.mxu0 %v4708_v25 }
  0x8f   : > { %1199 = vmatpush1.bf16.msra.mxu1 %v4683_v20 }
  0x90   : > { %1200 = vmatprep.subr.bf16.mxu1 %v4969_v2 }
  0x91   : > { %1974 = vmatpush1.bf16.msra.mxu0 %v4706_v27 }
  0x92   : > { %1975 = vmatprep.subr.bf16.mxu0 %v4711_v28 }
  0x93   : > { %1201 = vmatpush1.bf16.msra.mxu1 %v4684_v23 }
  0x94   : > { %4270 = vmatprep.subr.bf16.mxu1 %v4712_v26 }
  0x95   : > { %1976 = vmatpush1.bf16.msra.mxu0 %v4709_v32 }
  0x96   : > { %1217 = vmatmul.mubr.bf16.vlgmr.msra.gmra.mrb[36].mxu1 %v5311_v58  ;;  %1977 = vmatprep.subr.bf16.mxu0 %v4716_v33  ;;  %v4743_v58 = vld [vmem:[%s6332_s3 + $0x2c0] ss:$12 sps:$4 sm:$0xff]  }
  0x97   : > { %3857 = vmatprep.mubr.msk.bf16.mxu1 %vm511_vm0, %v5319_v60  ;;  %4271 = vmatpush3.bf16.msra.mxu1 %v4713_v29  ;;  %v4747_v60 = vld [vmem:[%s6332_s3 + $0x398] ss:$12 sps:$4 sm:$0xff]  }
  0x98   : > { %4272 = vmatprep.subr.bf16.mxu1 %v4717_v30 }
  0x99   : > { %1978 = vmatpush1.bf16.msra.mxu0 %v4714_v35 }
  0x9a   : > { %1979 = vmatprep.subr.bf16.mxu0 %v4721_v36 }
  0x9b   : > { %4273 = vmatpush3.bf16.msra.mxu1 %v4718_v31 }
  0x9c   : > { %4274 = vmatprep.subr.bf16.mxu1 %v4722_v38 }
  0x9d   : > { %1980 = vmatpush1.bf16.msra.mxu0 %v4719_v37 }
  0x9e   : > { %1225 = vmatmul.mubr.bf16.gmra.mrb[40].mxu1 %v5339_v63  ;;  %1981 = vmatprep.subr.bf16.mxu0 %v4726_v41  ;;  %v4970_v63 = vmov 0.0  }
  0x9f   : > { %3858 = vmatprep.mubr.msk.bf16.mxu1 %vm511_vm0, %v5302_v55  ;;  %4275 = vmatpush3.bf16.msra.mxu1 %v4723_v40  ;;  %v4741_v55 = vld [vmem:[%s6332_s3 + $0x37c] ss:$12 sps:$4 sm:$0xff]  }
  0xa0   : > { %4276 = vmatprep.subr.bf16.mxu1 %v4727_v43 }
  0xa1   : > { %1982 = vmatpush1.bf16.msra.mxu0 %v4724_v44 }
  0xa2   : > { %1983 = vmatprep.subr.bf16.mxu0 %v4731_v47 }
  0xa3   : > { %4277 = vmatpush3.bf16.msra.mxu1 %v4728_v45 }
  0xa4   : > { %4278 = vmatprep.subr.bf16.mxu1 %v4732_v48 }
  0xa5   : > { %1984 = vmatpush1.bf16.msra.mxu0 %v4729_v49 }
  0xa6   : > { %1233 = vmatmul.mubr.bf16.gmra.mrb[44].mxu1 %v5329_v62  ;;  %1985 = vmatprep.subr.bf16.mxu0 %v4736_v51  ;;  %v4748_v62 = vld [vmem:[%s6332_s3 + $0x2d8] ss:$12 sps:$4 sm:$0xff]  }
  0xa7   : > { %4279 = vmatpush3.bf16.msra.mxu1 %v4733_v50 }
  0xa8   : > { %4280 = vmatprep.subr.bf16.mxu1 %v4737_v52 }
  0xa9   : > { %1986 = vmatpush1.bf16.msra.mxu0 %v4734_v53 }
  0xaa   : > { %1987 = vmatprep.subr.bf16.mxu0 %v4741_v55 }
  0xab   : > { %4281 = vmatpush3.bf16.msra.mxu1 %v4738_v54 }
  0xac   : > { %4282 = vmatprep.subr.bf16.mxu1 %v4742_v56 }
  0xad   : > { %1988 = vmatpush1.bf16.msra.mxu0 %v4739_v57 }
  0xae   : > { %1989 = vmatprep.subr.bf16.mxu0 %v4746_v59 }
  0xaf   : > { %4283 = vmatpush3.bf16.msra.mxu1 %v4743_v58 }
  0xb0   : > { %4284 = vmatprep.subr.bf16.mxu1 %v4747_v60 }
  0xb1   : > { %1990 = vmatpush1.bf16.msra.mxu0 %v4744_v61 }
  0xb2   : > { %2022 = vmatprep.subr.bf16.mxu0 %v4751_v0 }
  0xb3   : > { %4285 = vmatpush3.bf16.msra.mxu1 %v4748_v62 }
  0xb4   : > { %4402 = vmatprep.subr.bf16.mxu1 %v4970_v63 }
  0xfd   : > { %v555_v1 = vpop.f32.mrb[0].mxu1 }
  0xfe   : > { %v557_v3 = vpop.f32.mrb[1].mxu1 }
  0xff   : > { %v559_v4 = vpop.f32.mrb[2].mxu1 }
 0x100   : > { %v561_v5 = vpop.f32.mrb[3].mxu1 }
 0x105   : > { %v565_v6 = vpop.f32.mrb[4].mxu1 }
 0x106   : > { %v567_v34 = vpop.f32.mrb[5].mxu1 }
 0x107   : > { %v569_v7 = vpop.f32.mrb[6].mxu1 }
 0x108   : > { %v571_v9 = vpop.f32.mrb[7].mxu1 }
 0x10d   : > { %v575_v10 = vpop.f32.mrb[8].mxu1 }
 0x10e   : > { %v577_v11 = vpop.f32.mrb[9].mxu1 }
 0x10f   : > { %v5570_v39 = vpop.f32.mrb[10].mxu1 }
 0x110   : > { %v5572_v42 = vpop.f32.mrb[11].mxu1 }
 0x121   : > { %v5588_v17 = vpop.f32.mrb[12].mxu1  ;;  %v1155_v15 = vpop.f32.mrb[0].mxu0 }
 0x122   : > { %v4480_v19 = vadd.f32 %v1155_v15, %v555_v1  ;;  %v620_v20 = vpop.f32.mrb[13].mxu1  ;;  %v1157_v21 = vpop.f32.mrb[1].mxu0 }
 0x123   : > { %v4481_v22 = vadd.f32 %v1157_v21, %v557_v3  ;;  %v5595_v23 = vpop.f32.mrb[14].mxu1  ;;  %v1159_v24 = vpop.f32.mrb[2].mxu0 }
 0x124   : > { %v1276_v25 = vadd.f32 %v4480_v19, %v5586_v16  ;;  %v4482_v26 = vadd.f32 %v1159_v24, %v559_v4  ;;  %v623_v27 = vpop.f32.mrb[15].mxu1  ;;  %v1161_v28 = vpop.f32.mrb[3].mxu0 }
 0x125   : > { %v1277_v29 = vadd.f32 %v4481_v22, %v5593_v18  ;;  %v4483_v30 = vadd.f32 %v1161_v28, %v561_v5 }
 0x126   : > { %v1279_v31 = vadd.f32 %v4482_v26, %v5586_v16  ;;  %v1294_v33 = vmax.f32 %v1276_v25, 0.0 }
 0x127   : > { %v1280_v32 = vadd.f32 %v4483_v30, %v5593_v18  ;;  %v1295_v36 = vmax.f32 %v1277_v29, 0.0 }
 0x128   : > { %v1297_v35 = vmax.f32 %v1279_v31, 0.0 }
 0x129   : > { %v1298_v37 = vmax.f32 %v1280_v32, 0.0  ;;  %v1165_v38 = vpop.f32.mrb[4].mxu0  ;;  %v5601_v40 = vpop.f32.mrb[16].mxu1 }
 0x12a   : > { %v5603_v41 = vpack.c.bf16 %v1297_v35, %v1294_v33  ;;  %v4484_v43 = vadd.f32 %v1165_v38, %v565_v6  ;;  %v1167_v44 = vpop.f32.mrb[5].mxu0  ;;  %v628_v45 = vpop.f32.mrb[17].mxu1 }
 0x12b   : > { %v5605_v47 = vpack.c.bf16 %v1298_v37, %v1295_v36  ;;  %v4485_v48 = vadd.f32 %v1167_v44, %v567_v34  ;;  %v1169_v49 = vpop.f32.mrb[6].mxu0  ;;  %v5607_v50 = vpop.f32.mrb[18].mxu1 }
 0x12c   : > { %v1282_v51 = vadd.f32 %v4484_v43, %v5586_v16  ;;  %v4486_v52 = vadd.f32 %v1169_v49, %v569_v7  ;;  %v1171_v53 = vpop.f32.mrb[7].mxu0  ;;  %v631_v54 = vpop.f32.mrb[19].mxu1  ;;  %v1509_v62 = vshll.u32 %v5603_v41, 16  ;;  %v1507_v31 = vshrl.u32 %v5603_v41, 16  ;;  %v4752_v43 = vld [vmem:[%s6332_s3 + $0x3b0] ss:$12 sps:$4 sm:$0xff]  }
 0x12d   : > { %v1283_v55 = vadd.f32 %v4485_v48, %v5593_v18  ;;  %v4487_v56 = vadd.f32 %v1171_v53, %v571_v9  ;;  %v1521_v59 = vshll.u32 %v5605_v47, 16  ;;  %v1519_v29 = vshrl.u32 %v5605_v47, 16  ;;  %v4753_v53 = vld [vmem:[%s6332_s3 + $0x3c0] ss:$12 sps:$4 sm:$0xff]   ;;  %v4756_v54 = vld [vmem:[%s6332_s3 + $0x3c8] ss:$12 sps:$4 sm:$0xff]  }
 0x12e   : > { %v1285_v57 = vadd.f32 %v4486_v52, %v5586_v16  ;;  %v1300_v60 = vmax.f32 %v1282_v51, 0.0  ;;  %v1511_v25 = vrot.slane %v1509_v62, 1 }
 0x12f   : > { %v1286_v58 = vadd.f32 %v4487_v56, %v5593_v18  ;;  %v1301_v0 = vmax.f32 %v1283_v55, 0.0  ;;  %v1523_v19 = vrot.slane %v1521_v59, 1 }
 0x130   : > { %v1303_v61 = vmax.f32 %v1285_v57, 0.0  ;;  %v1512_v38 = vor.u32 %v1511_v25, %v1507_v31  ;;  %v4759_v57 = vld [vmem:[%s6332_s3 + $0x3dc] ss:$12 sps:$4 sm:$0xff]   ;;  %v4767_v25 = vld [vmem:[%s6332_s3 + $0x40c] ss:$12 sps:$4 sm:$0xff]  }
 0x131   : > { %v1304_v1 = vmax.f32 %v1286_v58, 0.0  ;;  %v1175_v3 = vpop.f32.mrb[8].mxu0  ;;  %v5615_v4 = vpop.f32.mrb[20].mxu1  ;;  %v1524_v33 = vor.u32 %v1523_v19, %v1519_v29  ;;  %v4761_v19 = vld [vmem:[%s6332_s3 + $0x3f0] ss:$12 sps:$4 sm:$0xff]  }
 0x132   : > { %v5617_v5 = vpack.c.bf16 %v1303_v61, %v1300_v60  ;;  %v4488_v6 = vadd.f32 %v1175_v3, %v575_v10  ;;  %v1177_v34 = vpop.f32.mrb[9].mxu0  ;;  %v636_v7 = vpop.f32.mrb[21].mxu1  ;;  %v4769_v31 = vld [vmem:[%s6332_s3 + $0x420] ss:$12 sps:$4 sm:$0xff]  }
 0x133   : > { %v5619_v9 = vpack.c.bf16 %v1304_v1, %v1301_v0  ;;  %v4489_v12 = vadd.f32 %v1177_v34, %v577_v11  ;;  %v1179_v15 = vpop.f32.mrb[10].mxu0  ;;  %v5621_v20 = vpop.f32.mrb[22].mxu1  ;;  %v4760_v34 = vld [vmem:[%s6332_s3 + $0x3e0] ss:$12 sps:$4 sm:$0xff]  }
 0x134   : > { %v1288_v21 = vadd.f32 %v4488_v6, %v5586_v16  ;;  %v4490_v22 = vadd.f32 %v1179_v15, %v5570_v39  ;;  %v1181_v24 = vpop.f32.mrb[11].mxu0  ;;  %v1514_v26 = vshll.u32 %v5617_v5, 16  ;;  %v639_v27 = vpop.f32.mrb[23].mxu1  ;;  %v1542_v58 = vshrl.u32 %v5617_v5, 16  ;;  %v4757_v6 = vld [vmem:[%s6332_s3 + $0x3d8] ss:$12 sps:$4 sm:$0xff]  }
 0x135   : > { %v1289_v10 = vadd.f32 %v4489_v12, %v5593_v18  ;;  %v4491_v28 = vadd.f32 %v1181_v24, %v5572_v42  ;;  %v1526_v11 = vshll.u32 %v5619_v9, 16  ;;  %v4749_v42 = vld [vmem:[%s6332_s3 + $0x3a8] ss:$12 sps:$4 sm:$0xff]   ;;  %v1550_v55 = vshrl.u32 %v5619_v9, 16 }
 0x136   : > { %v1291_v30 = vadd.f32 %v4490_v22, %v5586_v16  ;;  %v1516_v32 = vrot.slane %v1514_v26, 1  ;;  %v1306_v36 = vmax.f32 %v1288_v21, 0.0  ;;  %v4763_v12 = vld [vmem:[%s6332_s3 + $0x3f4] ss:$12 sps:$4 sm:$0xff]   ;;  %v4764_v21 = vld [vmem:[%s6332_s3 + $0x3f8] ss:$12 sps:$4 sm:$0xff]  }
 0x137   : > { %v1292_v39 = vadd.f32 %v4491_v28, %v5593_v18  ;;  %v1528_v35 = vrot.slane %v1526_v11, 1  ;;  %v1307_v44 = vmax.f32 %v1289_v10, 0.0  ;;  %v4755_v18 = vld [vmem:[%s6332_s3 + $0x3c4] ss:$12 sps:$4 sm:$0xff]  }
 0x138   : > { %v1309_v37 = vmax.f32 %v1291_v30, 0.0  ;;  %v1517_v49 = vsel %vm317_vm1, %v1512_v38, %v1516_v32  ;;  %v1544_v0 = vor.u32 %v1542_v58, %v1516_v32  ;;  %v4768_v11 = vld [vmem:[%s6332_s3 + $0x410] ss:$12 sps:$4 sm:$0xff]   ;;  %v4772_v32 = vld [vmem:[%s6332_s3 + $0x428] ss:$12 sps:$4 sm:$0xff]  }
 0x139   : > { %v1310_v16 = vmax.f32 %v1292_v39, 0.0  ;;  %v1529_v45 = vsel %vm317_vm1, %v1524_v33, %v1528_v35  ;;  %v1552_v60 = vor.u32 %v1550_v55, %v1528_v35  ;;  %v4771_v30 = vld [vmem:[%s6332_s3 + $0x424] ss:$12 sps:$4 sm:$0xff]   ;;  %v4775_v35 = vld [vmem:[%s6332_s3 + $0x43c] ss:$12 sps:$4 sm:$0xff]  }
 0x13a   : > { %v5643_v48 = vpack.c.bf16 %v1309_v37, %v1306_v36  ;;  %1991 = vmatprep.mubr.bf16.mxu0 %v1529_v45  ;;  %2117 = vmatprep.mubr.bf16.mxu1 %v1529_v45 }
 0x13b   : > { %v5646_v51 = vpack.c.bf16 %v1310_v16, %v1307_v44  ;;  %1992 = vmatmul.mubr.bf16.vlgmr.msra.gmra.mrb[12].mxu0 %v1517_v49  ;;  %2118 = vmatmul.mubr.bf16.vlgmr.msra.gmra.mrb[48].mxu1 %v1517_v49 }
 0x13c   : > { %v1546_v52 = vshll.u32 %v5643_v48, 16  ;;  %2023 = vmatpush1.bf16.msra.mxu0 %v4749_v42  ;;  %4403 = vmatpush3.bf16.msra.mxu1 %v4752_v43  ;;  %v1566_v27 = vshrl.u32 %v5643_v48, 16  ;;  %v4773_v42 = vld [vmem:[%s6332_s3 + $0x438] ss:$12 sps:$4 sm:$0xff]  }
 0x13d   : > { %v1554_v56 = vshll.u32 %v5646_v51, 16  ;;  %2024 = vmatprep.subr.bf16.mxu0 %v4755_v18  ;;  %4404 = vmatprep.subr.bf16.mxu1 %v4970_v63  ;;  %v1569_v62 = vshrl.u32 %v5646_v51, 16  ;;  %v4779_v43 = vld [vmem:[%s6332_s3 + $0x4] ss:$12 sps:$4 sm:$0xff]  }
 0x13e   : > { %v1548_v59 = vrot.slane %v1546_v52, 1 }
 0x13f   : > { %v1556_v61 = vrot.slane %v1554_v56, 1 }
 0x140   : > { %2025 = vmatpush1.bf16.msra.mxu0 %v4753_v53  ;;  %4405 = vmatpush3.bf16.msra.mxu1 %v4756_v54  ;;  %v1549_v7 = vsel %vm317_vm1, %v1544_v0, %v1548_v59  ;;  %v1568_v29 = vor.u32 %v1566_v27, %v1548_v59  ;;  %v1271_v53 = vsub.s32 2, %v5574_v46 }
 0x141   : > { %v1557_v1 = vsel %vm317_vm1, %v1552_v60, %v1556_v61  ;;  %v1571_v3 = vor.u32 %v1569_v62, %v1556_v61  ;;  %2026 = vmatprep.subr.bf16.mxu0 %v4759_v57  ;;  %4406 = vmatprep.subr.bf16.mxu1 %v4970_v63 }
 0x142   : > { %2001 = vmatprep.mubr.bf16.mxu0 %v1557_v1  ;;  %2125 = vmatprep.mubr.bf16.mxu1 %v1557_v1  ;;  %v1272_v54 = vrot.slane %v5580_v13, %v1271_v53 }
 0x143   : > { %2002 = vmatmul.mubr.bf16.gmra.mrb[16].mxu0 %v1549_v7  ;;  %2126 = vmatmul.mubr.bf16.gmra.mrb[52].mxu1 %v1549_v7 }
 0x144   : > { %2011 = vmatprep.mubr.bf16.mxu0 %v1571_v3  ;;  %2133 = vmatprep.mubr.bf16.mxu1 %v1571_v3 }
 0x145   : > { %v888_v15 = vpop.f32.mrb[24].mxu1  ;;  %2027 = vmatpush1.bf16.msra.mxu0 %v4757_v6  ;;  %4407 = vmatpush3.bf16.msra.mxu1 %v4760_v34 }
 0x146   : > { %v889_v22 = vadd.f32 %v888_v15, %v5588_v17  ;;  %v890_v24 = vpop.f32.mrb[25].mxu1  ;;  %2028 = vmatprep.subr.bf16.mxu0 %v4763_v12  ;;  %4408 = vmatprep.subr.bf16.mxu1 %v4970_v63  ;;  %v4765_v17 = vld [vmem:[%s6332_s3 + $0x408] ss:$12 sps:$4 sm:$0xff]  }
 0x147   : > { %v891_v26 = vpop.f32.mrb[26].mxu1 }
 0x148   : > { %v892_v10 = vadd.f32 %v891_v26, %v5595_v23  ;;  %v893_v28 = vpop.f32.mrb[27].mxu1 }
 0x149   : > { %2029 = vmatpush1.bf16.msra.mxu0 %v4761_v19  ;;  %4409 = vmatpush3.bf16.msra.mxu1 %v4764_v21 }
 0x14a   : > { %2030 = vmatprep.subr.bf16.mxu0 %v4767_v25  ;;  %4410 = vmatprep.subr.bf16.mxu1 %v4970_v63 }
 0x14b   : > { %2012 = vmatmul.mubr.bf16.gmra.mrb[20].mxu0 %v1568_v29  ;;  %2134 = vmatmul.mubr.bf16.gmra.mrb[56].mxu1 %v1568_v29 }
 0x14c   : > { %2054 = vmatprep.mubr.bf16.mxu0 %v4969_v2  ;;  %4416 = vmatprep.mubr.msk.bf16.mxu1 %vm4971_vm3, %v4970_v63 }
 0x14d   : > { %v896_v23 = vpop.f32.mrb[28].mxu1  ;;  %2031 = vmatpush1.bf16.msra.mxu0 %v4765_v17  ;;  %4411 = vmatpush3.bf16.msra.mxu1 %v4768_v11 }
 0x14e   : > { %v897_v39 = vadd.f32 %v896_v23, %v5601_v40  ;;  %v898_v33 = vpop.f32.mrb[29].mxu1  ;;  %2032 = vmatprep.subr.bf16.mxu0 %v4771_v30  ;;  %4412 = vmatprep.subr.bf16.mxu1 %v4970_v63  ;;  %v4776_v40 = vld [vmem:[%s6332_s3 + $0x440] ss:$12 sps:$4 sm:$0xff]  }
 0x14f   : > { %v899_v36 = vpop.f32.mrb[30].mxu1 }
 0x150   : > { %v900_v37 = vadd.f32 %v899_v36, %v5607_v50  ;;  %v901_v38 = vpop.f32.mrb[31].mxu1  ;;  %v4780_v50 = vld [vmem:[%s6332_s3 + $0xc8] ss:$12 sps:$4 sm:$0xff]  }
 0x151   : > { %2033 = vmatpush1.bf16.msra.mxu0 %v4769_v31  ;;  %4413 = vmatpush3.bf16.msra.mxu1 %v4772_v32  ;;  %v4777_v32 = vld [vmem:[%s6332_s3] ss:$12 sps:$4 sm:$0xff]   ;;  %v4784_v36 = vld [vmem:[%s6332_s3 + $0x1c] ss:$12 sps:$4 sm:$0xff]  }
 0x152   : > { %2034 = vmatprep.subr.bf16.mxu0 %v4775_v35  ;;  %4414 = vmatprep.subr.bf16.mxu1 %v4970_v63  ;;  %v4781_v35 = vld [vmem:[%s6332_s3 + $0x8] ss:$12 sps:$4 sm:$0xff]  }
 0x155   : > { %v904_v44 = vpop.f32.mrb[32].mxu1  ;;  %2035 = vmatpush1.bf16.msra.mxu0 %v4773_v42  ;;  %4415 = vmatpush3.bf16.msra.mxu1 %v4776_v40 }
 0x156   : > { %v905_v16 = vadd.f32 %v904_v44, %v5615_v4  ;;  %v906_v45 = vpop.f32.mrb[33].mxu1  ;;  %2573 = vmatprep.subr.bf16.mxu0 %v4779_v43  ;;  %4314 = vmatprep.subr.bf16.mxu1 %v4780_v50  ;;  %v4782_v50 = vld [vmem:[%s6332_s3 + $0x18] ss:$12 sps:$4 sm:$0xff]   ;;  %v4786_v44 = vld [vmem:[%s6332_s3 + $0x20] ss:$12 sps:$4 sm:$0xff]  }
 0x157   : > { %v907_v18 = vpop.f32.mrb[34].mxu1  ;;  %v4790_v45 = vld [vmem:[%s6332_s3 + $0xf8] ss:$12 sps:$4 sm:$0xff]  }
 0x158   : > { %v908_v49 = vadd.f32 %v907_v18, %v5621_v20  ;;  %v909_v52 = vpop.f32.mrb[35].mxu1 }
 0x159   : > { %v4787_v52 = vld [vmem:[%s6332_s3 + $0x30] ss:$12 sps:$4 sm:$0xff]  }
 0x169   : > { %v1218_v55 = vpop.f32.mrb[36].mxu1 }
 0x16a   : > { %v1243_v56 = vadd.f32 %v1218_v55, %v889_v22  ;;  %v1220_v57 = vpop.f32.mrb[37].mxu1 }
 0x16b   : > { %v1221_v58 = vpop.f32.mrb[38].mxu1  ;;  %v4794_v57 = vld [vmem:[%s6332_s3 + $0x4c] ss:$12 sps:$4 sm:$0xff]  }
 0x16c   : > { %v1278_v59 = vadd.f32 %v1272_v54, %v1243_v56  ;;  %v1246_v60 = vadd.f32 %v1221_v58, %v892_v10  ;;  %v1223_v4 = vpop.f32.mrb[39].mxu1  ;;  %v4791_v56 = vld [vmem:[%s6332_s3 + $0x38] ss:$12 sps:$4 sm:$0xff]   ;;  %v4795_v58 = vld [vmem:[%s6332_s3 + $0x110] ss:$12 sps:$4 sm:$0xff]  }
 0x16d   : > { %v4796_v4 = vld [vmem:[%s6332_s3 + $0x50] ss:$12 sps:$4 sm:$0xff]  }
 0x16e   : > { %v1281_v61 = vadd.f32 %v1272_v54, %v1246_v60  ;;  %v1296_v62 = vmax.f32 %v1278_v59, 0.0  ;;  %v4792_v60 = vld [vmem:[%s6332_s3 + $0x48] ss:$12 sps:$4 sm:$0xff]  }
 0x170   : > { %v1299_v0 = vmax.f32 %v1281_v61, 0.0  ;;  %v4799_v61 = vld [vmem:[%s6332_s3 + $0x64] ss:$12 sps:$4 sm:$0xff]  }
 0x171   : > { %v1226_v1 = vpop.f32.mrb[40].mxu1 }
 0x172   : > { %v5732_v3 = vpack.c.bf16 %v1299_v0, %v1296_v62  ;;  %v1249_v20 = vadd.f32 %v1226_v1, %v897_v39  ;;  %v1228_v6 = vpop.f32.mrb[41].mxu1  ;;  %v4800_v62 = vld [vmem:[%s6332_s3 + $0x128] ss:$12 sps:$4 sm:$0xff]   ;;  %v4797_v1 = vld [vmem:[%s6332_s3 + $0x60] ss:$12 sps:$4 sm:$0xff]  }
 0x173   : > { %v1229_v34 = vpop.f32.mrb[42].mxu1 }
 0x174   : > { %v1284_v7 = vadd.f32 %v1272_v54, %v1249_v20  ;;  %v1252_v12 = vadd.f32 %v1229_v34, %v900_v37  ;;  %v1231_v15 = vpop.f32.mrb[43].mxu1  ;;  %v1533_v19 = vshll.u32 %v5732_v3, 16  ;;  %v1531_v11 = vshrl.u32 %v5732_v3, 16  ;;  %v4785_v37 = vld [vmem:[%s6332_s3 + $0xe0] ss:$12 sps:$4 sm:$0xff]  }
 0x175   : > { %v4801_v20 = vld [vmem:[%s6332_s3 + $0x68] ss:$12 sps:$4 sm:$0xff]   ;;  %v4806_v15 = vld [vmem:[%s6332_s3 + $0x80] ss:$12 sps:$4 sm:$0xff]  }
 0x176   : > { %v1287_v13 = vadd.f32 %v1272_v54, %v1252_v12  ;;  %v1302_v21 = vmax.f32 %v1284_v7, 0.0  ;;  %v1535_v10 = vrot.slane %v1533_v19, 1  ;;  %v4804_v34 = vld [vmem:[%s6332_s3 + $0x7c] ss:$12 sps:$4 sm:$0xff]   ;;  %v4805_v7 = vld [vmem:[%s6332_s3 + $0x140] ss:$12 sps:$4 sm:$0xff]  }
 0x177   : > { %v4802_v12 = vld [vmem:[%s6332_s3 + $0x78] ss:$12 sps:$4 sm:$0xff]  }
 0x178   : > { %v1305_v22 = vmax.f32 %v1287_v13, 0.0  ;;  %v1536_v39 = vor.u32 %v1535_v10, %v1531_v11  ;;  %v4809_v13 = vld [vmem:[%s6332_s3 + $0x94] ss:$12 sps:$4 sm:$0xff]   ;;  %v4810_v19 = vld [vmem:[%s6332_s3 + $0x158] ss:$12 sps:$4 sm:$0xff]  }
 0x179   : > { %v1234_v24 = vpop.f32.mrb[44].mxu1  ;;  %v4816_v10 = vld [vmem:[%s6332_s3 + $0xb0] ss:$12 sps:$4 sm:$0xff]  }
 0x17a   : > { %v5735_v25 = vpack.c.bf16 %v1305_v22, %v1302_v21  ;;  %v1255_v26 = vadd.f32 %v1234_v24, %v905_v16  ;;  %v1236_v27 = vpop.f32.mrb[45].mxu1  ;;  %v4789_v16 = vld [vmem:[%s6332_s3 + $0x34] ss:$12 sps:$4 sm:$0xff]   ;;  %v4807_v21 = vld [vmem:[%s6332_s3 + $0x90] ss:$12 sps:$4 sm:$0xff]  }
 0x17b   : > { %v1237_v28 = vpop.f32.mrb[46].mxu1  ;;  %v4811_v22 = vld [vmem:[%s6332_s3 + $0x98] ss:$12 sps:$4 sm:$0xff]   ;;  %v4812_v27 = vld [vmem:[%s6332_s3 + $0xa8] ss:$12 sps:$4 sm:$0xff]  }
 0x17c   : > { %v1290_v29 = vadd.f32 %v1272_v54, %v1255_v26  ;;  %v1258_v17 = vadd.f32 %v1237_v28, %v908_v49  ;;  %v1538_v30 = vshll.u32 %v5735_v25, 16  ;;  %v1239_v23 = vpop.f32.mrb[47].mxu1  ;;  %v1558_v18 = vshrl.u32 %v5735_v25, 16  ;;  %v4814_v24 = vld [vmem:[%s6332_s3 + $0xac] ss:$12 sps:$4 sm:$0xff]  }
 0x17d   : > { %v4815_v26 = vld [vmem:[%s6332_s3 + $0x170] ss:$12 sps:$4 sm:$0xff]   ;;  %v4824_v23 = vld [vmem:[%s6332_s3 + $0x1a0] ss:$12 sps:$4 sm:$0xff]  }
 0x17e   : > { %v1293_v31 = vadd.f32 %v1272_v54, %v1258_v17  ;;  %v1540_v33 = vrot.slane %v1538_v30, 1  ;;  %v1308_v38 = vmax.f32 %v1290_v29, 0.0  ;;  %v4819_v28 = vld [vmem:[%s6332_s3 + $0xc4] ss:$12 sps:$4 sm:$0xff]   ;;  %v4817_v29 = vld [vmem:[%s6332_s3 + $0xc0] ss:$12 sps:$4 sm:$0xff]  }
 0x17f   : > { %v4820_v17 = vld [vmem:[%s6332_s3 + $0x188] ss:$12 sps:$4 sm:$0xff]   ;;  %v4821_v30 = vld [vmem:[%s6332_s3 + $0xd8] ss:$12 sps:$4 sm:$0xff]  }
 0x180   : > { %v1311_v42 = vmax.f32 %v1293_v31, 0.0  ;;  %v1541_v40 = vsel %vm317_vm1, %v1536_v39, %v1540_v33  ;;  %v1560_v54 = vor.u32 %v1558_v18, %v1540_v33  ;;  %v4823_v11 = vld [vmem:[%s6332_s3 + $0xdc] ss:$12 sps:$4 sm:$0xff]   ;;  %v4827_v31 = vld [vmem:[%s6332_s3 + $0xf4] ss:$12 sps:$4 sm:$0xff]  }
 0x181   : > { %4020 = vmatmul.mubr.msk.bf16.vlgmr.msra.gmra.mrb[12].mxu0 %vm1949_vm4, %v1541_v40  ;;  %4417 = vmatmul.mubr.msk.bf16.vlgmr.msra.gmra.mrb[60].mxu1 %vm1949_vm4, %v1541_v40  ;;  %v4828_v39 = vld [vmem:[%s6332_s3 + $0x1b8] ss:$12 sps:$4 sm:$0xff]   ;;  %v4839_v40 = vld [vmem:[%s6332_s3 + $0x13c] ss:$12 sps:$4 sm:$0xff]  }
 0x182   : > { %v5754_v43 = vpack.c.bf16 %v1311_v42, %v1308_v38  ;;  %2574 = vmatpush1.bf16.msra.mxu0 %v4777_v32  ;;  %4315 = vmatpush3.bf16.msra.mxu1 %v4781_v35  ;;  %v4825_v32 = vld [vmem:[%s6332_s3 + $0xf0] ss:$12 sps:$4 sm:$0xff]   ;;  %v4831_v33 = vld [vmem:[%s6332_s3 + $0x10c] ss:$12 sps:$4 sm:$0xff]   ;;  %v4829_v35 = vld [vmem:[%s6332_s3 + $0x108] ss:$12 sps:$4 sm:$0xff]  }
 0x183   : > { %2575 = vmatprep.subr.bf16.mxu0 %v4784_v36  ;;  %4316 = vmatprep.subr.bf16.mxu1 %v4785_v37  ;;  %v4832_v36 = vld [vmem:[%s6332_s3 + $0x1d0] ss:$12 sps:$4 sm:$0xff]   ;;  %v4833_v38 = vld [vmem:[%s6332_s3 + $0x120] ss:$12 sps:$4 sm:$0xff]   ;;  %v4836_v42 = vld [vmem:[%s6332_s3 + $0x1e8] ss:$12 sps:$4 sm:$0xff]  }
 0x184   : > { %2064 = vmatprep.mubr.bf16.mxu0 %v4969_v2  ;;  %4420 = vmatprep.mubr.msk.bf16.mxu1 %vm4971_vm3, %v4970_v63  ;;  %v1562_v49 = vshll.u32 %v5754_v43, 16  ;;  %v1572_v0 = vshrl.u32 %v5754_v43, 16  ;;  %v4835_v37 = vld [vmem:[%s6332_s3 + $0x124] ss:$12 sps:$4 sm:$0xff]  }
 0x185   : > { %v4844_v18 = vld [vmem:[%s6332_s3 + $0x218] ss:$12 sps:$4 sm:$0xff]  }
 0x186   : > { %2576 = vmatpush1.bf16.msra.mxu0 %v4782_v50  ;;  %4317 = vmatpush3.bf16.msra.mxu1 %v4786_v44  ;;  %v1564_v55 = vrot.slane %v1562_v49, 1  ;;  %v4837_v50 = vld [vmem:[%s6332_s3 + $0x138] ss:$12 sps:$4 sm:$0xff]   ;;  %v4840_v44 = vld [vmem:[%s6332_s3 + $0x200] ss:$12 sps:$4 sm:$0xff]  }
 0x187   : > { %2577 = vmatprep.subr.bf16.mxu0 %v4789_v16  ;;  %4318 = vmatprep.subr.bf16.mxu1 %v4790_v45  ;;  %v4843_v16 = vld [vmem:[%s6332_s3 + $0x154] ss:$12 sps:$4 sm:$0xff]   ;;  %v4841_v45 = vld [vmem:[%s6332_s3 + $0x150] ss:$12 sps:$4 sm:$0xff]   ;;  %v4847_v49 = vld [vmem:[%s6332_s3 + $0x16c] ss:$12 sps:$4 sm:$0xff]  }
 0x188   : > { %v1565_v59 = vsel %vm317_vm1, %v1560_v54, %v1564_v55  ;;  %v1574_v6 = vor.u32 %v1572_v0, %v1564_v55  ;;  %v4845_v54 = vld [vmem:[%s6332_s3 + $0x168] ss:$12 sps:$4 sm:$0xff]   ;;  %v4849_v55 = vld [vmem:[%s6332_s3 + $0x458] ss:$12 sps:$4 sm:$0xff]  }
 0x189   : > { %4021 = vmatmul.mubr.msk.bf16.gmra.mrb[16].mxu0 %vm1949_vm4, %v1565_v59  ;;  %4421 = vmatmul.mubr.msk.bf16.gmra.mrb[64].mxu1 %vm1949_vm4, %v1565_v59  ;;  %v4854_v59 = vld [vmem:[%s6332_s3 + $0x470] ss:$12 sps:$4 sm:$0xff]   ;;  %v4862_v0 = vld [vmem:[%s6332_s3 + $0x1b4] ss:$12 sps:$4 sm:$0xff]  }
 0x18a   : > { %2578 = vmatpush1.bf16.msra.mxu0 %v4787_v52  ;;  %4319 = vmatpush3.bf16.msra.mxu1 %v4791_v56  ;;  %v4848_v52 = vld [vmem:[%s6332_s3 + $0x518] ss:$12 sps:$4 sm:$0xff]  }
 0x18b   : > { %2579 = vmatprep.subr.bf16.mxu0 %v4794_v57  ;;  %4320 = vmatprep.subr.bf16.mxu1 %v4795_v58  ;;  %v4852_v56 = vld [vmem:[%s6332_s3 + $0x184] ss:$12 sps:$4 sm:$0xff]   ;;  %v4850_v58 = vld [vmem:[%s6332_s3 + $0x180] ss:$12 sps:$4 sm:$0xff]  }
 0x18c   : > { %2074 = vmatprep.mubr.bf16.mxu0 %v4969_v2  ;;  %4424 = vmatprep.mubr.msk.bf16.mxu1 %vm4971_vm3, %v4970_v63  ;;  %v4853_v57 = vld [vmem:[%s6332_s3 + $0x530] ss:$12 sps:$4 sm:$0xff]  }
 0x18e   : > { %2580 = vmatpush1.bf16.msra.mxu0 %v4792_v60  ;;  %4321 = vmatpush3.bf16.msra.mxu1 %v4796_v4  ;;  %v4857_v60 = vld [vmem:[%s6332_s3 + $0x19c] ss:$12 sps:$4 sm:$0xff]  }
 0x18f   : > { %2581 = vmatprep.subr.bf16.mxu0 %v4799_v61  ;;  %4322 = vmatprep.subr.bf16.mxu1 %v4800_v62  ;;  %v4858_v4 = vld [vmem:[%s6332_s3 + $0x548] ss:$12 sps:$4 sm:$0xff]   ;;  %v4855_v61 = vld [vmem:[%s6332_s3 + $0x198] ss:$12 sps:$4 sm:$0xff]  }
 0x190   : > { %v4859_v62 = vld [vmem:[%s6332_s3 + $0x488] ss:$12 sps:$4 sm:$0xff]  }
 0x191   : > { %4022 = vmatmul.mubr.msk.bf16.gmra.mrb[20].mxu0 %vm1949_vm4, %v1574_v6  ;;  %4425 = vmatmul.mubr.msk.bf16.gmra.mrb[68].mxu1 %vm1949_vm4, %v1574_v6  ;;  %v4864_v6 = vld [vmem:[%s6332_s3 + $0x4a0] ss:$12 sps:$4 sm:$0xff]  }
 0x192   : > { %2582 = vmatpush1.bf16.msra.mxu0 %v4797_v1  ;;  %4323 = vmatpush3.bf16.msra.mxu1 %v4801_v20  ;;  %v4863_v1 = vld [vmem:[%s6332_s3 + $0x560] ss:$12 sps:$4 sm:$0xff]   ;;  %v4860_v20 = vld [vmem:[%s6332_s3 + $0x1b0] ss:$12 sps:$4 sm:$0xff]  }
 0x193   : > { %2605 = vmatprep.mubr.bf16.mxu0 %v5605_v47  ;;  %2731 = vmatprep.mubr.bf16.mxu1 %v5605_v47 }
 0x194   : > { %2583 = vmatprep.subr.bf16.mxu0 %v4804_v34  ;;  %4324 = vmatprep.subr.bf16.mxu1 %v4805_v7  ;;  %v4867_v34 = vld [vmem:[%s6332_s3 + $0x1cc] ss:$12 sps:$4 sm:$0xff]  }
 0x195   : > { %v4868_v7 = vld [vmem:[%s6332_s3 + $0x578] ss:$12 sps:$4 sm:$0xff]  }
 0x196   : > { %2584 = vmatpush1.bf16.msra.mxu0 %v4802_v12  ;;  %4325 = vmatpush3.bf16.msra.mxu1 %v4806_v15  ;;  %v4865_v12 = vld [vmem:[%s6332_s3 + $0x1c8] ss:$12 sps:$4 sm:$0xff]   ;;  %v2919_v15 = vrot.slane %v5619_v9, 1 }
 0x197   : > { %2585 = vmatprep.subr.bf16.mxu0 %v4809_v13  ;;  %4326 = vmatprep.subr.bf16.mxu1 %v4810_v19  ;;  %v4869_v13 = vld [vmem:[%s6332_s3 + $0x4b8] ss:$12 sps:$4 sm:$0xff]   ;;  %v2918_v19 = vrot.slane %v5605_v47, 1  ;;  %v4874_v47 = vld [vmem:[%s6332_s3 + $0x4d0] ss:$12 sps:$4 sm:$0xff]  }
 0x19a   : > { %2586 = vmatpush1.bf16.msra.mxu0 %v4807_v21  ;;  %4327 = vmatpush3.bf16.msra.mxu1 %v4811_v22  ;;  %v4872_v21 = vld [vmem:[%s6332_s3 + $0x1e4] ss:$12 sps:$4 sm:$0xff]  }
 0x19b   : > { %2587 = vmatprep.subr.bf16.mxu0 %v4814_v24  ;;  %4328 = vmatprep.subr.bf16.mxu1 %v4815_v26  ;;  %v4873_v22 = vld [vmem:[%s6332_s3 + $0x590] ss:$12 sps:$4 sm:$0xff]   ;;  %v4870_v24 = vld [vmem:[%s6332_s3 + $0x1e0] ss:$12 sps:$4 sm:$0xff]  }
 0x19c   : > { %v4877_v26 = vld [vmem:[%s6332_s3 + $0x1fc] ss:$12 sps:$4 sm:$0xff]  }
 0x19e   : > { %2588 = vmatpush1.bf16.msra.mxu0 %v4812_v27  ;;  %4329 = vmatpush3.bf16.msra.mxu1 %v4816_v10  ;;  %v4878_v27 = vld [vmem:[%s6332_s3 + $0x5a8] ss:$12 sps:$4 sm:$0xff]   ;;  %v4875_v10 = vld [vmem:[%s6332_s3 + $0x1f8] ss:$12 sps:$4 sm:$0xff]  }
 0x19f   : > { %2589 = vmatprep.subr.bf16.mxu0 %v4819_v28  ;;  %4428 = vmatprep.subr.bf16.mxu1 %v4970_v63  ;;  %v4879_v28 = vld [vmem:[%s6332_s3 + $0x4e8] ss:$12 sps:$4 sm:$0xff]  }
 0x1a1   : > { %2732 = vmatmul.mubr.bf16.vlgmr.msra.gmra.mrb[72].mxu1 %v5603_v41 }
 0x1a2   : > { %2590 = vmatpush1.bf16.msra.mxu0 %v4817_v29  ;;  %2739 = vmatprep.mubr.bf16.mxu1 %v5619_v9  ;;  %v4882_v29 = vld [vmem:[%s6332_s3 + $0x214] ss:$12 sps:$4 sm:$0xff]  }
 0x1a3   : > { %4429 = vmatpush3.bf16.msra.mxu1 %v4820_v17  ;;  %2591 = vmatprep.subr.bf16.mxu0 %v4823_v11  ;;  %v4883_v17 = vld [vmem:[%s6332_s3 + $0x5c0] ss:$12 sps:$4 sm:$0xff]   ;;  %v4880_v11 = vld [vmem:[%s6332_s3 + $0x210] ss:$12 sps:$4 sm:$0xff]  }
 0x1a4   : > { %4430 = vmatprep.subr.bf16.mxu1 %v4970_v63 }
 0x1a6   : > { %2592 = vmatpush1.bf16.msra.mxu0 %v4821_v30  ;;  %v4884_v30 = vld [vmem:[%s6332_s3 + $0x500] ss:$12 sps:$4 sm:$0xff]  }
 0x1a7   : > { %4431 = vmatpush3.bf16.msra.mxu1 %v4824_v23  ;;  %2593 = vmatprep.subr.bf16.mxu0 %v4827_v31  ;;  %v4887_v23 = vld [vmem:[%s6332_s3 + $0x454] ss:$12 sps:$4 sm:$0xff]   ;;  %v2916_v31 = vrot.slane %v5617_v5, 1 }
 0x1a8   : > { %4432 = vmatprep.subr.bf16.mxu1 %v4970_v63 }
 0x1a9   : > { %2740 = vmatmul.mubr.bf16.gmra.mrb[76].mxu1 %v5617_v5 }
 0x1aa   : > { %2594 = vmatpush1.bf16.msra.mxu0 %v4825_v32  ;;  %2747 = vmatprep.mubr.bf16.mxu1 %v5646_v51  ;;  %v4885_v32 = vld [vmem:[%s6332_s3 + $0x450] ss:$12 sps:$4 sm:$0xff]  }
 0x1ab   : > { %4433 = vmatpush3.bf16.msra.mxu1 %v4828_v39  ;;  %2595 = vmatprep.subr.bf16.mxu0 %v4831_v33  ;;  %v6053_v39 = vrot.slane %v5646_v51, 1  ;;  %v2915_v33 = vrot.slane %v5603_v41, 1 }
 0x1ac   : > { %4434 = vmatprep.subr.bf16.mxu1 %v4970_v63 }
 0x1ae   : > { %2596 = vmatpush1.bf16.msra.mxu0 %v4829_v35  ;;  %v4888_v35 = vld [vmem:[%s6332_s3 + $0x5d8] ss:$12 sps:$4 sm:$0xff]  }
 0x1af   : > { %4435 = vmatpush3.bf16.msra.mxu1 %v4832_v36  ;;  %2597 = vmatprep.subr.bf16.mxu0 %v4835_v37  ;;  %v4889_v36 = vld [vmem:[%s6332_s3 + $0x468] ss:$12 sps:$4 sm:$0xff]   ;;  %v4892_v37 = vld [vmem:[%s6332_s3 + $0x5f0] ss:$12 sps:$4 sm:$0xff]  }
 0x1b0   : > { %4436 = vmatprep.subr.bf16.mxu1 %v4970_v63 }
 0x1b1   : > { %2748 = vmatmul.mubr.bf16.gmra.mrb[80].mxu1 %v5643_v48 }
 0x1b2   : > { %2598 = vmatpush1.bf16.msra.mxu0 %v4833_v38  ;;  %4442 = vmatprep.mubr.msk.bf16.mxu1 %vm4971_vm3, %v4970_v63  ;;  %v4895_v38 = vld [vmem:[%s6332_s3 + $0x484] ss:$12 sps:$4 sm:$0xff]  }
 0x1b3   : > { %4437 = vmatpush3.bf16.msra.mxu1 %v4836_v42  ;;  %2599 = vmatprep.subr.bf16.mxu0 %v4839_v40  ;;  %v6086_v42 = vrot.slane %v5643_v48, 1  ;;  %v4893_v40 = vld [vmem:[%s6332_s3 + $0x480] ss:$12 sps:$4 sm:$0xff]  }
 0x1b4   : > { %4438 = vmatprep.subr.bf16.mxu1 %v4970_v63 }
 0x1b6   : > { %2600 = vmatpush1.bf16.msra.mxu0 %v4837_v50  ;;  %v4896_v50 = vld [vmem:[%s6332_s3 + $0x608] ss:$12 sps:$4 sm:$0xff]  }
 0x1b7   : > { %4439 = vmatpush3.bf16.msra.mxu1 %v4840_v44  ;;  %2601 = vmatprep.subr.bf16.mxu0 %v4843_v16  ;;  %v4899_v44 = vld [vmem:[%s6332_s3 + $0x49c] ss:$12 sps:$4 sm:$0xff]   ;;  %v4897_v16 = vld [vmem:[%s6332_s3 + $0x498] ss:$12 sps:$4 sm:$0xff]  }
 0x1b8   : > { %4440 = vmatprep.subr.bf16.mxu1 %v4970_v63 }
 0x1ba   : > { %2602 = vmatpush1.bf16.msra.mxu0 %v4841_v45  ;;  %v4900_v45 = vld [vmem:[%s6332_s3 + $0x620] ss:$12 sps:$4 sm:$0xff]  }
 0x1bb   : > { %4441 = vmatpush3.bf16.msra.mxu1 %v4844_v18  ;;  %2603 = vmatprep.subr.bf16.mxu0 %v4847_v49  ;;  %v4903_v18 = vld [vmem:[%s6332_s3 + $0x4b4] ss:$12 sps:$4 sm:$0xff]   ;;  %v4901_v49 = vld [vmem:[%s6332_s3 + $0x4b0] ss:$12 sps:$4 sm:$0xff]  }
 0x1bc   : > { %4358 = vmatprep.subr.bf16.mxu1 %v4848_v52  ;;  %v4904_v52 = vld [vmem:[%s6332_s3 + $0x638] ss:$12 sps:$4 sm:$0xff]  }
 0x1be   : > { %4443 = vmatmul.mubr.msk.bf16.vlgmr.msra.gmra.mrb[84].mxu1 %vm1949_vm4, %v5732_v3  ;;  %2604 = vmatpush1.bf16.msra.mxu0 %v4845_v54  ;;  %v4907_v54 = vld [vmem:[%s6332_s3 + $0x4cc] ss:$12 sps:$4 sm:$0xff]  }
 0x1bf   : > { %4359 = vmatpush3.bf16.msra.mxu1 %v4849_v55  ;;  %2636 = vmatprep.subr.bf16.mxu0 %v4852_v56  ;;  %v4905_v55 = vld [vmem:[%s6332_s3 + $0x4c8] ss:$12 sps:$4 sm:$0xff]   ;;  %v4908_v56 = vld [vmem:[%s6332_s3 + $0x650] ss:$12 sps:$4 sm:$0xff]  }
 0x1c0   : > { %4360 = vmatprep.subr.bf16.mxu1 %v4853_v57  ;;  %4446 = vmatprep.mubr.msk.bf16.mxu1 %vm4971_vm3, %v4970_v63  ;;  %v4911_v57 = vld [vmem:[%s6332_s3 + $0x4e4] ss:$12 sps:$4 sm:$0xff]  }
 0x1c1   : > { %2606 = vmatmul.mubr.bf16.vlgmr.msra.gmra.mrb[12].mxu0 %v5603_v41  ;;  %v6071_v41 = vsel %vm954_vm2, %v2919_v15, %v6053_v39 }
 0x1c2   : > { %2615 = vmatprep.mubr.bf16.mxu0 %v5619_v9  ;;  %2637 = vmatpush1.bf16.msra.mxu0 %v4850_v58  ;;  %v6010_v9 = vsel %vm954_vm2, %v2918_v19, %v2919_v15  ;;  %v4909_v58 = vld [vmem:[%s6332_s3 + $0x4e0] ss:$12 sps:$4 sm:$0xff]   ;;  %v4925_v15 = vld [vmem:[%s6332_s3 + $0x558] ss:$12 sps:$4 sm:$0xff]  }
 0x1c3   : > { %4361 = vmatpush3.bf16.msra.mxu1 %v4854_v59  ;;  %2638 = vmatprep.subr.bf16.mxu0 %v4857_v60  ;;  %v4912_v59 = vld [vmem:[%s6332_s3 + $0x668] ss:$12 sps:$4 sm:$0xff]   ;;  %v4933_v19 = vld [vmem:[%s6332_s3 + $0x58c] ss:$12 sps:$4 sm:$0xff]  }
 0x1c4   : > { %4362 = vmatprep.subr.bf16.mxu1 %v4858_v4  ;;  %v4915_v60 = vld [vmem:[%s6332_s3 + $0x4fc] ss:$12 sps:$4 sm:$0xff]   ;;  %v2922_v4 = vrot.slane %v5735_v25, 1 }
 0x1c6   : > { %4447 = vmatmul.mubr.msk.bf16.gmra.mrb[88].mxu1 %vm1949_vm4, %v5735_v25  ;;  %2639 = vmatpush1.bf16.msra.mxu0 %v4855_v61  ;;  %v4913_v61 = vld [vmem:[%s6332_s3 + $0x4f8] ss:$12 sps:$4 sm:$0xff]  }
 0x1c7   : > { %4363 = vmatpush3.bf16.msra.mxu1 %v4859_v62  ;;  %2640 = vmatprep.subr.bf16.mxu0 %v4862_v0  ;;  %v2921_v62 = vrot.slane %v5732_v3, 1  ;;  %v4918_v0 = vld [vmem:[%s6332_s3 + $0x514] ss:$12 sps:$4 sm:$0xff]  }
 0x1c8   : > { %4364 = vmatprep.subr.bf16.mxu1 %v4863_v1  ;;  %4450 = vmatprep.mubr.msk.bf16.mxu1 %vm4971_vm3, %v4970_v63 }
 0x1c9   : > { %2616 = vmatmul.mubr.bf16.gmra.mrb[16].mxu0 %v5617_v5  ;;  %v4891_v5 = vld [vmem:[%s6332_s3 + $0x46c] ss:$12 sps:$4 sm:$0xff]   ;;  %v6162_v1 = vsel %vm954_vm2, %v2921_v62, %v2922_v4 }
 0x1ca   : > { %2625 = vmatprep.mubr.bf16.mxu0 %v5646_v51  ;;  %2641 = vmatpush1.bf16.msra.mxu0 %v4860_v20  ;;  %v6066_v51 = vsel %vm954_vm2, %v2915_v33, %v2916_v31  ;;  %v6175_v20 = vrot.slane %v5754_v43, 1 }
 0x1cb   : > { %4365 = vmatpush3.bf16.msra.mxu1 %v4864_v6  ;;  %2642 = vmatprep.subr.bf16.mxu0 %v4867_v34  ;;  %v4919_v6 = vld [vmem:[%s6332_s3 + $0x528] ss:$12 sps:$4 sm:$0xff]   ;;  %v4924_v34 = vld [vmem:[%s6332_s3 + $0x544] ss:$12 sps:$4 sm:$0xff]  }
 0x1cc   : > { %4366 = vmatprep.subr.bf16.mxu1 %v4868_v7  ;;  %v6185_v7 = vsel %vm954_vm2, %v2922_v4, %v6175_v20 }
 0x1ce   : > { %4451 = vmatmul.mubr.msk.bf16.gmra.mrb[92].mxu1 %vm1949_vm4, %v5754_v43  ;;  %2643 = vmatpush1.bf16.msra.mxu0 %v4865_v12  ;;  %v4927_v12 = vld [vmem:[%s6332_s3 + $0x55c] ss:$12 sps:$4 sm:$0xff]  }
 0x1cf   : > { %4367 = vmatpush3.bf16.msra.mxu1 %v4869_v13  ;;  %3471 = vmatprep.mubr.bf16.mxu1 %v6010_v9  ;;  %v4930_v13 = vld [vmem:[%s6332_s3 + $0x574] ss:$12 sps:$4 sm:$0xff]  }
 0x1d0   : > { %2644 = vmatprep.subr.bf16.mxu0 %v4872_v21  ;;  %4368 = vmatprep.subr.bf16.mxu1 %v4873_v22  ;;  %v4931_v22 = vld [vmem:[%s6332_s3 + $0x588] ss:$12 sps:$4 sm:$0xff]  }
 0x1d1   : > { %2626 = vmatmul.mubr.bf16.gmra.mrb[20].mxu0 %v5643_v48  ;;  %v6102_v48 = vsel %vm954_vm2, %v2916_v31, %v6086_v42 }
 0x1d2   : > { %2645 = vmatpush1.bf16.msra.mxu0 %v4870_v24  ;;  %2668 = vmatprep.mubr.bf16.mxu0 %v4969_v2  ;;  %v4936_v24 = vld [vmem:[%s6332_s3 + $0x5a4] ss:$12 sps:$4 sm:$0xff]  }
 0x1d3   : > { %4369 = vmatpush3.bf16.msra.mxu1 %v4874_v47  ;;  %2646 = vmatprep.subr.bf16.mxu0 %v4877_v26 }
 0x1d4   : > { %4370 = vmatprep.subr.bf16.mxu1 %v4878_v27 }
 0x1d6   : > { %2647 = vmatpush1.bf16.msra.mxu0 %v4875_v10 }
 0x1d7   : > { %4371 = vmatpush3.bf16.msra.mxu1 %v4879_v28  ;;  %2648 = vmatprep.subr.bf16.mxu0 %v4882_v29  ;;  %v4934_v28 = vld [vmem:[%s6332_s3 + $0x5a0] ss:$12 sps:$4 sm:$0xff]   ;;  %v4939_v29 = vld [vmem:[%s6332_s3 + $0x5bc] ss:$12 sps:$4 sm:$0xff]  }
 0x1d8   : > { %4372 = vmatprep.subr.bf16.mxu1 %v4883_v17 }
 0x1da   : > { %2649 = vmatpush1.bf16.msra.mxu0 %v4880_v11  ;;  %v4937_v11 = vld [vmem:[%s6332_s3 + $0x5b8] ss:$12 sps:$4 sm:$0xff]  }
 0x1db   : > { %4373 = vmatpush3.bf16.msra.mxu1 %v4884_v30  ;;  %3313 = vmatprep.subr.bf16.mxu0 %v4887_v23  ;;  %v4942_v23 = vld [vmem:[%s6332_s3 + $0x5d4] ss:$12 sps:$4 sm:$0xff]  }
 0x1dc   : > { %4454 = vmatprep.subr.bf16.mxu1 %v4970_v63 }
 0x1dd   : > { %4095 = vmatmul.mubr.msk.bf16.vlgmr.msra.gmra.mrb[12].mxu0 %vm1949_vm4, %v5732_v3  ;;  %v4921_v3 = vld [vmem:[%s6332_s3 + $0x52c] ss:$12 sps:$4 sm:$0xff]  }
 0x1de   : > { %3472 = vmatmul.mubr.bf16.vlgmr.msra.gmra.mrb[96].mxu1 %v6066_v51  ;;  %3314 = vmatpush1.bf16.msra.mxu0 %v4885_v32 }
 0x1df   : > { %3479 = vmatprep.mubr.bf16.mxu1 %v6071_v41  ;;  %4455 = vmatpush3.bf16.msra.mxu1 %v4888_v35 }
 0x1e0   : > { %3315 = vmatprep.subr.bf16.mxu0 %v4891_v5  ;;  %4456 = vmatprep.subr.bf16.mxu1 %v4970_v63  ;;  %v4940_v5 = vld [vmem:[%s6332_s3 + $0x5d0] ss:$12 sps:$4 sm:$0xff]  }
 0x1e1   : > { %2678 = vmatprep.mubr.bf16.mxu0 %v4969_v2 }
 0x1e2   : > { %3316 = vmatpush1.bf16.msra.mxu0 %v4889_v36  ;;  %v4945_v36 = vld [vmem:[%s6332_s3 + $0x5ec] ss:$12 sps:$4 sm:$0xff]  }
 0x1e3   : > { %4457 = vmatpush3.bf16.msra.mxu1 %v4892_v37  ;;  %3317 = vmatprep.subr.bf16.mxu0 %v4895_v38  ;;  %v4943_v38 = vld [vmem:[%s6332_s3 + $0x5e8] ss:$12 sps:$4 sm:$0xff]  }
 0x1e4   : > { %4458 = vmatprep.subr.bf16.mxu1 %v4970_v63 }
 0x1e5   : > { %4096 = vmatmul.mubr.msk.bf16.gmra.mrb[16].mxu0 %vm1949_vm4, %v5735_v25  ;;  %v4916_v25 = vld [vmem:[%s6332_s3 + $0x510] ss:$12 sps:$4 sm:$0xff]  }
 0x1e6   : > { %3480 = vmatmul.mubr.bf16.gmra.mrb[100].mxu1 %v6102_v48  ;;  %3318 = vmatpush1.bf16.msra.mxu0 %v4893_v40 }
 0x1e7   : > { %3487 = vmatprep.mubr.bf16.mxu1 %v6053_v39  ;;  %4459 = vmatpush3.bf16.msra.mxu1 %v4896_v50  ;;  %v4948_v50 = vld [vmem:[%s6332_s3 + $0x604] ss:$12 sps:$4 sm:$0xff]  }
 0x1e8   : > { %3319 = vmatprep.subr.bf16.mxu0 %v4899_v44  ;;  %4460 = vmatprep.subr.bf16.mxu1 %v4970_v63 }
 0x1e9   : > { %2688 = vmatprep.mubr.bf16.mxu0 %v4969_v2 }
 0x1ea   : > { %3320 = vmatpush1.bf16.msra.mxu0 %v4897_v16 }
 0x1eb   : > { %4461 = vmatpush3.bf16.msra.mxu1 %v4900_v45  ;;  %3321 = vmatprep.subr.bf16.mxu0 %v4903_v18 }
 0x1ec   : > { %4462 = vmatprep.subr.bf16.mxu1 %v4970_v63 }
 0x1ed   : > { %4097 = vmatmul.mubr.msk.bf16.gmra.mrb[20].mxu0 %vm1949_vm4, %v5754_v43  ;;  %v4922_v43 = vld [vmem:[%s6332_s3 + $0x540] ss:$12 sps:$4 sm:$0xff]  }
 0x1ee   : > { %3488 = vmatmul.mubr.bf16.gmra.mrb[104].mxu1 %v6086_v42  ;;  %3322 = vmatpush1.bf16.msra.mxu0 %v4901_v49  ;;  %v4949_v49 = vld [vmem:[%s6332_s3 + $0x618] ss:$12 sps:$4 sm:$0xff]  }
 0x1ef   : > { %3345 = vmatprep.mubr.bf16.mxu0 %v6010_v9  ;;  %4463 = vmatpush3.bf16.msra.mxu1 %v4904_v52  ;;  %v4954_v52 = vld [vmem:[%s6332_s3 + $0x634] ss:$12 sps:$4 sm:$0xff]  }
 0x1f0   : > { %3323 = vmatprep.subr.bf16.mxu0 %v4907_v54  ;;  %4464 = vmatprep.subr.bf16.mxu1 %v4970_v63  ;;  %v4952_v54 = vld [vmem:[%s6332_s3 + $0x630] ss:$12 sps:$4 sm:$0xff]  }
 0x1f1   : > { %4468 = vmatprep.mubr.msk.bf16.mxu1 %vm4971_vm3, %v4970_v63 }
 0x1f2   : > { %3324 = vmatpush1.bf16.msra.mxu0 %v4905_v55  ;;  %v4960_v55 = vld [vmem:[%s6332_s3 + $0x664] ss:$12 sps:$4 sm:$0xff]  }
 0x1f3   : > { %4465 = vmatpush3.bf16.msra.mxu1 %v4908_v56  ;;  %3325 = vmatprep.subr.bf16.mxu0 %v4911_v57  ;;  %v4958_v56 = vld [vmem:[%s6332_s3 + $0x660] ss:$12 sps:$4 sm:$0xff]  }
 0x1f4   : > { %4466 = vmatprep.subr.bf16.mxu1 %v4970_v63 }
 0x1f6   : > { %3326 = vmatpush1.bf16.msra.mxu0 %v4909_v58 }
 0x1f7   : > { %4467 = vmatpush3.bf16.msra.mxu1 %v4912_v59  ;;  %3327 = vmatprep.subr.bf16.mxu0 %v4915_v60 }
 0x1fa   : > { %4469 = vmatmul.mubr.msk.bf16.vlgmr.msra.gmra.mrb[108].mxu1 %vm1949_vm4, %v6162_v1  ;;  %3328 = vmatpush1.bf16.msra.mxu0 %v4913_v61 }
 0x1fb   : > { %3329 = vmatprep.subr.bf16.mxu0 %v4918_v0  ;;  %4472 = vmatprep.mubr.msk.bf16.mxu1 %vm4971_vm3, %v4970_v63 }
 0x1fe   : > { %3330 = vmatpush1.bf16.msra.mxu0 %v4916_v25 }
 0x1ff   : > { %3331 = vmatprep.subr.bf16.mxu0 %v4921_v3 }
 0x202   : > { %4473 = vmatmul.mubr.msk.bf16.gmra.mrb[112].mxu1 %vm1949_vm4, %v6185_v7  ;;  %3332 = vmatpush1.bf16.msra.mxu0 %v4919_v6 }
 0x203   : > { %3333 = vmatprep.subr.bf16.mxu0 %v4924_v34  ;;  %4476 = vmatprep.mubr.msk.bf16.mxu1 %vm4971_vm3, %v4970_v63  ;;  %v4928_v63 = vld [vmem:[%s6332_s3 + $0x570] ss:$12 sps:$4 sm:$0xff]  }
 0x206   : > { %3334 = vmatpush1.bf16.msra.mxu0 %v4922_v43 }
 0x207   : > { %3335 = vmatprep.subr.bf16.mxu0 %v4927_v12 }
 0x20a   : > { %4477 = vmatmul.mubr.msk.bf16.gmra.mrb[116].mxu1 %vm1949_vm4, %v6175_v20  ;;  %3336 = vmatpush1.bf16.msra.mxu0 %v4925_v15 }
 0x20b   : > { %3337 = vmatprep.subr.bf16.mxu0 %v4930_v13 }
 0x20e   : > { %3338 = vmatpush1.bf16.msra.mxu0 %v4928_v63  ;;  %v4286_v21 = vpop.f32.mrb[48].mxu1 }
 0x20f   : > { %v4287_v9 = vpop.f32.mrb[49].mxu1  ;;  %3339 = vmatprep.subr.bf16.mxu0 %v4933_v19 }
 0x210   : > { %v6217_v47 = vadd.f32 %v4287_v9, %v4286_v21  ;;  %v4289_v26 = vpop.f32.mrb[50].mxu1 }
 0x211   : > { %v4290_v27 = vpop.f32.mrb[51].mxu1 }
 0x212   : > { %v6219_v10 = vadd.f32 %v4290_v27, %v4289_v26  ;;  %3340 = vmatpush1.bf16.msra.mxu0 %v4931_v22 }
 0x213   : > { %3341 = vmatprep.subr.bf16.mxu0 %v4936_v24 }
 0x216   : > { %3342 = vmatpush1.bf16.msra.mxu0 %v4934_v28  ;;  %v4292_v17 = vpop.f32.mrb[52].mxu1 }
 0x217   : > { %v4293_v30 = vpop.f32.mrb[53].mxu1  ;;  %3343 = vmatprep.subr.bf16.mxu0 %v4939_v29 }
 0x218   : > { %v4294_v31 = vadd.f32 %v4293_v30, %v4292_v17  ;;  %v4295_v32 = vpop.f32.mrb[54].mxu1 }
 0x219   : > { %v4296_v33 = vpop.f32.mrb[55].mxu1 }
 0x21a   : > { %v4297_v35 = vadd.f32 %v4296_v33, %v4295_v32  ;;  %3344 = vmatpush1.bf16.msra.mxu0 %v4937_v11 }
 0x21b   : > { %3376 = vmatprep.subr.bf16.mxu0 %v4942_v23 }
 0x21d   : > { %3346 = vmatmul.mubr.bf16.vlgmr.msra.gmra.mrb[12].mxu0 %v6066_v51  ;;  %v4946_v51 = vld [vmem:[%s6332_s3 + $0x600] ss:$12 sps:$4 sm:$0xff]  }
 0x21e   : > { %3355 = vmatprep.mubr.bf16.mxu0 %v6071_v41  ;;  %3377 = vmatpush1.bf16.msra.mxu0 %v4940_v5  ;;  %v4298_v37 = vpop.f32.mrb[56].mxu1  ;;  %v4951_v41 = vld [vmem:[%s6332_s3 + $0x61c] ss:$12 sps:$4 sm:$0xff]  }
 0x21f   : > { %v4299_v40 = vpop.f32.mrb[57].mxu1  ;;  %3378 = vmatprep.subr.bf16.mxu0 %v4945_v36 }
 0x220   : > { %v4300_v44 = vadd.f32 %v4299_v40, %v4298_v37  ;;  %v4301_v16 = vpop.f32.mrb[58].mxu1 }
 0x221   : > { %v4302_v45 = vpop.f32.mrb[59].mxu1 }
 0x222   : > { %v4303_v18 = vadd.f32 %v4302_v45, %v4301_v16  ;;  %3379 = vmatpush1.bf16.msra.mxu0 %v4943_v38 }
 0x223   : > { %3380 = vmatprep.subr.bf16.mxu0 %v4948_v50 }
 0x225   : > { %3356 = vmatmul.mubr.bf16.gmra.mrb[16].mxu0 %v6102_v48  ;;  %v4955_v48 = vld [vmem:[%s6332_s3 + $0x648] ss:$12 sps:$4 sm:$0xff]  }
 0x226   : > { %3365 = vmatprep.mubr.bf16.mxu0 %v6053_v39  ;;  %3381 = vmatpush1.bf16.msra.mxu0 %v4946_v51  ;;  %v4957_v39 = vld [vmem:[%s6332_s3 + $0x64c] ss:$12 sps:$4 sm:$0xff]  }
 0x227   : > { %3382 = vmatprep.subr.bf16.mxu0 %v4951_v41 }
 0x22a   : > { %3383 = vmatpush1.bf16.msra.mxu0 %v4949_v49 }
 0x22b   : > { %3384 = vmatprep.subr.bf16.mxu0 %v4954_v52 }
 0x22d   : > { %3366 = vmatmul.mubr.bf16.gmra.mrb[20].mxu0 %v6086_v42 }
 0x22e   : > { %3385 = vmatpush1.bf16.msra.mxu0 %v4952_v54  ;;  %3408 = vmatprep.mubr.bf16.mxu0 %v4969_v2 }
 0x22f   : > { %3386 = vmatprep.subr.bf16.mxu0 %v4957_v39 }
 0x232   : > { %3387 = vmatpush1.bf16.msra.mxu0 %v4955_v48 }
 0x233   : > { %3388 = vmatprep.subr.bf16.mxu0 %v4960_v55 }
 0x236   : > { %3389 = vmatpush1.bf16.msra.mxu0 %v4958_v56 }
 0x239   : > { %4262 = vmatmul.mubr.msk.bf16.vlgmr.msra.gmra.mrb[12].mxu0 %vm1949_vm4, %v6162_v1 }
 0x23a   : > { %3418 = vmatprep.mubr.bf16.mxu0 %v4969_v2 }
 0x241   : > { %4263 = vmatmul.mubr.msk.bf16.gmra.mrb[16].mxu0 %vm1949_vm4, %v6185_v7 }
 0x242   : > { %3428 = vmatprep.mubr.bf16.mxu0 %v4969_v2 }
 0x249   : > { %4264 = vmatmul.mubr.msk.bf16.gmra.mrb[20].mxu0 %vm1949_vm4, %v6175_v20 }
 0x254   : > { %v2176_v42 = vpop.f32.mrb[60].mxu1 }
 0x255   : > { %v2177_v57 = vadd.f32 %v6217_v47, %v2176_v42  ;;  %v4418_v58 = vpop.f32.mrb[61].mxu1 }
 0x256   : > { %v2179_v59 = vpop.f32.mrb[62].mxu1 }
 0x257   : > { %v2180_v60 = vadd.f32 %v6219_v10, %v2179_v59  ;;  %v4419_v4 = vpop.f32.mrb[63].mxu1 }
 0x25c   : > { %v2184_v61 = vpop.f32.mrb[64].mxu1 }
 0x25d   : > { %v2185_v62 = vadd.f32 %v4294_v31, %v2184_v61  ;;  %v4422_v0 = vpop.f32.mrb[65].mxu1 }
 0x25e   : > { %v2187_v1 = vpop.f32.mrb[66].mxu1 }
 0x25f   : > { %v2188_v25 = vadd.f32 %v4297_v35, %v2187_v1  ;;  %v4423_v3 = vpop.f32.mrb[67].mxu1 }
 0x264   : > { %v2192_v6 = vpop.f32.mrb[68].mxu1 }
 0x265   : > { %v2193_v34 = vadd.f32 %v4300_v44, %v2192_v6  ;;  %v4426_v2 = vpop.f32.mrb[69].mxu1 }
 0x266   : > { %v2195_v7 = vpop.f32.mrb[70].mxu1 }
 0x267   : > { %v2196_v43 = vadd.f32 %v4303_v18, %v2195_v7  ;;  %v4427_v20 = vpop.f32.mrb[71].mxu1 }
 0x274   : > { %v4330_v12 = vpop.f32.mrb[72].mxu1 }
 0x275   : > { %v4331_v15 = vpop.f32.mrb[73].mxu1 }
 0x276   : > { %v4332_v13 = vadd.f32 %v4331_v15, %v4330_v12  ;;  %v4333_v63 = vpop.f32.mrb[74].mxu1  ;;  %v3571_v12 = vld [vmem:[%s6333_s4] sm:$0x7] }
 0x277   : > { %v4334_v19 = vpop.f32.mrb[75].mxu1 }
 0x278   : > { %v4335_v21 = vadd.f32 %v4334_v19, %v4333_v63  ;;  %v2734_v22 = vadd.f32 %v4332_v13, %v2177_v57  ;;  %v3584_v63 = vrot.slane %v3571_v12, %v1271_v53 }
 0x27a   : > { %v2737_v9 = vadd.f32 %v4335_v21, %v2180_v60 }
 0x27c   : > { %v4336_v24 = vpop.f32.mrb[76].mxu1 }
 0x27d   : > { %v4337_v47 = vpop.f32.mrb[77].mxu1 }
 0x27e   : > { %v4338_v26 = vadd.f32 %v4337_v47, %v4336_v24  ;;  %v4339_v27 = vpop.f32.mrb[78].mxu1 }
 0x27f   : > { %v4340_v10 = vpop.f32.mrb[79].mxu1 }
 0x280   : > { %v4341_v28 = vadd.f32 %v4340_v10, %v4339_v27  ;;  %v2742_v29 = vadd.f32 %v4338_v26, %v2185_v62 }
 0x282   : > { %v2745_v17 = vadd.f32 %v4341_v28, %v2188_v25 }
 0x284   : > { %v4342_v11 = vpop.f32.mrb[80].mxu1 }
 0x285   : > { %v4343_v30 = vpop.f32.mrb[81].mxu1 }
 0x286   : > { %v4344_v23 = vadd.f32 %v4343_v30, %v4342_v11  ;;  %v4345_v31 = vpop.f32.mrb[82].mxu1 }
 0x287   : > { %v4346_v32 = vpop.f32.mrb[83].mxu1 }
 0x288   : > { %v4347_v33 = vadd.f32 %v4346_v32, %v4345_v31  ;;  %v2750_v35 = vadd.f32 %v4344_v23, %v2193_v34 }
 0x28a   : > { %v2753_v5 = vadd.f32 %v4347_v33, %v2196_v43 }
 0x291   : > { %v2790_v36 = vpop.f32.mrb[84].mxu1 }
 0x292   : > { %v2791_v37 = vadd.f32 %v2790_v36, %v2734_v22  ;;  %v4444_v38 = vpop.f32.mrb[85].mxu1 }
 0x293   : > { %v2793_v40 = vpop.f32.mrb[86].mxu1 }
 0x294   : > { %v2794_v50 = vadd.f32 %v2793_v40, %v2737_v9  ;;  %v4445_v44 = vpop.f32.mrb[87].mxu1 }
 0x299   : > { %v2798_v16 = vpop.f32.mrb[88].mxu1 }
 0x29a   : > { %v2799_v45 = vadd.f32 %v2798_v16, %v2742_v29  ;;  %v4448_v18 = vpop.f32.mrb[89].mxu1 }
 0x29b   : > { %v2801_v51 = vpop.f32.mrb[90].mxu1  ;;  %v3580_v18 = vrot.slane %v3571_v12, %v1267_v14 }
 0x29c   : > { %v2802_v41 = vadd.f32 %v2801_v51, %v2745_v17  ;;  %v4449_v49 = vpop.f32.mrb[91].mxu1 }
 0x2a1   : > { %v2806_v52 = vpop.f32.mrb[92].mxu1 }
 0x2a2   : > { %v2807_v54 = vadd.f32 %v2806_v52, %v2750_v35  ;;  %v4452_v39 = vpop.f32.mrb[93].mxu1 }
 0x2a3   : > { %v2809_v48 = vpop.f32.mrb[94].mxu1 }
 0x2a4   : > { %v2810_v55 = vadd.f32 %v2809_v48, %v2753_v5  ;;  %v4453_v56 = vpop.f32.mrb[95].mxu1 }
 0x2b1   : > { %v4374_v42 = vpop.f32.mrb[96].mxu1 }
 0x2b2   : > { %v4375_v57 = vpop.f32.mrb[97].mxu1 }
 0x2b3   : > { %v4376_v58 = vadd.f32 %v4375_v57, %v4374_v42  ;;  %v4377_v59 = vpop.f32.mrb[98].mxu1 }
 0x2b4   : > { %v4378_v60 = vpop.f32.mrb[99].mxu1 }
 0x2b5   : > { %v4379_v4 = vadd.f32 %v4378_v60, %v4377_v59 }
 0x2b9   : > { %v4380_v61 = vpop.f32.mrb[100].mxu1 }
 0x2ba   : > { %v4381_v62 = vpop.f32.mrb[101].mxu1 }
 0x2bb   : > { %v4382_v0 = vadd.f32 %v4381_v62, %v4380_v61  ;;  %v4383_v1 = vpop.f32.mrb[102].mxu1 }
 0x2bc   : > { %v4384_v25 = vpop.f32.mrb[103].mxu1 }
 0x2bd   : > { %v4385_v3 = vadd.f32 %v4384_v25, %v4383_v1 }
 0x2c1   : > { %v4386_v6 = vpop.f32.mrb[104].mxu1 }
 0x2c2   : > { %v4387_v34 = vpop.f32.mrb[105].mxu1 }
 0x2c3   : > { %v4388_v2 = vadd.f32 %v4387_v34, %v4386_v6  ;;  %v4389_v7 = vpop.f32.mrb[106].mxu1 }
 0x2c4   : > { %v4390_v43 = vpop.f32.mrb[107].mxu1 }
 0x2c5   : > { %v4391_v20 = vadd.f32 %v4390_v43, %v4389_v7 }
 0x2cd   : > { %v3530_v15 = vpop.f32.mrb[108].mxu1 }
 0x2ce   : > { %v3531_v13 = vadd.f32 %v4376_v58, %v3530_v15  ;;  %v4470_v19 = vpop.f32.mrb[109].mxu1 }
 0x2cf   : > { %v3533_v21 = vpop.f32.mrb[110].mxu1 }
 0x2d0   : > { %v3555_v22 = vadd.f32 %v3531_v13, %v2791_v37  ;;  %v3534_v9 = vadd.f32 %v4379_v4, %v3533_v21  ;;  %v4471_v24 = vpop.f32.mrb[111].mxu1 }
 0x2d2   : > { %v3590_v47 = vadd.f32 %v3584_v63, %v3555_v22  ;;  %v3558_v26 = vadd.f32 %v3534_v9, %v2794_v50 }
 0x2d4   : > { %3609 = vst.msk [vmem:[%s6297_s8 + $0x10] sm:$0xff] %vm3608_vm5, %v3590_v47  ;;  %v3593_v53 = vadd.f32 %v3584_v63, %v3558_v26 }
 0x2d5   : > { %v3538_v27 = vpop.f32.mrb[112].mxu1 }
 0x2d6   : > { %3612 = vst.msk [vmem:[%s6297_s8 + $0x28] sm:$0xff] %vm3608_vm5, %v3593_v53  ;;  %v3539_v10 = vadd.f32 %v4382_v0, %v3538_v27  ;;  %v4474_v28 = vpop.f32.mrb[113].mxu1 }
 0x2d7   : > { %v3541_v29 = vpop.f32.mrb[114].mxu1 }
 0x2d8   : > { %v3561_v17 = vadd.f32 %v3539_v10, %v2799_v45  ;;  %v3542_v11 = vadd.f32 %v4385_v3, %v3541_v29  ;;  %v4475_v30 = vpop.f32.mrb[115].mxu1  ;;  %v3576_v45 = vrot.slane %v3571_v12, %v1263_v8 }
 0x2da   : > { %v3596_v23 = vadd.f32 %v3584_v63, %v3561_v17  ;;  %v3564_v31 = vadd.f32 %v3542_v11, %v2802_v41 }
 0x2dc   : > { %3615 = vst.msk [vmem:[%s6297_s8 + $0x40] sm:$0xff] %vm3608_vm5, %v3596_v23  ;;  %v3599_v32 = vadd.f32 %v3584_v63, %v3564_v31 }
 0x2dd   : > { %v3546_v33 = vpop.f32.mrb[116].mxu1 }
 0x2de   : > { %3618 = vst.msk [vmem:[%s6297_s8 + $0x58] sm:$0xff] %vm3608_vm5, %v3599_v32  ;;  %v3547_v35 = vadd.f32 %v4388_v2, %v3546_v33  ;;  %v4478_v5 = vpop.f32.mrb[117].mxu1 }
 0x2df   : > { %v3549_v36 = vpop.f32.mrb[118].mxu1 }
 0x2e0   : > { %v3567_v37 = vadd.f32 %v3547_v35, %v2807_v54  ;;  %v3550_v38 = vadd.f32 %v4391_v20, %v3549_v36  ;;  %v4479_v40 = vpop.f32.mrb[119].mxu1 }
 0x2e2   : > { %v3602_v50 = vadd.f32 %v3584_v63, %v3567_v37  ;;  %v3570_v44 = vadd.f32 %v3550_v38, %v2810_v55 }
 0x2e4   : > { %3621 = vst.msk [vmem:[%s6297_s8 + $0x70] sm:$0xff] %vm3608_vm5, %v3602_v50  ;;  %v3605_v16 = vadd.f32 %v3584_v63, %v3570_v44 }
 0x2e6   : > { %3625 = vst.msk [vmem:[%s6297_s8 + $0x88] sm:$0xf] %vm3624_vm6, %v3605_v16 }
 0x30c   : > { %v3410_v51 = vpop.f32.mrb[12].mxu0 }
 0x30d   : > { %v3588_v41 = vadd.f32 %v3576_v45, %v3410_v51  ;;  %v3412_v49 = vpop.f32.mrb[13].mxu0 }
 0x30e   : > { %v3589_v52 = vadd.f32 %v3580_v18, %v3412_v49  ;;  %v3414_v54 = vpop.f32.mrb[14].mxu0 }
 0x30f   : > { %3606 = vst [vmem:[%s6297_s8] sm:$0xff] %v3588_v41  ;;  %v3591_v39 = vadd.f32 %v3576_v45, %v3414_v54  ;;  %v3416_v48 = vpop.f32.mrb[15].mxu0 }
 0x310   : > { %3607 = vst [vmem:[%s6297_s8 + $0x8] sm:$0xff] %v3589_v52  ;;  %v3592_v55 = vadd.f32 %v3580_v18, %v3416_v48 }
 0x311   : > { %3610 = vst [vmem:[%s6297_s8 + $0x18] sm:$0xff] %v3591_v39 }
 0x312   : > { %3611 = vst [vmem:[%s6297_s8 + $0x20] sm:$0xff] %v3592_v55 }
 0x314   : > { %v3420_v8 = vpop.f32.mrb[16].mxu0 }
 0x315   : > { %v3594_v56 = vadd.f32 %v3576_v45, %v3420_v8  ;;  %v3422_v46 = vpop.f32.mrb[17].mxu0 }
 0x316   : > { %v3595_v14 = vadd.f32 %v3580_v18, %v3422_v46  ;;  %v3424_v42 = vpop.f32.mrb[18].mxu0 }
 0x317   : > { %3613 = vst [vmem:[%s6297_s8 + $0x30] sm:$0xff] %v3594_v56  ;;  %v3597_v57 = vadd.f32 %v3576_v45, %v3424_v42  ;;  %v3426_v58 = vpop.f32.mrb[19].mxu0 }
 0x318   : > { %3614 = vst [vmem:[%s6297_s8 + $0x38] sm:$0xff] %v3595_v14  ;;  %v3598_v59 = vadd.f32 %v3580_v18, %v3426_v58 }
 0x319   : > { %3616 = vst [vmem:[%s6297_s8 + $0x48] sm:$0xff] %v3597_v57 }
 0x31a   : > { %3617 = vst [vmem:[%s6297_s8 + $0x50] sm:$0xff] %v3598_v59 }
 0x31c   : > { %v3430_v60 = vpop.f32.mrb[20].mxu0 }
 0x31d   : > { %v3600_v4 = vadd.f32 %v3576_v45, %v3430_v60  ;;  %v3432_v61 = vpop.f32.mrb[21].mxu0 }
 0x31e   : > { %v3601_v62 = vadd.f32 %v3580_v18, %v3432_v61  ;;  %v3434_v0 = vpop.f32.mrb[22].mxu0 }
 0x31f   : > { %3619 = vst [vmem:[%s6297_s8 + $0x60] sm:$0xff] %v3600_v4  ;;  %v3603_v1 = vadd.f32 %v3576_v45, %v3434_v0  ;;  %v3436_v25 = vpop.f32.mrb[23].mxu0 }
 0x320   : > { %3620 = vst [vmem:[%s6297_s8 + $0x68] sm:$0xff] %v3601_v62  ;;  %v3604_v3 = vadd.f32 %v3580_v18, %v3436_v25 }
 0x321   : > { %3622 = vst [vmem:[%s6297_s8 + $0x78] sm:$0xf] %v3603_v1 }
 0x322   : > { %3623 = vst [vmem:[%s6297_s8 + $0x80] sm:$0xf] %v3604_v3 }
 0x323 PF: > { %s15_s18 = sadd.s32 1, %s4967_s18  }
 0x324   : > { %p12_p4 = scmp.ge.s32.totalorder %s15_s18, 4  }
 0x326   :  { %14 = sbr.rel (!%p12_p4) target bundleno = 1 (0x1), region = 74 }

// kernel: tile.58
= control target key start
LH: loop header
LB: loop body
LE: loop exit
PB: predicated region body
PF: predicated region fallthrough
CT: control target
= control target key end

     0   :  { %s34_s0 = inlined_call_operand.vmem [shape: f32[16], index: 0, kind: input, shape index: {}]   ;;  %s35_s1 = inlined_call_operand.vmem [shape: f32[20,16], index: 1, kind: output, shape index: {}]  }
   0x1   :  { %v4_v0 = vld [vmem:[%s34_s0] ss:$0 sm:$0xff] }
   0x2   :  { %5 = vst [vmem:[%s35_s1] sm:$0xff] %v4_v0  ;;  %10 = vst [vmem:[%s35_s1 + $0x8] sm:$0xff] %v4_v0 }
   0x3   :  { %11 = vst [vmem:[%s35_s1 + $0x10] sm:$0xff] %v4_v0 }

// kernel: tile.59
= control target key start
LH: loop header
LB: loop body
LE: loop exit
PB: predicated region body
PF: predicated region fallthrough
CT: control target
= control target key end

     0   :  { %s6_s6 = smov 3  ;;  %s20_s9 = smov 3  ;;  %vm3_vm0 = vcmask 130048   ;;  %vm10_vm1 = vcmask 1048448   ;;  %vm17_vm2 = vcmask 917248   ;;  %vm24_vm3 = vcmask 786048   ;;  %s135_s0 = inlined_call_operand.vmem [shape: f32[20,16], index: 0, kind: input, shape index: {}]   ;;  %s136_s1 = inlined_call_operand.vmem [shape: f32[1,320], index: 1, kind: output, shape index: {}]  }
   0x1   :  { %v69_v0 = vld [vmem:[%s135_s0 + $0x7] ss:$8 sm:%s6_s6]   ;;  %s85_s10 = smov 112   ;;  %v71_v1 = vld [vmem:[%s135_s0 + $0x5] ss:$8 sm:%s20_s9]   ;;  %s13_s13 = smov 3 }
   0x2   :  { %8 = vrot.lane.b32.xlu0 %v69_v0, %s85_s10  ;;  %s86_s14 = smov 80   ;;  %v70_v2 = vld [vmem:[%s135_s0 + $0x6] ss:$8 sm:%s13_s13]   ;;  %s27_s17 = smov 3  ;;  %vm31_vm4 = vcmask 654848   ;;  %vm37_vm5 = vcmask 523648  }
   0x3   :  { %22 = vrot.lane.b32.xlu1 %v71_v1, %s86_s14  ;;  %v72_v3 = vld [vmem:[%s135_s0 + $0x4] ss:$8 sm:%s27_s17]   ;;  %s87_s20 = smov 96   ;;  %v2_v4 = vld [vmem:[%s135_s0] ss:$8 sm:$0x7]  }
   0x4   :  { %s88_s23 = smov 64   ;;  %v73_v5 = vld [vmem:[%s135_s0 + $0x3] ss:$8 sm:$0x7]   ;;  %s89_s28 = smov 48   ;;  %vm43_vm6 = vcmask 392448  }
   0x5   :  { %4 = vst.msk [vmem:[#allocation0] ss:$8 sm:$0x7] %vm3_vm0, %v2_v4   ;;  %v74_v6 = vld [vmem:[%s135_s0 + $0x2] ss:$8 sm:$0x7]  }
   0x6   :  { %15 = vrot.lane.b32.xlu0 %v70_v2, %s87_s20  ;;  %s90_s29 = smov 32   ;;  %v75_v7 = vld [vmem:[%s135_s0 + $0x1] ss:$8 sm:$0x7]   ;;  %s91_s0 = smov 16   ;;  %vm49_vm7 = vcmask 261248  }
   0x7   :  { %29 = vrot.lane.b32.xlu1 %v72_v3, %s88_s23 }
   0xa   :  { %35 = vrot.lane.b32.xlu0 %v73_v5, %s89_s28 }
   0xb   :  { %41 = vrot.lane.b32.xlu1 %v74_v6, %s90_s29 }
   0xe   :  { %47 = vrot.lane.b32.xlu0 %v75_v7, %s91_s0 }
  0x74   :  { %v9_v8 = vpop.permute.xlu0 %8  }
  0x75   :  { %11 = vst.msk [vmem:[#allocation0] ss:$8 sm:$0x3] %vm10_vm1, %v9_v8   ;;  %v23_v9 = vpop.permute.xlu1 %22  }
  0x78   :  { %v16_v10 = vpop.permute.xlu0 %15  }
  0x79   :  { %18 = vst.msk [vmem:[#allocation0] ss:$8 sm:$0x3] %vm17_vm2, %v16_v10   ;;  %v30_v11 = vpop.permute.xlu1 %29  }
  0x7a   :  { %25 = vst.msk [vmem:[#allocation0] ss:$8 sm:$0x3] %vm24_vm3, %v23_v9  }
  0x7b   :  { %32 = vst.msk [vmem:[#allocation0] ss:$8 sm:$0x3] %vm31_vm4, %v30_v11  }
  0x7c   :  { %v36_v12 = vpop.permute.xlu0 %35  }
  0x7d   :  { %38 = vst.msk [vmem:[#allocation0] ss:$8 sm:$0x7] %vm37_vm5, %v36_v12   ;;  %v42_v13 = vpop.permute.xlu1 %41  }
  0x7e   :  { %44 = vst.msk [vmem:[#allocation0] ss:$8 sm:$0x7] %vm43_vm6, %v42_v13  }
  0x80   :  { %v48_v14 = vpop.permute.xlu0 %47  }
  0x81   :  { %50 = vst.msk [vmem:[#allocation0] ss:$8 sm:$0x7] %vm49_vm7, %v48_v14  }
  0x88   :  { %v54_v15 = vld [vmem:[#allocation0] sm:$0x1]  ;;  %v58_v16 = vld [vmem:[#allocation0 + $0x8] sm:$0x1]  ;;  %v63_v17 = vld [vmem:[#allocation0 + $0x10] sm:$0x1] }
  0x89   :  { %56 = vst [vmem:[%s136_s1] sm:$0x1] %v54_v15  ;;  %76 = vst [vmem:[%s136_s1 + $0x1] sm:$0x1] %v58_v16 }
  0x8a   :  { %77 = vst [vmem:[%s136_s1 + $0x2] sm:$0x1] %v63_v17 }

// kernel: tile.62
= control target key start
LH: loop header
LB: loop body
LE: loop exit
PB: predicated region body
PF: predicated region fallthrough
CT: control target
= control target key end

     0   :  { %s34_s0 = inlined_call_operand.vmem [shape: f32[16], index: 0, kind: input, shape index: {}]   ;;  %s35_s1 = inlined_call_operand.vmem [shape: f32[18,16], index: 1, kind: output, shape index: {}]  }
   0x1   :  { %v4_v0 = vld [vmem:[%s34_s0] ss:$0 sm:$0xff] }
   0x2   :  { %5 = vst [vmem:[%s35_s1] sm:$0xff] %v4_v0  ;;  %10 = vst [vmem:[%s35_s1 + $0x8] sm:$0xff] %v4_v0 }
   0x3   :  { %11 = vst [vmem:[%s35_s1 + $0x10] sm:$0xff] %v4_v0 }

// kernel: tile.63
= control target key start
LH: loop header
LB: loop body
LE: loop exit
PB: predicated region body
PF: predicated region fallthrough
CT: control target
= control target key end

     0   :  { %s6_s6 = smov 3  ;;  %s20_s9 = smov 3  ;;  %vm3_vm0 = vcmask 130048   ;;  %vm10_vm1 = vcmask 1048448   ;;  %vm17_vm2 = vcmask 917248   ;;  %vm24_vm3 = vcmask 786048   ;;  %s137_s0 = inlined_call_operand.vmem [shape: f32[18,16], index: 0, kind: input, shape index: {}]   ;;  %s138_s1 = inlined_call_operand.vmem [shape: f32[1,288], index: 1, kind: output, shape index: {}]  }
   0x1   :  { %v71_v0 = vld [vmem:[%s137_s0 + $0x7] ss:$8 sm:%s6_s6]   ;;  %s87_s10 = smov 112   ;;  %v73_v1 = vld [vmem:[%s137_s0 + $0x5] ss:$8 sm:%s20_s9]   ;;  %s13_s13 = smov 3 }
   0x2   :  { %8 = vrot.lane.b32.xlu0 %v71_v0, %s87_s10  ;;  %s88_s14 = smov 80   ;;  %v72_v2 = vld [vmem:[%s137_s0 + $0x6] ss:$8 sm:%s13_s13]   ;;  %s27_s17 = smov 3  ;;  %vm31_vm4 = vcmask 654848   ;;  %vm38_vm5 = vcmask 523648  }
   0x3   :  { %22 = vrot.lane.b32.xlu1 %v73_v1, %s88_s14  ;;  %v74_v3 = vld [vmem:[%s137_s0 + $0x4] ss:$8 sm:%s27_s17]   ;;  %s34_s20 = smov 3  ;;  %s41_s21 = smov 3  ;;  %vm45_vm6 = vcmask 392448   ;;  %vm51_vm7 = vcmask 261248  }
   0x4   :  { %s89_s22 = smov 96   ;;  %v2_v4 = vld [vmem:[%s137_s0] ss:$8 sm:$0x7]   ;;  %s90_s25 = smov 64  }
   0x5   :  { %v75_v5 = vld [vmem:[%s137_s0 + $0x3] ss:$8 sm:%s34_s20]   ;;  %4 = vst.msk [vmem:[#allocation0] ss:$8 sm:$0x7] %vm3_vm0, %v2_v4   ;;  %s91_s30 = smov 48  }
   0x6   :  { %15 = vrot.lane.b32.xlu0 %v72_v2, %s89_s22  ;;  %v76_v6 = vld [vmem:[%s137_s0 + $0x2] ss:$8 sm:%s41_s21]   ;;  %s92_s2 = smov 32   ;;  %v77_v7 = vld [vmem:[%s137_s0 + $0x1] ss:$8 sm:$0x7]  }
   0x7   :  { %29 = vrot.lane.b32.xlu1 %v74_v3, %s90_s25  ;;  %s93_s0 = smov 16  }
   0xa   :  { %36 = vrot.lane.b32.xlu0 %v75_v5, %s91_s30 }
   0xb   :  { %43 = vrot.lane.b32.xlu1 %v76_v6, %s92_s2 }
   0xe   :  { %49 = vrot.lane.b32.xlu0 %v77_v7, %s93_s0 }
  0x74   :  { %v9_v8 = vpop.permute.xlu0 %8  }
  0x75   :  { %11 = vst.msk [vmem:[#allocation0] ss:$8 sm:$0x3] %vm10_vm1, %v9_v8   ;;  %v23_v9 = vpop.permute.xlu1 %22  }
  0x78   :  { %v16_v10 = vpop.permute.xlu0 %15  }
  0x79   :  { %18 = vst.msk [vmem:[#allocation0] ss:$8 sm:$0x3] %vm17_vm2, %v16_v10   ;;  %v30_v11 = vpop.permute.xlu1 %29  }
  0x7a   :  { %25 = vst.msk [vmem:[#allocation0] ss:$8 sm:$0x3] %vm24_vm3, %v23_v9  }
  0x7b   :  { %32 = vst.msk [vmem:[#allocation0] ss:$8 sm:$0x3] %vm31_vm4, %v30_v11  }
  0x7c   :  { %v37_v12 = vpop.permute.xlu0 %36  }
  0x7d   :  { %39 = vst.msk [vmem:[#allocation0] ss:$8 sm:$0x3] %vm38_vm5, %v37_v12   ;;  %v44_v13 = vpop.permute.xlu1 %43  }
  0x7e   :  { %46 = vst.msk [vmem:[#allocation0] ss:$8 sm:$0x3] %vm45_vm6, %v44_v13  }
  0x80   :  { %v50_v14 = vpop.permute.xlu0 %49  }
  0x81   :  { %52 = vst.msk [vmem:[#allocation0] ss:$8 sm:$0x7] %vm51_vm7, %v50_v14  }
  0x88   :  { %v56_v15 = vld [vmem:[#allocation0] sm:$0x1]  ;;  %v60_v16 = vld [vmem:[#allocation0 + $0x8] sm:$0x1]  ;;  %v65_v17 = vld [vmem:[#allocation0 + $0x10] sm:$0x1] }
  0x89   :  { %58 = vst [vmem:[%s138_s1] sm:$0x1] %v56_v15  ;;  %78 = vst [vmem:[%s138_s1 + $0x1] sm:$0x1] %v60_v16 }
  0x8a   :  { %79 = vst [vmem:[%s138_s1 + $0x2] sm:$0x1] %v65_v17 }

// kernel: _lambda_.6
= control target key start
LH: loop header
LB: loop body
LE: loop exit
PB: predicated region body
PF: predicated region fallthrough
CT: control target
= control target key end

     0   :  { %s5283_s24 = smov 0   ;;  %s6768_s0 = inlined_call_operand.vmem [shape: f32[2,44,352], index: 0, kind: input, shape index: {}]   ;;  %s6769_s1 = inlined_call_operand.vmem [shape: f32[22,43], index: 1, kind: input, shape index: {}]   ;;  %s6770_s2 = inlined_call_operand.vmem [shape: f32[344,176], index: 2, kind: input, shape index: {}]   ;;  %s6771_s3 = inlined_call_operand.vmem [shape: bf16[3,176,320], index: 3, kind: input, shape index: {}]   ;;  %s6772_s4 = inlined_call_operand.vmem [shape: f32[1,320], index: 4, kind: input, shape index: {}]   ;;  %s6773_s5 = inlined_call_operand.vmem [shape: bf16[3,320,288], index: 5, kind: input, shape index: {}]   ;;  %s6774_s6 = inlined_call_operand.vmem [shape: f32[1,288], index: 6, kind: input, shape index: {}]   ;;  %s6775_s7 = inlined_call_operand.vmem [shape: f32[2,18,288], index: 7, kind: output, shape index: {}]  }
   0x1 LB: > { %s3944_s25 = sadd.s32 4294967295, %s5235_s24   ;;  %p3948_p0 = scmp.ge.s32.totalorder %s5235_s24, 1  ;;  %s5235_s24 = sphi %s5283_s24, %s17_s24  }
   0x2   : > { %p237_p1 = scmp.lt.s32.totalorder %s5235_s24, 3 }
   0x4   : > { %p238_p2 = pnand %p3948_p0, %p237_p1 }
   0x5   : > { %p269_p3 = scmp.lt.s32.totalorder (!%p238_p2), %s3944_s25, 1  ;;  %v5237_v0 = vmov (!%p238_p2), 0.0   ;;  %vm316_vm0 = vcmask (!%p238_p2), 1046528   ;;  %vm399_vm1 = vcmask (!%p238_p2), 1042432   ;;  %vm5238_vm2 = vmmov (!%p238_p2), 1   ;;  %v636_v42 = vld [vmem:[%s6770_s2 + $0x60] sm:$0xff] (!%p238_p2) }
   0x6   : > { %241 = sbr.rel (%p238_p2) target bundleno = 1457 (0x5b1), region = 48  ;;  %473 = vmatprep.mubr.f32.mxu1 (!%p238_p2), %v5237_v0  ;;  %vm5323_vm3 = vmpackc.low (!%p238_p2), %vm399_vm1, %vm5238_vm2  ;;  %vm389_vm4 = vcmask (!%p238_p2), 351232   ;;  %vm5240_vm5 = vmmov (!%p238_p2), 0   ;;  %s5241_s19 = smov (!%p238_p2), 120   ;;  %vm599_vm6 = vcmask (!%p238_p2), 982016   ;;  %vm710_vm7 = vcmask (!%p238_p2), 719872  }
   0x7   : > { %vm1188_vm8 = vcmask (!%p238_p2), 392192   ;;  %vm979_vm9 = vsmask.f32 (!%p238_p2), 7424  ;;  %vm2492_vm10 = vcmask (!%p238_p2), 523264   ;;  %vm3887_vm11 = vcmask (!%p238_p2), 254976  }
   0x8   : > { %vm3880_vm12 = vcmask (!%p238_p2), 261120  }
   0xd   : > { %s6779_s25 = smov (!%p269_p3, %s3944_s25), 1 }
   0xe   : > { %s4826_s26 = smul.u32 144, %s6779_s25 }
   0xf   : > { %s4827_s13 = smul.u32 72, %s6779_s25 }
  0x10   : > { %s5298_s29 = scalar_lea.vmem %s6768_s0, %s4826_s26 }
  0x11   : > { %v281_v1 = vld [vmem:[%s5298_s29 + $0x8] sm:$0xff]  ;;  %v284_v2 = vld [vmem:[%s5298_s29 + $0x20] sm:$0xff]  ;;  %v287_v3 = vld [vmem:[%s5298_s29 + $0x38] sm:$0xff]  ;;  %s6749_s16 = scalar_lea.vmem %s6775_s7, %s4827_s13 }
  0x12   : > { %v320_v4 = vrot.slane %v281_v1, 1  ;;  %v321_v5 = vrot.slane %v284_v2, 1  ;;  %v328_v6 = vrot.slane %v287_v3, 1  ;;  %v280_v7 = vld [vmem:[%s5298_s29] sm:$0xff]  ;;  %v283_v8 = vld [vmem:[%s5298_s29 + $0x18] sm:$0xff]  ;;  %v286_v9 = vld [vmem:[%s5298_s29 + $0x30] sm:$0xff] }
  0x13   : > { %v317_v10 = vrot.slane %v280_v7, 1  ;;  %v318_v11 = vrot.slane %v283_v8, 1  ;;  %v326_v12 = vrot.slane %v286_v9, 1  ;;  %v290_v13 = vld [vmem:[%s5298_s29 + $0x50] sm:$0xff]  ;;  %v293_v14 = vld [vmem:[%s5298_s29 + $0x68] sm:$0xff]  ;;  %v292_v24 = vld [vmem:[%s5298_s29 + $0x60] sm:$0xff] }
  0x14   : > { %v322_v15 = vsel %vm316_vm0, %v320_v4, %v321_v5  ;;  %v329_v16 = vsel %vm316_vm0, %v321_v5, %v328_v6  ;;  %v334_v17 = vrot.slane %v290_v13, 1  ;;  %v340_v18 = vrot.slane %v293_v14, 1  ;;  %v289_v19 = vld [vmem:[%s5298_s29 + $0x48] sm:$0xff]  ;;  %v296_v25 = vld [vmem:[%s5298_s29 + $0x80] sm:$0xf]  ;;  %v282_v31 = vld [vmem:[%s5298_s29 + $0x10] sm:$0xff] }
  0x15   : > { %v369_v20 = vmax.f32 %v281_v1, %v322_v15  ;;  %v372_v21 = vmax.f32 %v284_v2, %v329_v16  ;;  %v319_v22 = vsel %vm316_vm0, %v317_v10, %v318_v11  ;;  %v327_v23 = vsel %vm316_vm0, %v318_v11, %v326_v12  ;;  %v295_v26 = vld [vmem:[%s5298_s29 + $0x78] sm:$0xf]  ;;  %v285_v32 = vld [vmem:[%s5298_s29 + $0x28] sm:$0xff]  ;;  %v288_v37 = vld [vmem:[%s5298_s29 + $0x40] sm:$0xff] }
  0x16   : > { %v368_v27 = vmax.f32 %v280_v7, %v319_v22  ;;  %v371_v28 = vmax.f32 %v283_v8, %v327_v23  ;;  %v335_v29 = vsel %vm316_vm0, %v328_v6, %v334_v17  ;;  %v341_v30 = vsel %vm316_vm0, %v334_v17, %v340_v18  ;;  %v291_v38 = vld [vmem:[%s5298_s29 + $0x58] sm:$0xff]  ;;  %v294_v44 = vld [vmem:[%s5298_s29 + $0x70] sm:$0xff]  ;;  %v297_v57 = vld [vmem:[%s5298_s29 + $0x88] sm:$0xf] }
  0x17   : > { %v4684_v33 = vpack.c.bf16 %v372_v21, %v369_v20  ;;  %v375_v34 = vmax.f32 %v287_v3, %v335_v29  ;;  %v378_v35 = vmax.f32 %v290_v13, %v341_v30  ;;  %v332_v36 = vrot.slane %v289_v19, 1  ;;  %v387_v15 = vld [vmem:[%s6769_s1 + $0x8] sm:$0xff]  ;;  %v627_v22 = vld [vmem:[%s6770_s2 + $0x18] sm:$0xff]  ;;  %v624_v23 = vld [vmem:[%s6770_s2] sm:$0xff] }
  0x18   : > { %v4686_v39 = vpack.c.bf16 %v371_v28, %v368_v27  ;;  %v338_v40 = vrot.slane %v292_v24, 1  ;;  %v346_v41 = vrot.slane %v296_v25, 1  ;;  %v344_v43 = vrot.slane %v295_v26, 1  ;;  %v625_v21 = vld [vmem:[%s6770_s2 + $0x8] sm:$0xff]  ;;  %v631_v27 = vld [vmem:[%s6770_s2 + $0x38] sm:$0xff]  ;;  %v628_v30 = vld [vmem:[%s6770_s2 + $0x20] sm:$0xff] }
  0x19   : > { %4685 = vmatprep.subr.bf16.mxu1 %v4684_v33  ;;  %v4688_v45 = vpack.c.bf16 %v378_v35, %v375_v34  ;;  %v333_v46 = vsel %vm316_vm0, %v326_v12, %v332_v36  ;;  %v323_v47 = vrot.slane %v282_v31, 1  ;;  %v324_v48 = vrot.slane %v285_v32, 1  ;;  %v635_v33 = vld [vmem:[%s6770_s2 + $0x58] sm:$0xff] }
  0x1a   : > { %4687 = vmatpush1.bf16.msra.mxu1 %v4686_v39  ;;  %v339_v49 = vsel %vm316_vm0, %v332_v36, %v338_v40  ;;  %v374_v50 = vmax.f32 %v286_v9, %v333_v46  ;;  %v347_v51 = vsel %vm316_vm0, %v340_v18, %v346_v41  ;;  %v384_v52 = vmax.f32 %v296_v25, %v346_v41  ;;  %v386_v9 = vld [vmem:[%s6769_s1] sm:$0xff]  ;;  %v626_v25 = vld [vmem:[%s6770_s2 + $0x10] sm:$0xff]  ;;  %v639_v39 = vld [vmem:[%s6770_s2 + $0x78] sm:$0xff] }
  0x1b   : > { %4689 = vmatprep.subr.bf16.mxu1 %v4688_v45  ;;  %v377_v53 = vmax.f32 %v289_v19, %v339_v49  ;;  %v381_v54 = vmax.f32 %v293_v14, %v347_v51  ;;  %v345_v55 = vsel %vm316_vm0, %v338_v40, %v344_v43  ;;  %v383_v56 = vmax.f32 %v295_v26, %v344_v43  ;;  %v388_v19 = vld [vmem:[%s6769_s1 + $0x10] sm:$0x3f]  ;;  %v629_v26 = vld [vmem:[%s6770_s2 + $0x28] sm:$0xff]  ;;  %v632_v36 = vld [vmem:[%s6770_s2 + $0x40] sm:$0xff] }
  0x1c   : > { %v380_v58 = vmax.f32 %v292_v24, %v345_v55  ;;  %v325_v59 = vsel %vm316_vm0, %v323_v47, %v324_v48  ;;  %v330_v60 = vrot.slane %v288_v37, 1  ;;  %v336_v61 = vrot.slane %v291_v38, 1  ;;  %v638_v43 = vld [vmem:[%s6770_s2 + $0x70] sm:$0xff]  ;;  %v643_v45 = vld [vmem:[%s6770_s2 + $0x98] sm:$0xff] }
  0x1d   : > { %v4690_v62 = vpack.c.bf16 %v377_v53, %v374_v50  ;;  %v4692_v63 = vpack.c.bf16 %v384_v52, %v381_v54  ;;  %v342_v1 = vrot.slane %v294_v44, 1  ;;  %v370_v4 = vmax.f32 %v282_v31, %v325_v59  ;;  %v630_v31 = vld [vmem:[%s6770_s2 + $0x30] sm:$0xff]  ;;  %v645_v50 = vld [vmem:[%s6770_s2 + $0xa8] sm:$0xff]  ;;  %v647_v51 = vld [vmem:[%s6770_s2 + $0xb8] sm:$0xff] }
  0x1e   : > { %v331_v2 = vsel %vm316_vm0, %v324_v48, %v330_v60  ;;  %v4695_v3 = vpack.c.bf16 %v383_v56, %v380_v58  ;;  %v337_v6 = vsel %vm316_vm0, %v330_v60, %v336_v61  ;;  %v348_v8 = vrot.slane %v297_v57, 1  ;;  %v640_v48 = vld [vmem:[%s6770_s2 + $0x80] sm:$0xff]  ;;  %v642_v49 = vld [vmem:[%s6770_s2 + $0x90] sm:$0xff]  ;;  %v649_v56 = vld [vmem:[%s6770_s2 + $0xc8] sm:$0xff] }
  0x1f   : > { %4691 = vmatpush1.bf16.msra.mxu1 %v4690_v62  ;;  %v373_v5 = vmax.f32 %v285_v32, %v331_v2  ;;  %v343_v7 = vsel %vm316_vm0, %v336_v61, %v342_v1  ;;  %v376_v11 = vmax.f32 %v288_v37, %v337_v6  ;;  %v5239_v13 = vmov 0.0|0.0   ;;  %v633_v32 = vld [vmem:[%s6770_s2 + $0x48] sm:$0xff]  ;;  %v634_v37 = vld [vmem:[%s6770_s2 + $0x50] sm:$0xff]  ;;  %v644_v54 = vld [vmem:[%s6770_s2 + $0xa0] sm:$0xff] }
  0x20   : > { %4694 = vmatprep.subr.msk.bf16.mxu1 %vm5323_vm3, %v4692_v63  ;;  %v379_v12 = vmax.f32 %v291_v38, %v343_v7  ;;  %v349_v14 = vsel %vm316_vm0, %v342_v1, %v348_v8  ;;  %v385_v18 = vmax.f32 %v297_v57, %v348_v8  ;;  %v4708_v24 = vpack.c.bf16 %v627_v22, %v625_v21  ;;  %v637_v38 = vld [vmem:[%s6770_s2 + $0x68] sm:$0xff]  ;;  %v646_v55 = vld [vmem:[%s6770_s2 + $0xb0] sm:$0xff]  ;;  %v651_v57 = vld [vmem:[%s6770_s2 + $0xd8] sm:$0xff] }
  0x21   : > { %v4699_v10 = vpack.c.bf16 %v373_v5, %v370_v4  ;;  %v382_v17 = vmax.f32 %v294_v44, %v349_v14  ;;  %v4710_v28 = vpack.c.bf16 %v626_v25, %v624_v23  ;;  %v4712_v29 = vpack.c.bf16 %v631_v27, %v629_v26  ;;  %v641_v44 = vld [vmem:[%s6770_s2 + $0x88] sm:$0xff]  ;;  %v648_v60 = vld [vmem:[%s6770_s2 + $0xc0] sm:$0xff]  ;;  %v650_v61 = vld [vmem:[%s6770_s2 + $0xd0] sm:$0xff] }
  0x22   : > { %v4702_v16 = vpack.c.bf16 %v379_v12, %v376_v11  ;;  %4709 = vmatprep.subr.bf16.mxu0 %v4708_v24  ;;  %v4714_v34 = vpack.c.bf16 %v630_v31, %v628_v30  ;;  %v4716_v35 = vpack.c.bf16 %v635_v33, %v633_v32  ;;  %v4718_v40 = vpack.c.bf16 %v634_v37, %v632_v36  ;;  %v653_v62 = vld [vmem:[%s6770_s2 + $0xe8] sm:$0xff]  ;;  %v655_v63 = vld [vmem:[%s6770_s2 + $0xf8] sm:$0xff]  ;;  %v654_v4 = vld [vmem:[%s6770_s2 + $0xf0] sm:$0xff] }
  0x23   : > { %4697 = vmatpush1.bf16.msk.msra.mxu1 %vm5323_vm3, %v4695_v3  ;;  %v4705_v20 = vpack.c.bf16 %v385_v18, %v382_v17  ;;  %4711 = vmatpush1.bf16.msra.mxu0 %v4710_v28  ;;  %v4720_v41 = vpack.c.bf16 %v639_v39, %v637_v38  ;;  %v4722_v46 = vpack.c.bf16 %v638_v43, %v636_v42  ;;  %v652_v3 = vld [vmem:[%s6770_s2 + $0xe0] sm:$0xff]  ;;  %v657_v5 = vld [vmem:[%s6770_s2 + $0x108] sm:$0xff]  ;;  %v659_v6 = vld [vmem:[%s6770_s2 + $0x118] sm:$0xff] }
  0x24   : > { %4698 = vmatprep.subr.bf16.mxu1 %v5239_v13  ;;  %4713 = vmatprep.subr.bf16.mxu0 %v4712_v29  ;;  %v4724_v47 = vpack.c.bf16 %v643_v45, %v641_v44  ;;  %v4726_v52 = vpack.c.bf16 %v642_v49, %v640_v48  ;;  %v4728_v53 = vpack.c.bf16 %v647_v51, %v645_v50  ;;  %v661_v11 = vld [vmem:[%s6770_s2 + $0x128] sm:$0xff]  ;;  %v663_v12 = vld [vmem:[%s6770_s2 + $0x138] sm:$0xff]  ;;  %v664_v21 = vld [vmem:[%s6770_s2 + $0x140] sm:$0xff] }
  0x25   : > { %v4730_v58 = vpack.c.bf16 %v646_v55, %v644_v54  ;;  %v4732_v59 = vpack.c.bf16 %v651_v57, %v649_v56  ;;  %v4734_v1 = vpack.c.bf16 %v650_v61, %v648_v60  ;;  %v4736_v2 = vpack.c.bf16 %v655_v63, %v653_v62  ;;  %v665_v17 = vld [vmem:[%s6770_s2 + $0x148] sm:$0xff]  ;;  %v667_v18 = vld [vmem:[%s6770_s2 + $0x158] sm:$0xff]  ;;  %v666_v22 = vld [vmem:[%s6770_s2 + $0x150] sm:$0xff] }
  0x26   : > { %3953 = vmatmul.mubr.msk.f32.vlgmr.msra.gmra.mrb[0].mxu1 %vm389_vm4, %v386_v9  ;;  %v4738_v7 = vpack.c.bf16 %v654_v4, %v652_v3  ;;  %v4740_v8 = vpack.c.bf16 %v659_v6, %v657_v5  ;;  %v4744_v14 = vpack.c.bf16 %v663_v12, %v661_v11  ;;  %v669_v23 = vld [vmem:[%s6770_s2 + $0x168] sm:$0xff]  ;;  %v671_v24 = vld [vmem:[%s6770_s2 + $0x178] sm:$0xff]  ;;  %v4750_v25 = vpack.c.bf16 %v666_v22, %v664_v21  ;;  %v668_v27 = vld [vmem:[%s6770_s2 + $0x160] sm:$0xff] }
  0x27   : > { %4700 = vmatpush3.bf16.msra.mxu1 %v4699_v10  ;;  %479 = vmatprep.mubr.f32.mxu1 %v5237_v0  ;;  %v658_v10 = vld [vmem:[%s6770_s2 + $0x110] sm:$0xff]  ;;  %v4752_v26 = vpack.c.bf16 %v671_v24, %v669_v23  ;;  %v673_v29 = vld [vmem:[%s6770_s2 + $0x188] sm:$0xff]  ;;  %v675_v30 = vld [vmem:[%s6770_s2 + $0x198] sm:$0xff] }
  0x28   : > { %4701 = vmatprep.subr.bf16.mxu1 %v5239_v13  ;;  %4715 = vmatpush1.bf16.msra.mxu0 %v4714_v34  ;;  %v670_v28 = vld [vmem:[%s6770_s2 + $0x170] sm:$0xff]  ;;  %v4756_v32 = vpack.c.bf16 %v675_v30, %v673_v29  ;;  %v672_v33 = vld [vmem:[%s6770_s2 + $0x180] sm:$0xff]  ;;  %v677_v36 = vld [vmem:[%s6770_s2 + $0x1a8] sm:$0xff] }
  0x29   : > { %4717 = vmatprep.subr.bf16.mxu0 %v4716_v35  ;;  %v4754_v31 = vpack.c.bf16 %v670_v28, %v668_v27  ;;  %v674_v34 = vld [vmem:[%s6770_s2 + $0x190] sm:$0xff]  ;;  %v679_v37 = vld [vmem:[%s6770_s2 + $0x1b8] sm:$0xff]  ;;  %v676_v39 = vld [vmem:[%s6770_s2 + $0x1a0] sm:$0xff] }
  0x2a   : > { %3954 = vmatmul.mubr.msk.f32.gmra.mrb[2].mxu1 %vm389_vm4, %v387_v15  ;;  %v4758_v35 = vpack.c.bf16 %v674_v34, %v672_v33  ;;  %v4760_v38 = vpack.c.bf16 %v679_v37, %v677_v36  ;;  %v681_v42 = vld [vmem:[%s6770_s2 + $0x1c8] sm:$0xff]  ;;  %v683_v43 = vld [vmem:[%s6770_s2 + $0x1d8] sm:$0xff]  ;;  %v680_v45 = vld [vmem:[%s6770_s2 + $0x1c0] sm:$0xff] }
  0x2b   : > { %4703 = vmatpush3.bf16.msra.mxu1 %v4702_v16  ;;  %485 = vmatprep.mubr.f32.mxu1 %v5237_v0  ;;  %v662_v16 = vld [vmem:[%s6770_s2 + $0x130] sm:$0xff]  ;;  %v4764_v44 = vpack.c.bf16 %v683_v43, %v681_v42  ;;  %v685_v48 = vld [vmem:[%s6770_s2 + $0x1e8] sm:$0xff]  ;;  %v687_v49 = vld [vmem:[%s6770_s2 + $0x1f8] sm:$0xff] }
  0x2c   : > { %4704 = vmatprep.subr.bf16.mxu1 %v5239_v13  ;;  %4719 = vmatpush1.bf16.msra.mxu0 %v4718_v40  ;;  %v678_v40 = vld [vmem:[%s6770_s2 + $0x1b0] sm:$0xff]  ;;  %v4768_v50 = vpack.c.bf16 %v687_v49, %v685_v48  ;;  %v684_v51 = vld [vmem:[%s6770_s2 + $0x1e0] sm:$0xff]  ;;  %v689_v55 = vld [vmem:[%s6770_s2 + $0x208] sm:$0xff] }
  0x2d   : > { %4721 = vmatprep.subr.bf16.mxu0 %v4720_v41  ;;  %v4762_v41 = vpack.c.bf16 %v678_v40, %v676_v39  ;;  %v691_v56 = vld [vmem:[%s6770_s2 + $0x218] sm:$0xff]  ;;  %v4863_v11 = vld [vmem:[%s6771_s3 + $0x124] ss:$12 sps:$4 sm:$0xff]   ;;  %v4861_v12 = vld [vmem:[%s6771_s3 + $0x120] ss:$12 sps:$4 sm:$0xff]  }
  0x2e   : > { %3955 = vmatmul.mubr.msk.f32.gmra.mrb[4].mxu1 %vm389_vm4, %v388_v19  ;;  %v4883_v21 = vld [vmem:[%s6771_s3 + $0x19c] ss:$12 sps:$4 sm:$0xff]   ;;  %v4881_v22 = vld [vmem:[%s6771_s3 + $0x198] ss:$12 sps:$4 sm:$0xff]   ;;  %v690_v28 = vld [vmem:[%s6770_s2 + $0x210] sm:$0xff] }
  0x2f   : > { %4707 = vmatpush3.bf16.msk.msra.mxu1 %vm5323_vm3, %v4705_v20  ;;  %4639 = vmatprep.mubr.msk.f32.mxu1 %vm5240_vm5, %v5237_v0  ;;  %v4748_v20 = vpack.c.bf16 %v667_v18, %v665_v17  ;;  %v4875_v17 = vld [vmem:[%s6771_s3 + $0x16c] ss:$12 sps:$4 sm:$0xff]   ;;  %v4873_v18 = vld [vmem:[%s6771_s3 + $0x168] ss:$12 sps:$4 sm:$0xff]   ;;  %v688_v27 = vld [vmem:[%s6770_s2 + $0x200] sm:$0xff] }
  0x30   : > { %4723 = vmatpush1.bf16.msra.mxu0 %v4722_v46  ;;  %v682_v46 = vld [vmem:[%s6770_s2 + $0x1d0] sm:$0xff]  ;;  %v693_v33 = vld [vmem:[%s6770_s2 + $0x228] sm:$0xff]  ;;  %v695_v34 = vld [vmem:[%s6770_s2 + $0x238] sm:$0xff]  ;;  %v4774_v37 = vpack.c.bf16 %v690_v28, %v688_v27 }
  0x31   : > { %4725 = vmatprep.subr.bf16.mxu0 %v4724_v47  ;;  %v4766_v47 = vpack.c.bf16 %v682_v46, %v680_v45  ;;  %v4776_v39 = vpack.c.bf16 %v695_v34, %v693_v33  ;;  %v692_v40 = vld [vmem:[%s6770_s2 + $0x220] sm:$0xff]  ;;  %v697_v45 = vld [vmem:[%s6770_s2 + $0x248] sm:$0xff]  ;;  %v699_v46 = vld [vmem:[%s6770_s2 + $0x258] sm:$0xff] }
  0x32   : > { %4640 = vmatmul.mubr.msk.f32.vlgmr.msra.gmra.mrb[6].mxu1 %vm389_vm4, %v386_v9  ;;  %v656_v9 = vld [vmem:[%s6770_s2 + $0x100] sm:$0xff]  ;;  %v4889_v28 = vld [vmem:[%s6771_s3 + $0x1c8] ss:$12 sps:$4 sm:$0xff]  }
  0x33   : > { %4642 = vmatprep.mubr.msk.f32.mxu1 %vm5240_vm5, %v5237_v0  ;;  %v4742_v13 = vpack.c.bf16 %v658_v10, %v656_v9  ;;  %v4857_v9 = vld [vmem:[%s6771_s3 + $0x108] ss:$12 sps:$4 sm:$0xff]   ;;  %v4859_v10 = vld [vmem:[%s6771_s3 + $0x10c] ss:$12 sps:$4 sm:$0xff]  }
  0x34   : > { %4727 = vmatpush1.bf16.msra.mxu0 %v4726_v52  ;;  %v686_v52 = vld [vmem:[%s6770_s2 + $0x1f0] sm:$0xff]  ;;  %1195 = vmatprep.subr.bf16.mxu1 %v4859_v10  ;;  %v4892_v27 = vld [vmem:[%s6771_s3 + $0x2d8] ss:$12 sps:$4 sm:$0xff]   ;;  %v4899_v33 = vld [vmem:[%s6771_s3 + $0x1fc] ss:$12 sps:$4 sm:$0xff]  }
  0x35   : > { %4729 = vmatprep.subr.bf16.mxu0 %v4728_v53  ;;  %v4770_v53 = vpack.c.bf16 %v686_v52, %v684_v51  ;;  %1196 = vmatpush1.bf16.msra.mxu1 %v4857_v9  ;;  %v705_v9 = vld [vmem:[%s6770_s2 + $0x288] sm:$0xff] }
  0x36   : > { %4643 = vmatmul.mubr.msk.f32.gmra.mrb[8].mxu1 %vm389_vm4, %v387_v15  ;;  %v660_v15 = vld [vmem:[%s6770_s2 + $0x120] sm:$0xff]  ;;  %1197 = vmatprep.subr.bf16.mxu1 %v4863_v11  ;;  %v4900_v34 = vld [vmem:[%s6771_s3 + $0x308] ss:$12 sps:$4 sm:$0xff]  }
  0x37   : > { %4645 = vmatprep.mubr.msk.f32.mxu1 %vm5240_vm5, %v5237_v0  ;;  %v704_v11 = vld [vmem:[%s6770_s2 + $0x280] sm:$0xff] }
  0x38   : > { %4731 = vmatpush1.bf16.msra.mxu0 %v4730_v58  ;;  %v4772_v58 = vpack.c.bf16 %v691_v56, %v689_v55  ;;  %v698_v55 = vld [vmem:[%s6770_s2 + $0x250] sm:$0xff] }
  0x39   : > { %4733 = vmatprep.subr.bf16.mxu0 %v4732_v59  ;;  %1198 = vmatpush1.bf16.msra.mxu1 %v4861_v12  ;;  %v706_v12 = vld [vmem:[%s6770_s2 + $0x290] sm:$0xff] }
  0x3a   : > { %4646 = vmatmul.mubr.msk.f32.gmra.mrb[10].mxu1 %vm389_vm4, %v388_v19  ;;  %v4746_v19 = vpack.c.bf16 %v662_v16, %v660_v15  ;;  %v4871_v15 = vld [vmem:[%s6771_s3 + $0x154] ss:$12 sps:$4 sm:$0xff]   ;;  %v4869_v16 = vld [vmem:[%s6771_s3 + $0x150] ss:$12 sps:$4 sm:$0xff]  }
  0x3c   : > { %4735 = vmatpush1.bf16.msra.mxu0 %v4734_v1 }
  0x3d   : > { %4737 = vmatprep.subr.bf16.mxu0 %v4736_v2 }
  0x40   : > { %4739 = vmatpush1.bf16.msra.mxu0 %v4738_v7 }
  0x41   : > { %4741 = vmatprep.subr.bf16.mxu0 %v4740_v8 }
  0x44   : > { %4743 = vmatpush1.bf16.msra.mxu0 %v4742_v13  ;;  %v4867_v13 = vld [vmem:[%s6771_s3 + $0x13c] ss:$12 sps:$4 sm:$0xff]  }
  0x45   : > { %4745 = vmatprep.subr.bf16.mxu0 %v4744_v14  ;;  %v4865_v14 = vld [vmem:[%s6771_s3 + $0x138] ss:$12 sps:$4 sm:$0xff]   ;;  %1199 = vmatprep.subr.bf16.mxu1 %v4867_v13  ;;  %v4790_v13 = vpack.c.bf16 %v706_v12, %v704_v11 }
  0x46   : > { %1200 = vmatpush1.bf16.msra.mxu1 %v4865_v14  ;;  %v709_v14 = vld [vmem:[%s6770_s2 + $0x2a8] sm:$0xff]  ;;  %v4904_v12 = vld [vmem:[%s6771_s3 + $0x158] ss:$12 sps:$4 sm:$0xff]  }
  0x47   : > { %1201 = vmatprep.subr.bf16.mxu1 %v4871_v15  ;;  %v708_v15 = vld [vmem:[%s6770_s2 + $0x2a0] sm:$0xff] }
  0x48   : > { %4747 = vmatpush1.bf16.msra.mxu0 %v4746_v19  ;;  %v4879_v19 = vld [vmem:[%s6771_s3 + $0x184] ss:$12 sps:$4 sm:$0xff]  }
  0x49   : > { %4749 = vmatprep.subr.bf16.mxu0 %v4748_v20  ;;  %v4877_v20 = vld [vmem:[%s6771_s3 + $0x180] ss:$12 sps:$4 sm:$0xff]  }
  0x4a   : > { %1202 = vmatpush1.bf16.msra.mxu1 %v4869_v16  ;;  %v4860_v16 = vld [vmem:[%s6771_s3 + $0x218] ss:$12 sps:$4 sm:$0xff]  }
  0x4b   : > { %1203 = vmatprep.subr.bf16.mxu1 %v4875_v17 }
  0x4c   : > { %4751 = vmatpush1.bf16.msra.mxu0 %v4750_v25 }
  0x4d   : > { %4753 = vmatprep.subr.bf16.mxu0 %v4752_v26 }
  0x4e   : > { %1204 = vmatpush1.bf16.msra.mxu1 %v4873_v18  ;;  %v5242_v18 = vmov 0  }
  0x4f   : > { %1205 = vmatprep.subr.bf16.mxu1 %v4879_v19  ;;  %v4864_v19 = vld [vmem:[%s6771_s3 + $0x230] ss:$12 sps:$4 sm:$0xff]  }
  0x50   : > { %4755 = vmatpush1.bf16.msra.mxu0 %v4754_v31 }
  0x51   : > { %4757 = vmatprep.subr.bf16.mxu0 %v4756_v32 }
  0x52   : > { %1206 = vmatpush1.bf16.msra.mxu1 %v4877_v20 }
  0x53   : > { %1207 = vmatprep.subr.bf16.mxu1 %v4883_v21 }
  0x54   : > { %4759 = vmatpush1.bf16.msra.mxu0 %v4758_v35 }
  0x55   : > { %4761 = vmatprep.subr.bf16.mxu0 %v4760_v38 }
  0x56   : > { %1208 = vmatpush1.bf16.msra.mxu1 %v4881_v22  ;;  %v4884_v22 = vld [vmem:[%s6771_s3 + $0x2a8] ss:$12 sps:$4 sm:$0xff]  }
  0x58   : > { %4763 = vmatpush1.bf16.msra.mxu0 %v4762_v41  ;;  %v694_v41 = vld [vmem:[%s6770_s2 + $0x230] sm:$0xff] }
  0x59   : > { %4765 = vmatprep.subr.bf16.mxu0 %v4764_v44  ;;  %v4778_v51 = vpack.c.bf16 %v694_v41, %v692_v40 }
  0x5c   : > { %4767 = vmatpush1.bf16.msra.mxu0 %v4766_v47 }
  0x5d   : > { %4769 = vmatprep.subr.bf16.mxu0 %v4768_v50 }
  0x60   : > { %4771 = vmatpush1.bf16.msra.mxu0 %v4770_v53  ;;  %v4780_v53 = vpack.c.bf16 %v699_v46, %v697_v45 }
  0x61   : > { %4773 = vmatprep.subr.bf16.mxu0 %v4772_v58  ;;  %v701_v58 = vld [vmem:[%s6770_s2 + $0x268] sm:$0xff] }
  0xf9   : > { %v5556_v54 = vpop.f32.mrb[0].mxu1 }
  0xfa   : > { %v5564_v57 = vpop.f32.mrb[1].mxu1 }
  0xfb   : > { %v4842_v59 = vpack.i.bf16 %v5556_v54, %v5564_v57 }
  0xfd   : > { %4843 = vrot.lane.b32.xlu0 %v4842_v59, %s5241_s19  ;;  %v5568_v60 = vpop.f32.mrb[2].mxu1  ;;  %v703_v59 = vld [vmem:[%s6770_s2 + $0x278] sm:$0xff] }
  0xfe   : > { %v5570_v61 = vpop.f32.mrb[3].mxu1 }
  0xff   : > { %v4847_v62 = vpack.i.bf16 %v5568_v60, %v5570_v61 }
 0x101   : > { %4848 = vrot.lane.b32.xlu1 %v4847_v62, %s5241_s19  ;;  %v5574_v63 = vpop.f32.mrb[4].mxu1 }
 0x102   : > { %v5576_v1 = vpop.f32.mrb[5].mxu1 }
 0x103   : > { %v4852_v2 = vpack.i.bf16 %v5574_v63, %v5576_v1 }
 0x105   : > { %v5580_v3 = vpop.f32.mrb[6].mxu1 }
 0x106   : > { %585 = vrot.lane.b32.xlu0 %v5580_v3, %s5241_s19  ;;  %v4641_v4 = vpop.f32.mrb[7].mxu1 }
 0x107   : > { %v4784_v4 = vpack.c.bf16 %v703_v59, %v701_v58 }
 0x109   : > { %v5583_v5 = vpop.f32.mrb[8].mxu1 }
 0x10a   : > { %4853 = vrot.lane.b32.xlu0 %v4852_v2, %s5241_s19  ;;  %591 = vrot.lane.b32.xlu1 %v5583_v5, %s5241_s19  ;;  %v4644_v6 = vpop.f32.mrb[9].mxu1 }
 0x10b   : > { %v700_v6 = vld [vmem:[%s6770_s2 + $0x260] sm:$0xff] }
 0x10d   : > { %v5586_v7 = vpop.f32.mrb[10].mxu1 }
 0x10e   : > { %597 = vrot.lane.b32.xlu1 %v5586_v7, %s5241_s19  ;;  %v4647_v8 = vpop.f32.mrb[11].mxu1 }
 0x10f   : > { %v702_v8 = vld [vmem:[%s6770_s2 + $0x270] sm:$0xff] }
 0x16f   : > { %v4844_v23 = vpop.permute.xlu0 %4843 }
 0x170   : > { %v4846_v24 = vunpack.i.h.bf16 %v4844_v23  ;;  %v4845_v25 = vunpack.i.l.bf16 %v4844_v23  ;;  %v4887_v23 = vld [vmem:[%s6771_s3 + $0x1b4] ss:$12 sps:$4 sm:$0xff]  }
 0x171   : > { %1209 = vmatprep.subr.bf16.mxu1 %v4887_v23  ;;  %v4923_v23 = vld [vmem:[%s6771_s3 + $0x4c] ss:$12 sps:$4 sm:$0xff]  }
 0x172   : > { %v600_v32 = vsel %vm599_vm6, %v4846_v24, %v4845_v25  ;;  %v4888_v24 = vld [vmem:[%s6771_s3 + $0x2c0] ss:$12 sps:$4 sm:$0xff]  }
 0x173   : > { %v4849_v26 = vpop.permute.xlu1 %4848  ;;  %v615_v38 = vmax.f32 %v5556_v54, %v600_v32  ;;  %v696_v54 = vld [vmem:[%s6770_s2 + $0x240] sm:$0xff] }
 0x174   : > { %v4851_v29 = vunpack.i.h.bf16 %v4849_v26  ;;  %v4850_v30 = vunpack.i.l.bf16 %v4849_v26  ;;  %v4782_v62 = vpack.c.bf16 %v698_v55, %v696_v54  ;;  %v4891_v26 = vld [vmem:[%s6771_s3 + $0x1cc] ss:$12 sps:$4 sm:$0xff]  }
 0x175   : > { %v4897_v32 = vld [vmem:[%s6771_s3 + $0x1f8] ss:$12 sps:$4 sm:$0xff]  }
 0x176   : > { %v602_v44 = vsel %vm599_vm6, %v4851_v29, %v4850_v30  ;;  %v4895_v29 = vld [vmem:[%s6771_s3 + $0x1e4] ss:$12 sps:$4 sm:$0xff]  }
 0x177   : > { %v618_v52 = vmax.f32 %v5568_v60, %v602_v44 }
 0x178   : > { %v5637_v31 = vpop.permute.xlu0 %585 }
 0x179   : > { %v601_v35 = vsel %vm599_vm6, %v4845_v25, %v5637_v31  ;;  %v617_v17 = vmax.f32 %v5580_v3, %v5637_v31  ;;  %v4868_v3 = vld [vmem:[%s6771_s3 + $0x248] ss:$12 sps:$4 sm:$0xff]   ;;  %v4885_v25 = vld [vmem:[%s6771_s3 + $0x1b0] ss:$12 sps:$4 sm:$0xff]   ;;  %v4893_v31 = vld [vmem:[%s6771_s3 + $0x1e0] ss:$12 sps:$4 sm:$0xff]  }
 0x17a   : > { %v616_v36 = vmax.f32 %v5564_v57, %v601_v35  ;;  %1210 = vmatpush1.bf16.msra.mxu1 %v4885_v25  ;;  %v4926_v25 = vld [vmem:[%s6771_s3 + $0x64] ss:$12 sps:$4 sm:$0xff]  }
 0x17b   : > { %1211 = vmatprep.subr.bf16.mxu1 %v4891_v26  ;;  %v4924_v26 = vld [vmem:[%s6771_s3 + $0x60] ss:$12 sps:$4 sm:$0xff]  }
 0x17c   : > { %784 = vmatprep.mubr.f32.mxu0 %v616_v36  ;;  %v4854_v42 = vpop.permute.xlu0 %4853  ;;  %v592_v43 = vpop.permute.xlu1 %591 }
 0x17d   : > { %v4856_v47 = vunpack.i.h.bf16 %v4854_v42  ;;  %v4855_v48 = vunpack.i.l.bf16 %v4854_v42  ;;  %v603_v49 = vsel %vm599_vm6, %v4850_v30, %v592_v43  ;;  %785 = vmatmul.mubr.f32.vlgmr.msra.gmra.mrb[0].mxu0 %v615_v38  ;;  %v620_v20 = vmax.f32 %v5583_v5, %v592_v43  ;;  %v4872_v5 = vld [vmem:[%s6771_s3 + $0x260] ss:$12 sps:$4 sm:$0xff]   ;;  %v4896_v30 = vld [vmem:[%s6771_s3 + $0x2f0] ss:$12 sps:$4 sm:$0xff]  }
 0x17e   : > { %v619_v50 = vmax.f32 %v5570_v61, %v603_v49  ;;  %4775 = vmatpush1.bf16.msra.mxu0 %v4774_v37  ;;  %1212 = vmatpush1.bf16.msra.mxu1 %v4889_v28  ;;  %v4927_v28 = vld [vmem:[%s6771_s3 + $0x78] ss:$12 sps:$4 sm:$0xff]  }
 0x17f   : > { %4777 = vmatprep.subr.bf16.mxu0 %v4776_v39  ;;  %v604_v57 = vsel %vm599_vm6, %v4856_v47, %v4855_v48  ;;  %1213 = vmatprep.subr.bf16.mxu1 %v4895_v29  ;;  %v4932_v29 = vld [vmem:[%s6771_s3 + $0x94] ss:$12 sps:$4 sm:$0xff]  }
 0x180   : > { %790 = vmatprep.mubr.f32.mxu0 %v619_v50  ;;  %v598_v56 = vpop.permute.xlu1 %597  ;;  %v621_v2 = vmax.f32 %v5574_v63, %v604_v57  ;;  %v4786_v63 = vpack.c.bf16 %v702_v8, %v700_v6 }
 0x181   : > { %v605_v60 = vsel %vm599_vm6, %v4855_v48, %v598_v56  ;;  %791 = vmatmul.mubr.f32.gmra.mrb[2].mxu0 %v618_v52  ;;  %v623_v21 = vmax.f32 %v5586_v7, %v598_v56  ;;  %v4880_v7 = vld [vmem:[%s6771_s3 + $0x290] ss:$12 sps:$4 sm:$0xff]  }
 0x182   : > { %v622_v61 = vmax.f32 %v5576_v1, %v605_v60  ;;  %4779 = vmatpush1.bf16.msra.mxu0 %v4778_v51  ;;  %v707_v1 = vld [vmem:[%s6770_s2 + $0x298] sm:$0xff]  ;;  %1214 = vmatpush1.bf16.msra.mxu1 %v4893_v31 }
 0x183   : > { %4781 = vmatprep.subr.bf16.mxu0 %v4780_v53  ;;  %v4788_v10 = vpack.c.bf16 %v707_v1, %v705_v9  ;;  %1215 = vmatprep.subr.bf16.mxu1 %v4899_v33  ;;  %v4902_v1 = vld [vmem:[%s6771_s3 + $0x128] ss:$12 sps:$4 sm:$0xff]   ;;  %v4935_v31 = vld [vmem:[%s6771_s3 + $0xac] ss:$12 sps:$4 sm:$0xff]   ;;  %v4938_v33 = vld [vmem:[%s6771_s3 + $0xc4] ss:$12 sps:$4 sm:$0xff]  }
 0x184   : > { %796 = vmatprep.mubr.f32.mxu0 %v622_v61 }
 0x185   : > { %797 = vmatmul.mubr.f32.gmra.mrb[4].mxu0 %v621_v2 }
 0x186   : > { %4783 = vmatpush1.bf16.msra.mxu0 %v4782_v62  ;;  %867 = vmatprep.mubr.f32.mxu0 %v5237_v0 }
 0x187   : > { %4785 = vmatprep.subr.bf16.mxu0 %v4784_v4  ;;  %1216 = vmatpush1.bf16.msra.mxu1 %v4897_v32  ;;  %v4901_v4 = vld [vmem:[%s6771_s3 + $0x110] ss:$12 sps:$4 sm:$0xff]   ;;  %v4933_v32 = vld [vmem:[%s6771_s3 + $0xa8] ss:$12 sps:$4 sm:$0xff]  }
 0x188   : > { %1246 = vmatprep.subr.bf16.mxu1 %v5242_v18 }
 0x18a   : > { %4787 = vmatpush1.bf16.msra.mxu0 %v4786_v63 }
 0x18b   : > { %4789 = vmatprep.subr.bf16.mxu0 %v4788_v10  ;;  %v4903_v10 = vld [vmem:[%s6771_s3 + $0x140] ss:$12 sps:$4 sm:$0xff]  }
 0x18e   : > { %4791 = vmatpush1.bf16.msra.mxu0 %v4790_v13  ;;  %v4905_v13 = vld [vmem:[%s6771_s3 + $0x170] ss:$12 sps:$4 sm:$0xff]  }
 0x18f   : > { %823 = vmatprep.subr.mxu0 %v709_v14  ;;  %v4906_v14 = vld [vmem:[%s6771_s3 + $0x188] ss:$12 sps:$4 sm:$0xff]  }
 0x192   : > { %824 = vmatpush1.msra.mxu0 %v708_v15  ;;  %v4907_v15 = vld [vmem:[%s6771_s3 + $0x1a0] ss:$12 sps:$4 sm:$0xff]  }
 0x193   : > { %3960 = vmatmul.mubr.msk.f32.vlgmr.msra.gmra.mrb[0].mxu0 %vm710_vm7, %v617_v17  ;;  %1864 = vmatprep.subr.bf16.mxu0 %v5242_v18  ;;  %v4909_v17 = vld [vmem:[%s6771_s3 + $0x1d0] ss:$12 sps:$4 sm:$0xff]  }
 0x194   : > { %873 = vmatprep.mubr.f32.mxu0 %v5237_v0  ;;  %1865 = vmatpush1.bf16.msra.mxu0 %v4860_v16  ;;  %v4908_v16 = vld [vmem:[%s6771_s3 + $0x1b8] ss:$12 sps:$4 sm:$0xff]  }
 0x195   : > { %1866 = vmatprep.subr.bf16.mxu0 %v5242_v18 }
 0x197   : > { %3961 = vmatmul.mubr.msk.f32.gmra.mrb[2].mxu0 %vm710_vm7, %v620_v20  ;;  %v4911_v20 = vld [vmem:[%s6771_s3 + $0x200] ss:$12 sps:$4 sm:$0xff]  }
 0x198   : > { %879 = vmatprep.mubr.f32.mxu0 %v5237_v0  ;;  %1867 = vmatpush1.bf16.msra.mxu0 %v4864_v19  ;;  %v4876_v0 = vld [vmem:[%s6771_s3 + $0x278] ss:$12 sps:$4 sm:$0xff]   ;;  %v4910_v19 = vld [vmem:[%s6771_s3 + $0x1e8] ss:$12 sps:$4 sm:$0xff]  }
 0x199   : > { %1868 = vmatprep.subr.bf16.mxu0 %v5242_v18 }
 0x19b   : > { %3962 = vmatmul.mubr.msk.f32.gmra.mrb[4].mxu0 %vm710_vm7, %v623_v21  ;;  %v4912_v21 = vld [vmem:[%s6771_s3] ss:$12 sps:$4 sm:$0xff]  }
 0x19c   : > { %1869 = vmatpush1.bf16.msra.mxu0 %v4868_v3  ;;  %v4914_v3 = vld [vmem:[%s6771_s3 + $0x4] ss:$12 sps:$4 sm:$0xff]  }
 0x19d   : > { %1870 = vmatprep.subr.bf16.mxu0 %v5242_v18 }
 0x1a0   : > { %1871 = vmatpush1.bf16.msra.mxu0 %v4872_v5  ;;  %v4917_v5 = vld [vmem:[%s6771_s3 + $0x1c] ss:$12 sps:$4 sm:$0xff]  }
 0x1a1   : > { %1872 = vmatprep.subr.bf16.mxu0 %v5242_v18 }
 0x1a4   : > { %1873 = vmatpush1.bf16.msra.mxu0 %v4876_v0  ;;  %v4915_v0 = vld [vmem:[%s6771_s3 + $0x18] ss:$12 sps:$4 sm:$0xff]  }
 0x1a5   : > { %1874 = vmatprep.subr.bf16.mxu0 %v5242_v18 }
 0x1a8   : > { %1875 = vmatpush1.bf16.msra.mxu0 %v4880_v7  ;;  %v4920_v7 = vld [vmem:[%s6771_s3 + $0x34] ss:$12 sps:$4 sm:$0xff]  }
 0x1a9   : > { %1876 = vmatprep.subr.bf16.mxu0 %v5242_v18 }
 0x1ac   : > { %1877 = vmatpush1.bf16.msra.mxu0 %v4884_v22  ;;  %v4918_v22 = vld [vmem:[%s6771_s3 + $0x30] ss:$12 sps:$4 sm:$0xff]  }
 0x1ad   : > { %1878 = vmatprep.subr.bf16.mxu0 %v5242_v18 }
 0x1b0   : > { %1879 = vmatpush1.bf16.msra.mxu0 %v4888_v24  ;;  %v4921_v24 = vld [vmem:[%s6771_s3 + $0x48] ss:$12 sps:$4 sm:$0xff]  }
 0x1b1   : > { %1880 = vmatprep.subr.bf16.mxu0 %v5242_v18 }
 0x1b4   : > { %1881 = vmatpush1.bf16.msra.mxu0 %v4892_v27  ;;  %v4929_v27 = vld [vmem:[%s6771_s3 + $0x7c] ss:$12 sps:$4 sm:$0xff]  }
 0x1b5   : > { %1882 = vmatprep.subr.bf16.mxu0 %v5242_v18 }
 0x1b8   : > { %1883 = vmatpush1.bf16.msra.mxu0 %v4896_v30  ;;  %v4930_v30 = vld [vmem:[%s6771_s3 + $0x90] ss:$12 sps:$4 sm:$0xff]  }
 0x1b9   : > { %1884 = vmatprep.subr.bf16.mxu0 %v5242_v18 }
 0x1bc   : > { %1885 = vmatpush1.bf16.msra.mxu0 %v4900_v34  ;;  %v4936_v34 = vld [vmem:[%s6771_s3 + $0xc0] ss:$12 sps:$4 sm:$0xff]  }
 0x266   : > { %v869_v35 = vpop.f32.mrb[0].mxu0 }
 0x267   : > { %v871_v36 = vpop.f32.mrb[1].mxu0 }
 0x26a   : > { %v875_v37 = vpop.f32.mrb[2].mxu0 }
 0x26b   : > { %v5785_v38 = vpack.c.bf16 %v875_v37, %v869_v35  ;;  %v877_v39 = vpop.f32.mrb[3].mxu0  ;;  %v4941_v35 = vld [vmem:[%s6771_s3 + $0xdc] ss:$12 sps:$4 sm:$0xff]   ;;  %v4944_v37 = vld [vmem:[%s6771_s3 + $0xf4] ss:$12 sps:$4 sm:$0xff]  }
 0x26c   : > { %v5787_v40 = vpack.c.bf16 %v877_v39, %v871_v36  ;;  %v4939_v36 = vld [vmem:[%s6771_s3 + $0xd8] ss:$12 sps:$4 sm:$0xff]   ;;  %v4942_v39 = vld [vmem:[%s6771_s3 + $0xf0] ss:$12 sps:$4 sm:$0xff]  }
 0x26d   : > { %v983_v41 = vshll.u32 %v5785_v38, 16  ;;  %v1623_v55 = vrot.slane %v5785_v38, 1  ;;  %v981_v56 = vshrl.u32 %v5785_v38, 16 }
 0x26e   : > { %v881_v42 = vpop.f32.mrb[4].mxu0  ;;  %v995_v43 = vshll.u32 %v5787_v40, 16  ;;  %v1626_v51 = vrot.slane %v5787_v40, 1  ;;  %v993_v53 = vshrl.u32 %v5787_v40, 16 }
 0x26f   : > { %v5791_v44 = vpack.c.bf16 %v881_v42, %v881_v42  ;;  %v883_v45 = vpop.f32.mrb[5].mxu0  ;;  %v985_v49 = vrot.slane %v983_v41, 1  ;;  %v4945_v41 = vld [vmem:[%s6771_s3 + $0x8] ss:$12 sps:$4 sm:$0xff]   ;;  %v4946_v42 = vld [vmem:[%s6771_s3 + $0x20] ss:$12 sps:$4 sm:$0xff]  }
 0x270   : > { %v5793_v46 = vpack.c.bf16 %v883_v45, %v883_v45  ;;  %v997_v47 = vrot.slane %v995_v43, 1  ;;  %v4947_v43 = vld [vmem:[%s6771_s3 + $0x38] ss:$12 sps:$4 sm:$0xff]   ;;  %v4948_v45 = vld [vmem:[%s6771_s3 + $0x50] ss:$12 sps:$4 sm:$0xff]  }
 0x271   : > { %v5796_v48 = vrot.slane %v5791_v44, 1  ;;  %v988_v50 = vshll.u32 %v5791_v44, 16  ;;  %v986_v2 = vor.u32 %v985_v49, %v981_v56  ;;  %v1004_v63 = vshrl.u32 %v5791_v44, 16  ;;  %v4950_v49 = vld [vmem:[%s6771_s3 + $0x80] ss:$12 sps:$4 sm:$0xff]  }
 0x272   : > { %v5801_v52 = vrot.slane %v5793_v46, 1  ;;  %v1000_v54 = vshll.u32 %v5793_v46, 16  ;;  %v998_v59 = vor.u32 %v997_v47, %v993_v53  ;;  %v1007_v61 = vshrl.u32 %v5793_v46, 16  ;;  %v4949_v47 = vld [vmem:[%s6771_s3 + $0x68] ss:$12 sps:$4 sm:$0xff]  }
 0x273   : > { %v990_v57 = vrot.slane %v988_v50, 1  ;;  %v5816_v62 = vsel %vm316_vm0, %v1623_v55, %v5796_v48  ;;  %v4952_v50 = vld [vmem:[%s6771_s3 + $0xb0] ss:$12 sps:$4 sm:$0xff]   ;;  %v4954_v53 = vld [vmem:[%s6771_s3 + $0xe0] ss:$12 sps:$4 sm:$0xff]  }
 0x274   : > { %v5809_v58 = vsel %vm316_vm0, %v1626_v51, %v5801_v52  ;;  %v1002_v60 = vrot.slane %v1000_v54, 1  ;;  %v4953_v51 = vld [vmem:[%s6771_s3 + $0xc8] ss:$12 sps:$4 sm:$0xff]   ;;  %v4955_v54 = vld [vmem:[%s6771_s3 + $0xf8] ss:$12 sps:$4 sm:$0xff]  }
 0x275   : > { %4160 = vmatprep.mubr.msk.bf16.mxu0 %vm1188_vm8, %v5809_v58  ;;  %v991_v9 = vsel %vm979_vm9, %v986_v2, %v990_v57  ;;  %v1006_v11 = vor.u32 %v1004_v63, %v990_v57  ;;  %v4958_v55 = vld [vmem:[%s6771_s3 + $0x214] ss:$12 sps:$4 sm:$0xff]   ;;  %v4956_v56 = vld [vmem:[%s6771_s3 + $0x210] ss:$12 sps:$4 sm:$0xff]   ;;  %v4961_v57 = vld [vmem:[%s6771_s3 + $0x22c] ss:$12 sps:$4 sm:$0xff]  }
 0x276   : > { %1897 = vmatmul.mubr.bf16.vlgmr.msra.gmra.mrb[8].mxu0 %v5816_v62  ;;  %v1003_v6 = vsel %vm979_vm9, %v998_v59, %v1002_v60  ;;  %v1009_v8 = vor.u32 %v1007_v61, %v1002_v60  ;;  %v4959_v59 = vld [vmem:[%s6771_s3 + $0x228] ss:$12 sps:$4 sm:$0xff]   ;;  %v4964_v60 = vld [vmem:[%s6771_s3 + $0x244] ss:$12 sps:$4 sm:$0xff]   ;;  %v4962_v61 = vld [vmem:[%s6771_s3 + $0x240] ss:$12 sps:$4 sm:$0xff]  }
 0x277   : > { %4040 = vmatprep.mubr.msk.bf16.mxu1 %vm1188_vm8, %v1003_v6  ;;  %4161 = vmatprep.mubr.msk.bf16.mxu0 %vm1188_vm8, %v5801_v52  ;;  %v4970_v2 = vld [vmem:[%s6771_s3 + $0x274] ss:$12 sps:$4 sm:$0xff]  }
 0x278   : > { %1228 = vmatmul.mubr.bf16.vlgmr.msra.gmra.mrb[12].mxu1 %v991_v9  ;;  %v4982_v63 = vld [vmem:[%s6771_s3 + $0x2d4] ss:$12 sps:$4 sm:$0xff]  }
 0x279   : > { %1247 = vmatpush1.bf16.msra.mxu1 %v4901_v4  ;;  %4041 = vmatprep.mubr.msk.bf16.mxu1 %vm1188_vm8, %v1009_v8  ;;  %v4968_v4 = vld [vmem:[%s6771_s3 + $0x270] ss:$12 sps:$4 sm:$0xff]  }
 0x27a   : > { %1248 = vmatprep.subr.bf16.mxu1 %v5242_v18 }
 0x27d   : > { %1249 = vmatpush1.bf16.msra.mxu1 %v4902_v1  ;;  %v4977_v1 = vld [vmem:[%s6771_s3 + $0x2b8] ss:$12 sps:$4 sm:$0xff]  }
 0x27e   : > { %1905 = vmatmul.mubr.bf16.gmra.mrb[12].mxu0 %v5796_v48  ;;  %1250 = vmatprep.subr.bf16.mxu1 %v5242_v18 }
 0x280   : > { %1238 = vmatmul.mubr.bf16.gmra.mrb[16].mxu1 %v1006_v11 }
 0x281   : > { %1251 = vmatpush1.bf16.msra.mxu1 %v4903_v10  ;;  %4042 = vmatprep.mubr.msk.bf16.mxu1 %vm1188_vm8, %v1003_v6  ;;  %v4976_v6 = vld [vmem:[%s6771_s3 + $0x2a4] ss:$12 sps:$4 sm:$0xff]  }
 0x282   : > { %1252 = vmatprep.subr.bf16.mxu1 %v5242_v18  ;;  %v4980_v10 = vld [vmem:[%s6771_s3 + $0x2d0] ss:$12 sps:$4 sm:$0xff]  }
 0x285   : > { %1253 = vmatpush1.bf16.msra.mxu1 %v4904_v12  ;;  %v4983_v12 = vld [vmem:[%s6771_s3 + $0x2e8] ss:$12 sps:$4 sm:$0xff]  }
 0x286   : > { %1254 = vmatprep.subr.bf16.mxu1 %v5242_v18 }
 0x289   : > { %1255 = vmatpush1.bf16.msra.mxu1 %v4905_v13  ;;  %v4988_v13 = vld [vmem:[%s6771_s3 + $0x304] ss:$12 sps:$4 sm:$0xff]  }
 0x28a   : > { %1256 = vmatprep.subr.bf16.mxu1 %v5242_v18 }
 0x28d   : > { %1257 = vmatpush1.bf16.msra.mxu1 %v4906_v14  ;;  %v4986_v14 = vld [vmem:[%s6771_s3 + $0x300] ss:$12 sps:$4 sm:$0xff]  }
 0x28e   : > { %1258 = vmatprep.subr.bf16.mxu1 %v5242_v18 }
 0x291   : > { %1259 = vmatpush1.bf16.msra.mxu1 %v4907_v15 }
 0x292   : > { %1260 = vmatprep.subr.bf16.mxu1 %v5242_v18 }
 0x295   : > { %1261 = vmatpush1.bf16.msra.mxu1 %v4908_v16 }
 0x296   : > { %1262 = vmatprep.subr.bf16.mxu1 %v5242_v18 }
 0x299   : > { %1263 = vmatpush1.bf16.msra.mxu1 %v4909_v17 }
 0x29a   : > { %1264 = vmatprep.subr.bf16.mxu1 %v5242_v18 }
 0x29d   : > { %1265 = vmatpush1.bf16.msra.mxu1 %v4910_v19 }
 0x29e   : > { %1266 = vmatprep.subr.bf16.mxu1 %v5242_v18 }
 0x2a1   : > { %1267 = vmatpush1.bf16.msra.mxu1 %v4911_v20  ;;  %v4991_v20 = vld [vmem:[%s6773_s5 + $0x1e4] ss:$12 sps:$4 sm:$0xff]  }
 0x2a2   : > { %1474 = vmatprep.subr.bf16.mxu1 %v4914_v3  ;;  %2499 = vmatprep.subr.bf16.mxu0 %v4991_v20  ;;  %v5050_v20 = vld [vmem:[%s6773_s5 + $0x34c] ss:$12 sps:$4 sm:$0xff]  }
 0x2a4   : > { %1279 = vmatmul.mubr.bf16.vlgmr.msra.gmra.mrb[20].mxu1 %v991_v9  ;;  %v4979_v9 = vld [vmem:[%s6771_s3 + $0x2bc] ss:$12 sps:$4 sm:$0xff]  }
 0x2a5   : > { %4043 = vmatprep.mubr.msk.bf16.mxu1 %vm1188_vm8, %v1009_v8  ;;  %1475 = vmatpush1.bf16.msra.mxu1 %v4912_v21  ;;  %v4974_v8 = vld [vmem:[%s6771_s3 + $0x2a0] ss:$12 sps:$4 sm:$0xff]  }
 0x2a6   : > { %1476 = vmatprep.subr.bf16.mxu1 %v4917_v5 }
 0x2a9   : > { %1477 = vmatpush1.bf16.msra.mxu1 %v4915_v0 }
 0x2aa   : > { %1478 = vmatprep.subr.bf16.mxu1 %v4920_v7  ;;  %v4994_v7 = vld [vmem:[%s6773_s5 + $0x1fc] ss:$12 sps:$4 sm:$0xff]  }
 0x2ac   : > { %1287 = vmatmul.mubr.bf16.gmra.mrb[24].mxu1 %v1006_v11  ;;  %v4985_v11 = vld [vmem:[%s6771_s3 + $0x2ec] ss:$12 sps:$4 sm:$0xff]  }
 0x2ad   : > { %1479 = vmatpush1.bf16.msra.mxu1 %v4918_v22  ;;  %4077 = vmatprep.mubr.msk.bf16.mxu1 %vm1188_vm8, %v5787_v40 }
 0x2ae   : > { %1480 = vmatprep.subr.bf16.mxu1 %v4923_v23  ;;  %v4992_v23 = vld [vmem:[%s6773_s5 + $0x1f8] ss:$12 sps:$4 sm:$0xff]  }
 0x2b1   : > { %1481 = vmatpush1.bf16.msra.mxu1 %v4921_v24 }
 0x2b2   : > { %1482 = vmatprep.subr.bf16.mxu1 %v4926_v25  ;;  %v4997_v25 = vld [vmem:[%s6773_s5 + $0x214] ss:$12 sps:$4 sm:$0xff]  }
 0x2b5   : > { %1483 = vmatpush1.bf16.msra.mxu1 %v4924_v26  ;;  %v4995_v26 = vld [vmem:[%s6773_s5 + $0x210] ss:$12 sps:$4 sm:$0xff]  }
 0x2b6   : > { %1484 = vmatprep.subr.bf16.mxu1 %v4929_v27  ;;  %v5000_v27 = vld [vmem:[%s6773_s5 + $0x22c] ss:$12 sps:$4 sm:$0xff]  }
 0x2b9   : > { %1485 = vmatpush1.bf16.msra.mxu1 %v4927_v28  ;;  %v4998_v28 = vld [vmem:[%s6773_s5 + $0x228] ss:$12 sps:$4 sm:$0xff]  }
 0x2ba   : > { %1486 = vmatprep.subr.bf16.mxu1 %v4932_v29  ;;  %v5001_v29 = vld [vmem:[%s6773_s5 + $0x240] ss:$12 sps:$4 sm:$0xff]  }
 0x2bd   : > { %1487 = vmatpush1.bf16.msra.mxu1 %v4930_v30  ;;  %v5003_v30 = vld [vmem:[%s6773_s5 + $0x244] ss:$12 sps:$4 sm:$0xff]  }
 0x2be   : > { %1488 = vmatprep.subr.bf16.mxu1 %v4935_v31  ;;  %v5006_v31 = vld [vmem:[%s6773_s5 + $0x25c] ss:$12 sps:$4 sm:$0xff]  }
 0x2c1   : > { %1489 = vmatpush1.bf16.msra.mxu1 %v4933_v32  ;;  %v5004_v32 = vld [vmem:[%s6773_s5 + $0x258] ss:$12 sps:$4 sm:$0xff]  }
 0x2c2   : > { %1490 = vmatprep.subr.bf16.mxu1 %v4938_v33  ;;  %v5016_v33 = vld [vmem:[%s6773_s5 + $0x2a8] ss:$12 sps:$4 sm:$0xff]  }
 0x2c5   : > { %1491 = vmatpush1.bf16.msra.mxu1 %v4936_v34  ;;  %v5017_v34 = vld [vmem:[%s6773_s5 + $0x1e8] ss:$12 sps:$4 sm:$0xff]  }
 0x2c6   : > { %1492 = vmatprep.subr.bf16.mxu1 %v4941_v35  ;;  %v5009_v35 = vld [vmem:[%s6773_s5 + $0x274] ss:$12 sps:$4 sm:$0xff]  }
 0x2c9   : > { %1493 = vmatpush1.bf16.msra.mxu1 %v4939_v36  ;;  %v5021_v36 = vld [vmem:[%s6773_s5 + $0x2c0] ss:$12 sps:$4 sm:$0xff]  }
 0x2ca   : > { %1494 = vmatprep.subr.bf16.mxu1 %v4944_v37  ;;  %v5022_v37 = vld [vmem:[%s6773_s5 + $0x200] ss:$12 sps:$4 sm:$0xff]  }
 0x2cd   : > { %1495 = vmatpush1.bf16.msra.mxu1 %v4942_v39  ;;  %v5007_v39 = vld [vmem:[%s6773_s5 + $0x270] ss:$12 sps:$4 sm:$0xff]  }
 0x2ce   : > { %1525 = vmatprep.subr.bf16.mxu1 %v5242_v18 }
 0x2d0   : > { %1507 = vmatmul.mubr.bf16.vlgmr.msra.gmra.mrb[12].mxu1 %v5785_v38 }
 0x2d1   : > { %4078 = vmatprep.mubr.msk.bf16.mxu1 %vm1188_vm8, %v5793_v46  ;;  %1526 = vmatpush1.bf16.msra.mxu1 %v4945_v41  ;;  %v5026_v41 = vld [vmem:[%s6773_s5 + $0x2d8] ss:$12 sps:$4 sm:$0xff]  }
 0x2d2   : > { %1527 = vmatprep.subr.bf16.mxu1 %v5242_v18 }
 0x2d5   : > { %1528 = vmatpush1.bf16.msra.mxu1 %v4946_v42  ;;  %v5012_v42 = vld [vmem:[%s6773_s5 + $0x28c] ss:$12 sps:$4 sm:$0xff]  }
 0x2d6   : > { %1529 = vmatprep.subr.bf16.mxu1 %v5242_v18 }
 0x2d8   : > { %1517 = vmatmul.mubr.bf16.gmra.mrb[28].mxu1 %v5791_v44 }
 0x2d9   : > { %1530 = vmatpush1.bf16.msra.mxu1 %v4947_v43  ;;  %4079 = vmatprep.mubr.msk.bf16.mxu1 %vm1188_vm8, %v5787_v40  ;;  %v4951_v40 = vld [vmem:[%s6771_s3 + $0x98] ss:$12 sps:$4 sm:$0xff]   ;;  %v5010_v43 = vld [vmem:[%s6773_s5 + $0x288] ss:$12 sps:$4 sm:$0xff]  }
 0x2da   : > { %1531 = vmatprep.subr.bf16.mxu1 %v5242_v18 }
 0x2dd   : > { %1532 = vmatpush1.bf16.msra.mxu1 %v4948_v45  ;;  %v5015_v45 = vld [vmem:[%s6773_s5 + $0x2a4] ss:$12 sps:$4 sm:$0xff]  }
 0x2de   : > { %1533 = vmatprep.subr.bf16.mxu1 %v5242_v18 }
 0x2e1   : > { %1534 = vmatpush1.bf16.msra.mxu1 %v4949_v47  ;;  %v5013_v47 = vld [vmem:[%s6773_s5 + $0x2a0] ss:$12 sps:$4 sm:$0xff]  }
 0x2e2   : > { %1535 = vmatprep.subr.bf16.mxu1 %v5242_v18 }
 0x2e5   : > { %1536 = vmatpush1.bf16.msra.mxu1 %v4950_v49  ;;  %v5020_v49 = vld [vmem:[%s6773_s5 + $0x2bc] ss:$12 sps:$4 sm:$0xff]  }
 0x2e6   : > { %1537 = vmatprep.subr.bf16.mxu1 %v5242_v18 }
 0x2e9   : > { %1538 = vmatpush1.bf16.msra.mxu1 %v4951_v40  ;;  %v5018_v40 = vld [vmem:[%s6773_s5 + $0x2b8] ss:$12 sps:$4 sm:$0xff]  }
 0x2ea   : > { %1539 = vmatprep.subr.bf16.mxu1 %v5242_v18 }
 0x2ed   : > { %1540 = vmatpush1.bf16.msra.mxu1 %v4952_v50  ;;  %v5025_v50 = vld [vmem:[%s6773_s5 + $0x2d4] ss:$12 sps:$4 sm:$0xff]  }
 0x2ee   : > { %1541 = vmatprep.subr.bf16.mxu1 %v5242_v18 }
 0x2f1   : > { %1542 = vmatpush1.bf16.msra.mxu1 %v4953_v51 }
 0x2f2   : > { %1543 = vmatprep.subr.bf16.mxu1 %v5242_v18 }
 0x2f5   : > { %1544 = vmatpush1.bf16.msra.mxu1 %v4954_v53  ;;  %v5023_v53 = vld [vmem:[%s6773_s5 + $0x2d0] ss:$12 sps:$4 sm:$0xff]  }
 0x2f6   : > { %1545 = vmatprep.subr.bf16.mxu1 %v5242_v18 }
 0x2f9   : > { %1546 = vmatpush1.bf16.msra.mxu1 %v4955_v54 }
 0x2fa   : > { %1813 = vmatprep.subr.bf16.mxu1 %v4958_v55 }
 0x2fc   : > { %1558 = vmatmul.mubr.bf16.vlgmr.msra.gmra.mrb[32].mxu1 %v5785_v38  ;;  %v4967_v38 = vld [vmem:[%s6771_s3 + $0x25c] ss:$12 sps:$4 sm:$0xff]  }
 0x2fd   : > { %4080 = vmatprep.mubr.msk.bf16.mxu1 %vm1188_vm8, %v5793_v46  ;;  %1814 = vmatpush1.bf16.msra.mxu1 %v4956_v56  ;;  %v4965_v46 = vld [vmem:[%s6771_s3 + $0x258] ss:$12 sps:$4 sm:$0xff]  }
 0x2fe   : > { %1815 = vmatprep.subr.bf16.mxu1 %v4961_v57  ;;  %v5027_v56 = vld [vmem:[%s6773_s5 + $0x218] ss:$12 sps:$4 sm:$0xff]  }
 0x301   : > { %1816 = vmatpush1.bf16.msra.mxu1 %v4959_v59  ;;  %v5030_v59 = vld [vmem:[%s6773_s5 + $0x2ec] ss:$12 sps:$4 sm:$0xff]  }
 0x302   : > { %1817 = vmatprep.subr.bf16.mxu1 %v4964_v60  ;;  %v5031_v60 = vld [vmem:[%s6773_s5 + $0x2f0] ss:$12 sps:$4 sm:$0xff]  }
 0x304   : > { %1566 = vmatmul.mubr.bf16.gmra.mrb[36].mxu1 %v5791_v44  ;;  %v4973_v44 = vld [vmem:[%s6771_s3 + $0x28c] ss:$12 sps:$4 sm:$0xff]  }
 0x305   : > { %1818 = vmatpush1.bf16.msra.mxu1 %v4962_v61  ;;  %4158 = vmatprep.mubr.msk.bf16.mxu1 %vm1188_vm8, %v5809_v58  ;;  %v4971_v58 = vld [vmem:[%s6771_s3 + $0x288] ss:$12 sps:$4 sm:$0xff]  }
 0x306   : > { %1819 = vmatprep.subr.bf16.mxu1 %v4967_v38  ;;  %v5028_v61 = vld [vmem:[%s6773_s5 + $0x2e8] ss:$12 sps:$4 sm:$0xff]   ;;  %v5032_v38 = vld [vmem:[%s6773_s5 + $0x230] ss:$12 sps:$4 sm:$0xff]  }
 0x309   : > { %1820 = vmatpush1.bf16.msra.mxu1 %v4965_v46 }
 0x30a   : > { %1821 = vmatprep.subr.bf16.mxu1 %v4970_v2 }
 0x30d   : > { %1822 = vmatpush1.bf16.msra.mxu1 %v4968_v4  ;;  %v5035_v4 = vld [vmem:[%s6773_s5 + $0x304] ss:$12 sps:$4 sm:$0xff]  }
 0x30e   : > { %1823 = vmatprep.subr.bf16.mxu1 %v4973_v44  ;;  %v5036_v44 = vld [vmem:[%s6773_s5 + $0x308] ss:$12 sps:$4 sm:$0xff]  }
 0x311   : > { %1824 = vmatpush1.bf16.msra.mxu1 %v4971_v58 }
 0x312   : > { %1825 = vmatprep.subr.bf16.mxu1 %v4976_v6  ;;  %v5033_v6 = vld [vmem:[%s6773_s5 + $0x300] ss:$12 sps:$4 sm:$0xff]  }
 0x315   : > { %1826 = vmatpush1.bf16.msra.mxu1 %v4974_v8  ;;  %v5037_v8 = vld [vmem:[%s6773_s5 + $0x248] ss:$12 sps:$4 sm:$0xff]  }
 0x316   : > { %1827 = vmatprep.subr.bf16.mxu1 %v4979_v9 }
 0x319   : > { %1828 = vmatpush1.bf16.msra.mxu1 %v4977_v1  ;;  %v5040_v1 = vld [vmem:[%s6773_s5 + $0x31c] ss:$12 sps:$4 sm:$0xff]  }
 0x31a   : > { %1829 = vmatprep.subr.bf16.mxu1 %v4982_v63  ;;  %v5041_v63 = vld [vmem:[%s6773_s5 + $0x320] ss:$12 sps:$4 sm:$0xff]  }
 0x31d   : > { %1830 = vmatpush1.bf16.msra.mxu1 %v4980_v10  ;;  %v5038_v10 = vld [vmem:[%s6773_s5 + $0x318] ss:$12 sps:$4 sm:$0xff]  }
 0x31e   : > { %1831 = vmatprep.subr.bf16.mxu1 %v4985_v11  ;;  %v5042_v11 = vld [vmem:[%s6773_s5 + $0x260] ss:$12 sps:$4 sm:$0xff]  }
 0x321   : > { %1832 = vmatpush1.bf16.msra.mxu1 %v4983_v12  ;;  %v5045_v12 = vld [vmem:[%s6773_s5 + $0x334] ss:$12 sps:$4 sm:$0xff]  }
 0x322   : > { %1833 = vmatprep.subr.bf16.mxu1 %v4988_v13  ;;  %v5046_v13 = vld [vmem:[%s6773_s5 + $0x338] ss:$12 sps:$4 sm:$0xff]  }
 0x325   : > { %1834 = vmatpush1.bf16.msra.mxu1 %v4986_v14  ;;  %v5043_v14 = vld [vmem:[%s6773_s5 + $0x330] ss:$12 sps:$4 sm:$0xff]  }
 0x326   : > { %4525 = vmatprep.subr.bf16.mxu1 %v5016_v33 }
 0x328   : > { %1846 = vmatmul.mubr.bf16.vlgmr.msra.gmra.mrb[12].mxu1 %v5816_v62  ;;  %v4989_v62 = vld [vmem:[%s6773_s5 + $0x1e0] ss:$12 sps:$4 sm:$0xff]  }
 0x329   : > { %4159 = vmatprep.mubr.msk.bf16.mxu1 %vm1188_vm8, %v5801_v52  ;;  %2500 = vmatpush1.bf16.msra.mxu0 %v4989_v62  ;;  %v5051_v62 = vld [vmem:[%s6773_s5 + $0x350] ss:$12 sps:$4 sm:$0xff]  }
 0x32a   : > { %2501 = vmatprep.subr.bf16.mxu0 %v4994_v7  ;;  %4526 = vmatpush3.bf16.msra.mxu1 %v5017_v34 }
 0x32b   : > { %4527 = vmatprep.subr.bf16.mxu1 %v5021_v36 }
 0x32d   : > { %2502 = vmatpush1.bf16.msra.mxu0 %v4992_v23 }
 0x32e   : > { %2503 = vmatprep.subr.bf16.mxu0 %v4997_v25  ;;  %4528 = vmatpush3.bf16.msra.mxu1 %v5022_v37 }
 0x32f   : > { %4529 = vmatprep.subr.bf16.mxu1 %v5026_v41 }
 0x330   : > { %1856 = vmatmul.mubr.bf16.gmra.mrb[40].mxu1 %v5796_v48 }
 0x331   : > { %2504 = vmatpush1.bf16.msra.mxu0 %v4995_v26 }
 0x332   : > { %2505 = vmatprep.subr.bf16.mxu0 %v5000_v27  ;;  %4530 = vmatpush3.bf16.msra.mxu1 %v5027_v56  ;;  %v1923_v27 = vlaneseq }
 0x333   : > { %4531 = vmatprep.subr.bf16.mxu1 %v5031_v60 }
 0x335   : > { %2506 = vmatpush1.bf16.msra.mxu0 %v4998_v28  ;;  %v6237_v28 = vshrl.u32 %v1923_v27, 7 }
 0x336   : > { %2507 = vmatprep.subr.bf16.mxu0 %v5003_v30  ;;  %4532 = vmatpush3.bf16.msra.mxu1 %v5032_v38  ;;  %v1921_v30 = vld [vmem:[%s6772_s4] sm:$0x7] }
 0x337   : > { %4533 = vmatprep.subr.bf16.mxu1 %v5036_v44 }
 0x339   : > { %2508 = vmatpush1.bf16.msra.mxu0 %v5001_v29  ;;  %v1933_v29 = vsub.s32 2, %v6237_v28 }
 0x33a   : > { %2509 = vmatprep.subr.bf16.mxu0 %v5006_v31  ;;  %4534 = vmatpush3.bf16.msra.mxu1 %v5037_v8 }
 0x33b   : > { %4535 = vmatprep.subr.bf16.mxu1 %v5041_v63 }
 0x33d   : > { %2510 = vmatpush1.bf16.msra.mxu0 %v5004_v32 }
 0x33e   : > { %2511 = vmatprep.subr.bf16.mxu0 %v5009_v35  ;;  %4536 = vmatpush3.bf16.msra.mxu1 %v5042_v11 }
 0x33f   : > { %4537 = vmatprep.subr.bf16.mxu1 %v5046_v13 }
 0x341   : > { %2512 = vmatpush1.bf16.msra.mxu0 %v5007_v39 }
 0x342   : > { %2513 = vmatprep.subr.bf16.mxu0 %v5012_v42 }
 0x345   : > { %2514 = vmatpush1.bf16.msra.mxu0 %v5010_v43 }
 0x346   : > { %2515 = vmatprep.subr.bf16.mxu0 %v5015_v45 }
 0x349   : > { %v6066_v15 = vpop.f32.mrb[8].mxu0  ;;  %2516 = vmatpush1.bf16.msra.mxu0 %v5013_v47 }
 0x34a   : > { %v1900_v16 = vpop.f32.mrb[9].mxu0  ;;  %2517 = vmatprep.subr.bf16.mxu0 %v5020_v49 }
 0x34b   : > { %v6068_v17 = vpop.f32.mrb[10].mxu0  ;;  %v5047_v16 = vld [vmem:[%s6773_s5 + $0x278] ss:$12 sps:$4 sm:$0xff]  }
 0x34c   : > { %v1903_v19 = vpop.f32.mrb[11].mxu0  ;;  %4538 = vmatpush3.bf16.msra.mxu1 %v5047_v16 }
 0x34d   : > { %2518 = vmatpush1.bf16.msra.mxu0 %v5018_v40  ;;  %v5048_v19 = vld [vmem:[%s6773_s5 + $0x348] ss:$12 sps:$4 sm:$0xff]   ;;  %4539 = vmatprep.subr.bf16.mxu1 %v5051_v62 }
 0x34e   : > { %2519 = vmatprep.subr.bf16.mxu0 %v5025_v50 }
 0x351   : > { %v6073_v3 = vpop.f32.mrb[12].mxu0  ;;  %2520 = vmatpush1.bf16.msra.mxu0 %v5023_v53 }
 0x352   : > { %v1908_v21 = vpop.f32.mrb[13].mxu0  ;;  %2521 = vmatprep.subr.bf16.mxu0 %v5030_v59 }
 0x353   : > { %v6078_v52 = vpop.f32.mrb[16].mxu1  ;;  %v1909_v48 = vpop.f32.mrb[14].mxu0  ;;  %v5052_v21 = vld [vmem:[%s6773_s5 + $0x290] ss:$12 sps:$4 sm:$0xff]  }
 0x354   : > { %v6080_v5 = vpop.f32.mrb[17].mxu1  ;;  %v1910_v0 = vpop.f32.mrb[15].mxu0  ;;  %4540 = vmatpush3.bf16.msra.mxu1 %v5052_v21  ;;  %v5055_v48 = vld [vmem:[%s6773_s5 + $0x364] ss:$12 sps:$4 sm:$0xff]  }
 0x355   : > { %v1243_v22 = vpop.f32.mrb[18].mxu1  ;;  %2522 = vmatpush1.bf16.msra.mxu0 %v5028_v61  ;;  %v6232_v0 = vld [vmem:[%s6773_s5 + $0x368] ss:$12 sps:$4 sm:$0xff]  }
 0x356   : > { %v1244_v24 = vpop.f32.mrb[19].mxu1  ;;  %2523 = vmatprep.subr.bf16.mxu0 %v5035_v4  ;;  %4648 = vmatprep.subr.bf16.mxu1 %v6232_v0 }
 0x359   : > { %2524 = vmatpush1.bf16.msra.mxu0 %v5033_v6 }
 0x35a   : > { %2525 = vmatprep.subr.bf16.mxu0 %v5040_v1 }
 0x35d   : > { %2526 = vmatpush1.bf16.msra.mxu0 %v5038_v10 }
 0x35e   : > { %2527 = vmatprep.subr.bf16.mxu0 %v5045_v12 }
 0x361   : > { %2528 = vmatpush1.bf16.msra.mxu0 %v5043_v14 }
 0x362   : > { %2529 = vmatprep.subr.bf16.mxu0 %v5050_v20 }
 0x365   : > { %2530 = vmatpush1.bf16.msra.mxu0 %v5048_v19 }
 0x366   : > { %2550 = vmatprep.subr.bf16.mxu0 %v5055_v48 }
 0x377   : > { %v6154_v51 = vpop.f32.mrb[20].mxu1 }
 0x378   : > { %v1282_v54 = vpop.f32.mrb[21].mxu1 }
 0x379   : > { %v6159_v55 = vpop.f32.mrb[22].mxu1  ;;  %v1929_v54 = vsub.s32 1, %v6237_v28 }
 0x37a   : > { %v1285_v57 = vpop.f32.mrb[23].mxu1 }
 0x37f   : > { %v6176_v46 = vpop.f32.mrb[24].mxu1 }
 0x380   : > { %v1290_v2 = vpop.f32.mrb[25].mxu1 }
 0x381   : > { %v1291_v58 = vpop.f32.mrb[26].mxu1 }
 0x382   : > { %v1292_v9 = vpop.f32.mrb[27].mxu1 }
 0x3ab   : > { %v1518_v7 = vpop.f32.mrb[28].mxu1 }
 0x3ac   : > { %v1519_v22 = vadd.f32 %v1518_v7, %v6078_v52  ;;  %v1520_v23 = vpop.f32.mrb[29].mxu1  ;;  %v1934_v52 = vrot.slane %v1921_v30, %v1933_v29 }
 0x3ad   : > { %v1521_v24 = vadd.f32 %v1520_v23, %v6080_v5  ;;  %v1522_v25 = vpop.f32.mrb[30].mxu1 }
 0x3ae   : > { %v1523_v26 = vpop.f32.mrb[31].mxu1 }
 0x3cf   : > { %v1559_v31 = vpop.f32.mrb[32].mxu1 }
 0x3d0   : > { %v1560_v32 = vadd.f32 %v1559_v31, %v6154_v51  ;;  %v1561_v33 = vpop.f32.mrb[33].mxu1 }
 0x3d1   : > { %v1562_v34 = vpop.f32.mrb[34].mxu1 }
 0x3d2   : > { %v1914_v5 = vadd.f32 %v6066_v15, %v1560_v32  ;;  %v1563_v35 = vadd.f32 %v1562_v34, %v6159_v55  ;;  %v1564_v36 = vpop.f32.mrb[35].mxu1  ;;  %v1925_v15 = vsub.s32 0, %v6237_v28  ;;  %v1930_v55 = vrot.slane %v1921_v30, %v1929_v54 }
 0x3d4   : > { %v1940_v37 = vadd.f32 %v1934_v52, %v1914_v5  ;;  %v1917_v39 = vadd.f32 %v6068_v17, %v1563_v35  ;;  %v1926_v17 = vrot.slane %v1921_v30, %v1925_v15  ;;  %v5053_v5 = vld [vmem:[%s6773_s5 + $0x360] ss:$12 sps:$4 sm:$0xff]  }
 0x3d6   : > { %v1943_v41 = vadd.f32 %v1934_v52, %v1917_v39  ;;  %v1949_v43 = vmax.f32 %v1940_v37, 0.0 }
 0x3d7   : > { %v1567_v42 = vpop.f32.mrb[36].mxu1 }
 0x3d8   : > { %v1952_v45 = vmax.f32 %v1943_v41, 0.0  ;;  %v1568_v47 = vadd.f32 %v1567_v42, %v6176_v46  ;;  %v1569_v49 = vpop.f32.mrb[37].mxu1  ;;  %v5059_v41 = vld [vmem:[%s6773_s5 + $0x37c] ss:$12 sps:$4 sm:$0xff]   ;;  %v5060_v42 = vld [vmem:[%s6773_s5 + $0x380] ss:$12 sps:$4 sm:$0xff]  }
 0x3d9   : > { %v1570_v40 = vpop.f32.mrb[38].mxu1  ;;  %v5063_v49 = vld [vmem:[%s6773_s5 + $0x394] ss:$12 sps:$4 sm:$0xff]  }
 0x3da   : > { %v6250_v50 = vpack.c.bf16 %v1952_v45, %v1949_v43  ;;  %v1920_v51 = vadd.f32 %v6073_v3, %v1568_v47  ;;  %v1571_v53 = vpop.f32.mrb[39].mxu1  ;;  %v5057_v45 = vld [vmem:[%s6773_s5 + $0x378] ss:$12 sps:$4 sm:$0xff]  }
 0x3db   : > { %v5064_v40 = vld [vmem:[%s6773_s5 + $0x398] ss:$12 sps:$4 sm:$0xff]   ;;  %v5061_v53 = vld [vmem:[%s6773_s5 + $0x390] ss:$12 sps:$4 sm:$0xff]  }
 0x3dc   : > { %v1946_v19 = vadd.f32 %v1934_v52, %v1920_v51  ;;  %v2150_v43 = vshll.u32 %v6250_v50, 16 }
 0x3de   : > { %v1955_v25 = vmax.f32 %v1946_v19, 0.0  ;;  %v2152_v51 = vrot.slane %v2150_v43, 1  ;;  %v5087_v19 = vld [vmem:[%s6773_s5 + $0x110] ss:$12 sps:$4 sm:$0xff]  }
 0x3df   : > { %v5115_v43 = vld [vmem:[%s6773_s5 + $0xdc] ss:$12 sps:$4 sm:$0xff]  }
 0x3e0   : > { %v6274_v34 = vpack.c.bf16 %v1955_v25, %v1955_v25  ;;  %v5089_v25 = vld [vmem:[%s6773_s5 + $0x60] ss:$12 sps:$4 sm:$0xff]  }
 0x3e2   : > { %v2155_v47 = vshll.u32 %v6274_v34, 16 }
 0x3fb   : > { %v1847_v56 = vpop.f32.mrb[12].mxu1 }
 0x3fc   : > { %v1938_v57 = vadd.f32 %v1926_v17, %v1847_v56  ;;  %v1849_v59 = vpop.f32.mrb[13].mxu1 }
 0x3fd   : > { %v1939_v60 = vadd.f32 %v1930_v55, %v1849_v59  ;;  %v1851_v61 = vpop.f32.mrb[14].mxu1 }
 0x3fe   : > { %v1941_v38 = vadd.f32 %v1926_v17, %v1851_v61  ;;  %v1853_v46 = vpop.f32.mrb[15].mxu1  ;;  %v1947_v3 = vmax.f32 %v1938_v57, 0.0  ;;  %v5067_v57 = vld [vmem:[%s6773_s5 + $0x3ac] ss:$12 sps:$4 sm:$0xff]  }
 0x3ff   : > { %v1942_v2 = vadd.f32 %v1930_v55, %v1853_v46  ;;  %v1948_v44 = vmax.f32 %v1939_v60, 0.0  ;;  %v5068_v60 = vld [vmem:[%s6773_s5 + $0x3b0] ss:$12 sps:$4 sm:$0xff]  }
 0x400   : > { %v1950_v4 = vmax.f32 %v1941_v38, 0.0  ;;  %v5065_v38 = vld [vmem:[%s6773_s5 + $0x3a8] ss:$12 sps:$4 sm:$0xff]   ;;  %v5071_v46 = vld [vmem:[%s6773_s5 + $0x4] ss:$12 sps:$4 sm:$0xff]  }
 0x401   : > { %v1951_v58 = vmax.f32 %v1942_v2, 0.0  ;;  %v5072_v2 = vld [vmem:[%s6773_s5 + $0xc8] ss:$12 sps:$4 sm:$0xff]  }
 0x402   : > { %v6259_v6 = vpack.c.bf16 %v1950_v4, %v1947_v3  ;;  %v2165_v3 = vshrl.u32 %v6274_v34, 16  ;;  %v5069_v4 = vld [vmem:[%s6773_s5] ss:$12 sps:$4 sm:$0xff]  }
 0x403   : > { %v6261_v8 = vpack.c.bf16 %v1951_v58, %v1948_v44  ;;  %v1857_v9 = vpop.f32.mrb[40].mxu1  ;;  %v5073_v44 = vld [vmem:[%s6773_s5 + $0x8] ss:$12 sps:$4 sm:$0xff]  }
 0x404   : > { %v1918_v1 = vadd.f32 %v1857_v9, %v1519_v22  ;;  %v1859_v63 = vpop.f32.mrb[41].mxu1  ;;  %v2126_v62 = vshll.u32 %v6259_v6, 16  ;;  %v2124_v30 = vshrl.u32 %v6259_v6, 16  ;;  %v5076_v9 = vld [vmem:[%s6773_s5 + $0x1c] ss:$12 sps:$4 sm:$0xff]  }
 0x405   : > { %v1919_v10 = vadd.f32 %v1859_v63, %v1521_v24  ;;  %v1861_v11 = vpop.f32.mrb[42].mxu1  ;;  %v2138_v16 = vshll.u32 %v6261_v8, 16  ;;  %v2136_v26 = vshrl.u32 %v6261_v8, 16  ;;  %v5074_v63 = vld [vmem:[%s6773_s5 + $0x18] ss:$12 sps:$4 sm:$0xff]  }
 0x406   : > { %v1944_v12 = vadd.f32 %v1926_v17, %v1918_v1  ;;  %v1862_v13 = vpop.f32.mrb[43].mxu1  ;;  %v2128_v22 = vrot.slane %v2126_v62, 1  ;;  %v2148_v17 = vshrl.u32 %v6250_v50, 16  ;;  %v5077_v1 = vld [vmem:[%s6773_s5 + $0xe0] ss:$12 sps:$4 sm:$0xff]  }
 0x407   : > { %v1945_v14 = vadd.f32 %v1930_v55, %v1919_v10  ;;  %v2140_v23 = vrot.slane %v2138_v16, 1  ;;  %v2157_v55 = vrot.slane %v2155_v47, 1  ;;  %v5078_v10 = vld [vmem:[%s6773_s5 + $0x20] ss:$12 sps:$4 sm:$0xff]   ;;  %v5079_v13 = vld [vmem:[%s6773_s5 + $0x30] ss:$12 sps:$4 sm:$0xff]  }
 0x408   : > { %v1953_v20 = vmax.f32 %v1944_v12, 0.0  ;;  %v2129_v35 = vor.u32 %v2128_v22, %v2124_v30  ;;  %v2153_v59 = vor.u32 %v2152_v51, %v2148_v17  ;;  %v5081_v11 = vld [vmem:[%s6773_s5 + $0x34] ss:$12 sps:$4 sm:$0xff]   ;;  %v5082_v12 = vld [vmem:[%s6773_s5 + $0xf8] ss:$12 sps:$4 sm:$0xff]  }
 0x409   : > { %v1954_v21 = vmax.f32 %v1945_v14, 0.0  ;;  %v2141_v32 = vor.u32 %v2140_v23, %v2136_v26  ;;  %v2167_v58 = vor.u32 %v2165_v3, %v2157_v55  ;;  %v5083_v14 = vld [vmem:[%s6773_s5 + $0x38] ss:$12 sps:$4 sm:$0xff]   ;;  %v5088_v62 = vld [vmem:[%s6773_s5 + $0x50] ss:$12 sps:$4 sm:$0xff]  }
 0x40a   : > { %v6265_v48 = vpack.c.bf16 %v1953_v20, %v1953_v20  ;;  %v2158_v61 = vsel %vm979_vm9, %v2153_v59, %v2157_v55  ;;  %v5086_v16 = vld [vmem:[%s6773_s5 + $0x4c] ss:$12 sps:$4 sm:$0xff]   ;;  %v5084_v20 = vld [vmem:[%s6773_s5 + $0x48] ss:$12 sps:$4 sm:$0xff]   ;;  %v5117_v51 = vld [vmem:[%s6773_s5 + $0xf0] ss:$12 sps:$4 sm:$0xff]  }
 0x40b   : > { %v6267_v7 = vpack.c.bf16 %v1954_v21, %v1954_v21  ;;  %v5091_v21 = vld [vmem:[%s6773_s5 + $0x64] ss:$12 sps:$4 sm:$0xff]   ;;  %v5092_v23 = vld [vmem:[%s6773_s5 + $0x128] ss:$12 sps:$4 sm:$0xff]   ;;  %v5097_v26 = vld [vmem:[%s6773_s5 + $0x140] ss:$12 sps:$4 sm:$0xff]  }
 0x40c   : > { %v2131_v24 = vshll.u32 %v6265_v48, 16  ;;  %v5093_v22 = vld [vmem:[%s6773_s5 + $0x68] ss:$12 sps:$4 sm:$0xff]   ;;  %v5098_v30 = vld [vmem:[%s6773_s5 + $0x80] ss:$12 sps:$4 sm:$0xff]  }
 0x40d   : > { %v2143_v27 = vshll.u32 %v6267_v7, 16  ;;  %v2162_v33 = vshrl.u32 %v6267_v7, 16  ;;  %v5113_v47 = vld [vmem:[%s6773_s5 + $0xd8] ss:$12 sps:$4 sm:$0xff]   ;;  %v5121_v17 = vld [vmem:[%s6773_s5 + $0x108] ss:$12 sps:$4 sm:$0xff]  }
 0x40e   : > { %v2133_v31 = vrot.slane %v2131_v24, 1  ;;  %v5096_v24 = vld [vmem:[%s6773_s5 + $0x7c] ss:$12 sps:$4 sm:$0xff]   ;;  %v5127_v55 = vld [vmem:[%s6773_s5 + $0x124] ss:$12 sps:$4 sm:$0xff]   ;;  %v6470_v59 = vrot.slane %v6267_v7, 1 }
 0x40f   : > { %v2145_v52 = vrot.slane %v2143_v27, 1  ;;  %v5094_v27 = vld [vmem:[%s6773_s5 + $0x78] ss:$12 sps:$4 sm:$0xff]   ;;  %v5134_v3 = vld [vmem:[%s6773_s5 + $0x3e0] ss:$12 sps:$4 sm:$0xff]  }
 0x410   : > { %v2134_v39 = vsel %vm979_vm9, %v2129_v35, %v2133_v31  ;;  %v5107_v35 = vld [vmem:[%s6773_s5 + $0x170] ss:$12 sps:$4 sm:$0xff]  }
 0x411   : > { %v2146_v36 = vsel %vm979_vm9, %v2141_v32, %v2145_v52  ;;  %v2164_v37 = vor.u32 %v2162_v33, %v2145_v52  ;;  %v5102_v32 = vld [vmem:[%s6773_s5 + $0x158] ss:$12 sps:$4 sm:$0xff]   ;;  %v5099_v52 = vld [vmem:[%s6773_s5 + $0x90] ss:$12 sps:$4 sm:$0xff]  }
 0x412   : > { %2531 = vmatprep.mubr.bf16.mxu0 %v2146_v36  ;;  %2633 = vmatprep.mubr.bf16.mxu1 %v2146_v36  ;;  %v5103_v33 = vld [vmem:[%s6773_s5 + $0x98] ss:$12 sps:$4 sm:$0xff]   ;;  %v5104_v36 = vld [vmem:[%s6773_s5 + $0xa8] ss:$12 sps:$4 sm:$0xff]  }
 0x413   : > { %2532 = vmatmul.mubr.bf16.vlgmr.msra.gmra.mrb[16].mxu0 %v2134_v39  ;;  %2634 = vmatmul.mubr.bf16.vlgmr.msra.gmra.mrb[44].mxu1 %v2134_v39  ;;  %v5111_v39 = vld [vmem:[%s6773_s5 + $0xc4] ss:$12 sps:$4 sm:$0xff]  }
 0x414   : > { %2551 = vmatpush1.bf16.msra.mxu0 %v5053_v5  ;;  %4649 = vmatpush3.bf16.msra.mxu1 %v6232_v0  ;;  %v2159_v0 = vshrl.u32 %v6265_v48, 16  ;;  %v5106_v5 = vld [vmem:[%s6773_s5 + $0xac] ss:$12 sps:$4 sm:$0xff]  }
 0x415   : > { %2541 = vmatprep.mubr.bf16.mxu0 %v2164_v37  ;;  %2641 = vmatprep.mubr.bf16.mxu1 %v2164_v37  ;;  %v5108_v37 = vld [vmem:[%s6773_s5 + $0xb0] ss:$12 sps:$4 sm:$0xff]  }
 0x416   : > { %2552 = vmatprep.subr.bf16.mxu0 %v5059_v41  ;;  %4650 = vmatprep.subr.bf16.mxu1 %v5060_v42  ;;  %v2161_v56 = vor.u32 %v2159_v0, %v2133_v31  ;;  %v5101_v31 = vld [vmem:[%s6773_s5 + $0x94] ss:$12 sps:$4 sm:$0xff]   ;;  %v5123_v0 = vld [vmem:[%s6773_s5 + $0x10c] ss:$12 sps:$4 sm:$0xff]  }
 0x417   : > { %v5112_v41 = vld [vmem:[%s6773_s5 + $0x188] ss:$12 sps:$4 sm:$0xff]  }
 0x418   : > { %2553 = vmatpush1.bf16.msra.mxu0 %v5057_v45  ;;  %4651 = vmatpush3.bf16.msra.mxu1 %v5060_v42  ;;  %v5109_v42 = vld [vmem:[%s6773_s5 + $0xc0] ss:$12 sps:$4 sm:$0xff]  }
 0x419   : > { %2554 = vmatprep.subr.bf16.mxu0 %v5063_v49  ;;  %4652 = vmatprep.subr.bf16.mxu1 %v5064_v40  ;;  %v5116_v45 = vld [vmem:[%s6773_s5 + $0x1a0] ss:$12 sps:$4 sm:$0xff]  }
 0x41a   : > { %v5119_v49 = vld [vmem:[%s6773_s5 + $0xf4] ss:$12 sps:$4 sm:$0xff]  }
 0x41b   : > { %2542 = vmatmul.mubr.bf16.gmra.mrb[20].mxu0 %v2161_v56  ;;  %2642 = vmatmul.mubr.bf16.gmra.mrb[48].mxu1 %v2161_v56  ;;  %v5128_v56 = vld [vmem:[%s6773_s5 + $0x488] ss:$12 sps:$4 sm:$0xff]  }
 0x41c   : > { %2555 = vmatpush1.bf16.msra.mxu0 %v5061_v53  ;;  %4653 = vmatpush3.bf16.msra.mxu1 %v5064_v40  ;;  %v5120_v40 = vld [vmem:[%s6773_s5 + $0x1b8] ss:$12 sps:$4 sm:$0xff]   ;;  %v5124_v53 = vld [vmem:[%s6773_s5 + $0x1d0] ss:$12 sps:$4 sm:$0xff]  }
 0x41d   : > { %4656 = vmatprep.mubr.msk.bf16.mxu1 %vm2492_vm10, %v2158_v61  ;;  %2556 = vmatprep.subr.bf16.mxu0 %v5067_v57  ;;  %v5125_v57 = vld [vmem:[%s6773_s5 + $0x120] ss:$12 sps:$4 sm:$0xff]  }
 0x41e   : > { %4654 = vmatprep.subr.bf16.mxu1 %v5068_v60  ;;  %2582 = vmatprep.mubr.bf16.mxu0 %v5242_v18 }
 0x420   : > { %2557 = vmatpush1.bf16.msra.mxu0 %v5065_v38  ;;  %4655 = vmatpush3.bf16.msra.mxu1 %v5068_v60  ;;  %v5129_v60 = vld [vmem:[%s6773_s5 + $0x3c8] ss:$12 sps:$4 sm:$0xff]  }
 0x421   : > { %3021 = vmatprep.subr.bf16.mxu0 %v5071_v46  ;;  %4559 = vmatprep.subr.bf16.mxu1 %v5072_v2  ;;  %v5132_v38 = vld [vmem:[%s6773_s5 + $0x13c] ss:$12 sps:$4 sm:$0xff]   ;;  %v5133_v46 = vld [vmem:[%s6773_s5 + $0x4a0] ss:$12 sps:$4 sm:$0xff]  }
 0x423   : > { %4302 = vmatmul.mubr.msk.bf16.vlgmr.msra.gmra.mrb[16].mxu0 %vm2492_vm10, %v2158_v61  ;;  %4657 = vmatmul.mubr.msk.bf16.vlgmr.msra.gmra.mrb[52].mxu1 %vm2492_vm10, %v2167_v58  ;;  %v3309_v61 = vrot.slane %v6261_v8, 1 }
 0x424   : > { %3022 = vmatpush1.bf16.msra.mxu0 %v5069_v4  ;;  %4560 = vmatpush3.bf16.msra.mxu1 %v5073_v44  ;;  %v5137_v4 = vld [vmem:[%s6773_s5 + $0x154] ss:$12 sps:$4 sm:$0xff]   ;;  %v5138_v44 = vld [vmem:[%s6773_s5 + $0x4b8] ss:$12 sps:$4 sm:$0xff]  }
 0x425   : > { %3155 = vmatprep.mubr.bf16.mxu1 %v6261_v8  ;;  %3023 = vmatprep.subr.bf16.mxu0 %v5076_v9  ;;  %v6486_v2 = vsel %vm316_vm0, %v3309_v61, %v6470_v59  ;;  %v5139_v9 = vld [vmem:[%s6773_s5 + $0x3f8] ss:$12 sps:$4 sm:$0xff]   ;;  %v5198_v61 = vld [vmem:[%s6773_s5 + $0x4c8] ss:$12 sps:$4 sm:$0xff]  }
 0x426   : > { %4561 = vmatprep.subr.bf16.mxu1 %v5077_v1  ;;  %2592 = vmatprep.mubr.bf16.mxu0 %v5242_v18  ;;  %v5142_v1 = vld [vmem:[%s6773_s5 + $0x16c] ss:$12 sps:$4 sm:$0xff]  }
 0x428   : > { %3024 = vmatpush1.bf16.msra.mxu0 %v5074_v63  ;;  %4562 = vmatpush3.bf16.msra.mxu1 %v5078_v10  ;;  %v5143_v63 = vld [vmem:[%s6773_s5 + $0x4d0] ss:$12 sps:$4 sm:$0xff]   ;;  %v5140_v10 = vld [vmem:[%s6773_s5 + $0x168] ss:$12 sps:$4 sm:$0xff]  }
 0x429   : > { %3025 = vmatprep.subr.bf16.mxu0 %v5081_v11  ;;  %4563 = vmatprep.subr.bf16.mxu1 %v5082_v12  ;;  %v5144_v11 = vld [vmem:[%s6773_s5 + $0x410] ss:$12 sps:$4 sm:$0xff]  }
 0x42a   : > { %v5147_v12 = vld [vmem:[%s6773_s5 + $0x184] ss:$12 sps:$4 sm:$0xff]  }
 0x42b   : > { %4303 = vmatmul.mubr.msk.bf16.gmra.mrb[24].mxu0 %vm2492_vm10, %v2167_v58  ;;  %v5135_v58 = vld [vmem:[%s6773_s5 + $0x150] ss:$12 sps:$4 sm:$0xff]  }
 0x42c   : > { %3026 = vmatpush1.bf16.msra.mxu0 %v5079_v13  ;;  %4564 = vmatpush3.bf16.msra.mxu1 %v5083_v14  ;;  %v5148_v13 = vld [vmem:[%s6773_s5 + $0x4e8] ss:$12 sps:$4 sm:$0xff]   ;;  %v5145_v14 = vld [vmem:[%s6773_s5 + $0x180] ss:$12 sps:$4 sm:$0xff]  }
 0x42d   : > { %3053 = vmatprep.mubr.bf16.mxu0 %v6261_v8  ;;  %3027 = vmatprep.subr.bf16.mxu0 %v5086_v16  ;;  %v5130_v8 = vld [vmem:[%s6773_s5 + $0x138] ss:$12 sps:$4 sm:$0xff]   ;;  %v5149_v16 = vld [vmem:[%s6773_s5 + $0x428] ss:$12 sps:$4 sm:$0xff]  }
 0x42e   : > { %4565 = vmatprep.subr.bf16.mxu1 %v5087_v19  ;;  %v5152_v19 = vld [vmem:[%s6773_s5 + $0x19c] ss:$12 sps:$4 sm:$0xff]  }
 0x430   : > { %3028 = vmatpush1.bf16.msra.mxu0 %v5084_v20  ;;  %4566 = vmatpush3.bf16.msra.mxu1 %v5088_v62  ;;  %v5153_v20 = vld [vmem:[%s6773_s5 + $0x500] ss:$12 sps:$4 sm:$0xff]   ;;  %v5150_v62 = vld [vmem:[%s6773_s5 + $0x198] ss:$12 sps:$4 sm:$0xff]  }
 0x431   : > { %3029 = vmatprep.subr.bf16.mxu0 %v5091_v21  ;;  %4567 = vmatprep.subr.bf16.mxu1 %v5092_v23  ;;  %v5154_v21 = vld [vmem:[%s6773_s5 + $0x440] ss:$12 sps:$4 sm:$0xff]  }
 0x432   : > { %v5157_v23 = vld [vmem:[%s6773_s5 + $0x1b4] ss:$12 sps:$4 sm:$0xff]  }
 0x434   : > { %3030 = vmatpush1.bf16.msra.mxu0 %v5089_v25  ;;  %4568 = vmatpush3.bf16.msra.mxu1 %v5093_v22  ;;  %v5155_v25 = vld [vmem:[%s6773_s5 + $0x1b0] ss:$12 sps:$4 sm:$0xff]   ;;  %v5159_v22 = vld [vmem:[%s6773_s5 + $0x458] ss:$12 sps:$4 sm:$0xff]  }
 0x435   : > { %3031 = vmatprep.subr.bf16.mxu0 %v5096_v24  ;;  %4569 = vmatprep.subr.bf16.mxu1 %v5097_v26  ;;  %v5162_v24 = vld [vmem:[%s6773_s5 + $0x1cc] ss:$12 sps:$4 sm:$0xff]   ;;  %v5163_v26 = vld [vmem:[%s6773_s5 + $0x530] ss:$12 sps:$4 sm:$0xff]  }
 0x438   : > { %3032 = vmatpush1.bf16.msra.mxu0 %v5094_v27  ;;  %4570 = vmatpush3.bf16.msra.mxu1 %v5098_v30  ;;  %v5160_v27 = vld [vmem:[%s6773_s5 + $0x1c8] ss:$12 sps:$4 sm:$0xff]   ;;  %v5164_v30 = vld [vmem:[%s6773_s5 + $0x470] ss:$12 sps:$4 sm:$0xff]  }
 0x439   : > { %3033 = vmatprep.subr.bf16.mxu0 %v5101_v31  ;;  %4571 = vmatprep.subr.bf16.mxu1 %v5102_v32  ;;  %v5167_v31 = vld [vmem:[%s6773_s5 + $0x3c4] ss:$12 sps:$4 sm:$0xff]   ;;  %v6575_v32 = vrot.slane %v6265_v48, 1 }
 0x43c   : > { %3034 = vmatpush1.bf16.msra.mxu0 %v5099_v52  ;;  %4572 = vmatpush3.bf16.msra.mxu1 %v5103_v33  ;;  %v5165_v52 = vld [vmem:[%s6773_s5 + $0x3c0] ss:$12 sps:$4 sm:$0xff]   ;;  %v3306_v33 = vrot.slane %v6259_v6, 1 }
 0x43d   : > { %3035 = vmatprep.subr.bf16.mxu0 %v5106_v5  ;;  %4573 = vmatprep.subr.bf16.mxu1 %v5107_v35  ;;  %v5170_v5 = vld [vmem:[%s6773_s5 + $0x3dc] ss:$12 sps:$4 sm:$0xff]   ;;  %v5168_v35 = vld [vmem:[%s6773_s5 + $0x3d8] ss:$12 sps:$4 sm:$0xff]  }
 0x440   : > { %3036 = vmatpush1.bf16.msra.mxu0 %v5104_v36  ;;  %4574 = vmatpush3.bf16.msra.mxu1 %v5108_v37  ;;  %v5171_v36 = vld [vmem:[%s6773_s5 + $0x3f0] ss:$12 sps:$4 sm:$0xff]   ;;  %v5176_v37 = vld [vmem:[%s6773_s5 + $0x40c] ss:$12 sps:$4 sm:$0xff]  }
 0x441   : > { %3037 = vmatprep.subr.bf16.mxu0 %v5111_v39  ;;  %4660 = vmatprep.subr.bf16.mxu1 %v5112_v41  ;;  %v5174_v39 = vld [vmem:[%s6773_s5 + $0x408] ss:$12 sps:$4 sm:$0xff]  }
 0x443   : > { %3156 = vmatmul.mubr.bf16.vlgmr.msra.gmra.mrb[56].mxu1 %v6259_v6 }
 0x444   : > { %3038 = vmatpush1.bf16.msra.mxu0 %v5109_v42  ;;  %3163 = vmatprep.mubr.bf16.mxu1 %v6267_v7  ;;  %v5177_v42 = vld [vmem:[%s6773_s5 + $0x420] ss:$12 sps:$4 sm:$0xff]  }
 0x445   : > { %4661 = vmatpush3.bf16.msra.mxu1 %v5112_v41  ;;  %3039 = vmatprep.subr.bf16.mxu0 %v5115_v43  ;;  %v5179_v41 = vld [vmem:[%s6773_s5 + $0x424] ss:$12 sps:$4 sm:$0xff]   ;;  %v5182_v43 = vld [vmem:[%s6773_s5 + $0x43c] ss:$12 sps:$4 sm:$0xff]  }
 0x446   : > { %4662 = vmatprep.subr.bf16.mxu1 %v5116_v45 }
 0x448   : > { %3040 = vmatpush1.bf16.msra.mxu0 %v5113_v47  ;;  %v5185_v47 = vld [vmem:[%s6773_s5 + $0x454] ss:$12 sps:$4 sm:$0xff]  }
 0x449   : > { %4663 = vmatpush3.bf16.msra.mxu1 %v5116_v45  ;;  %3041 = vmatprep.subr.bf16.mxu0 %v5119_v49  ;;  %v5180_v45 = vld [vmem:[%s6773_s5 + $0x438] ss:$12 sps:$4 sm:$0xff]   ;;  %v5183_v49 = vld [vmem:[%s6773_s5 + $0x450] ss:$12 sps:$4 sm:$0xff]  }
 0x44a   : > { %4664 = vmatprep.subr.bf16.mxu1 %v5120_v40 }
 0x44b   : > { %3164 = vmatmul.mubr.bf16.gmra.mrb[60].mxu1 %v6265_v48 }
 0x44c   : > { %3042 = vmatpush1.bf16.msra.mxu0 %v5117_v51  ;;  %4668 = vmatprep.mubr.msk.bf16.mxu1 %vm2492_vm10, %v6250_v50  ;;  %v5186_v51 = vld [vmem:[%s6773_s5 + $0x468] ss:$12 sps:$4 sm:$0xff]  }
 0x44d   : > { %4665 = vmatpush3.bf16.msra.mxu1 %v5120_v40  ;;  %3043 = vmatprep.subr.bf16.mxu0 %v5123_v0  ;;  %v5188_v40 = vld [vmem:[%s6773_s5 + $0x46c] ss:$12 sps:$4 sm:$0xff]   ;;  %v5191_v0 = vld [vmem:[%s6773_s5 + $0x484] ss:$12 sps:$4 sm:$0xff]  }
 0x44e   : > { %4666 = vmatprep.subr.bf16.mxu1 %v5124_v53 }
 0x450   : > { %3044 = vmatpush1.bf16.msra.mxu0 %v5121_v17  ;;  %v5194_v17 = vld [vmem:[%s6773_s5 + $0x49c] ss:$12 sps:$4 sm:$0xff]  }
 0x451   : > { %4667 = vmatpush3.bf16.msra.mxu1 %v5124_v53  ;;  %3045 = vmatprep.subr.bf16.mxu0 %v5127_v55  ;;  %v5189_v53 = vld [vmem:[%s6773_s5 + $0x480] ss:$12 sps:$4 sm:$0xff]   ;;  %v5192_v55 = vld [vmem:[%s6773_s5 + $0x498] ss:$12 sps:$4 sm:$0xff]  }
 0x452   : > { %4593 = vmatprep.subr.bf16.mxu1 %v5128_v56  ;;  %v5197_v56 = vld [vmem:[%s6773_s5 + $0x4b4] ss:$12 sps:$4 sm:$0xff]  }
 0x454   : > { %4669 = vmatmul.mubr.msk.bf16.vlgmr.msra.gmra.mrb[64].mxu1 %vm2492_vm10, %v6274_v34  ;;  %3046 = vmatpush1.bf16.msra.mxu0 %v5125_v57  ;;  %v5195_v57 = vld [vmem:[%s6773_s5 + $0x4b0] ss:$12 sps:$4 sm:$0xff]  }
 0x455   : > { %4594 = vmatpush3.bf16.msra.mxu1 %v5129_v60  ;;  %3779 = vmatprep.mubr.bf16.mxu1 %v6486_v2  ;;  %v5200_v60 = vld [vmem:[%s6773_s5 + $0x4cc] ss:$12 sps:$4 sm:$0xff]  }
 0x456   : > { %3047 = vmatprep.subr.bf16.mxu0 %v5132_v38  ;;  %4595 = vmatprep.subr.bf16.mxu1 %v5133_v46  ;;  %v5203_v38 = vld [vmem:[%s6773_s5 + $0x4e4] ss:$12 sps:$4 sm:$0xff]   ;;  %v5201_v46 = vld [vmem:[%s6773_s5 + $0x4e0] ss:$12 sps:$4 sm:$0xff]  }
 0x458   : > { %3048 = vmatpush1.bf16.msra.mxu0 %v5130_v8  ;;  %v5204_v8 = vld [vmem:[%s6773_s5 + $0x4f8] ss:$12 sps:$4 sm:$0xff]  }
 0x459   : > { %4596 = vmatpush3.bf16.msra.mxu1 %v5134_v3  ;;  %3049 = vmatprep.subr.bf16.mxu0 %v5137_v4  ;;  %v5209_v3 = vld [vmem:[%s6773_s5 + $0x514] ss:$12 sps:$4 sm:$0xff]   ;;  %v5207_v4 = vld [vmem:[%s6773_s5 + $0x510] ss:$12 sps:$4 sm:$0xff]  }
 0x45a   : > { %4597 = vmatprep.subr.bf16.mxu1 %v5138_v44  ;;  %v5212_v44 = vld [vmem:[%s6773_s5 + $0x52c] ss:$12 sps:$4 sm:$0xff]  }
 0x45c   : > { %3050 = vmatpush1.bf16.msra.mxu0 %v5135_v58  ;;  %v5210_v58 = vld [vmem:[%s6773_s5 + $0x528] ss:$12 sps:$4 sm:$0xff]  }
 0x45d   : > { %4598 = vmatpush3.bf16.msra.mxu1 %v5139_v9  ;;  %3051 = vmatprep.subr.bf16.mxu0 %v5142_v1  ;;  %v5215_v9 = vld [vmem:[%s6773_s5 + $0x544] ss:$12 sps:$4 sm:$0xff]   ;;  %v5213_v1 = vld [vmem:[%s6773_s5 + $0x540] ss:$12 sps:$4 sm:$0xff]  }
 0x45e   : > { %4599 = vmatprep.subr.bf16.mxu1 %v5143_v63  ;;  %v5218_v63 = vld [vmem:[%s6773_s5 + $0x55c] ss:$12 sps:$4 sm:$0xff]  }
 0x460   : > { %3052 = vmatpush1.bf16.msra.mxu0 %v5140_v10  ;;  %v5216_v10 = vld [vmem:[%s6773_s5 + $0x558] ss:$12 sps:$4 sm:$0xff]  }
 0x461   : > { %4600 = vmatpush3.bf16.msra.mxu1 %v5144_v11  ;;  %3072 = vmatprep.subr.bf16.mxu0 %v5147_v12  ;;  %v5221_v11 = vld [vmem:[%s6773_s5 + $0x574] ss:$12 sps:$4 sm:$0xff]   ;;  %v5219_v12 = vld [vmem:[%s6773_s5 + $0x570] ss:$12 sps:$4 sm:$0xff]  }
 0x462   : > { %4601 = vmatprep.subr.bf16.mxu1 %v5148_v13  ;;  %v5222_v13 = vld [vmem:[%s6773_s5 + $0x588] ss:$12 sps:$4 sm:$0xff]  }
 0x463   : > { %3054 = vmatmul.mubr.bf16.vlgmr.msra.gmra.mrb[16].mxu0 %v6259_v6  ;;  %v5173_v6 = vld [vmem:[%s6773_s5 + $0x3f4] ss:$12 sps:$4 sm:$0xff]  }
 0x464   : > { %3063 = vmatprep.mubr.bf16.mxu0 %v6267_v7  ;;  %3073 = vmatpush1.bf16.msra.mxu0 %v5145_v14  ;;  %v5158_v7 = vld [vmem:[%s6773_s5 + $0x518] ss:$12 sps:$4 sm:$0xff]   ;;  %v5225_v14 = vld [vmem:[%s6773_s5 + $0x548] ss:$12 sps:$4 sm:$0xff]  }
 0x465   : > { %4602 = vmatpush3.bf16.msra.mxu1 %v5149_v16  ;;  %3074 = vmatprep.subr.bf16.mxu0 %v5152_v19  ;;  %v3313_v16 = vrot.slane %v6274_v34, 1  ;;  %v3312_v19 = vrot.slane %v6250_v50, 1 }
 0x466   : > { %4603 = vmatprep.subr.bf16.mxu1 %v5153_v20  ;;  %v5226_v20 = vld [vmem:[%s6773_s5 + $0x560] ss:$12 sps:$4 sm:$0xff]  }
 0x468   : > { %3075 = vmatpush1.bf16.msra.mxu0 %v5150_v62  ;;  %v3314_v62 = vsel %vm316_vm0, %v3312_v19, %v3313_v16 }
 0x469   : > { %4604 = vmatpush3.bf16.msra.mxu1 %v5154_v21  ;;  %3076 = vmatprep.subr.bf16.mxu0 %v5157_v23 }
 0x46a   : > { %4605 = vmatprep.subr.bf16.mxu1 %v5158_v7 }
 0x46b   : > { %3064 = vmatmul.mubr.bf16.gmra.mrb[28].mxu0 %v6265_v48  ;;  %v6588_v48 = vsel %vm316_vm0, %v3306_v33, %v6575_v32 }
 0x46c   : > { %3077 = vmatpush1.bf16.msra.mxu0 %v5155_v25  ;;  %3104 = vmatprep.mubr.bf16.mxu0 %v5242_v18 }
 0x46d   : > { %4606 = vmatpush3.bf16.msra.mxu1 %v5159_v22  ;;  %3078 = vmatprep.subr.bf16.mxu0 %v5162_v24 }
 0x46e   : > { %4607 = vmatprep.subr.bf16.mxu1 %v5163_v26 }
 0x470   : > { %3079 = vmatpush1.bf16.msra.mxu0 %v5160_v27 }
 0x471   : > { %4608 = vmatpush3.bf16.msra.mxu1 %v5164_v30  ;;  %3645 = vmatprep.subr.bf16.mxu0 %v5167_v31 }
 0x473   : > { %4366 = vmatmul.mubr.msk.bf16.vlgmr.msra.gmra.mrb[16].mxu0 %vm2492_vm10, %v6250_v50  ;;  %v5228_v50 = vld [vmem:[%s6773_s5 + $0x590] ss:$12 sps:$4 sm:$0xff]  }
 0x474   : > { %3780 = vmatmul.mubr.bf16.vlgmr.msra.gmra.mrb[68].mxu1 %v6588_v48  ;;  %3646 = vmatpush1.bf16.msra.mxu0 %v5165_v52 }
 0x475   : > { %3787 = vmatprep.mubr.bf16.mxu1 %v6470_v59  ;;  %3647 = vmatprep.subr.bf16.mxu0 %v5170_v5 }
 0x476   : > { %3114 = vmatprep.mubr.bf16.mxu0 %v5242_v18 }
 0x478   : > { %3648 = vmatpush1.bf16.msra.mxu0 %v5168_v35 }
 0x479   : > { %3649 = vmatprep.subr.bf16.mxu0 %v5173_v6 }
 0x47b   : > { %4367 = vmatmul.mubr.msk.bf16.gmra.mrb[32].mxu0 %vm2492_vm10, %v6274_v34  ;;  %v5227_v34 = vld [vmem:[%s6773_s5 + $0x578] ss:$12 sps:$4 sm:$0xff]  }
 0x47c   : > { %3788 = vmatmul.mubr.bf16.gmra.mrb[72].mxu1 %v6575_v32  ;;  %3650 = vmatpush1.bf16.msra.mxu0 %v5171_v36 }
 0x47d   : > { %3677 = vmatprep.mubr.bf16.mxu0 %v6486_v2  ;;  %3651 = vmatprep.subr.bf16.mxu0 %v5176_v37  ;;  %v5206_v2 = vld [vmem:[%s6773_s5 + $0x4fc] ss:$12 sps:$4 sm:$0xff]  }
 0x480   : > { %3652 = vmatpush1.bf16.msra.mxu0 %v5174_v39 }
 0x481   : > { %3653 = vmatprep.subr.bf16.mxu0 %v5179_v41 }
 0x484   : > { %3654 = vmatpush1.bf16.msra.mxu0 %v5177_v42 }
 0x485   : > { %3655 = vmatprep.subr.bf16.mxu0 %v5182_v43 }
 0x488   : > { %3656 = vmatpush1.bf16.msra.mxu0 %v5180_v45 }
 0x489   : > { %3657 = vmatprep.subr.bf16.mxu0 %v5185_v47 }
 0x48c   : > { %3658 = vmatpush1.bf16.msra.mxu0 %v5183_v49 }
 0x48d   : > { %3659 = vmatprep.subr.bf16.mxu0 %v5188_v40 }
 0x490   : > { %3660 = vmatpush1.bf16.msra.mxu0 %v5186_v51 }
 0x491   : > { %3661 = vmatprep.subr.bf16.mxu0 %v5191_v0 }
 0x494   : > { %3662 = vmatpush1.bf16.msra.mxu0 %v5189_v53 }
 0x495   : > { %3663 = vmatprep.subr.bf16.mxu0 %v5194_v17 }
 0x498   : > { %3664 = vmatpush1.bf16.msra.mxu0 %v5192_v55 }
 0x499   : > { %3665 = vmatprep.subr.bf16.mxu0 %v5197_v56 }
 0x49c   : > { %3666 = vmatpush1.bf16.msra.mxu0 %v5195_v57 }
 0x49d   : > { %3667 = vmatprep.subr.bf16.mxu0 %v5200_v60 }
 0x4a0   : > { %3668 = vmatpush1.bf16.msra.mxu0 %v5198_v61 }
 0x4a1   : > { %3669 = vmatprep.subr.bf16.mxu0 %v5203_v38 }
 0x4a4   : > { %3670 = vmatpush1.bf16.msra.mxu0 %v5201_v46 }
 0x4a5   : > { %3671 = vmatprep.subr.bf16.mxu0 %v5206_v2 }
 0x4a8   : > { %3672 = vmatpush1.bf16.msra.mxu0 %v5204_v8 }
 0x4a9   : > { %3673 = vmatprep.subr.bf16.mxu0 %v5209_v3 }
 0x4ac   : > { %3674 = vmatpush1.bf16.msra.mxu0 %v5207_v4 }
 0x4ad   : > { %3675 = vmatprep.subr.bf16.mxu0 %v5212_v44 }
 0x4b0   : > { %3676 = vmatpush1.bf16.msra.mxu0 %v5210_v58 }
 0x4b1   : > { %3696 = vmatprep.subr.bf16.mxu0 %v5215_v9 }
 0x4b3   : > { %3678 = vmatmul.mubr.bf16.vlgmr.msra.gmra.mrb[16].mxu0 %v6588_v48 }
 0x4b4   : > { %3687 = vmatprep.mubr.bf16.mxu0 %v6470_v59  ;;  %3697 = vmatpush1.bf16.msra.mxu0 %v5213_v1  ;;  %v5224_v59 = vld [vmem:[%s6773_s5 + $0x58c] ss:$12 sps:$4 sm:$0xff]  }
 0x4b5   : > { %3698 = vmatprep.subr.bf16.mxu0 %v5218_v63 }
 0x4b8   : > { %3699 = vmatpush1.bf16.msra.mxu0 %v5216_v10 }
 0x4b9   : > { %3700 = vmatprep.subr.bf16.mxu0 %v5221_v11 }
 0x4bb   : > { %3688 = vmatmul.mubr.bf16.gmra.mrb[36].mxu0 %v6575_v32 }
 0x4bc   : > { %3701 = vmatpush1.bf16.msra.mxu0 %v5219_v12  ;;  %3728 = vmatprep.mubr.bf16.mxu0 %v5242_v18 }
 0x4bd   : > { %3702 = vmatprep.subr.bf16.mxu0 %v5224_v59 }
 0x4c0   : > { %3703 = vmatpush1.bf16.msra.mxu0 %v5222_v13 }
 0x4c1   : > { %4672 = vmatprep.subr.bf16.mxu0 %v5225_v14 }
 0x4c3   : > { %4510 = vmatmul.mubr.msk.bf16.vlgmr.msra.gmra.mrb[16].mxu0 %vm2492_vm10, %v3314_v62 }
 0x4c4   : > { %4673 = vmatpush3.bf16.msra.mxu0 %v5225_v14  ;;  %3738 = vmatprep.mubr.bf16.mxu0 %v5242_v18 }
 0x4c5   : > { %4674 = vmatprep.subr.bf16.mxu0 %v5226_v20 }
 0x4c8   : > { %4675 = vmatpush3.bf16.msra.mxu0 %v5226_v20 }
 0x4c9   : > { %4676 = vmatprep.subr.bf16.mxu0 %v5227_v34 }
 0x4cb   : > { %4511 = vmatmul.mubr.msk.bf16.gmra.mrb[40].mxu0 %vm2492_vm10, %v3313_v16 }
 0x4cc   : > { %4677 = vmatpush3.bf16.msra.mxu0 %v5227_v34  ;;  %4680 = vmatprep.mubr.msk.bf16.mxu0 %vm2492_vm10, %v3314_v62 }
 0x4cd   : > { %4678 = vmatprep.subr.bf16.mxu0 %v5228_v50 }
 0x4d0   : > { %4679 = vmatpush3.bf16.msra.mxu0 %v5228_v50 }
 0x4d3   : > { %4681 = vmatmul.mubr.msk.bf16.vlgmr.msra.gmra.mrb[44].mxu0 %vm2492_vm10, %v3313_v16 }
 0x4e6   : > { %v4541_v18 = vpop.f32.mrb[44].mxu1 }
 0x4e7   : > { %v4542_v21 = vpop.f32.mrb[45].mxu1 }
 0x4e8   : > { %v4543_v23 = vadd.f32 %v4542_v21, %v4541_v18  ;;  %v4544_v7 = vpop.f32.mrb[46].mxu1 }
 0x4e9   : > { %v4545_v25 = vpop.f32.mrb[47].mxu1 }
 0x4ea   : > { %v4546_v22 = vadd.f32 %v4545_v25, %v4544_v7 }
 0x4ee   : > { %v2543_v24 = vpop.f32.mrb[20].mxu0  ;;  %v4547_v26 = vpop.f32.mrb[48].mxu1 }
 0x4ef   : > { %v2545_v27 = vpop.f32.mrb[21].mxu0  ;;  %v4548_v30 = vpop.f32.mrb[49].mxu1 }
 0x4f0   : > { %v4549_v31 = vadd.f32 %v4548_v30, %v4547_v26  ;;  %v2547_v32 = vpop.f32.mrb[22].mxu0  ;;  %v4550_v52 = vpop.f32.mrb[50].mxu1 }
 0x4f1   : > { %v2548_v33 = vpop.f32.mrb[23].mxu0  ;;  %v4551_v5 = vpop.f32.mrb[51].mxu1 }
 0x4f6   : > { %v4658_v48 = vpop.f32.mrb[52].mxu1 }
 0x4f7   : > { %v2692_v35 = vadd.f32 %v4658_v48, %v4549_v31  ;;  %v2683_v6 = vpop.f32.mrb[53].mxu1  ;;  %v3852_v48 = vld [vmem:[%s6774_s6] sm:$0x7] }
 0x4f8   : > { %v2684_v36 = vadd.f32 %v4543_v23, %v2683_v6  ;;  %v4659_v37 = vpop.f32.mrb[54].mxu1  ;;  %v3857_v6 = vrot.slane %v3852_v48, %v1925_v15 }
 0x4f9   : > { %v2686_v39 = vpop.f32.mrb[55].mxu1 }
 0x4fa   : > { %v2687_v41 = vadd.f32 %v4546_v22, %v2686_v39 }
 0x4fe   : > { %v2594_v42 = vpop.f32.mrb[24].mxu0 }
 0x4ff   : > { %v2595_v43 = vadd.f32 %v2594_v42, %v2543_v24  ;;  %v2596_v45 = vpop.f32.mrb[25].mxu0 }
 0x500   : > { %v2597_v47 = vadd.f32 %v2596_v45, %v2545_v27  ;;  %v2598_v49 = vpop.f32.mrb[26].mxu0 }
 0x501   : > { %v2599_v40 = vpop.f32.mrb[27].mxu0 }
 0x516   : > { %v4575_v51 = vpop.f32.mrb[56].mxu1 }
 0x517   : > { %v4576_v0 = vpop.f32.mrb[57].mxu1 }
 0x518   : > { %v4577_v53 = vadd.f32 %v4576_v0, %v4575_v51  ;;  %v4578_v17 = vpop.f32.mrb[58].mxu1 }
 0x519   : > { %v4579_v55 = vpop.f32.mrb[59].mxu1 }
 0x51a   : > { %v4580_v56 = vadd.f32 %v4579_v55, %v4578_v17  ;;  %v3158_v57 = vadd.f32 %v4577_v53, %v2684_v36  ;;  %v3861_v36 = vrot.slane %v3852_v48, %v1929_v54 }
 0x51c   : > { %v3161_v60 = vadd.f32 %v4580_v56, %v2687_v41 }
 0x51e   : > { %v4581_v61 = vpop.f32.mrb[60].mxu1 }
 0x51f   : > { %v4582_v38 = vpop.f32.mrb[61].mxu1 }
 0x520   : > { %v4583_v46 = vadd.f32 %v4582_v38, %v4581_v61  ;;  %v4584_v2 = vpop.f32.mrb[62].mxu1  ;;  %v3865_v38 = vrot.slane %v3852_v48, %v1933_v29 }
 0x521   : > { %v4585_v8 = vpop.f32.mrb[63].mxu1 }
 0x522   : > { %v3166_v3 = vadd.f32 %v4583_v46, %v2692_v35 }
 0x527   : > { %v4670_v4 = vpop.f32.mrb[64].mxu1 }
 0x528   : > { %v6732_v44 = vadd.f32 %v4670_v4, %v3166_v3  ;;  %v3205_v58 = vpop.f32.mrb[65].mxu1 }
 0x529   : > { %v6734_v9 = vadd.f32 %v3205_v58, %v3158_v57  ;;  %v4671_v1 = vpop.f32.mrb[66].mxu1 }
 0x52a   : > { %v3208_v63 = vpop.f32.mrb[67].mxu1 }
 0x52b   : > { %v6736_v10 = vadd.f32 %v3208_v63, %v3161_v60 }
 0x53e   : > { %v3065_v11 = vpop.f32.mrb[28].mxu0 }
 0x53f   : > { %v3066_v12 = vadd.f32 %v3065_v11, %v2595_v43  ;;  %v3067_v59 = vpop.f32.mrb[29].mxu0 }
 0x540   : > { %v3068_v13 = vadd.f32 %v3067_v59, %v2597_v47  ;;  %v3069_v14 = vpop.f32.mrb[30].mxu0 }
 0x541   : > { %v3070_v16 = vpop.f32.mrb[31].mxu0 }
 0x547   : > { %v4609_v19 = vpop.f32.mrb[68].mxu1 }
 0x548   : > { %v4610_v20 = vpop.f32.mrb[69].mxu1 }
 0x549   : > { %v4611_v62 = vadd.f32 %v4610_v20, %v4609_v19  ;;  %v4612_v34 = vpop.f32.mrb[70].mxu1 }
 0x54a   : > { %v4613_v50 = vpop.f32.mrb[71].mxu1 }
 0x54b   : > { %v4614_v18 = vadd.f32 %v4613_v50, %v4612_v34 }
 0x54e   : > { %v3116_v21 = vpop.f32.mrb[32].mxu0 }
 0x54f   : > { %v3117_v23 = vadd.f32 %v3116_v21, %v3066_v12  ;;  %v4615_v7 = vpop.f32.mrb[72].mxu1  ;;  %v3118_v25 = vpop.f32.mrb[33].mxu0 }
 0x550   : > { %v3119_v22 = vadd.f32 %v3118_v25, %v3068_v13  ;;  %v4616_v24 = vpop.f32.mrb[73].mxu1  ;;  %v3120_v26 = vpop.f32.mrb[34].mxu0 }
 0x551   : > { %v4617_v27 = vadd.f32 %v4616_v24, %v4615_v7  ;;  %v4618_v30 = vpop.f32.mrb[74].mxu1  ;;  %v3121_v31 = vpop.f32.mrb[35].mxu0 }
 0x552   : > { %v4619_v32 = vpop.f32.mrb[75].mxu1 }
 0x58e   : > { %v3689_v52 = vpop.f32.mrb[36].mxu0 }
 0x58f   : > { %v3691_v33 = vpop.f32.mrb[37].mxu0 }
 0x590   : > { %v3693_v5 = vpop.f32.mrb[38].mxu0 }
 0x591   : > { %v3694_v35 = vpop.f32.mrb[39].mxu0 }
 0x596   : > { %v3730_v37 = vpop.f32.mrb[16].mxu0 }
 0x597   : > { %v3869_v39 = vadd.f32 %v3857_v6, %v3730_v37  ;;  %v3732_v41 = vpop.f32.mrb[17].mxu0 }
 0x598   : > { %v3870_v42 = vadd.f32 %v3861_v36, %v3732_v41  ;;  %v3734_v43 = vpop.f32.mrb[18].mxu0 }
 0x599   : > { %3878 = vst [vmem:[%s6749_s16] sm:$0xff] %v3869_v39  ;;  %v3872_v45 = vadd.f32 %v3857_v6, %v3734_v43  ;;  %v3736_v15 = vpop.f32.mrb[19].mxu0 }
 0x59a   : > { %3879 = vst [vmem:[%s6749_s16 + $0x8] sm:$0xff] %v3870_v42  ;;  %v3873_v54 = vadd.f32 %v3861_v36, %v3736_v15 }
 0x59b   : > { %3882 = vst [vmem:[%s6749_s16 + $0x18] sm:$0xff] %v3872_v45 }
 0x59c   : > { %3883 = vst [vmem:[%s6749_s16 + $0x20] sm:$0xff] %v3873_v54 }
 0x59e   : > { %v3740_v47 = vpop.f32.mrb[40].mxu0 }
 0x59f   : > { %v3741_v49 = vadd.f32 %v3740_v47, %v3689_v52  ;;  %v3742_v40 = vpop.f32.mrb[41].mxu0 }
 0x5a0   : > { %v3743_v51 = vadd.f32 %v3742_v40, %v3691_v33  ;;  %v3744_v0 = vpop.f32.mrb[42].mxu0 }
 0x5a1   : > { %v3849_v53 = vadd.f32 %v3741_v49, %v3117_v23  ;;  %v3745_v17 = vpop.f32.mrb[43].mxu0 }
 0x5a2   : > { %v3850_v55 = vadd.f32 %v3743_v51, %v3119_v22 }
 0x5a3   : > { %v3875_v56 = vadd.f32 %v3857_v6, %v3849_v53 }
 0x5a4   : > { %v3876_v57 = vadd.f32 %v3861_v36, %v3850_v55 }
 0x5a5   : > { %3885 = vst [vmem:[%s6749_s16 + $0x30] sm:$0x3] %v3875_v56 }
 0x5a6   : > { %3886 = vst [vmem:[%s6749_s16 + $0x38] sm:$0x3] %v3876_v57  ;;  %v4682_v60 = vpop.f32.mrb[44].mxu0 }
 0x5a7   : > { %v3838_v61 = vadd.f32 %v4682_v60, %v4617_v27  ;;  %v3829_v46 = vpop.f32.mrb[45].mxu0 }
 0x5a8   : > { %v3830_v2 = vadd.f32 %v4611_v62, %v3829_v46  ;;  %v4683_v8 = vpop.f32.mrb[46].mxu0 }
 0x5a9   : > { %v3851_v3 = vadd.f32 %v3838_v61, %v6732_v44  ;;  %v3832_v4 = vpop.f32.mrb[47].mxu0 }
 0x5aa   : > { %v3845_v58 = vadd.f32 %v3830_v2, %v6734_v9  ;;  %v3833_v1 = vadd.f32 %v4614_v18, %v3832_v4 }
 0x5ab   : > { %v3877_v63 = vadd.f32 %v3865_v38, %v3851_v3 }
 0x5ac   : > { %v3871_v11 = vadd.f32 %v3865_v38, %v3845_v58  ;;  %v3848_v12 = vadd.f32 %v3833_v1, %v6736_v10 }
 0x5ad   : > { %3888 = vst.msk [vmem:[%s6749_s16 + $0x40] sm:$0x3] %vm3887_vm11, %v3877_v63 }
 0x5ae   : > { %3881 = vst.msk [vmem:[%s6749_s16 + $0x10] sm:$0xff] %vm3880_vm12, %v3871_v11  ;;  %v3874_v28 = vadd.f32 %v3865_v38, %v3848_v12 }
 0x5b0   : > { %3884 = vst.msk [vmem:[%s6749_s16 + $0x28] sm:$0xff] %vm3880_vm12, %v3874_v28 }
 0x5b1 PF: > { %s17_s24 = sadd.s32 1, %s5235_s24  }
 0x5b2   : > { %p14_p4 = scmp.ge.s32.totalorder %s17_s24, 4  }
 0x5b4   :  { %16 = sbr.rel (!%p14_p4) target bundleno = 1 (0x1), region = 82 }

// kernel: tile.66
= control target key start
LH: loop header
LB: loop body
LE: loop exit
PB: predicated region body
PF: predicated region fallthrough
CT: control target
= control target key end

     0   :  { %s22_s0 = inlined_call_operand.vmem [shape: f32[32], index: 0, kind: input, shape index: {}]   ;;  %s23_s1 = inlined_call_operand.vmem [shape: f32[7,32], index: 1, kind: output, shape index: {}]  }
   0x1   :  { %v4_v0 = vld [vmem:[%s22_s0] ss:$0 sm:$0xff] }
   0x2   :  { %5 = vst [vmem:[%s23_s1] sm:$0xff] %v4_v0 }

// kernel: tile.67
= control target key start
LH: loop header
LB: loop body
LE: loop exit
PB: predicated region body
PF: predicated region fallthrough
CT: control target
= control target key end

     0   :  { %s13_s8 = smov 3  ;;  %s44_s9 = smov 96   ;;  %vm4_vm0 = vcmask 261120   ;;  %vm10_vm1 = vcmask 1048320   ;;  %vm17_vm2 = vcmask 785920   ;;  %vm24_vm3 = vcmask 523520   ;;  %s75_s0 = inlined_call_operand.vmem [shape: f32[7,32], index: 0, kind: input, shape index: {}]   ;;  %s76_s1 = inlined_call_operand.vmem [shape: f32[1,224], index: 1, kind: output, shape index: {}]  }
   0x1   :  { %v37_v0 = vld [vmem:[%s75_s0 + $0x3] sm:$0x1]   ;;  %s20_s10 = smov 3  ;;  %v38_v1 = vld [vmem:[%s75_s0 + $0x2] ss:$4 sm:%s13_s8]   ;;  %s2_s15 = smov 3 }
   0x2   :  { %8 = vrot.lane.b32.xlu0 %v37_v0, %s44_s9  ;;  %v39_v2 = vld [vmem:[%s75_s0 + $0x1] ss:$4 sm:%s20_s10]   ;;  %s45_s16 = smov 32  }
   0x3   :  { %22 = vrot.lane.b32.xlu1 %v39_v2, %s45_s16  ;;  %v3_v3 = vld [vmem:[%s75_s0] ss:$4 sm:%s2_s15]   ;;  %s46_s0 = smov 64  }
   0x4   :  { %5 = vst.msk [vmem:[#allocation0] ss:$8 sm:$0x3] %vm4_vm0, %v3_v3  }
   0x6   :  { %15 = vrot.lane.b32.xlu0 %v38_v1, %s46_s0 }
  0x74   :  { %v9_v4 = vpop.permute.xlu0 %8  }
  0x75   :  { %11 = vst.msk [vmem:[#allocation0] sm:$0x1] %vm10_vm1, %v9_v4   ;;  %v23_v5 = vpop.permute.xlu1 %22  }
  0x78   :  { %v16_v6 = vpop.permute.xlu0 %15  }
  0x79   :  { %18 = vst.msk [vmem:[#allocation0] ss:$8 sm:$0x3] %vm17_vm2, %v16_v6  }
  0x7a   :  { %25 = vst.msk [vmem:[#allocation0] ss:$8 sm:$0x3] %vm24_vm3, %v23_v5  }
  0x81   :  { %v29_v7 = vld [vmem:[#allocation0] sm:$0x1]  ;;  %v33_v8 = vld [vmem:[#allocation0 + $0x8] sm:$0x1] }
  0x82   :  { %31 = vst [vmem:[%s76_s1] sm:$0x1] %v29_v7  ;;  %40 = vst [vmem:[%s76_s1 + $0x1] sm:$0x1] %v33_v8 }

// kernel: tile.70
= control target key start
LH: loop header
LB: loop body
LE: loop exit
PB: predicated region body
PF: predicated region fallthrough
CT: control target
= control target key end

     0   :  { %s22_s0 = inlined_call_operand.vmem [shape: f32[32], index: 0, kind: input, shape index: {}]   ;;  %s23_s1 = inlined_call_operand.vmem [shape: f32[5,32], index: 1, kind: output, shape index: {}]  }
   0x1   :  { %v4_v0 = vld [vmem:[%s22_s0] ss:$0 sm:$0xff] }
   0x2   :  { %5 = vst [vmem:[%s23_s1] sm:$0xff] %v4_v0 }

// kernel: tile.71
= control target key start
LH: loop header
LB: loop body
LE: loop exit
PB: predicated region body
PF: predicated region fallthrough
CT: control target
= control target key end

     0   :  { %s42_s8 = smov 96   ;;  %s2_s11 = smov 3  ;;  %vm4_vm0 = vcmask 261120   ;;  %vm10_vm1 = vcmask 1048320   ;;  %vm16_vm2 = vcmask 785920   ;;  %vm22_vm3 = vcmask 523520   ;;  %s73_s0 = inlined_call_operand.vmem [shape: f32[5,32], index: 0, kind: input, shape index: {}]   ;;  %s74_s1 = inlined_call_operand.vmem [shape: f32[1,160], index: 1, kind: output, shape index: {}]  }
   0x1   :  { %v35_v0 = vld [vmem:[%s73_s0 + $0x3] sm:$0x1]   ;;  %v37_v1 = vld [vmem:[%s73_s0 + $0x1] sm:$0x1]   ;;  %v36_v2 = vld [vmem:[%s73_s0 + $0x2] sm:$0x1]  }
   0x2   :  { %8 = vrot.lane.b32.xlu0 %v35_v0, %s42_s8  ;;  %s43_s14 = smov 32   ;;  %v3_v3 = vld [vmem:[%s73_s0] ss:$4 sm:%s2_s11]   ;;  %s44_s0 = smov 64  }
   0x3   :  { %20 = vrot.lane.b32.xlu1 %v37_v1, %s43_s14  ;;  %5 = vst.msk [vmem:[#allocation0] ss:$8 sm:$0x3] %vm4_vm0, %v3_v3  }
   0x6   :  { %14 = vrot.lane.b32.xlu0 %v36_v2, %s44_s0 }
   0xa   :  { %v31_v4 = vld [vmem:[#allocation0 + $0x8] sm:$0x1] }
   0xb   :  { %38 = vst [vmem:[%s74_s1 + $0x1] sm:$0x1] %v31_v4 }
  0x74   :  { %v9_v5 = vpop.permute.xlu0 %8  }
  0x75   :  { %11 = vst.msk [vmem:[#allocation0] sm:$0x1] %vm10_vm1, %v9_v5   ;;  %v21_v6 = vpop.permute.xlu1 %20  }
  0x78   :  { %v15_v7 = vpop.permute.xlu0 %14  }
  0x79   :  { %17 = vst.msk [vmem:[#allocation0] sm:$0x1] %vm16_vm2, %v15_v7  }
  0x7a   :  { %23 = vst.msk [vmem:[#allocation0] sm:$0x1] %vm22_vm3, %v21_v6  }
  0x81   :  { %v27_v8 = vld [vmem:[#allocation0] sm:$0x1] }
  0x82   :  { %29 = vst [vmem:[%s74_s1] sm:$0x1] %v27_v8 }

// kernel: _lambda_.7
= control target key start
LH: loop header
LB: loop body
LE: loop exit
PB: predicated region body
PF: predicated region fallthrough
CT: control target
= control target key end

     0   :  { %s2628_s24 = smov 0   ;;  %s3348_s0 = inlined_call_operand.vmem [shape: f32[2,18,288], index: 0, kind: input, shape index: {}]   ;;  %s3349_s1 = inlined_call_operand.vmem [shape: f32[9,17], index: 1, kind: input, shape index: {}]   ;;  %s3350_s2 = inlined_call_operand.vmem [shape: f32[272,144], index: 2, kind: input, shape index: {}]   ;;  %s3351_s3 = inlined_call_operand.vmem [shape: bf16[3,144,224], index: 3, kind: input, shape index: {}]   ;;  %s3352_s4 = inlined_call_operand.vmem [shape: f32[1,224], index: 4, kind: input, shape index: {}]   ;;  %s3353_s5 = inlined_call_operand.vmem [shape: bf16[3,224,160], index: 5, kind: input, shape index: {}]   ;;  %s3354_s6 = inlined_call_operand.vmem [shape: f32[1,160], index: 6, kind: input, shape index: {}]   ;;  %s3355_s7 = inlined_call_operand.vmem [shape: f32[2,5,160], index: 7, kind: output, shape index: {}]  }
   0x1 LB: > { %s2000_s25 = sadd.s32 4294967295, %s2584_s24   ;;  %p2004_p0 = scmp.ge.s32.totalorder %s2584_s24, 1  ;;  %s2584_s24 = sphi %s2628_s24, %s17_s24  }
   0x2   : > { %p237_p1 = scmp.lt.s32.totalorder %s2584_s24, 3 }
   0x4   : > { %p238_p2 = pnand %p2004_p0, %p237_p1 }
   0x5   : > { %p269_p3 = scmp.lt.s32.totalorder (!%p238_p2), %s2000_s25, 1  ;;  %v2586_v0 = vmov (!%p238_p2), 0.0   ;;  %vm298_vm0 = vcmask (!%p238_p2), 1046528   ;;  %vm341_vm1 = vcmask (!%p238_p2), 1040384   ;;  %v332_v35 = vld [vmem:[%s3349_s1] sm:$0xff] (!%p238_p2)  ;;  %vm334_vm2 = vcmask (!%p238_p2), 138240  }
   0x6   : > { %241 = sbr.rel (%p238_p2) target bundleno = 1142 (0x476), region = 48  ;;  %415 = vmatprep.mubr.f32.mxu0 (!%p238_p2), %v2586_v0  ;;  %v333_v38 = vld [vmem:[%s3349_s1 + $0x8] sm:$0x1] (!%p238_p2)  ;;  %v541_v40 = vld [vmem:[%s3350_s2 + $0x18] sm:$0xff] (!%p238_p2)  ;;  %v538_v41 = vld [vmem:[%s3350_s2] sm:$0xff] (!%p238_p2)  ;;  %s2587_s17 = smov (!%p238_p2), 112  }
   0x7   : > { %v539_v39 = vld [vmem:[%s3350_s2 + $0x8] sm:$0xff] (!%p238_p2)  ;;  %v540_v43 = vld [vmem:[%s3350_s2 + $0x10] sm:$0xff] (!%p238_p2)  ;;  %v545_v45 = vld [vmem:[%s3350_s2 + $0x38] sm:$0xff] (!%p238_p2)  ;;  %vm521_vm3 = vcmask (!%p238_p2), 916480   ;;  %vm606_vm4 = vcmask (!%p238_p2), 130048   ;;  %vm1480_vm5 = vcmask (!%p238_p2), 785408  }
   0x8   : > { %v2278_v42 = vpack.c.bf16 (!%p238_p2), %v541_v40, %v539_v39  ;;  %v543_v44 = vld [vmem:[%s3350_s2 + $0x28] sm:$0xff] (!%p238_p2)  ;;  %v2280_v46 = vpack.c.bf16 (!%p238_p2), %v540_v43, %v538_v41  ;;  %v542_v48 = vld [vmem:[%s3350_s2 + $0x20] sm:$0xff] (!%p238_p2)  ;;  %v544_v49 = vld [vmem:[%s3350_s2 + $0x30] sm:$0xff] (!%p238_p2)  ;;  %vm1943_vm6 = vcmask (!%p238_p2), 258048  }
   0x9   : > { %v2282_v47 = vpack.c.bf16 (!%p238_p2), %v545_v45, %v543_v44  ;;  %v547_v50 = vld [vmem:[%s3350_s2 + $0x48] sm:$0xff] (!%p238_p2)  ;;  %v549_v51 = vld [vmem:[%s3350_s2 + $0x58] sm:$0xff] (!%p238_p2)  ;;  %v2284_v52 = vpack.c.bf16 (!%p238_p2), %v544_v49, %v542_v48  ;;  %v546_v54 = vld [vmem:[%s3350_s2 + $0x40] sm:$0xff] (!%p238_p2) }
   0xa   : > { %v2286_v53 = vpack.c.bf16 (!%p238_p2), %v549_v51, %v547_v50  ;;  %v548_v55 = vld [vmem:[%s3350_s2 + $0x50] sm:$0xff] (!%p238_p2)  ;;  %v551_v56 = vld [vmem:[%s3350_s2 + $0x68] sm:$0xff] (!%p238_p2)  ;;  %v553_v57 = vld [vmem:[%s3350_s2 + $0x78] sm:$0xff] (!%p238_p2) }
   0xb   : > { %v2288_v58 = vpack.c.bf16 (!%p238_p2), %v548_v55, %v546_v54  ;;  %v2290_v59 = vpack.c.bf16 (!%p238_p2), %v553_v57, %v551_v56  ;;  %v550_v60 = vld [vmem:[%s3350_s2 + $0x60] sm:$0xff] (!%p238_p2)  ;;  %v552_v61 = vld [vmem:[%s3350_s2 + $0x70] sm:$0xff] (!%p238_p2)  ;;  %v555_v62 = vld [vmem:[%s3350_s2 + $0x88] sm:$0xff] (!%p238_p2) }
   0xc   : > { %v557_v63 = vld [vmem:[%s3350_s2 + $0x98] sm:$0xff] (!%p238_p2)  ;;  %v578_v39 = vld [vmem:[%s3350_s2 + $0x140] sm:$0xff] (!%p238_p2)  ;;  %v580_v40 = vld [vmem:[%s3350_s2 + $0x150] sm:$0xff] (!%p238_p2) }
   0xd   : > { %s3357_s25 = smov (!%p269_p3, %s2000_s25), 1  ;;  %v583_v41 = vld [vmem:[%s3350_s2 + $0x168] sm:$0xff]  ;;  %v2320_v43 = vpack.c.bf16 %v580_v40, %v578_v39  ;;  %v582_v45 = vld [vmem:[%s3350_s2 + $0x160] sm:$0xff]  ;;  %v589_v48 = vld [vmem:[%s3350_s2 + $0x198] sm:$0xff] }
   0xe   : > { %s2350_s26 = smul.u32 72, %s3357_s25  ;;  %v586_v51 = vld [vmem:[%s3350_s2 + $0x180] sm:$0xff]  ;;  %v593_v54 = vld [vmem:[%s3350_s2 + $0x1b8] sm:$0xff]  ;;  %v604_v39 = vld [vmem:[%s3350_s2 + $0x210] sm:$0xff]  ;;  %s2255_s8 = sshll.u32 %s3357_s25, 4 }
   0xf   : > { %v590_v57 = vld [vmem:[%s3350_s2 + $0x1a0] sm:$0xff]  ;;  %s278_s11 = scalar_lea.vmem %s3355_s7, %s2255_s8 }
  0x10   : > { %s273_s29 = scalar_lea.vmem %s3348_s0, %s2350_s26 }
  0x11   : > { %v281_v1 = vld [vmem:[%s273_s29 + $0x8] sm:$0xff]  ;;  %v284_v2 = vld [vmem:[%s273_s29 + $0x20] sm:$0xff]  ;;  %v287_v3 = vld [vmem:[%s273_s29 + $0x38] sm:$0x3] }
  0x12   : > { %v302_v4 = vrot.slane %v281_v1, 1  ;;  %v303_v5 = vrot.slane %v284_v2, 1  ;;  %v310_v6 = vrot.slane %v287_v3, 1  ;;  %v280_v7 = vld [vmem:[%s273_s29] sm:$0xff]  ;;  %v283_v8 = vld [vmem:[%s273_s29 + $0x18] sm:$0xff]  ;;  %v282_v9 = vld [vmem:[%s273_s29 + $0x10] sm:$0xff] }
  0x13   : > { %v286_v10 = vld [vmem:[%s273_s29 + $0x30] sm:$0x3]  ;;  %v299_v11 = vrot.slane %v280_v7, 1  ;;  %v300_v12 = vrot.slane %v283_v8, 1  ;;  %v285_v13 = vld [vmem:[%s273_s29 + $0x28] sm:$0xff]  ;;  %v305_v14 = vrot.slane %v282_v9, 1 }
  0x14   : > { %v304_v15 = vsel %vm298_vm0, %v302_v4, %v303_v5  ;;  %v311_v16 = vsel %vm298_vm0, %v303_v5, %v310_v6  ;;  %v308_v17 = vrot.slane %v286_v10, 1  ;;  %v288_v18 = vld [vmem:[%s273_s29 + $0x40] sm:$0x3]  ;;  %v306_v22 = vrot.slane %v285_v13, 1  ;;  %v556_v4 = vld [vmem:[%s3350_s2 + $0x90] sm:$0xff]  ;;  %v559_v5 = vld [vmem:[%s3350_s2 + $0xa8] sm:$0xff] }
  0x15   : > { %v324_v19 = vmax.f32 %v281_v1, %v304_v15  ;;  %v327_v20 = vmax.f32 %v284_v2, %v311_v16  ;;  %v301_v21 = vsel %vm298_vm0, %v299_v11, %v300_v12  ;;  %v312_v25 = vrot.slane %v288_v18, 1  ;;  %v563_v11 = vld [vmem:[%s3350_s2 + $0xc8] sm:$0xff]  ;;  %v562_v15 = vld [vmem:[%s3350_s2 + $0xc0] sm:$0xff]  ;;  %v564_v16 = vld [vmem:[%s3350_s2 + $0xd0] sm:$0xff] }
  0x16   : > { %v309_v23 = vsel %vm298_vm0, %v300_v12, %v308_v17  ;;  %v323_v24 = vmax.f32 %v280_v7, %v301_v21  ;;  %v307_v28 = vsel %vm298_vm0, %v305_v14, %v306_v22  ;;  %v330_v29 = vmax.f32 %v287_v3, %v310_v6  ;;  %v554_v3 = vld [vmem:[%s3350_s2 + $0x80] sm:$0xff]  ;;  %v561_v6 = vld [vmem:[%s3350_s2 + $0xb8] sm:$0xff] }
  0x17   : > { %v2270_v26 = vpack.c.bf16 %v327_v20, %v324_v19  ;;  %v326_v27 = vmax.f32 %v283_v8, %v309_v23  ;;  %v313_v30 = vsel %vm298_vm0, %v306_v22, %v312_v25  ;;  %v325_v31 = vmax.f32 %v282_v9, %v307_v28  ;;  %v558_v9 = vld [vmem:[%s3350_s2 + $0xa0] sm:$0xff]  ;;  %v565_v12 = vld [vmem:[%s3350_s2 + $0xd8] sm:$0xff]  ;;  %v568_v22 = vld [vmem:[%s3350_s2 + $0xf0] sm:$0xff] }
  0x18   : > { %v328_v33 = vmax.f32 %v285_v13, %v313_v30  ;;  %v329_v34 = vmax.f32 %v286_v10, %v308_v17  ;;  %v331_v37 = vmax.f32 %v288_v18, %v312_v25  ;;  %v2292_v1 = vpack.c.bf16 %v552_v61, %v550_v60  ;;  %v560_v10 = vld [vmem:[%s3350_s2 + $0xb0] sm:$0xff]  ;;  %v567_v17 = vld [vmem:[%s3350_s2 + $0xe8] sm:$0xff]  ;;  %v569_v18 = vld [vmem:[%s3350_s2 + $0xf8] sm:$0xff] }
  0x19   : > { %2271 = vmatprep.subr.bf16.mxu0 %v2270_v26  ;;  %v2272_v32 = vpack.c.bf16 %v326_v27, %v323_v24  ;;  %v2294_v2 = vpack.c.bf16 %v557_v63, %v555_v62  ;;  %v2296_v7 = vpack.c.bf16 %v556_v4, %v554_v3  ;;  %v2298_v8 = vpack.c.bf16 %v561_v6, %v559_v5  ;;  %v566_v21 = vld [vmem:[%s3350_s2 + $0xe0] sm:$0xff]  ;;  %v571_v23 = vld [vmem:[%s3350_s2 + $0x108] sm:$0xff]  ;;  %v573_v24 = vld [vmem:[%s3350_s2 + $0x118] sm:$0xff] }
  0x1a   : > { %v2274_v36 = vpack.c.bf16 %v328_v33, %v325_v31  ;;  %v2300_v13 = vpack.c.bf16 %v560_v10, %v558_v9  ;;  %v2302_v14 = vpack.c.bf16 %v565_v12, %v563_v11  ;;  %v2304_v19 = vpack.c.bf16 %v564_v16, %v562_v15  ;;  %v570_v27 = vld [vmem:[%s3350_s2 + $0x100] sm:$0xff]  ;;  %v572_v28 = vld [vmem:[%s3350_s2 + $0x110] sm:$0xff]  ;;  %v577_v30 = vld [vmem:[%s3350_s2 + $0x138] sm:$0xff] }
  0x1b   : > { %2273 = vmatpush1.bf16.msra.mxu0 %v2272_v32  ;;  %v2306_v20 = vpack.c.bf16 %v569_v18, %v567_v17  ;;  %v2308_v25 = vpack.c.bf16 %v568_v22, %v566_v21  ;;  %v2310_v26 = vpack.c.bf16 %v573_v24, %v571_v23  ;;  %v2312_v31 = vpack.c.bf16 %v572_v28, %v570_v27  ;;  %v574_v33 = vld [vmem:[%s3350_s2 + $0x120] sm:$0xff]  ;;  %v595_v60 = vld [vmem:[%s3350_s2 + $0x1c8] sm:$0xff]  ;;  %v597_v61 = vld [vmem:[%s3350_s2 + $0x1d8] sm:$0xff] }
  0x1c   : > { %2008 = vmatprep.subr.msk.mxu0 %vm341_vm1, %v330_v29  ;;  %v575_v29 = vld [vmem:[%s3350_s2 + $0x128] sm:$0xff]  ;;  %v2334_v62 = vpack.c.bf16 %v597_v61, %v595_v60  ;;  %v594_v63 = vld [vmem:[%s3350_s2 + $0x1c0] sm:$0xff]  ;;  %v601_v4 = vld [vmem:[%s3350_s2 + $0x1f8] sm:$0xff] }
  0x1d   : > { %v2314_v32 = vpack.c.bf16 %v577_v30, %v575_v29  ;;  %v599_v3 = vld [vmem:[%s3350_s2 + $0x1e8] sm:$0xff]  ;;  %v598_v6 = vld [vmem:[%s3350_s2 + $0x1e0] sm:$0xff]  ;;  %v605_v12 = vld [vmem:[%s3350_s2 + $0x218] sm:$0xff] }
  0x1e   : > { %v2338_v5 = vpack.c.bf16 %v601_v4, %v599_v3  ;;  %v603_v11 = vld [vmem:[%s3350_s2 + $0x208] sm:$0xff]  ;;  %v2373_v21 = vld [vmem:[%s3351_s3 + $0x90] ss:$8 sps:$4 sm:$0xff]   ;;  %v2383_v24 = vld [vmem:[%s3351_s3 + $0xb4] ss:$8 sps:$4 sm:$0xff]  }
  0x1f   : > { %2009 = vmatpush1.msk.msra.mxu0 %vm341_vm1, %v329_v34  ;;  %v576_v34 = vld [vmem:[%s3350_s2 + $0x130] sm:$0xff]  ;;  %v2377_v22 = vld [vmem:[%s3351_s3 + $0xa4] ss:$8 sps:$4 sm:$0xff]   ;;  %v2379_v23 = vld [vmem:[%s3351_s3 + $0xa0] ss:$8 sps:$4 sm:$0xff]  }
  0x20   : > { %2010 = vmatmul.mubr.msk.f32.vlgmr.msra.gmra.mrb[0].mxu0 %vm334_vm2, %v332_v35  ;;  %2275 = vmatprep.subr.bf16.mxu0 %v2274_v36  ;;  %v2391_v27 = vld [vmem:[%s3351_s3 + $0xc0] ss:$8 sps:$4 sm:$0xff]   ;;  %v2395_v28 = vld [vmem:[%s3351_s3 + $0xd4] ss:$8 sps:$4 sm:$0xff]   ;;  %v2397_v29 = vld [vmem:[%s3351_s3 + $0xd0] ss:$8 sps:$4 sm:$0xff]  }
  0x21   : > { %2277 = vmatpush3.bf16.msra.mxu0 %v2274_v36  ;;  %421 = vmatprep.mubr.f32.mxu0 %v2586_v0  ;;  %v581_v36 = vld [vmem:[%s3350_s2 + $0x158] sm:$0xff]  ;;  %v2401_v30 = vld [vmem:[%s3351_s3 + $0xe4] ss:$8 sps:$4 sm:$0xff]   ;;  %v2386_v60 = vld [vmem:[%s3351_s3 + $0x140] ss:$8 sps:$4 sm:$0xff]  }
  0x22   : > { %2265 = vmatprep.subr.msk.mxu0 %vm341_vm1, %v331_v37  ;;  %v2392_v61 = vld [vmem:[%s3351_s3 + $0x150] ss:$8 sps:$4 sm:$0xff]   ;;  %v2412_v3 = vld [vmem:[%s3351_s3 + $0x184] ss:$8 sps:$4 sm:$0xff]   ;;  %v2410_v4 = vld [vmem:[%s3351_s3 + $0x180] ss:$8 sps:$4 sm:$0xff]  }
  0x24   : > { %2011 = vmatmul.mubr.msk.f32.gmra.mrb[2].mxu0 %vm334_vm2, %v333_v38 }
  0x25   : > { %2266 = vmatpush3.msk.msra.mxu0 %vm341_vm1, %v331_v37  ;;  %2267 = vmatprep.mubr.msk.f32.mxu0 %vm334_vm2, %v332_v35  ;;  %v579_v35 = vld [vmem:[%s3350_s2 + $0x148] sm:$0xff]  ;;  %v2316_v37 = vpack.c.bf16 %v576_v34, %v574_v33  ;;  %v2409_v33 = vld [vmem:[%s3351_s3 + $0xf0] ss:$8 sps:$4 sm:$0xff]  }
  0x26   : > { %2279 = vmatprep.subr.bf16.mxu0 %v2278_v42  ;;  %v585_v42 = vld [vmem:[%s3350_s2 + $0x178] sm:$0xff] }
  0x27   : > { %v2322_v44 = vpack.c.bf16 %v585_v42, %v583_v41 }
  0x28   : > { %2268 = vmatmul.mubr.msk.f32.vlgmr.msra.gmra.mrb[4].mxu0 %vm334_vm2, %v333_v38  ;;  %v2318_v38 = vpack.c.bf16 %v581_v36, %v579_v35 }
  0x29   : > { %2281 = vmatpush1.bf16.msra.mxu0 %v2280_v46  ;;  %v584_v46 = vld [vmem:[%s3350_s2 + $0x170] sm:$0xff] }
  0x2a   : > { %2283 = vmatprep.subr.bf16.mxu0 %v2282_v47  ;;  %v587_v47 = vld [vmem:[%s3350_s2 + $0x188] sm:$0xff]  ;;  %v2324_v49 = vpack.c.bf16 %v584_v46, %v582_v45 }
  0x2b   : > { %v2326_v50 = vpack.c.bf16 %v589_v48, %v587_v47 }
  0x2d   : > { %2285 = vmatpush1.bf16.msra.mxu0 %v2284_v52  ;;  %v588_v52 = vld [vmem:[%s3350_s2 + $0x190] sm:$0xff] }
  0x2e   : > { %2287 = vmatprep.subr.bf16.mxu0 %v2286_v53  ;;  %v591_v53 = vld [vmem:[%s3350_s2 + $0x1a8] sm:$0xff]  ;;  %v2328_v55 = vpack.c.bf16 %v588_v52, %v586_v51 }
  0x2f   : > { %v2330_v56 = vpack.c.bf16 %v593_v54, %v591_v53  ;;  %v2374_v54 = vld [vmem:[%s3351_s3 + $0x120] ss:$8 sps:$4 sm:$0xff]  }
  0x31   : > { %2289 = vmatpush1.bf16.msra.mxu0 %v2288_v58  ;;  %v592_v58 = vld [vmem:[%s3350_s2 + $0x1b0] sm:$0xff] }
  0x32   : > { %2291 = vmatprep.subr.bf16.mxu0 %v2290_v59  ;;  %v2332_v59 = vpack.c.bf16 %v592_v58, %v590_v57  ;;  %v2380_v57 = vld [vmem:[%s3351_s3 + $0x130] ss:$8 sps:$4 sm:$0xff]  }
  0x35   : > { %2293 = vmatpush1.bf16.msra.mxu0 %v2292_v1  ;;  %v596_v1 = vld [vmem:[%s3350_s2 + $0x1d0] sm:$0xff] }
  0x36   : > { %2295 = vmatprep.subr.bf16.mxu0 %v2294_v2  ;;  %v2336_v2 = vpack.c.bf16 %v596_v1, %v594_v63  ;;  %v2398_v63 = vld [vmem:[%s3351_s3 + $0x160] ss:$8 sps:$4 sm:$0xff]   ;;  %v2406_v1 = vld [vmem:[%s3351_s3 + $0x174] ss:$8 sps:$4 sm:$0xff]  }
  0x39   : > { %2297 = vmatpush1.bf16.msra.mxu0 %v2296_v7  ;;  %v600_v7 = vld [vmem:[%s3350_s2 + $0x1f0] sm:$0xff] }
  0x3a   : > { %2299 = vmatprep.subr.bf16.mxu0 %v2298_v8  ;;  %v2340_v8 = vpack.c.bf16 %v600_v7, %v598_v6  ;;  %v2415_v6 = vld [vmem:[%s3351_s3 + $0x100] ss:$8 sps:$4 sm:$0xff]   ;;  %v2418_v7 = vld [vmem:[%s3351_s3 + $0x194] ss:$8 sps:$4 sm:$0xff]  }
  0x3d   : > { %2301 = vmatpush1.bf16.msra.mxu0 %v2300_v13 }
  0x3e   : > { %2303 = vmatprep.subr.bf16.mxu0 %v2302_v14  ;;  %v2342_v14 = vpack.c.bf16 %v605_v12, %v603_v11  ;;  %v2424_v11 = vld [vmem:[%s3351_s3 + $0x1a4] ss:$8 sps:$4 sm:$0xff]   ;;  %v2422_v12 = vld [vmem:[%s3351_s3 + $0x1a0] ss:$8 sps:$4 sm:$0xff]  }
  0x41   : > { %2305 = vmatpush1.bf16.msra.mxu0 %v2304_v19 }
  0x42   : > { %2307 = vmatprep.subr.bf16.mxu0 %v2306_v20  ;;  %v2371_v20 = vld [vmem:[%s3351_s3 + $0x94] ss:$8 sps:$4 sm:$0xff]  }
  0x43   : > { %914 = vmatprep.subr.bf16.mxu1 %v2371_v20 }
  0x44   : > { %915 = vmatpush1.bf16.msra.mxu1 %v2373_v21 }
  0x45   : > { %2309 = vmatpush1.bf16.msra.mxu0 %v2308_v25  ;;  %916 = vmatprep.subr.bf16.mxu1 %v2377_v22  ;;  %v2385_v25 = vld [vmem:[%s3351_s3 + $0xb0] ss:$8 sps:$4 sm:$0xff]  }
  0x46   : > { %2311 = vmatprep.subr.bf16.mxu0 %v2310_v26  ;;  %v2389_v26 = vld [vmem:[%s3351_s3 + $0xc4] ss:$8 sps:$4 sm:$0xff]  }
  0x48   : > { %917 = vmatpush1.bf16.msra.mxu1 %v2379_v23 }
  0x49   : > { %2313 = vmatpush1.bf16.msra.mxu0 %v2312_v31  ;;  %918 = vmatprep.subr.bf16.mxu1 %v2383_v24  ;;  %v2403_v31 = vld [vmem:[%s3351_s3 + $0xe0] ss:$8 sps:$4 sm:$0xff]  }
  0x4a   : > { %2315 = vmatprep.subr.bf16.mxu0 %v2314_v32  ;;  %v2407_v32 = vld [vmem:[%s3351_s3 + $0xf4] ss:$8 sps:$4 sm:$0xff]  }
  0x4c   : > { %919 = vmatpush1.bf16.msra.mxu1 %v2385_v25 }
  0x4d   : > { %2317 = vmatpush1.bf16.msra.mxu0 %v2316_v37  ;;  %920 = vmatprep.subr.bf16.mxu1 %v2389_v26 }
  0x4e   : > { %2319 = vmatprep.subr.bf16.mxu0 %v2318_v38  ;;  %v602_v38 = vld [vmem:[%s3350_s2 + $0x200] sm:$0xff] }
  0x4f   : > { %v2344_v47 = vpack.c.bf16 %v604_v39, %v602_v38  ;;  %v2433_v38 = vld [vmem:[%s3351_s3 + $0x24] ss:$8 sps:$4 sm:$0xff]   ;;  %v2455_v39 = vld [vmem:[%s3353_s5 + $0x10] ss:$8 sps:$4 sm:$0xff]  }
  0x50   : > { %921 = vmatpush1.bf16.msra.mxu1 %v2391_v27 }
  0x51   : > { %2321 = vmatpush1.bf16.msra.mxu0 %v2320_v43  ;;  %922 = vmatprep.subr.bf16.mxu1 %v2395_v28 }
  0x52   : > { %2323 = vmatprep.subr.bf16.mxu0 %v2322_v44 }
  0x54   : > { %923 = vmatpush1.bf16.msra.mxu1 %v2397_v29 }
  0x55   : > { %2325 = vmatpush1.bf16.msra.mxu0 %v2324_v49  ;;  %924 = vmatprep.subr.bf16.mxu1 %v2401_v30 }
  0x56   : > { %2327 = vmatprep.subr.bf16.mxu0 %v2326_v50  ;;  %v2376_v50 = vld [vmem:[%s3351_s3 + $0x124] ss:$8 sps:$4 sm:$0xff]  }
  0x58   : > { %925 = vmatpush1.bf16.msra.mxu1 %v2403_v31  ;;  %v2425_v31 = vld [vmem:[%s3351_s3] ss:$8 sps:$4 sm:$0xff]  }
  0x59   : > { %2329 = vmatpush1.bf16.msra.mxu0 %v2328_v55  ;;  %926 = vmatprep.subr.bf16.mxu1 %v2407_v32 }
  0x5a   : > { %2331 = vmatprep.subr.bf16.mxu0 %v2330_v56  ;;  %v2382_v56 = vld [vmem:[%s3351_s3 + $0x134] ss:$8 sps:$4 sm:$0xff]  }
  0x5c   : > { %927 = vmatpush1.bf16.msra.mxu1 %v2409_v33 }
  0x5d   : > { %2333 = vmatpush1.bf16.msra.mxu0 %v2332_v59  ;;  %v2388_v59 = vld [vmem:[%s3351_s3 + $0x144] ss:$8 sps:$4 sm:$0xff]  }
  0x5e   : > { %2335 = vmatprep.subr.bf16.mxu0 %v2334_v62  ;;  %v2400_v62 = vld [vmem:[%s3351_s3 + $0x164] ss:$8 sps:$4 sm:$0xff]  }
  0x61   : > { %2337 = vmatpush1.bf16.msra.mxu0 %v2336_v2  ;;  %v2404_v2 = vld [vmem:[%s3351_s3 + $0x170] ss:$8 sps:$4 sm:$0xff]  }
  0x62   : > { %2339 = vmatprep.subr.bf16.mxu0 %v2338_v5  ;;  %v2413_v5 = vld [vmem:[%s3351_s3 + $0x104] ss:$8 sps:$4 sm:$0xff]  }
  0x63   : > { %928 = vmatprep.subr.bf16.mxu1 %v2413_v5  ;;  %v2479_v5 = vld [vmem:[%s3353_s5 + $0x50] ss:$8 sps:$4 sm:$0xff]  }
  0x64   : > { %929 = vmatpush1.bf16.msra.mxu1 %v2415_v6  ;;  %v2482_v6 = vld [vmem:[%s3353_s5 + $0x120] ss:$8 sps:$4 sm:$0xff]  }
  0x65   : > { %2341 = vmatpush1.bf16.msra.mxu0 %v2340_v8  ;;  %v2416_v8 = vld [vmem:[%s3351_s3 + $0x190] ss:$8 sps:$4 sm:$0xff]  }
  0x66   : > { %2343 = vmatprep.subr.bf16.mxu0 %v2342_v14  ;;  %v2454_v14 = vld [vmem:[%s3353_s5 + $0x4] ss:$8 sps:$4 sm:$0xff]  }
  0xf3   : > { %v2852_v9 = vpop.f32.mrb[0].mxu0 }
  0xf4   : > { %v2854_v10 = vpop.f32.mrb[1].mxu0 }
  0xf5   : > { %v2361_v13 = vpack.i.bf16 %v2852_v9, %v2854_v10 }
  0xf7   : > { %2362 = vrot.lane.b32.xlu0 %v2361_v13, %s2587_s17  ;;  %v2864_v15 = vpop.f32.mrb[2].mxu0  ;;  %v2427_v13 = vld [vmem:[%s3351_s3 + $0x4] ss:$8 sps:$4 sm:$0xff]  }
  0xf8   : > { %v425_v16 = vpop.f32.mrb[3].mxu0 }
  0xf9   : > { %v2366_v17 = vpack.i.bf16 %v2864_v15, %v425_v16 }
  0xfb   : > { %2367 = vrot.lane.b32.xlu1 %v2366_v17, %s2587_s17  ;;  %v2867_v18 = vpop.f32.mrb[4].mxu0 }
  0xfc   : > { %v2869_v19 = vpop.f32.mrb[5].mxu0 }
  0xfd   : > { %513 = vrot.lane.b32.xlu0 %v2869_v19, %s2587_s17 }
  0xff   : > { %519 = vrot.lane.b32.xlu1 %v2867_v18, %s2587_s17 }
 0x169   : > { %v2363_v34 = vpop.permute.xlu0 %2362 }
 0x16a   : > { %v2365_v35 = vunpack.i.h.bf16 %v2363_v34  ;;  %v2364_v36 = vunpack.i.l.bf16 %v2363_v34  ;;  %v2430_v34 = vld [vmem:[%s3351_s3 + $0x14] ss:$8 sps:$4 sm:$0xff]  }
 0x16c   : > { %v522_v43 = vsel %vm521_vm3, %v2365_v35, %v2364_v36  ;;  %v2452_v35 = vld [vmem:[%s3353_s5] ss:$8 sps:$4 sm:$0xff]  }
 0x16d   : > { %v2368_v37 = vpop.permute.xlu1 %2367  ;;  %v532_v49 = vmax.f32 %v2852_v9, %v522_v43  ;;  %v2419_v9 = vld [vmem:[%s3351_s3 + $0x114] ss:$8 sps:$4 sm:$0xff]   ;;  %v2439_v43 = vld [vmem:[%s3351_s3 + $0x44] ss:$8 sps:$4 sm:$0xff]  }
 0x16e   : > { %v2370_v40 = vunpack.i.h.bf16 %v2368_v37  ;;  %v2369_v41 = vunpack.i.l.bf16 %v2368_v37  ;;  %930 = vmatprep.subr.bf16.mxu1 %v2419_v9  ;;  %v2428_v37 = vld [vmem:[%s3351_s3 + $0x10] ss:$8 sps:$4 sm:$0xff]   ;;  %v2485_v9 = vld [vmem:[%s3353_s5 + $0x60] ss:$8 sps:$4 sm:$0xff]  }
 0x16f   : > { %v514_v42 = vpop.permute.xlu0 %513 }
 0x170   : > { %v523_v44 = vsel %vm521_vm3, %v2364_v36, %v514_v42  ;;  %v524_v52 = vsel %vm521_vm3, %v2370_v40, %v2369_v41  ;;  %v534_v55 = vmax.f32 %v2869_v19, %v514_v42  ;;  %v2457_v36 = vld [vmem:[%s3353_s5 + $0x14] ss:$8 sps:$4 sm:$0xff]   ;;  %v2431_v40 = vld [vmem:[%s3351_s3 + $0x20] ss:$8 sps:$4 sm:$0xff]   ;;  %v2434_v42 = vld [vmem:[%s3351_s3 + $0x30] ss:$8 sps:$4 sm:$0xff]  }
 0x171   : > { %v533_v45 = vmax.f32 %v2854_v10, %v523_v44  ;;  %v520_v46 = vpop.permute.xlu1 %519  ;;  %v535_v53 = vmax.f32 %v2864_v15, %v524_v52  ;;  %v2421_v10 = vld [vmem:[%s3351_s3 + $0x110] ss:$8 sps:$4 sm:$0xff]   ;;  %v2437_v44 = vld [vmem:[%s3351_s3 + $0x40] ss:$8 sps:$4 sm:$0xff]  }
 0x172   : > { %v525_v48 = vsel %vm521_vm3, %v2369_v41, %v520_v46  ;;  %v537_v58 = vmax.f32 %v2867_v18, %v520_v46  ;;  %931 = vmatpush1.bf16.msra.mxu1 %v2421_v10  ;;  %v2436_v41 = vld [vmem:[%s3351_s3 + $0x34] ss:$8 sps:$4 sm:$0xff]   ;;  %v2440_v46 = vld [vmem:[%s3351_s3 + $0x50] ss:$8 sps:$4 sm:$0xff]   ;;  %v2449_v52 = vld [vmem:[%s3351_s3 + $0x80] ss:$8 sps:$4 sm:$0xff]  }
 0x173   : > { %v536_v51 = vmax.f32 %v425_v16, %v525_v48  ;;  %677 = vmatprep.mubr.f32.mxu0 %v533_v45  ;;  %1047 = vmatprep.subr.bf16.mxu1 %v2427_v13  ;;  %v2442_v45 = vld [vmem:[%s3351_s3 + $0x54] ss:$8 sps:$4 sm:$0xff]   ;;  %v2443_v48 = vld [vmem:[%s3351_s3 + $0x60] ss:$8 sps:$4 sm:$0xff]   ;;  %v2488_v10 = vld [vmem:[%s3353_s5 + $0x130] ss:$8 sps:$4 sm:$0xff]  }
 0x174   : > { %678 = vmatmul.mubr.f32.vlgmr.msra.gmra.mrb[6].mxu0 %v532_v49  ;;  %v2448_v49 = vld [vmem:[%s3351_s3 + $0x74] ss:$8 sps:$4 sm:$0xff]   ;;  %v2491_v13 = vld [vmem:[%s3353_s5 + $0x70] ss:$8 sps:$4 sm:$0xff]  }
 0x175   : > { %683 = vmatprep.mubr.f32.mxu0 %v536_v51  ;;  %2345 = vmatpush1.bf16.msra.mxu0 %v2344_v47  ;;  %v2445_v47 = vld [vmem:[%s3351_s3 + $0x64] ss:$8 sps:$4 sm:$0xff]  }
 0x176   : > { %1207 = vmatprep.subr.bf16.mxu0 %v2376_v50  ;;  %v2446_v50 = vld [vmem:[%s3351_s3 + $0x70] ss:$8 sps:$4 sm:$0xff]   ;;  %v2451_v51 = vld [vmem:[%s3351_s3 + $0x84] ss:$8 sps:$4 sm:$0xff]  }
 0x178   : > { %684 = vmatmul.mubr.f32.gmra.mrb[8].mxu0 %v535_v53  ;;  %v2460_v53 = vld [vmem:[%s3353_s5 + $0xe4] ss:$8 sps:$4 sm:$0xff]  }
 0x179   : > { %754 = vmatprep.mubr.f32.mxu0 %v2586_v0 }
 0x17c   : > { %2015 = vmatmul.mubr.msk.f32.vlgmr.msra.gmra.mrb[6].mxu0 %vm606_vm4, %v534_v55  ;;  %v2463_v55 = vld [vmem:[%s3353_s5 + $0x24] ss:$8 sps:$4 sm:$0xff]  }
 0x17d   : > { %760 = vmatprep.mubr.f32.mxu0 %v2586_v0  ;;  %1208 = vmatpush1.bf16.msra.mxu0 %v2374_v54  ;;  %v2394_v0 = vld [vmem:[%s3351_s3 + $0x154] ss:$8 sps:$4 sm:$0xff]   ;;  %v2458_v54 = vld [vmem:[%s3353_s5 + $0xe0] ss:$8 sps:$4 sm:$0xff]  }
 0x17e   : > { %1209 = vmatprep.subr.bf16.mxu0 %v2382_v56  ;;  %v2461_v56 = vld [vmem:[%s3353_s5 + $0x20] ss:$8 sps:$4 sm:$0xff]  }
 0x180   : > { %2016 = vmatmul.mubr.msk.f32.gmra.mrb[8].mxu0 %vm606_vm4, %v537_v58  ;;  %v2464_v58 = vld [vmem:[%s3353_s5 + $0xf0] ss:$8 sps:$4 sm:$0xff]  }
 0x181   : > { %1210 = vmatpush1.bf16.msra.mxu0 %v2380_v57  ;;  %v2466_v57 = vld [vmem:[%s3353_s5 + $0xf4] ss:$8 sps:$4 sm:$0xff]  }
 0x182   : > { %1211 = vmatprep.subr.bf16.mxu0 %v2388_v59  ;;  %v2467_v59 = vld [vmem:[%s3353_s5 + $0x30] ss:$8 sps:$4 sm:$0xff]  }
 0x185   : > { %1212 = vmatpush1.bf16.msra.mxu0 %v2386_v60  ;;  %v2469_v60 = vld [vmem:[%s3353_s5 + $0x34] ss:$8 sps:$4 sm:$0xff]  }
 0x186   : > { %1213 = vmatprep.subr.bf16.mxu0 %v2394_v0  ;;  %v2470_v0 = vld [vmem:[%s3353_s5 + $0x100] ss:$8 sps:$4 sm:$0xff]  }
 0x189   : > { %1214 = vmatpush1.bf16.msra.mxu0 %v2392_v61  ;;  %v2472_v61 = vld [vmem:[%s3353_s5 + $0x104] ss:$8 sps:$4 sm:$0xff]  }
 0x18a   : > { %1215 = vmatprep.subr.bf16.mxu0 %v2400_v62  ;;  %v2475_v62 = vld [vmem:[%s3353_s5 + $0x44] ss:$8 sps:$4 sm:$0xff]  }
 0x18d   : > { %1216 = vmatpush1.bf16.msra.mxu0 %v2398_v63  ;;  %v2478_v63 = vld [vmem:[%s3353_s5 + $0x114] ss:$8 sps:$4 sm:$0xff]  }
 0x18e   : > { %1217 = vmatprep.subr.bf16.mxu0 %v2406_v1  ;;  %v2473_v1 = vld [vmem:[%s3353_s5 + $0x40] ss:$8 sps:$4 sm:$0xff]  }
 0x191   : > { %1218 = vmatpush1.bf16.msra.mxu0 %v2404_v2  ;;  %v2476_v2 = vld [vmem:[%s3353_s5 + $0x110] ss:$8 sps:$4 sm:$0xff]  }
 0x192   : > { %1219 = vmatprep.subr.bf16.mxu0 %v2412_v3  ;;  %v2481_v3 = vld [vmem:[%s3353_s5 + $0x54] ss:$8 sps:$4 sm:$0xff]  }
 0x195   : > { %1220 = vmatpush1.bf16.msra.mxu0 %v2410_v4  ;;  %v2484_v4 = vld [vmem:[%s3353_s5 + $0x124] ss:$8 sps:$4 sm:$0xff]  }
 0x196   : > { %1221 = vmatprep.subr.bf16.mxu0 %v2418_v7  ;;  %v2487_v7 = vld [vmem:[%s3353_s5 + $0x64] ss:$8 sps:$4 sm:$0xff]  }
 0x199   : > { %1222 = vmatpush1.bf16.msra.mxu0 %v2416_v8  ;;  %v2490_v8 = vld [vmem:[%s3353_s5 + $0x134] ss:$8 sps:$4 sm:$0xff]  }
 0x19a   : > { %1223 = vmatprep.subr.bf16.mxu0 %v2424_v11  ;;  %v2493_v11 = vld [vmem:[%s3353_s5 + $0x74] ss:$8 sps:$4 sm:$0xff]  }
 0x19d   : > { %1224 = vmatpush1.bf16.msra.mxu0 %v2422_v12  ;;  %v2496_v12 = vld [vmem:[%s3353_s5 + $0x144] ss:$8 sps:$4 sm:$0xff]  }
 0x19e   : > { %1667 = vmatprep.subr.bf16.mxu0 %v2454_v14  ;;  %v2494_v14 = vld [vmem:[%s3353_s5 + $0x140] ss:$8 sps:$4 sm:$0xff]  }
 0x24f   : > { %v756_v15 = vpop.f32.mrb[6].mxu0 }
 0x250   : > { %v3006_v16 = vpack.c.bf16 %v756_v15, %v756_v15  ;;  %v758_v17 = vpop.f32.mrb[7].mxu0 }
 0x251   : > { %v768_v18 = vpack.c.bf16 %v758_v17, %v758_v17 }
 0x252   : > { %v809_v19 = vshll.u32 %v3006_v16, 16  ;;  %v807_v28 = vshrl.u32 %v3006_v16, 16 }
 0x253   : > { %v762_v20 = vpop.f32.mrb[8].mxu0  ;;  %v816_v21 = vshll.u32 %v768_v18, 16  ;;  %v814_v26 = vshrl.u32 %v768_v18, 16 }
 0x254   : > { %v1088_v22 = vpack.c.bf16 %v762_v20, %v756_v15  ;;  %v764_v23 = vpop.f32.mrb[9].mxu0  ;;  %v811_v24 = vrot.slane %v809_v19, 1  ;;  %v2499_v15 = vld [vmem:[%s3353_s5 + $0x84] ss:$8 sps:$4 sm:$0xff]   ;;  %v2505_v19 = vld [vmem:[%s3353_s5 + $0x94] ss:$8 sps:$4 sm:$0xff]  }
 0x255   : > { %v1089_v25 = vpack.c.bf16 %v764_v23, %v758_v17  ;;  %v818_v27 = vrot.slane %v816_v21, 1  ;;  %v2497_v17 = vld [vmem:[%s3353_s5 + $0x80] ss:$8 sps:$4 sm:$0xff]   ;;  %v2508_v20 = vld [vmem:[%s3353_s5 + $0x164] ss:$8 sps:$4 sm:$0xff]  }
 0x256   : > { %v1111_v32 = vrot.slane %v1088_v22, 1  ;;  %v812_v33 = vor.u32 %v811_v24, %v807_v28  ;;  %v2503_v21 = vld [vmem:[%s3353_s5 + $0x90] ss:$8 sps:$4 sm:$0xff]   ;;  %v2506_v22 = vld [vmem:[%s3353_s5 + $0x160] ss:$8 sps:$4 sm:$0xff]  }
 0x257   : > { %v1112_v29 = vrot.slane %v1089_v25, 1  ;;  %v819_v30 = vor.u32 %v818_v27, %v814_v26  ;;  %v2511_v23 = vld [vmem:[%s3353_s5 + $0xa4] ss:$8 sps:$4 sm:$0xff]   ;;  %v2514_v24 = vld [vmem:[%s3353_s5 + $0x174] ss:$8 sps:$4 sm:$0xff]  }
 0x258   : > { %v2509_v25 = vld [vmem:[%s3353_s5 + $0xa0] ss:$8 sps:$4 sm:$0xff]   ;;  %v2512_v26 = vld [vmem:[%s3353_s5 + $0x170] ss:$8 sps:$4 sm:$0xff]   ;;  %v2517_v27 = vld [vmem:[%s3353_s5 + $0xb4] ss:$8 sps:$4 sm:$0xff]  }
 0x259   : > { %2053 = vmatprep.mubr.msk.bf16.mxu1 %vm606_vm4, %v819_v30  ;;  %2109 = vmatprep.mubr.msk.bf16.mxu0 %vm606_vm4, %v1112_v29  ;;  %v2515_v28 = vld [vmem:[%s3353_s5 + $0xb0] ss:$8 sps:$4 sm:$0xff]   ;;  %v2520_v29 = vld [vmem:[%s3353_s5 + $0x184] ss:$8 sps:$4 sm:$0xff]   ;;  %v2518_v30 = vld [vmem:[%s3353_s5 + $0x180] ss:$8 sps:$4 sm:$0xff]  }
 0x25a   : > { %947 = vmatmul.mubr.bf16.vlgmr.msra.gmra.mrb[0].mxu1 %v812_v33  ;;  %1240 = vmatmul.mubr.bf16.vlgmr.msra.gmra.mrb[12].mxu0 %v1111_v32  ;;  %v2521_v32 = vld [vmem:[%s3353_s5 + $0xc0] ss:$8 sps:$4 sm:$0xff]   ;;  %v2526_v33 = vld [vmem:[%s3353_s5 + $0x194] ss:$8 sps:$4 sm:$0xff]  }
 0x25b   : > { %1048 = vmatpush1.bf16.msra.mxu1 %v2425_v31  ;;  %2072 = vmatprep.mubr.msk.bf16.mxu1 %vm606_vm4, %v768_v18  ;;  %v2500_v18 = vld [vmem:[%s3353_s5 + $0x150] ss:$8 sps:$4 sm:$0xff]   ;;  %v2523_v31 = vld [vmem:[%s3353_s5 + $0xc4] ss:$8 sps:$4 sm:$0xff]  }
 0x25c   : > { %1049 = vmatprep.subr.bf16.mxu1 %v2430_v34  ;;  %1668 = vmatpush1.bf16.msra.mxu0 %v2452_v35  ;;  %v2524_v34 = vld [vmem:[%s3353_s5 + $0x190] ss:$8 sps:$4 sm:$0xff]   ;;  %v2529_v35 = vld [vmem:[%s3353_s5 + $0xd4] ss:$8 sps:$4 sm:$0xff]  }
 0x25d   : > { %1669 = vmatprep.subr.bf16.mxu0 %v2457_v36  ;;  %v2527_v36 = vld [vmem:[%s3353_s5 + $0xd0] ss:$8 sps:$4 sm:$0xff]  }
 0x25f   : > { %1050 = vmatpush1.bf16.msra.mxu1 %v2428_v37  ;;  %v2532_v37 = vld [vmem:[%s3353_s5 + $0x1a4] ss:$8 sps:$4 sm:$0xff]  }
 0x260   : > { %1051 = vmatprep.subr.bf16.mxu1 %v2433_v38  ;;  %1670 = vmatpush1.bf16.msra.mxu0 %v2455_v39  ;;  %v2530_v38 = vld [vmem:[%s3353_s5 + $0x1a0] ss:$8 sps:$4 sm:$0xff]   ;;  %v2535_v39 = vld [vmem:[%s3353_s5 + $0x1b4] ss:$8 sps:$4 sm:$0xff]  }
 0x261   : > { %1671 = vmatprep.subr.bf16.mxu0 %v2463_v55 }
 0x263   : > { %1052 = vmatpush1.bf16.msra.mxu1 %v2431_v40  ;;  %v2533_v40 = vld [vmem:[%s3353_s5 + $0x1b0] ss:$8 sps:$4 sm:$0xff]  }
 0x264   : > { %1053 = vmatprep.subr.bf16.mxu1 %v2436_v41  ;;  %1672 = vmatpush1.bf16.msra.mxu0 %v2461_v56  ;;  %v2538_v41 = vld [vmem:[%s3353_s5 + $0x1c4] ss:$8 sps:$4 sm:$0xff]  }
 0x265   : > { %1673 = vmatprep.subr.bf16.mxu0 %v2469_v60 }
 0x267   : > { %1054 = vmatpush1.bf16.msra.mxu1 %v2434_v42 }
 0x268   : > { %1055 = vmatprep.subr.bf16.mxu1 %v2439_v43  ;;  %1674 = vmatpush1.bf16.msra.mxu0 %v2467_v59 }
 0x269   : > { %1675 = vmatprep.subr.bf16.mxu0 %v2475_v62 }
 0x26b   : > { %1056 = vmatpush1.bf16.msra.mxu1 %v2437_v44 }
 0x26c   : > { %1057 = vmatprep.subr.bf16.mxu1 %v2442_v45  ;;  %1676 = vmatpush1.bf16.msra.mxu0 %v2473_v1 }
 0x26d   : > { %1677 = vmatprep.subr.bf16.mxu0 %v2481_v3 }
 0x26f   : > { %1058 = vmatpush1.bf16.msra.mxu1 %v2440_v46 }
 0x270   : > { %1059 = vmatprep.subr.bf16.mxu1 %v2445_v47  ;;  %1678 = vmatpush1.bf16.msra.mxu0 %v2479_v5 }
 0x271   : > { %1679 = vmatprep.subr.bf16.mxu0 %v2487_v7 }
 0x273   : > { %1060 = vmatpush1.bf16.msra.mxu1 %v2443_v48 }
 0x274   : > { %1061 = vmatprep.subr.bf16.mxu1 %v2448_v49  ;;  %1680 = vmatpush1.bf16.msra.mxu0 %v2485_v9 }
 0x275   : > { %1681 = vmatprep.subr.bf16.mxu0 %v2493_v11 }
 0x277   : > { %1062 = vmatpush1.bf16.msra.mxu1 %v2446_v50  ;;  %v1252_v50 = vlaneseq }
 0x278   : > { %1063 = vmatprep.subr.bf16.mxu1 %v2451_v51  ;;  %1682 = vmatpush1.bf16.msra.mxu0 %v2491_v13 }
 0x279   : > { %1683 = vmatprep.subr.bf16.mxu0 %v2499_v15  ;;  %v3233_v51 = vshrl.u32 %v1252_v50, 7 }
 0x27b   : > { %1064 = vmatpush1.bf16.msra.mxu1 %v2449_v52  ;;  %v1254_v52 = vsub.s32 0, %v3233_v51 }
 0x27c   : > { %1484 = vmatprep.subr.bf16.mxu1 %v2460_v53  ;;  %1684 = vmatpush1.bf16.msra.mxu0 %v2497_v17  ;;  %v1250_v53 = vld [vmem:[%s3352_s4] sm:$0x3] }
 0x27d   : > { %1685 = vmatprep.subr.bf16.mxu0 %v2505_v19  ;;  %v2544_v19 = vld [vmem:[%s3353_s5 + $0x1e4] ss:$8 sps:$4 sm:$0xff]  }
 0x27e   : > { %1080 = vmatmul.mubr.bf16.vlgmr.msra.gmra.mrb[4].mxu1 %v3006_v16  ;;  %v2502_v16 = vld [vmem:[%s3353_s5 + $0x154] ss:$8 sps:$4 sm:$0xff]  }
 0x27f   : > { %1485 = vmatpush1.bf16.msra.mxu1 %v2458_v54  ;;  %v1258_v54 = vsub.s32 1, %v3233_v51 }
 0x280   : > { %1486 = vmatprep.subr.bf16.mxu1 %v2466_v57  ;;  %1686 = vmatpush1.bf16.msra.mxu0 %v2503_v21  ;;  %v1255_v57 = vrot.slane %v1250_v53, %v1254_v52  ;;  %v2547_v21 = vld [vmem:[%s3353_s5 + $0x1f4] ss:$8 sps:$4 sm:$0xff]  }
 0x281   : > { %1687 = vmatprep.subr.bf16.mxu0 %v2511_v23  ;;  %v1259_v60 = vrot.slane %v1250_v53, %v1258_v54  ;;  %v2550_v23 = vld [vmem:[%s3353_s5 + $0x204] ss:$8 sps:$4 sm:$0xff]  }
 0x283   : > { %1487 = vmatpush1.bf16.msra.mxu1 %v2464_v58 }
 0x284   : > { %1488 = vmatprep.subr.bf16.mxu1 %v2472_v61  ;;  %1688 = vmatpush1.bf16.msra.mxu0 %v2509_v25  ;;  %v2553_v25 = vld [vmem:[%s3353_s5 + $0x214] ss:$8 sps:$4 sm:$0xff]  }
 0x285   : > { %1689 = vmatprep.subr.bf16.mxu0 %v2517_v27  ;;  %v2556_v27 = vld [vmem:[%s3353_s5 + $0x224] ss:$8 sps:$4 sm:$0xff]  }
 0x287   : > { %1489 = vmatpush1.bf16.msra.mxu1 %v2470_v0 }
 0x288   : > { %1490 = vmatprep.subr.bf16.mxu1 %v2478_v63  ;;  %1690 = vmatpush1.bf16.msra.mxu0 %v2515_v28  ;;  %v2554_v28 = vld [vmem:[%s3353_s5 + $0x220] ss:$8 sps:$4 sm:$0xff]  }
 0x289   : > { %1691 = vmatprep.subr.bf16.mxu0 %v2523_v31  ;;  %v2562_v31 = vld [vmem:[%s3353_s5 + $0x244] ss:$8 sps:$4 sm:$0xff]  }
 0x28b   : > { %1491 = vmatpush1.bf16.msra.mxu1 %v2476_v2 }
 0x28c   : > { %1492 = vmatprep.subr.bf16.mxu1 %v2484_v4  ;;  %1692 = vmatpush1.bf16.msra.mxu0 %v2521_v32  ;;  %v2560_v32 = vld [vmem:[%s3353_s5 + $0x240] ss:$8 sps:$4 sm:$0xff]  }
 0x28d   : > { %1693 = vmatprep.subr.bf16.mxu0 %v2529_v35  ;;  %v2568_v35 = vld [vmem:[%s3353_s5 + $0x264] ss:$8 sps:$4 sm:$0xff]  }
 0x28f   : > { %1493 = vmatpush1.bf16.msra.mxu1 %v2482_v6 }
 0x290   : > { %1494 = vmatprep.subr.bf16.mxu1 %v2490_v8  ;;  %1694 = vmatpush1.bf16.msra.mxu0 %v2527_v36  ;;  %v2566_v36 = vld [vmem:[%s3353_s5 + $0x260] ss:$8 sps:$4 sm:$0xff]  }
 0x293   : > { %1495 = vmatpush1.bf16.msra.mxu1 %v2488_v10 }
 0x294   : > { %1496 = vmatprep.subr.bf16.mxu1 %v2496_v12 }
 0x297   : > { %1497 = vmatpush1.bf16.msra.mxu1 %v2494_v14  ;;  %v2536_v14 = vld [vmem:[%s3353_s5 + $0x1c0] ss:$8 sps:$4 sm:$0xff]  }
 0x298   : > { %1498 = vmatprep.subr.bf16.mxu1 %v2502_v16  ;;  %v2541_v16 = vld [vmem:[%s3353_s5 + $0x1d4] ss:$8 sps:$4 sm:$0xff]  }
 0x29b   : > { %1499 = vmatpush1.bf16.msra.mxu1 %v2500_v18  ;;  %v2539_v18 = vld [vmem:[%s3353_s5 + $0x1d0] ss:$8 sps:$4 sm:$0xff]  }
 0x29c   : > { %1500 = vmatprep.subr.bf16.mxu1 %v2508_v20  ;;  %v2542_v20 = vld [vmem:[%s3353_s5 + $0x1e0] ss:$8 sps:$4 sm:$0xff]  }
 0x29f   : > { %1501 = vmatpush1.bf16.msra.mxu1 %v2506_v22  ;;  %v2545_v22 = vld [vmem:[%s3353_s5 + $0x1f0] ss:$8 sps:$4 sm:$0xff]  }
 0x2a0   : > { %1502 = vmatprep.subr.bf16.mxu1 %v2514_v24  ;;  %v2548_v24 = vld [vmem:[%s3353_s5 + $0x200] ss:$8 sps:$4 sm:$0xff]  }
 0x2a3   : > { %1503 = vmatpush1.bf16.msra.mxu1 %v2512_v26  ;;  %v2551_v26 = vld [vmem:[%s3353_s5 + $0x210] ss:$8 sps:$4 sm:$0xff]  }
 0x2a4   : > { %1504 = vmatprep.subr.bf16.mxu1 %v2520_v29  ;;  %v2559_v29 = vld [vmem:[%s3353_s5 + $0x234] ss:$8 sps:$4 sm:$0xff]  }
 0x2a7   : > { %1505 = vmatpush1.bf16.msra.mxu1 %v2518_v30  ;;  %v2557_v30 = vld [vmem:[%s3353_s5 + $0x230] ss:$8 sps:$4 sm:$0xff]  }
 0x2a8   : > { %1506 = vmatprep.subr.bf16.mxu1 %v2526_v33  ;;  %v2565_v33 = vld [vmem:[%s3353_s5 + $0x254] ss:$8 sps:$4 sm:$0xff]  }
 0x2ab   : > { %1507 = vmatpush1.bf16.msra.mxu1 %v2524_v34  ;;  %v2563_v34 = vld [vmem:[%s3353_s5 + $0x250] ss:$8 sps:$4 sm:$0xff]  }
 0x2ac   : > { %1508 = vmatprep.subr.bf16.mxu1 %v2532_v37  ;;  %v2571_v37 = vld [vmem:[%s3353_s5 + $0x274] ss:$8 sps:$4 sm:$0xff]  }
 0x2af   : > { %1509 = vmatpush1.bf16.msra.mxu1 %v2530_v38  ;;  %v2569_v38 = vld [vmem:[%s3353_s5 + $0x270] ss:$8 sps:$4 sm:$0xff]  }
 0x2b0   : > { %1510 = vmatprep.subr.bf16.mxu1 %v2535_v39  ;;  %v2574_v39 = vld [vmem:[%s3353_s5 + $0x284] ss:$8 sps:$4 sm:$0xff]  }
 0x2b3   : > { %1511 = vmatpush1.bf16.msra.mxu1 %v2533_v40  ;;  %v2572_v40 = vld [vmem:[%s3353_s5 + $0x280] ss:$8 sps:$4 sm:$0xff]  }
 0x2b4   : > { %1885 = vmatprep.subr.bf16.mxu1 %v2538_v41  ;;  %v2577_v41 = vld [vmem:[%s3353_s5 + $0x294] ss:$8 sps:$4 sm:$0xff]  }
 0x32d   : > { %v948_v42 = vpop.f32.mrb[0].mxu1  ;;  %v1241_v43 = vpop.f32.mrb[12].mxu0 }
 0x32e   : > { %v950_v44 = vpop.f32.mrb[1].mxu1  ;;  %v1243_v45 = vpop.f32.mrb[13].mxu0 }
 0x32f   : > { %v952_v46 = vpop.f32.mrb[2].mxu1  ;;  %v1245_v47 = vpop.f32.mrb[14].mxu0 }
 0x330   : > { %v953_v48 = vpop.f32.mrb[3].mxu1  ;;  %v1246_v49 = vpop.f32.mrb[15].mxu0 }
 0x351   : > { %v1081_v55 = vpop.f32.mrb[4].mxu1 }
 0x352   : > { %v1082_v56 = vadd.f32 %v1081_v55, %v948_v42  ;;  %v1083_v58 = vpop.f32.mrb[5].mxu1  ;;  %v2575_v42 = vld [vmem:[%s3353_s5 + $0x290] ss:$8 sps:$4 sm:$0xff]  }
 0x353   : > { %v1084_v59 = vadd.f32 %v1083_v58, %v950_v44  ;;  %v1085_v0 = vpop.f32.mrb[6].mxu1 }
 0x354   : > { %v1248_v61 = vadd.f32 %v1241_v43, %v1082_v56  ;;  %v1086_v62 = vpop.f32.mrb[7].mxu1 }
 0x355   : > { %v1249_v63 = vadd.f32 %v1243_v45, %v1084_v59 }
 0x356   : > { %v1262_v1 = vadd.f32 %v1255_v57, %v1248_v61  ;;  %v1928_v57 = vld [vmem:[%s3354_s6] sm:$0x3] }
 0x357   : > { %v1263_v2 = vadd.f32 %v1259_v60, %v1249_v63  ;;  %v1933_v58 = vrot.slane %v1928_v57, %v1254_v52  ;;  %v1937_v60 = vrot.slane %v1928_v57, %v1258_v54 }
 0x358   : > { %v1264_v3 = vmax.f32 %v1262_v1, 0.0 }
 0x359   : > { %v1265_v4 = vmax.f32 %v1263_v2, 0.0 }
 0x35a   : > { %v3244_v5 = vpack.c.bf16 %v1264_v3, %v1264_v3 }
 0x35b   : > { %v1267_v6 = vpack.c.bf16 %v1265_v4, %v1265_v4 }
 0x35c   : > { %v1328_v7 = vshll.u32 %v3244_v5, 16  ;;  %v1326_v12 = vshrl.u32 %v3244_v5, 16  ;;  %v1739_v43 = vrot.slane %v3244_v5, 1 }
 0x35d   : > { %2195 = vmatprep.mubr.msk.bf16.mxu0 %vm1480_vm5, %v1267_v6  ;;  %v1335_v8 = vshll.u32 %v1267_v6, 16  ;;  %v1333_v10 = vshrl.u32 %v1267_v6, 16  ;;  %v1740_v17 = vrot.slane %v1267_v6, 1 }
 0x35e   : > { %1700 = vmatmul.mubr.bf16.vlgmr.msra.gmra.mrb[16].mxu0 %v3244_v5  ;;  %v1330_v9 = vrot.slane %v1328_v7, 1 }
 0x35f   : > { %v1337_v11 = vrot.slane %v1335_v8, 1 }
 0x360   : > { %v1331_v15 = vor.u32 %v1330_v9, %v1326_v12 }
 0x361   : > { %v1338_v13 = vor.u32 %v1337_v11, %v1333_v10 }
 0x363   : > { %2166 = vmatprep.mubr.msk.bf16.mxu1 %vm1480_vm5, %v1338_v13 }
 0x364   : > { %1517 = vmatmul.mubr.bf16.vlgmr.msra.gmra.mrb[8].mxu1 %v1331_v15 }
 0x365   : > { %1886 = vmatpush1.bf16.msra.mxu1 %v2536_v14  ;;  %2252 = vmatprep.mubr.msk.bf16.mxu1 %vm1480_vm5, %v1740_v17 }
 0x366   : > { %1887 = vmatprep.subr.bf16.mxu1 %v2541_v16 }
 0x369   : > { %1888 = vmatpush1.bf16.msra.mxu1 %v2539_v18 }
 0x36a   : > { %1889 = vmatprep.subr.bf16.mxu1 %v2544_v19 }
 0x36d   : > { %1890 = vmatpush1.bf16.msra.mxu1 %v2542_v20 }
 0x36e   : > { %1891 = vmatprep.subr.bf16.mxu1 %v2547_v21 }
 0x371   : > { %1892 = vmatpush1.bf16.msra.mxu1 %v2545_v22 }
 0x372   : > { %1893 = vmatprep.subr.bf16.mxu1 %v2550_v23 }
 0x375   : > { %1894 = vmatpush1.bf16.msra.mxu1 %v2548_v24 }
 0x376   : > { %1895 = vmatprep.subr.bf16.mxu1 %v2553_v25 }
 0x379   : > { %1896 = vmatpush1.bf16.msra.mxu1 %v2551_v26 }
 0x37a   : > { %1897 = vmatprep.subr.bf16.mxu1 %v2556_v27 }
 0x37d   : > { %1898 = vmatpush1.bf16.msra.mxu1 %v2554_v28 }
 0x37e   : > { %1899 = vmatprep.subr.bf16.mxu1 %v2559_v29 }
 0x381   : > { %1900 = vmatpush1.bf16.msra.mxu1 %v2557_v30 }
 0x382   : > { %1901 = vmatprep.subr.bf16.mxu1 %v2562_v31 }
 0x385   : > { %1902 = vmatpush1.bf16.msra.mxu1 %v2560_v32 }
 0x386   : > { %1903 = vmatprep.subr.bf16.mxu1 %v2565_v33 }
 0x389   : > { %1904 = vmatpush1.bf16.msra.mxu1 %v2563_v34 }
 0x38a   : > { %1905 = vmatprep.subr.bf16.mxu1 %v2568_v35 }
 0x38d   : > { %1906 = vmatpush1.bf16.msra.mxu1 %v2566_v36 }
 0x38e   : > { %1907 = vmatprep.subr.bf16.mxu1 %v2571_v37 }
 0x391   : > { %1908 = vmatpush1.bf16.msra.mxu1 %v2569_v38 }
 0x392   : > { %1909 = vmatprep.subr.bf16.mxu1 %v2574_v39 }
 0x395   : > { %1910 = vmatpush1.bf16.msra.mxu1 %v2572_v40 }
 0x396   : > { %1911 = vmatprep.subr.bf16.mxu1 %v2577_v41 }
 0x399   : > { %1912 = vmatpush1.bf16.msra.mxu1 %v2575_v42 }
 0x39c   : > { %1918 = vmatmul.mubr.bf16.vlgmr.msra.gmra.mrb[12].mxu1 %v1739_v43 }
 0x431   : > { %v1701_v44 = vpop.f32.mrb[16].mxu0 }
 0x432   : > { %v1703_v45 = vpop.f32.mrb[17].mxu0 }
 0x433   : > { %v1705_v46 = vpop.f32.mrb[18].mxu0 }
 0x434   : > { %v1706_v47 = vpop.f32.mrb[19].mxu0 }
 0x437   : > { %v1518_v48 = vpop.f32.mrb[8].mxu1 }
 0x438   : > { %v1702_v49 = vadd.f32 %v1701_v44, %v1518_v48  ;;  %v1520_v50 = vpop.f32.mrb[9].mxu1 }
 0x439   : > { %v1704_v53 = vadd.f32 %v1703_v45, %v1520_v50  ;;  %v1522_v55 = vpop.f32.mrb[10].mxu1 }
 0x43a   : > { %v1523_v56 = vpop.f32.mrb[11].mxu1 }
 0x46f   : > { %v1919_v59 = vpop.f32.mrb[12].mxu1 }
 0x470   : > { %v1926_v0 = vadd.f32 %v1919_v59, %v1702_v49  ;;  %v1921_v61 = vpop.f32.mrb[13].mxu1 }
 0x471   : > { %v1927_v62 = vadd.f32 %v1921_v61, %v1704_v53  ;;  %v1923_v63 = vpop.f32.mrb[14].mxu1 }
 0x472   : > { %v1940_v1 = vadd.f32 %v1933_v58, %v1926_v0  ;;  %v1924_v2 = vpop.f32.mrb[15].mxu1 }
 0x473   : > { %v1941_v3 = vadd.f32 %v1937_v60, %v1927_v62 }
 0x474   : > { %1942 = vst [vmem:[%s278_s11] sm:$0x1f] %v1940_v1 }
 0x475   : > { %1944 = vst.msk [vmem:[%s278_s11 + $0x8] sm:$0x1f] %vm1943_vm6, %v1941_v3 }
 0x476 PF: > { %s17_s24 = sadd.s32 1, %s2584_s24  }
 0x477   : > { %p14_p4 = scmp.ge.s32.totalorder %s17_s24, 4  }
 0x479   :  { %16 = sbr.rel (!%p14_p4) target bundleno = 1 (0x1), region = 82 }

// kernel: tile.74
= control target key start
LH: loop header
LB: loop body
LE: loop exit
PB: predicated region body
PF: predicated region fallthrough
CT: control target
= control target key end

     0   :  { %s28_s0 = inlined_call_operand.vmem [shape: f32[16], index: 0, kind: input, shape index: {}]   ;;  %s29_s1 = inlined_call_operand.vmem [shape: f32[10,16], index: 1, kind: output, shape index: {}]  }
   0x1   :  { %v4_v0 = vld [vmem:[%s28_s0] ss:$0 sm:$0xff] }
   0x2   :  { %5 = vst [vmem:[%s29_s1] sm:$0xff] %v4_v0  ;;  %8 = vst [vmem:[%s29_s1 + $0x8] sm:$0xff] %v4_v0 }

// kernel: tile.75
= control target key start
LH: loop header
LB: loop body
LE: loop exit
PB: predicated region body
PF: predicated region fallthrough
CT: control target
= control target key end

     0   :  { %s75_s10 = smov 112   ;;  %s76_s11 = smov 80   ;;  %vm4_vm0 = vcmask 130048   ;;  %vm10_vm1 = vcmask 1048448   ;;  %vm16_vm2 = vcmask 917248   ;;  %vm22_vm3 = vcmask 786048   ;;  %s122_s0 = inlined_call_operand.vmem [shape: f32[10,16], index: 0, kind: input, shape index: {}]   ;;  %s123_s1 = inlined_call_operand.vmem [shape: f32[1,160], index: 1, kind: output, shape index: {}]  }
   0x1   :  { %v60_v0 = vld [vmem:[%s122_s0 + $0x7] sm:$0x1]   ;;  %v62_v1 = vld [vmem:[%s122_s0 + $0x5] sm:$0x1]   ;;  %v61_v2 = vld [vmem:[%s122_s0 + $0x6] sm:$0x1]  }
   0x2   :  { %8 = vrot.lane.b32.xlu0 %v60_v0, %s75_s10  ;;  %20 = vrot.lane.b32.xlu1 %v62_v1, %s76_s11  ;;  %v63_v3 = vld [vmem:[%s122_s0 + $0x4] sm:$0x1]   ;;  %s2_s16 = smov 3  ;;  %s77_s17 = smov 96   ;;  %v64_v5 = vld [vmem:[%s122_s0 + $0x3] sm:$0x1]  }
   0x3   :  { %s78_s18 = smov 64   ;;  %v3_v4 = vld [vmem:[%s122_s0] ss:$8 sm:%s2_s16]   ;;  %v65_v6 = vld [vmem:[%s122_s0 + $0x2] sm:$0x1]   ;;  %s43_s25 = smov 3 }
   0x4   :  { %5 = vst.msk [vmem:[#allocation0] ss:$8 sm:$0x3] %vm4_vm0, %v3_v4   ;;  %s79_s26 = smov 48   ;;  %s80_s27 = smov 32   ;;  %vm28_vm4 = vcmask 654848  }
   0x5   :  { %v66_v7 = vld [vmem:[%s122_s0 + $0x1] ss:$8 sm:%s43_s25]   ;;  %s81_s0 = smov 16   ;;  %vm34_vm5 = vcmask 523648   ;;  %vm40_vm6 = vcmask 392448   ;;  %vm47_vm7 = vcmask 261248  }
   0x6   :  { %14 = vrot.lane.b32.xlu0 %v61_v2, %s77_s17  ;;  %26 = vrot.lane.b32.xlu1 %v63_v3, %s78_s18 }
   0xa   :  { %32 = vrot.lane.b32.xlu0 %v64_v5, %s79_s26  ;;  %38 = vrot.lane.b32.xlu1 %v65_v6, %s80_s27 }
   0xe   :  { %45 = vrot.lane.b32.xlu0 %v66_v7, %s81_s0 }
  0x74   :  { %v9_v8 = vpop.permute.xlu0 %8   ;;  %v21_v9 = vpop.permute.xlu1 %20  }
  0x75   :  { %11 = vst.msk [vmem:[#allocation0] sm:$0x1] %vm10_vm1, %v9_v8  }
  0x78   :  { %v15_v10 = vpop.permute.xlu0 %14   ;;  %v27_v11 = vpop.permute.xlu1 %26  }
  0x79   :  { %17 = vst.msk [vmem:[#allocation0] sm:$0x1] %vm16_vm2, %v15_v10  }
  0x7a   :  { %23 = vst.msk [vmem:[#allocation0] sm:$0x1] %vm22_vm3, %v21_v9  }
  0x7b   :  { %29 = vst.msk [vmem:[#allocation0] sm:$0x1] %vm28_vm4, %v27_v11  }
  0x7c   :  { %v33_v12 = vpop.permute.xlu0 %32   ;;  %v39_v13 = vpop.permute.xlu1 %38  }
  0x7d   :  { %35 = vst.msk [vmem:[#allocation0] sm:$0x1] %vm34_vm5, %v33_v12  }
  0x7e   :  { %41 = vst.msk [vmem:[#allocation0] sm:$0x1] %vm40_vm6, %v39_v13  }
  0x80   :  { %v46_v14 = vpop.permute.xlu0 %45  }
  0x81   :  { %48 = vst.msk [vmem:[#allocation0] ss:$8 sm:$0x3] %vm47_vm7, %v46_v14  }
  0x88   :  { %v52_v15 = vld [vmem:[#allocation0] sm:$0x1]  ;;  %v56_v16 = vld [vmem:[#allocation0 + $0x8] sm:$0x1] }
  0x89   :  { %54 = vst [vmem:[%s123_s1] sm:$0x1] %v52_v15  ;;  %67 = vst [vmem:[%s123_s1 + $0x1] sm:$0x1] %v56_v16 }

// kernel: tile.78
= control target key start
LH: loop header
LB: loop body
LE: loop exit
PB: predicated region body
PF: predicated region fallthrough
CT: control target
= control target key end

     0   :  { %s22_s0 = inlined_call_operand.vmem [shape: f32[16], index: 0, kind: input, shape index: {}]   ;;  %s23_s1 = inlined_call_operand.vmem [shape: f32[8,16], index: 1, kind: output, shape index: {}]  }
   0x1   :  { %v4_v0 = vld [vmem:[%s22_s0] ss:$0 sm:$0xff] }
   0x2   :  { %5 = vst [vmem:[%s23_s1] sm:$0xff] %v4_v0 }

// kernel: tile.79
= control target key start
LH: loop header
LB: loop body
LE: loop exit
PB: predicated region body
PF: predicated region fallthrough
CT: control target
= control target key end

     0   :  { %s67_s10 = smov 112   ;;  %s68_s11 = smov 80   ;;  %vm3_vm0 = vcmask 130048   ;;  %vm9_vm1 = vcmask 1048448   ;;  %vm15_vm2 = vcmask 917248   ;;  %vm21_vm3 = vcmask 786048   ;;  %s111_s0 = inlined_call_operand.vmem [shape: f32[8,16], index: 0, kind: input, shape index: {}]   ;;  %s112_s1 = inlined_call_operand.vmem [shape: f32[1,128], index: 1, kind: output, shape index: {}]  }
   0x1   :  { %v53_v0 = vld [vmem:[%s111_s0 + $0x7] sm:$0x1]   ;;  %v55_v1 = vld [vmem:[%s111_s0 + $0x5] sm:$0x1]   ;;  %v54_v2 = vld [vmem:[%s111_s0 + $0x6] sm:$0x1]  }
   0x2   :  { %7 = vrot.lane.b32.xlu0 %v53_v0, %s67_s10  ;;  %19 = vrot.lane.b32.xlu1 %v55_v1, %s68_s11  ;;  %v56_v3 = vld [vmem:[%s111_s0 + $0x4] sm:$0x1]   ;;  %v2_v4 = vld [vmem:[%s111_s0] sm:$0x1]   ;;  %s69_s18 = smov 96   ;;  %s70_s19 = smov 64  }
   0x3   :  { %4 = vst.msk [vmem:[#allocation0] sm:$0x1] %vm3_vm0, %v2_v4   ;;  %v57_v5 = vld [vmem:[%s111_s0 + $0x3] sm:$0x1]   ;;  %v58_v6 = vld [vmem:[%s111_s0 + $0x2] sm:$0x1]  }
   0x4   :  { %s71_s24 = smov 48   ;;  %s72_s25 = smov 32   ;;  %v59_v7 = vld [vmem:[%s111_s0 + $0x1] sm:$0x1]   ;;  %vm27_vm4 = vcmask 654848   ;;  %vm33_vm5 = vcmask 523648  }
   0x5   :  { %s73_s0 = smov 16   ;;  %vm39_vm6 = vcmask 392448   ;;  %vm45_vm7 = vcmask 261248  }
   0x6   :  { %13 = vrot.lane.b32.xlu0 %v54_v2, %s69_s18  ;;  %25 = vrot.lane.b32.xlu1 %v56_v3, %s70_s19 }
   0xa   :  { %31 = vrot.lane.b32.xlu0 %v57_v5, %s71_s24  ;;  %37 = vrot.lane.b32.xlu1 %v58_v6, %s72_s25 }
   0xe   :  { %43 = vrot.lane.b32.xlu0 %v59_v7, %s73_s0 }
  0x74   :  { %v8_v8 = vpop.permute.xlu0 %7   ;;  %v20_v9 = vpop.permute.xlu1 %19  }
  0x75   :  { %10 = vst.msk [vmem:[#allocation0] sm:$0x1] %vm9_vm1, %v8_v8  }
  0x78   :  { %v14_v10 = vpop.permute.xlu0 %13   ;;  %v26_v11 = vpop.permute.xlu1 %25  }
  0x79   :  { %16 = vst.msk [vmem:[#allocation0] sm:$0x1] %vm15_vm2, %v14_v10  }
  0x7a   :  { %22 = vst.msk [vmem:[#allocation0] sm:$0x1] %vm21_vm3, %v20_v9  }
  0x7b   :  { %28 = vst.msk [vmem:[#allocation0] sm:$0x1] %vm27_vm4, %v26_v11  }
  0x7c   :  { %v32_v12 = vpop.permute.xlu0 %31   ;;  %v38_v13 = vpop.permute.xlu1 %37  }
  0x7d   :  { %34 = vst.msk [vmem:[#allocation0] sm:$0x1] %vm33_vm5, %v32_v12  }
  0x7e   :  { %40 = vst.msk [vmem:[#allocation0] sm:$0x1] %vm39_vm6, %v38_v13  }
  0x80   :  { %v44_v14 = vpop.permute.xlu0 %43  }
  0x81   :  { %46 = vst.msk [vmem:[#allocation0] sm:$0x1] %vm45_vm7, %v44_v14  }
  0x88   :  { %v50_v15 = vld [vmem:[#allocation0] sm:$0x1] }
  0x89   :  { %52 = vst [vmem:[%s112_s1] sm:$0x1] %v50_v15 }

// kernel: tile.82
= control target key start
LH: loop header
LB: loop body
LE: loop exit
PB: predicated region body
PF: predicated region fallthrough
CT: control target
= control target key end

     0   :  { %s22_s0 = inlined_call_operand.vmem [shape: f32[16], index: 0, kind: input, shape index: {}]   ;;  %s23_s1 = inlined_call_operand.vmem [shape: f32[6,16], index: 1, kind: output, shape index: {}]  }
   0x1   :  { %v4_v0 = vld [vmem:[%s22_s0] ss:$0 sm:$0xff] }
   0x2   :  { %5 = vst [vmem:[%s23_s1] sm:$0xff] %v4_v0 }

// kernel: tile.83
= control target key start
LH: loop header
LB: loop body
LE: loop exit
PB: predicated region body
PF: predicated region fallthrough
CT: control target
= control target key end

     0   :  { %s51_s10 = smov 80   ;;  %s52_s11 = smov 48   ;;  %vm3_vm0 = vcmask 130048   ;;  %vm9_vm1 = vcmask 786048   ;;  %vm15_vm2 = vcmask 654848   ;;  %vm21_vm3 = vcmask 523648   ;;  %s87_s0 = inlined_call_operand.vmem [shape: f32[6,16], index: 0, kind: input, shape index: {}]   ;;  %s88_s1 = inlined_call_operand.vmem [shape: f32[1,96], index: 1, kind: output, shape index: {}]  }
   0x1   :  { %v41_v0 = vld [vmem:[%s87_s0 + $0x5] sm:$0x1]   ;;  %v43_v1 = vld [vmem:[%s87_s0 + $0x3] sm:$0x1]   ;;  %v42_v2 = vld [vmem:[%s87_s0 + $0x4] sm:$0x1]  }
   0x2   :  { %7 = vrot.lane.b32.xlu0 %v41_v0, %s51_s10  ;;  %19 = vrot.lane.b32.xlu1 %v43_v1, %s52_s11  ;;  %v44_v3 = vld [vmem:[%s87_s0 + $0x2] sm:$0x1]   ;;  %v2_v4 = vld [vmem:[%s87_s0] sm:$0x1]   ;;  %s53_s18 = smov 64   ;;  %s54_s19 = smov 32  }
   0x3   :  { %4 = vst.msk [vmem:[#allocation0] sm:$0x1] %vm3_vm0, %v2_v4   ;;  %v45_v5 = vld [vmem:[%s87_s0 + $0x1] sm:$0x1]   ;;  %s55_s0 = smov 16   ;;  %vm27_vm4 = vcmask 392448  }
   0x4   :  { %vm33_vm5 = vcmask 261248  }
   0x6   :  { %13 = vrot.lane.b32.xlu0 %v42_v2, %s53_s18  ;;  %25 = vrot.lane.b32.xlu1 %v44_v3, %s54_s19 }
   0xa   :  { %31 = vrot.lane.b32.xlu0 %v45_v5, %s55_s0 }
  0x74   :  { %v8_v6 = vpop.permute.xlu0 %7   ;;  %v20_v7 = vpop.permute.xlu1 %19  }
  0x75   :  { %10 = vst.msk [vmem:[#allocation0] sm:$0x1] %vm9_vm1, %v8_v6  }
  0x78   :  { %v14_v8 = vpop.permute.xlu0 %13   ;;  %v26_v9 = vpop.permute.xlu1 %25  }
  0x79   :  { %16 = vst.msk [vmem:[#allocation0] sm:$0x1] %vm15_vm2, %v14_v8  }
  0x7a   :  { %22 = vst.msk [vmem:[#allocation0] sm:$0x1] %vm21_vm3, %v20_v7  }
  0x7b   :  { %28 = vst.msk [vmem:[#allocation0] sm:$0x1] %vm27_vm4, %v26_v9  }
  0x7c   :  { %v32_v10 = vpop.permute.xlu0 %31  }
  0x7d   :  { %34 = vst.msk [vmem:[#allocation0] sm:$0x1] %vm33_vm5, %v32_v10  }
  0x84   :  { %v38_v11 = vld [vmem:[#allocation0] sm:$0x1] }
  0x85   :  { %40 = vst [vmem:[%s88_s1] sm:$0x1] %v38_v11 }

// kernel: _lambda_.8
= control target key start
LH: loop header
LB: loop body
LE: loop exit
PB: predicated region body
PF: predicated region fallthrough
CT: control target
= control target key end

     0   :  { %s2770_s17 = smov 0   ;;  %s3328_s0 = inlined_call_operand.vmem [shape: f32[2,5,160], index: 0, kind: input, shape index: {}]   ;;  %s3329_s1 = inlined_call_operand.vmem [shape: f32[2,18,288], index: 1, kind: input, shape index: {}]   ;;  %s3330_s2 = inlined_call_operand.vmem [shape: f32[10,5], index: 2, kind: input, shape index: {}]   ;;  %s3331_s3 = inlined_call_operand.vmem [shape: f32[10,5], index: 3, kind: input, shape index: {}]   ;;  %s3332_s4 = inlined_call_operand.vmem [shape: bf16[2,160,160], index: 4, kind: input, shape index: {}]   ;;  %s3333_s5 = inlined_call_operand.vmem [shape: f32[1,160], index: 5, kind: input, shape index: {}]   ;;  %s3334_s6 = inlined_call_operand.vmem [shape: bf16[3,160,128], index: 6, kind: input, shape index: {}]   ;;  %s3335_s7 = inlined_call_operand.vmem [shape: bf16[3,160,128], index: 7, kind: input, shape index: {}]   ;;  %s3336_s8 = inlined_call_operand.vmem [shape: f32[1,128], index: 8, kind: input, shape index: {}]   ;;  %s3337_s9 = inlined_call_operand.vmem [shape: bf16[3,128,96], index: 9, kind: input, shape index: {}]   ;;  %s3338_s10 = inlined_call_operand.vmem [shape: f32[1,96], index: 10, kind: input, shape index: {}]   ;;  %s3339_s11 = inlined_call_operand.vmem [shape: f32[2,6,96], index: 11, kind: output, shape index: {}]  }
   0x1 LB: > { %s2164_s18 = sadd.s32 4294967295, %s2704_s17   ;;  %p2168_p0 = scmp.ge.s32.totalorder %s2704_s17, 1  ;;  %s2704_s17 = sphi %s2770_s17, %s21_s17  }
   0x2   : > { %p347_p1 = scmp.lt.s32.totalorder %s2704_s17, 3 }
   0x4   : > { %p348_p2 = pnand %p2168_p0, %p347_p1 }
   0x5   : > { %v2554_v0 = vld [vmem:[%s3332_s4 + $0xa4] ss:$8 sps:$4 sm:$0xff] (!%p348_p2)   ;;  %v2556_v1 = vld [vmem:[%s3332_s4 + $0xa0] ss:$8 sps:$4 sm:$0xff] (!%p348_p2)   ;;  %v2557_v2 = vld [vmem:[%s3332_s4 + $0xb4] ss:$8 sps:$4 sm:$0xff] (!%p348_p2)  }
   0x6   : > { %351 = sbr.rel (%p348_p2) target bundleno = 1056 (0x420), region = 64  ;;  %696 = vmatprep.subr.bf16.mxu1 (!%p348_p2), %v2554_v0  ;;  %v2559_v3 = vld [vmem:[%s3332_s4 + $0x4] ss:$8 sps:$4 sm:$0xff] (!%p348_p2)   ;;  %v2561_v4 = vld [vmem:[%s3332_s4 + $0xb0] ss:$8 sps:$4 sm:$0xff] (!%p348_p2)   ;;  %p391_p3 = scmp.lt.s32.totalorder (!%p348_p2), %s2164_s18, 1 }
   0x7   : > { %697 = vmatpush1.bf16.msra.mxu1 (!%p348_p2), %v2556_v1  ;;  %v2562_v5 = vld [vmem:[%s3332_s4] ss:$8 sps:$4 sm:$0xff] (!%p348_p2)   ;;  %v2563_v6 = vld [vmem:[%s3332_s4 + $0xc4] ss:$8 sps:$4 sm:$0xff] (!%p348_p2)   ;;  %534 = vmatprep.subr.bf16.mxu0 (!%p348_p2), %v2559_v3  ;;  %v2565_v7 = vld [vmem:[%s3332_s4 + $0x14] ss:$8 sps:$4 sm:$0xff] (!%p348_p2)  }
   0x8   : > { %698 = vmatprep.subr.bf16.mxu1 (!%p348_p2), %v2557_v2  ;;  %535 = vmatpush1.bf16.msra.mxu0 (!%p348_p2), %v2562_v5  ;;  %v2568_v8 = vld [vmem:[%s3332_s4 + $0x10] ss:$8 sps:$4 sm:$0xff] (!%p348_p2)   ;;  %v2567_v9 = vld [vmem:[%s3332_s4 + $0xc0] ss:$8 sps:$4 sm:$0xff] (!%p348_p2)   ;;  %v2569_v10 = vld [vmem:[%s3332_s4 + $0xd4] ss:$8 sps:$4 sm:$0xff] (!%p348_p2)  }
   0x9   : > { %536 = vmatprep.subr.bf16.mxu0 (!%p348_p2), %v2565_v7  ;;  %v2571_v11 = vld [vmem:[%s3332_s4 + $0x24] ss:$8 sps:$4 sm:$0xff] (!%p348_p2)   ;;  %v2574_v12 = vld [vmem:[%s3332_s4 + $0x20] ss:$8 sps:$4 sm:$0xff] (!%p348_p2)   ;;  %v2573_v13 = vld [vmem:[%s3332_s4 + $0xd0] ss:$8 sps:$4 sm:$0xff] (!%p348_p2)  }
   0xa   : > { %v2577_v14 = vld [vmem:[%s3332_s4 + $0x34] ss:$8 sps:$4 sm:$0xff] (!%p348_p2)   ;;  %v2575_v15 = vld [vmem:[%s3332_s4 + $0xe4] ss:$8 sps:$4 sm:$0xff] (!%p348_p2)   ;;  %v2579_v16 = vld [vmem:[%s3332_s4 + $0xe0] ss:$8 sps:$4 sm:$0xff] (!%p348_p2)  }
   0xb   : > { %699 = vmatpush1.bf16.msra.mxu1 (!%p348_p2), %v2561_v4  ;;  %v2580_v17 = vld [vmem:[%s3332_s4 + $0x30] ss:$8 sps:$4 sm:$0xff] (!%p348_p2)   ;;  %v2583_v18 = vld [vmem:[%s3332_s4 + $0x44] ss:$8 sps:$4 sm:$0xff] (!%p348_p2)   ;;  %v2581_v19 = vld [vmem:[%s3332_s4 + $0xf4] ss:$8 sps:$4 sm:$0xff] (!%p348_p2)  }
   0xc   : > { %700 = vmatprep.subr.bf16.mxu1 (!%p348_p2), %v2563_v6  ;;  %537 = vmatpush1.bf16.msra.mxu0 (!%p348_p2), %v2568_v8  ;;  %v2586_v20 = vld [vmem:[%s3332_s4 + $0x40] ss:$8 sps:$4 sm:$0xff] (!%p348_p2)   ;;  %v2585_v21 = vld [vmem:[%s3332_s4 + $0xf0] ss:$8 sps:$4 sm:$0xff] (!%p348_p2)   ;;  %v2589_v22 = vld [vmem:[%s3332_s4 + $0x54] ss:$8 sps:$4 sm:$0xff] (!%p348_p2)  }
   0xd   : > { %538 = vmatprep.subr.bf16.mxu0 %v2571_v11  ;;  %s3341_s18 = smov (!%p391_p3, %s2164_s18), 1  ;;  %v2587_v23 = vld [vmem:[%s3332_s4 + $0x104] ss:$8 sps:$4 sm:$0xff]   ;;  %v2591_v24 = vld [vmem:[%s3332_s4 + $0x100] ss:$8 sps:$4 sm:$0xff]   ;;  %vm530_vm0 = vcmask 261120  }
   0xe   : > { %s2449_s12 = sshll.u32 %s3341_s18, 4  ;;  %v2592_v25 = vld [vmem:[%s3332_s4 + $0x50] ss:$8 sps:$4 sm:$0xff]   ;;  %v2595_v26 = vld [vmem:[%s3332_s4 + $0x64] ss:$8 sps:$4 sm:$0xff]   ;;  %v2706_v44 = vmov 0.0  }
   0xf   : > { %701 = vmatpush1.bf16.msra.mxu1 %v2567_v9  ;;  %s395_s23 = scalar_lea.vmem %s3328_s0, %s2449_s12  ;;  %v2593_v27 = vld [vmem:[%s3332_s4 + $0x114] ss:$8 sps:$4 sm:$0xff]   ;;  %v2597_v28 = vld [vmem:[%s3332_s4 + $0x110] ss:$8 sps:$4 sm:$0xff]   ;;  %v2598_v29 = vld [vmem:[%s3332_s4 + $0x60] ss:$8 sps:$4 sm:$0xff]  }
  0x10   : > { %702 = vmatprep.subr.bf16.mxu1 %v2569_v10  ;;  %539 = vmatpush1.bf16.msra.mxu0 %v2574_v12  ;;  %v407_v30 = vld [vmem:[%s395_s23 + $0x8] sm:$0x1f]  ;;  %v2601_v33 = vld [vmem:[%s3332_s4 + $0x74] ss:$8 sps:$4 sm:$0xff]   ;;  %v2604_v34 = vld [vmem:[%s3332_s4 + $0x70] ss:$8 sps:$4 sm:$0xff]  }
  0x11   : > { %540 = vmatprep.subr.bf16.mxu0 %v2577_v14  ;;  %v2599_v31 = vld [vmem:[%s3332_s4 + $0x124] ss:$8 sps:$4 sm:$0xff]   ;;  %v409_v32 = vpack.c.bf16 %v407_v30, %v407_v30  ;;  %v2603_v35 = vld [vmem:[%s3332_s4 + $0x120] ss:$8 sps:$4 sm:$0xff]   ;;  %v2605_v37 = vld [vmem:[%s3332_s4 + $0x134] ss:$8 sps:$4 sm:$0xff]  }
  0x12   : > { %v2607_v36 = vld [vmem:[%s3332_s4 + $0x84] ss:$8 sps:$4 sm:$0xff]   ;;  %v2610_v38 = vld [vmem:[%s3332_s4 + $0x80] ss:$8 sps:$4 sm:$0xff]   ;;  %v2609_v39 = vld [vmem:[%s3332_s4 + $0x130] ss:$8 sps:$4 sm:$0xff]  }
  0x13   : > { %703 = vmatpush1.bf16.msra.mxu1 %v2573_v13  ;;  %2234 = vmatprep.mubr.msk.bf16.mxu1 %vm530_vm0, %v409_v32  ;;  %v406_v40 = vld [vmem:[%s395_s23] sm:$0x1f]  ;;  %v2611_v41 = vld [vmem:[%s3332_s4 + $0x94] ss:$8 sps:$4 sm:$0xff]   ;;  %v2613_v42 = vld [vmem:[%s3332_s4 + $0x90] ss:$8 sps:$4 sm:$0xff]  }
  0x14   : > { %704 = vmatprep.subr.bf16.mxu1 %v2575_v15  ;;  %541 = vmatpush1.bf16.msra.mxu0 %v2580_v17  ;;  %v408_v43 = vpack.c.bf16 %v406_v40, %v406_v40  ;;  %s2541_s23 = smul.u32 72, %s3341_s18  ;;  %v2707_v50 = vmov 0   ;;  %s2708_s22 = smov 64   ;;  %v2617_v59 = vld [vmem:[%s3334_s6 + $0x50] sm:$0xff]   ;;  %v2619_v1 = vld [vmem:[%s3334_s6 + $0x58] sm:$0xff]   ;;  %v2621_v4 = vld [vmem:[%s3334_s6 + $0x60] sm:$0xff]  }
  0x15   : > { %542 = vmatprep.subr.bf16.mxu0 %v2583_v18  ;;  %2193 = vmatprep.mubr.msk.bf16.mxu0 %vm530_vm0, %v409_v32  ;;  %v2623_v5 = vld [vmem:[%s3334_s6 + $0x68] sm:$0xff]   ;;  %v2625_v6 = vld [vmem:[%s3334_s6 + $0x70] sm:$0xff]   ;;  %v2627_v7 = vld [vmem:[%s3334_s6 + $0x78] sm:$0xff]   ;;  %vm748_vm1 = vcmask 1044480   ;;  %vm741_vm2 = vcmask 39936   ;;  %vm1400_vm3 = vcmask 523264  }
  0x16   : > { %s400_s21 = scalar_lea.vmem %s3329_s1, %s2541_s23  ;;  %v739_v10 = vld [vmem:[%s3331_s3] sm:$0xff]  ;;  %v2630_v30 = vld [vmem:[%s3334_s6 + $0x48] sm:$0xff]   ;;  %v2632_v32 = vld [vmem:[%s3334_s6 + $0x90] sm:$0xff]   ;;  %vm2709_vm4 = vmmov 0   ;;  %s2172_s15 = sshll.u32 %s3341_s18, 3  ;;  %vm2097_vm5 = vcmask 783360  }
  0x17   : > { %705 = vmatpush1.bf16.msra.mxu1 %v2579_v16  ;;  %v937_v45 = vld [vmem:[%s400_s21] sm:$0xf0]  ;;  %v939_v46 = vld [vmem:[%s400_s21 + $0x18] sm:$0x3f]  ;;  %v938_v48 = vld [vmem:[%s400_s21 + $0x8] sm:$0xf0] }
  0x18   : > { %706 = vmatprep.subr.bf16.mxu1 %v2581_v19  ;;  %543 = vmatpush1.bf16.msra.mxu0 %v2586_v20  ;;  %v1337_v47 = vpack.c.bf16 %v939_v46, %v937_v45  ;;  %v940_v49 = vld [vmem:[%s400_s21 + $0x20] sm:$0x3f]  ;;  %v740_v16 = vld [vmem:[%s3331_s3 + $0x8] sm:$0x3]  ;;  %s404_s21 = scalar_lea.vmem %s3339_s11, %s2172_s15 }
  0x19   : > { %544 = vmatprep.subr.bf16.mxu0 %v2589_v22  ;;  %v1338_v51 = vpack.c.bf16 %v940_v49, %v938_v48  ;;  %v737_v18 = vld [vmem:[%s3330_s2] sm:$0xff]  ;;  %v738_v20 = vld [vmem:[%s3330_s2 + $0x8] sm:$0x3]  ;;  %v2616_v22 = vld [vmem:[%s3334_s6 + $0x10] sm:$0xff]  }
  0x1a   : > { %v1381_v52 = vshrl.u32 %v1337_v47, 16  ;;  %v1384_v53 = vshll.u32 %v1337_v47, 16  ;;  %v1508_v54 = vrot.slane %v1337_v47, 2  ;;  %v1640_v3 = vrot.slane %v1337_v47, 3  ;;  %v2614_v19 = vld [vmem:[%s3334_s6] sm:$0xff]   ;;  %v2635_v49 = vld [vmem:[%s3335_s7 + $0x50] sm:$0xff]  }
  0x1b   : > { %707 = vmatpush1.bf16.msra.mxu1 %v2585_v21  ;;  %v1389_v55 = vshrl.u32 %v1338_v51, 16  ;;  %v1392_v56 = vshll.u32 %v1338_v51, 16  ;;  %v1509_v60 = vrot.slane %v1338_v51, 2  ;;  %v1641_v2 = vrot.slane %v1338_v51, 3  ;;  %v2615_v21 = vld [vmem:[%s3334_s6 + $0x8] sm:$0xff]  }
  0x1c   : > { %708 = vmatprep.subr.bf16.mxu1 %v2587_v23  ;;  %545 = vmatpush1.bf16.msra.mxu0 %v2592_v25  ;;  %v1383_v57 = vrot.slane %v1381_v52, 2  ;;  %v1386_v58 = vrot.slane %v1384_v53, 3  ;;  %v2618_v23 = vld [vmem:[%s3334_s6 + $0x18] sm:$0xff]   ;;  %v2622_v25 = vld [vmem:[%s3334_s6 + $0x28] sm:$0xff]  }
  0x1d   : > { %546 = vmatprep.subr.bf16.mxu0 %v2595_v26  ;;  %1510 = vrot.lane.b32.xlu1 %v1508_v54, %s2708_s22  ;;  %v1391_v61 = vrot.slane %v1389_v55, 2  ;;  %v1394_v62 = vrot.slane %v1392_v56, 3  ;;  %v2624_v26 = vld [vmem:[%s3334_s6 + $0x30] sm:$0xff]  }
  0x1e   : > { %v1387_v63 = vor.u32 %v1386_v58, %v1383_v57  ;;  %v2637_v58 = vld [vmem:[%s3335_s7 + $0x58] sm:$0xff]  }
  0x1f   : > { %709 = vmatpush1.bf16.msra.mxu1 %v2591_v24  ;;  %v1395_v0 = vor.u32 %v1394_v62, %v1391_v61  ;;  %v2620_v24 = vld [vmem:[%s3334_s6 + $0x20] sm:$0xff]  }
  0x20   : > { %710 = vmatprep.subr.bf16.mxu1 %v2593_v27  ;;  %547 = vmatpush1.bf16.msra.mxu0 %v2598_v29  ;;  %v2626_v27 = vld [vmem:[%s3334_s6 + $0x38] sm:$0xff]   ;;  %v2629_v29 = vld [vmem:[%s3334_s6 + $0x80] sm:$0xff]  }
  0x21   : > { %548 = vmatprep.subr.bf16.mxu0 %v2601_v33  ;;  %1396 = vrot.lane.b32.xlu0 %v1387_v63, %s2708_s22  ;;  %v2633_v33 = vld [vmem:[%s3334_s6 + $0x98] sm:$0xff]  }
  0x22   : > { %1512 = vrot.lane.b32.xlu1 %v1509_v60, %s2708_s22 }
  0x23   : > { %711 = vmatpush1.bf16.msra.mxu1 %v2597_v28  ;;  %v2628_v28 = vld [vmem:[%s3334_s6 + $0x40] sm:$0xff]  }
  0x24   : > { %712 = vmatprep.subr.bf16.mxu1 %v2599_v31  ;;  %549 = vmatpush1.bf16.msra.mxu0 %v2604_v34  ;;  %v2631_v31 = vld [vmem:[%s3334_s6 + $0x88] sm:$0xff]   ;;  %v923_v34 = vlaneseq }
  0x25   : > { %550 = vmatprep.subr.bf16.mxu0 %v2607_v36  ;;  %1398 = vrot.lane.b32.xlu0 %v1395_v0, %s2708_s22  ;;  %v2639_v0 = vld [vmem:[%s3335_s7 + $0x60] sm:$0xff]  }
  0x26   : > { %1644 = vrot.lane.b32.xlu1 %v1641_v2, %s2708_s22 }
  0x27   : > { %713 = vmatpush1.bf16.msra.mxu1 %v2603_v35  ;;  %v924_v35 = vshrl.u32 %v923_v34, 7  ;;  %v2658_v34 = vld [vmem:[%s3335_s7 + $0x10] sm:$0xff]  }
  0x28   : > { %714 = vmatprep.subr.bf16.mxu1 %v2605_v37  ;;  %551 = vmatpush1.bf16.msra.mxu0 %v2610_v38  ;;  %v921_v37 = vld [vmem:[%s3333_s5] sm:$0x3] }
  0x29   : > { %552 = vmatprep.subr.bf16.mxu0 %v2611_v41  ;;  %1642 = vrot.lane.b32.xlu0 %v1640_v3, %s2708_s22  ;;  %v925_v36 = vsub.s32 0, %v924_v35  ;;  %v929_v38 = vsub.s32 1, %v924_v35  ;;  %v2634_v3 = vld [vmem:[%s3334_s6 + $0xa0] sm:$0xff]   ;;  %v2665_v35 = vld [vmem:[%s3335_s7 + $0xc8] sm:$0xff]  }
  0x2b   : > { %715 = vmatpush1.bf16.msra.mxu1 %v2609_v39  ;;  %v926_v39 = vrot.slane %v921_v37, %v925_v36  ;;  %v930_v40 = vrot.slane %v921_v37, %v929_v38  ;;  %v2660_v36 = vld [vmem:[%s3335_s7 + $0x18] sm:$0xff]   ;;  %v2667_v37 = vld [vmem:[%s3335_s7 + $0xd0] sm:$0xff]   ;;  %v2662_v38 = vld [vmem:[%s3335_s7 + $0x20] sm:$0xff]  }
  0x2c   : > { %553 = vmatpush1.bf16.msra.mxu0 %v2613_v42  ;;  %1064 = vmatprep.subr.bf16.mxu1 %v2707_v50 }
  0x2e   : > { %729 = vmatmul.mubr.bf16.vlgmr.msra.gmra.mrb[0].mxu1 %v408_v43 }
  0x2f   : > { %567 = vmatmul.mubr.bf16.vlgmr.msra.gmra.mrb[0].mxu0 %v408_v43  ;;  %1065 = vmatpush1.bf16.msra.mxu1 %v2617_v59 }
  0x30   : > { %819 = vmatprep.mubr.f32.mxu0 %v2706_v44  ;;  %1066 = vmatprep.subr.bf16.mxu1 %v2707_v50 }
  0x33   : > { %1067 = vmatpush1.bf16.msra.mxu1 %v2619_v1 }
  0x34   : > { %1068 = vmatprep.subr.bf16.mxu1 %v2707_v50 }
  0x37   : > { %1069 = vmatpush1.bf16.msra.mxu1 %v2621_v4 }
  0x38   : > { %1070 = vmatprep.subr.bf16.mxu1 %v2707_v50 }
  0x3b   : > { %1071 = vmatpush1.bf16.msra.mxu1 %v2623_v5 }
  0x3c   : > { %1072 = vmatprep.subr.bf16.mxu1 %v2707_v50 }
  0x3f   : > { %1073 = vmatpush1.bf16.msra.mxu1 %v2625_v6  ;;  %v2641_v6 = vld [vmem:[%s3335_s7 + $0x68] sm:$0xff]  }
  0x40   : > { %1074 = vmatprep.subr.bf16.mxu1 %v2707_v50 }
  0x43   : > { %1075 = vmatpush1.bf16.msra.mxu1 %v2627_v7  ;;  %v2636_v7 = vld [vmem:[%s3334_s6 + $0xa8] sm:$0xff]  }
  0x44   : > { %1076 = vmatprep.subr.bf16.mxu1 %v2707_v50 }
  0x47   : > { %1077 = vmatpush1.bf16.msra.mxu1 %v2629_v29  ;;  %v2654_v29 = vld [vmem:[%s3335_s7] sm:$0xff]  }
  0x48   : > { %1078 = vmatprep.subr.bf16.mxu1 %v2707_v50 }
  0x4b   : > { %1079 = vmatpush1.bf16.msra.mxu1 %v2631_v31  ;;  %v2661_v31 = vld [vmem:[%s3335_s7 + $0xb8] sm:$0xff]  }
  0x4c   : > { %1080 = vmatprep.subr.bf16.mxu1 %v2707_v50 }
  0x4f   : > { %1081 = vmatpush1.bf16.msra.mxu1 %v2632_v32  ;;  %v2656_v32 = vld [vmem:[%s3335_s7 + $0x8] sm:$0xff]  }
  0x50   : > { %1082 = vmatprep.subr.bf16.mxu1 %v2707_v50 }
  0x53   : > { %1083 = vmatpush1.bf16.msra.mxu1 %v2633_v33  ;;  %v2663_v33 = vld [vmem:[%s3335_s7 + $0xc0] sm:$0xff]  }
  0x54   : > { %1296 = vmatprep.subr.bf16.mxu1 %v2707_v50 }
  0x93   : > { %v3023_v41 = vpop.permute.xlu0 %1396 }
  0x97   : > { %v3028_v54 = vpop.permute.xlu0 %1398 }
 0x101   : > { %v730_v8 = vpop.f32.mrb[0].mxu1 }
 0x102   : > { %v732_v9 = vpop.f32.mrb[1].mxu1  ;;  %v568_v13 = vpop.f32.mrb[0].mxu0 }
 0x103   : > { %v734_v11 = vpop.f32.mrb[2].mxu1  ;;  %2235 = vmatprep.subr.msk.mxu0 %vm748_vm1, %v732_v9  ;;  %v570_v14 = vpop.f32.mrb[1].mxu0  ;;  %v2638_v9 = vld [vmem:[%s3334_s6 + $0xb0] sm:$0xff]  }
 0x104   : > { %v735_v12 = vpop.f32.mrb[3].mxu1  ;;  %2236 = vmatpush1.msk.msra.mxu0 %vm748_vm1, %v730_v8  ;;  %v572_v15 = vpop.f32.mrb[2].mxu0  ;;  %v2643_v8 = vld [vmem:[%s3335_s7 + $0x70] sm:$0xff]   ;;  %v2640_v11 = vld [vmem:[%s3334_s6 + $0xb8] sm:$0xff]  }
 0x105   : > { %2237 = vmatmul.mubr.msk.f32.vlgmr.msra.gmra.mrb[4].mxu0 %vm741_vm2, %v739_v10  ;;  %2239 = vmatprep.subr.msk.mxu0 %vm748_vm1, %v570_v14  ;;  %v573_v17 = vpop.f32.mrb[3].mxu0  ;;  %v2645_v10 = vld [vmem:[%s3335_s7 + $0x78] sm:$0xff]   ;;  %v2647_v12 = vld [vmem:[%s3335_s7 + $0x80] sm:$0xff]   ;;  %v2649_v14 = vld [vmem:[%s3335_s7 + $0x88] sm:$0xff]   ;;  %v3086_v15 = vpop.permute.xlu1 %1510 }
 0x106   : > { %825 = vmatprep.mubr.f32.mxu0 %v2706_v44  ;;  %2240 = vmatpush1.msk.msra.mxu0 %vm748_vm1, %v568_v13  ;;  %v2642_v13 = vld [vmem:[%s3334_s6 + $0xc0] sm:$0xff]   ;;  %v2651_v17 = vld [vmem:[%s3335_s7 + $0x90] sm:$0xff]  }
 0x107   : > { %1167 = vmatprep.subr.bf16.mxu0 %v2707_v50 }
 0x109   : > { %2238 = vmatmul.mubr.msk.f32.gmra.mrb[6].mxu0 %vm741_vm2, %v740_v16  ;;  %v2644_v16 = vld [vmem:[%s3334_s6 + $0xc8] sm:$0xff]  }
 0x10a   : > { %908 = vmatprep.mubr.f32.mxu0 %v2706_v44 }
 0x10d   : > { %2241 = vmatmul.mubr.msk.f32.vlgmr.msra.gmra.mrb[4].mxu0 %vm741_vm2, %v737_v18  ;;  %v2646_v18 = vld [vmem:[%s3334_s6 + $0xd0] sm:$0xff]  }
 0x10e   : > { %914 = vmatprep.mubr.f32.mxu0 %v2706_v44  ;;  %1168 = vmatpush1.bf16.msra.mxu0 %v2614_v19  ;;  %v3100_v19 = vpop.permute.xlu1 %1512 }
 0x10f   : > { %1169 = vmatprep.subr.bf16.mxu0 %v2707_v50 }
 0x111   : > { %2242 = vmatmul.mubr.msk.f32.gmra.mrb[6].mxu0 %vm741_vm2, %v738_v20  ;;  %v2653_v20 = vld [vmem:[%s3335_s7 + $0x98] sm:$0xff]  }
 0x112   : > { %1170 = vmatpush1.bf16.msra.mxu0 %v2615_v21  ;;  %v2648_v21 = vld [vmem:[%s3334_s6 + $0xd8] sm:$0xff]  }
 0x113   : > { %1171 = vmatprep.subr.bf16.mxu0 %v2707_v50 }
 0x116   : > { %1172 = vmatpush1.bf16.msra.mxu0 %v2616_v22  ;;  %v1401_v22 = vsel %vm1400_vm3, %v3023_v41, %v3028_v54  ;;  %v2671_v41 = vld [vmem:[%s3335_s7 + $0xe0] sm:$0xff]  }
 0x117   : > { %1173 = vmatprep.subr.bf16.mxu0 %v2707_v50 }
 0x11a   : > { %1174 = vmatpush1.bf16.msra.mxu0 %v2618_v23  ;;  %v2655_v23 = vld [vmem:[%s3335_s7 + $0xa0] sm:$0xff]  }
 0x11b   : > { %1175 = vmatprep.subr.bf16.mxu0 %v2707_v50 }
 0x11e   : > { %1176 = vmatpush1.bf16.msra.mxu0 %v2620_v24  ;;  %v3117_v24 = vpop.permute.xlu1 %1644 }
 0x11f   : > { %1177 = vmatprep.subr.bf16.mxu0 %v2707_v50 }
 0x122   : > { %1178 = vmatpush1.bf16.msra.mxu0 %v2622_v25  ;;  %v2650_v25 = vld [vmem:[%s3334_s6 + $0xe0] sm:$0xff]  }
 0x123   : > { %1179 = vmatprep.subr.bf16.mxu0 %v2707_v50 }
 0x126   : > { %1180 = vmatpush1.bf16.msra.mxu0 %v2624_v26  ;;  %v2657_v26 = vld [vmem:[%s3335_s7 + $0xa8] sm:$0xff]  }
 0x127   : > { %1181 = vmatprep.subr.bf16.mxu0 %v2707_v50 }
 0x12a   : > { %1182 = vmatpush1.bf16.msra.mxu0 %v2626_v27  ;;  %v2652_v27 = vld [vmem:[%s3334_s6 + $0xe8] sm:$0xff]  }
 0x12b   : > { %1183 = vmatprep.subr.bf16.mxu0 %v2707_v50 }
 0x12e   : > { %1184 = vmatpush1.bf16.msra.mxu0 %v2628_v28  ;;  %v2659_v28 = vld [vmem:[%s3335_s7 + $0xb0] sm:$0xff]  }
 0x12f   : > { %1185 = vmatprep.subr.bf16.mxu0 %v2707_v50 }
 0x132   : > { %1186 = vmatpush1.bf16.msra.mxu0 %v2630_v30 }
 0x133   : > { %1466 = vmatprep.subr.bf16.mxu0 %v2707_v50 }
 0x1e0   : > { %v910_v42 = vpop.f32.mrb[4].mxu0 }
 0x1e1   : > { %v933_v43 = vadd.f32 %v926_v39, %v910_v42  ;;  %v912_v45 = vpop.f32.mrb[5].mxu0  ;;  %v2666_v42 = vld [vmem:[%s3335_s7 + $0x30] sm:$0xff]  }
 0x1e2   : > { %v934_v46 = vadd.f32 %v930_v40, %v912_v45  ;;  %v1643_v45 = vpop.permute.xlu0 %1642 }
 0x1e3   : > { %v941_v51 = vpack.c.bf16 %v933_v43, %v933_v43 }
 0x1e4   : > { %v942_v47 = vpack.c.bf16 %v934_v46, %v934_v46  ;;  %v916_v48 = vpop.f32.mrb[6].mxu0 }
 0x1e5   : > { %v935_v52 = vadd.f32 %v926_v39, %v916_v48  ;;  %v918_v53 = vpop.f32.mrb[7].mxu0  ;;  %v2669_v39 = vld [vmem:[%s3335_s7 + $0xd8] sm:$0xff]   ;;  %v2670_v48 = vld [vmem:[%s3335_s7 + $0x40] sm:$0xff]  }
 0x1e6   : > { %v936_v55 = vadd.f32 %v930_v40, %v918_v53  ;;  %2284 = vmatprep.mubr.msk.bf16.mxu0 %vm530_vm0, %v942_v47  ;;  %v2664_v40 = vld [vmem:[%s3335_s7 + $0x28] sm:$0xff]   ;;  %v1646_v47 = vsel %vm1400_vm3, %v1643_v45, %v3117_v24  ;;  %v2676_v53 = vld [vmem:[%s3337_s9 + $0x40] sm:$0xff]  }
 0x1e7   : > { %v3031_v56 = vpack.c.bf16 %v935_v52, %v933_v43  ;;  %1200 = vmatmul.mubr.bf16.vlgmr.msra.gmra.mrb[8].mxu0 %v941_v51  ;;  %v2673_v43 = vld [vmem:[%s3335_s7 + $0xe8] sm:$0xff]   ;;  %v1514_v51 = vsel %vm1400_vm3, %v3086_v15, %v3100_v19  ;;  %v2674_v52 = vld [vmem:[%s3337_s9] sm:$0xff]  }
 0x1e8   : > { %v964_v57 = vpack.c.bf16 %v936_v55, %v934_v46  ;;  %1467 = vmatpush1.bf16.msra.mxu0 %v2635_v49  ;;  %2346 = vmatprep.mubr.msk.bf16.mxu0 %vm530_vm0, %v3028_v54  ;;  %v2668_v46 = vld [vmem:[%s3335_s7 + $0x38] sm:$0xff]   ;;  %v2672_v49 = vld [vmem:[%s3335_s7 + $0x48] sm:$0xff]   ;;  %v2677_v55 = vld [vmem:[%s3337_s9 + $0x10] sm:$0xff]  }
 0x1e9   : > { %v989_v59 = vshll.u32 %v3031_v56, 16  ;;  %1468 = vmatprep.subr.bf16.mxu0 %v2707_v50  ;;  %v987_v1 = vshrl.u32 %v3031_v56, 16  ;;  %v1230_v30 = vrot.slane %v3031_v56, 1  ;;  %v2678_v54 = vld [vmem:[%s3337_s9 + $0x48] sm:$0xff]   ;;  %v2680_v56 = vld [vmem:[%s3337_s9 + $0x50] sm:$0xff]   ;;  %v2694_v45 = vld [vmem:[%s3337_s9 + $0xa0] sm:$0xff]  }
 0x1ea   : > { %v996_v60 = vshll.u32 %v964_v57, 16  ;;  %v994_v62 = vshrl.u32 %v964_v57, 16  ;;  %v1231_v5 = vrot.slane %v964_v57, 1  ;;  %v2679_v57 = vld [vmem:[%s3337_s9 + $0x18] sm:$0xff]  }
 0x1eb   : > { %v991_v61 = vrot.slane %v989_v59, 1  ;;  %v2681_v59 = vld [vmem:[%s3337_s9 + $0x20] sm:$0xff]  }
 0x1ec   : > { %v998_v63 = vrot.slane %v996_v60, 1  ;;  %1469 = vmatpush1.bf16.msra.mxu0 %v2637_v58  ;;  %v2682_v58 = vld [vmem:[%s3337_s9 + $0x58] sm:$0xff]   ;;  %v2683_v60 = vld [vmem:[%s3337_s9 + $0x28] sm:$0xff]  }
 0x1ed   : > { %1470 = vmatprep.subr.bf16.mxu0 %v2707_v50  ;;  %v992_v4 = vor.u32 %v991_v61, %v987_v1  ;;  %v2684_v61 = vld [vmem:[%s3337_s9 + $0x60] sm:$0xff]   ;;  %v2688_v1 = vld [vmem:[%s3337_s9 + $0x70] sm:$0xff]  }
 0x1ee   : > { %v999_v2 = vor.u32 %v998_v63, %v994_v62  ;;  %v2685_v62 = vld [vmem:[%s3337_s9 + $0x30] sm:$0xff]   ;;  %v2686_v63 = vld [vmem:[%s3337_s9 + $0x68] sm:$0xff]  }
 0x1f0   : > { %2273 = vmatprep.mubr.msk.bf16.mxu1 %vm530_vm0, %v999_v2  ;;  %1471 = vmatpush1.bf16.msra.mxu0 %v2639_v0  ;;  %v2687_v0 = vld [vmem:[%s3337_s9 + $0x38] sm:$0xff]  }
 0x1f1   : > { %1097 = vmatmul.mubr.bf16.vlgmr.msra.gmra.mrb[4].mxu1 %v992_v4  ;;  %1472 = vmatprep.subr.bf16.mxu0 %v2707_v50  ;;  %v2689_v2 = vld [vmem:[%s3337_s9 + $0x78] sm:$0xff]  }
 0x1f2   : > { %1297 = vmatpush1.bf16.msra.mxu1 %v2634_v3  ;;  %2315 = vmatprep.mubr.msk.bf16.mxu1 %vm530_vm0, %v1231_v5 }
 0x1f3   : > { %1298 = vmatprep.subr.bf16.mxu1 %v2707_v50 }
 0x1f4   : > { %1473 = vmatpush1.bf16.msra.mxu0 %v2641_v6 }
 0x1f5   : > { %1474 = vmatprep.subr.bf16.mxu0 %v2707_v50 }
 0x1f6   : > { %1299 = vmatpush1.bf16.msra.mxu1 %v2636_v7 }
 0x1f7   : > { %1300 = vmatprep.subr.bf16.mxu1 %v2707_v50 }
 0x1f8   : > { %1475 = vmatpush1.bf16.msra.mxu0 %v2643_v8 }
 0x1f9   : > { %1476 = vmatprep.subr.bf16.mxu0 %v2707_v50 }
 0x1fa   : > { %1301 = vmatpush1.bf16.msra.mxu1 %v2638_v9 }
 0x1fb   : > { %1302 = vmatprep.subr.bf16.mxu1 %v2707_v50 }
 0x1fc   : > { %1477 = vmatpush1.bf16.msra.mxu0 %v2645_v10 }
 0x1fd   : > { %1478 = vmatprep.subr.bf16.mxu0 %v2707_v50 }
 0x1fe   : > { %1303 = vmatpush1.bf16.msra.mxu1 %v2640_v11 }
 0x1ff   : > { %1304 = vmatprep.subr.bf16.mxu1 %v2707_v50 }
 0x200   : > { %1479 = vmatpush1.bf16.msra.mxu0 %v2647_v12 }
 0x201   : > { %1480 = vmatprep.subr.bf16.mxu0 %v2707_v50 }
 0x202   : > { %1305 = vmatpush1.bf16.msra.mxu1 %v2642_v13 }
 0x203   : > { %1306 = vmatprep.subr.bf16.mxu1 %v2707_v50 }
 0x204   : > { %1481 = vmatpush1.bf16.msra.mxu0 %v2649_v14 }
 0x205   : > { %1482 = vmatprep.subr.bf16.mxu0 %v2707_v50 }
 0x206   : > { %1307 = vmatpush1.bf16.msra.mxu1 %v2644_v16 }
 0x207   : > { %1308 = vmatprep.subr.bf16.mxu1 %v2707_v50 }
 0x208   : > { %1483 = vmatpush1.bf16.msra.mxu0 %v2651_v17 }
 0x209   : > { %1484 = vmatprep.subr.bf16.mxu0 %v2707_v50 }
 0x20a   : > { %1309 = vmatpush1.bf16.msra.mxu1 %v2646_v18 }
 0x20b   : > { %1310 = vmatprep.subr.bf16.mxu1 %v2707_v50 }
 0x20c   : > { %1485 = vmatpush1.bf16.msra.mxu0 %v2653_v20 }
 0x20d   : > { %1711 = vmatprep.subr.bf16.mxu0 %v2707_v50 }
 0x20e   : > { %1311 = vmatpush1.bf16.msra.mxu1 %v2648_v21 }
 0x20f   : > { %1312 = vmatprep.subr.bf16.mxu1 %v2707_v50  ;;  %1499 = vmatmul.mubr.bf16.vlgmr.msra.gmra.mrb[12].mxu0 %v1401_v22 }
 0x210   : > { %1712 = vmatpush1.bf16.msra.mxu0 %v2655_v23  ;;  %2388 = vmatprep.mubr.msk.bf16.mxu0 %vm530_vm0, %v3117_v24 }
 0x211   : > { %1713 = vmatprep.subr.bf16.mxu0 %v2707_v50 }
 0x212   : > { %1313 = vmatpush1.bf16.msra.mxu1 %v2650_v25 }
 0x213   : > { %1314 = vmatprep.subr.bf16.mxu1 %v2707_v50 }
 0x214   : > { %1714 = vmatpush1.bf16.msra.mxu0 %v2657_v26 }
 0x215   : > { %1715 = vmatprep.subr.bf16.mxu0 %v2707_v50 }
 0x216   : > { %1315 = vmatpush1.bf16.msra.mxu1 %v2652_v27 }
 0x217   : > { %1579 = vmatprep.subr.bf16.mxu1 %v2707_v50 }
 0x218   : > { %1716 = vmatpush1.bf16.msra.mxu0 %v2659_v28 }
 0x219   : > { %1329 = vmatmul.mubr.bf16.vlgmr.msra.gmra.mrb[8].mxu1 %v1230_v30  ;;  %1717 = vmatprep.subr.bf16.mxu0 %v2707_v50 }
 0x21a   : > { %1580 = vmatpush1.bf16.msra.mxu1 %v2654_v29  ;;  %2357 = vmatprep.mubr.msk.bf16.mxu1 %vm530_vm0, %v3100_v19 }
 0x21b   : > { %1581 = vmatprep.subr.bf16.mxu1 %v2707_v50 }
 0x21c   : > { %1718 = vmatpush1.bf16.msra.mxu0 %v2661_v31  ;;  %v2389_v31 = vld [vmem:[%s3336_s8] ss:$0 sm:$0xff] }
 0x21d   : > { %1719 = vmatprep.subr.bf16.mxu0 %v2707_v50 }
 0x21e   : > { %1582 = vmatpush1.bf16.msra.mxu1 %v2656_v32 }
 0x21f   : > { %1583 = vmatprep.subr.bf16.mxu1 %v2707_v50 }
 0x220   : > { %1720 = vmatpush1.bf16.msra.mxu0 %v2663_v33 }
 0x221   : > { %1721 = vmatprep.subr.bf16.mxu0 %v2707_v50 }
 0x222   : > { %1584 = vmatpush1.bf16.msra.mxu1 %v2658_v34 }
 0x223   : > { %1585 = vmatprep.subr.bf16.mxu1 %v2707_v50 }
 0x224   : > { %1722 = vmatpush1.bf16.msra.mxu0 %v2665_v35 }
 0x225   : > { %1723 = vmatprep.subr.bf16.mxu0 %v2707_v50 }
 0x226   : > { %1586 = vmatpush1.bf16.msra.mxu1 %v2660_v36 }
 0x227   : > { %1587 = vmatprep.subr.bf16.mxu1 %v2707_v50 }
 0x228   : > { %1724 = vmatpush1.bf16.msra.mxu0 %v2667_v37 }
 0x229   : > { %1725 = vmatprep.subr.bf16.mxu0 %v2707_v50 }
 0x22a   : > { %1588 = vmatpush1.bf16.msra.mxu1 %v2662_v38 }
 0x22b   : > { %1589 = vmatprep.subr.bf16.mxu1 %v2707_v50 }
 0x22c   : > { %1726 = vmatpush1.bf16.msra.mxu0 %v2669_v39  ;;  %v2690_v39 = vld [vmem:[%s3337_s9 + $0x80] sm:$0xff]  }
 0x22d   : > { %1727 = vmatprep.subr.bf16.mxu0 %v2707_v50 }
 0x22e   : > { %1590 = vmatpush1.bf16.msra.mxu1 %v2664_v40 }
 0x22f   : > { %1591 = vmatprep.subr.bf16.mxu1 %v2707_v50 }
 0x230   : > { %1728 = vmatpush1.bf16.msra.mxu0 %v2671_v41  ;;  %v2691_v41 = vld [vmem:[%s3337_s9 + $0x88] sm:$0xff]  }
 0x231   : > { %1729 = vmatprep.subr.bf16.mxu0 %v2707_v50 }
 0x232   : > { %1592 = vmatpush1.bf16.msra.mxu1 %v2666_v42  ;;  %v2692_v42 = vld [vmem:[%s3337_s9 + $0x90] sm:$0xff]  }
 0x233   : > { %1593 = vmatprep.subr.bf16.mxu1 %v2707_v50 }
 0x234   : > { %1730 = vmatpush1.bf16.msra.mxu0 %v2673_v43  ;;  %v2693_v43 = vld [vmem:[%s3337_s9 + $0x98] sm:$0xff]  }
 0x235   : > { %2497 = vmatprep.subr.bf16.mxu0 %v2706_v44 }
 0x236   : > { %1594 = vmatpush1.bf16.msra.mxu1 %v2668_v46  ;;  %v2695_v46 = vld [vmem:[%s3337_s9 + $0xa8] sm:$0xff]  }
 0x237   : > { %1595 = vmatprep.subr.bf16.mxu1 %v2707_v50  ;;  %1744 = vmatmul.mubr.bf16.vlgmr.msra.gmra.mrb[16].mxu0 %v1646_v47  ;;  %v2696_v47 = vld [vmem:[%s3337_s9 + $0xb0] sm:$0xff]  }
 0x238   : > { %2498 = vmatpush3.bf16.msra.mxu0 %v2674_v52  ;;  %2513 = vmatprep.mubr.msk.bf16.mxu0 %vm2709_vm4, %v2706_v44 }
 0x239   : > { %2499 = vmatprep.subr.bf16.mxu0 %v2706_v44 }
 0x23a   : > { %1596 = vmatpush1.bf16.msra.mxu1 %v2670_v48  ;;  %v2697_v48 = vld [vmem:[%s3337_s9 + $0xb8] sm:$0xff]  }
 0x23b   : > { %1597 = vmatprep.subr.bf16.mxu1 %v2707_v50  ;;  %v2675_v50 = vld [vmem:[%s3337_s9 + $0x8] sm:$0xff]  }
 0x23c   : > { %2500 = vmatpush3.bf16.msra.mxu0 %v2675_v50 }
 0x23d   : > { %2501 = vmatprep.subr.bf16.mxu0 %v2706_v44 }
 0x23e   : > { %1598 = vmatpush1.bf16.msra.mxu1 %v2672_v49 }
 0x23f   : > { %2477 = vmatprep.subr.bf16.mxu1 %v2706_v44 }
 0x240   : > { %2502 = vmatpush3.bf16.msra.mxu0 %v2677_v55 }
 0x241   : > { %1612 = vmatmul.mubr.bf16.vlgmr.msra.gmra.mrb[12].mxu1 %v1514_v51  ;;  %2503 = vmatprep.subr.bf16.mxu0 %v2706_v44 }
 0x242   : > { %2478 = vmatpush3.bf16.msra.mxu1 %v2676_v53  ;;  %2493 = vmatprep.mubr.msk.bf16.mxu1 %vm2709_vm4, %v2706_v44 }
 0x243   : > { %2479 = vmatprep.subr.bf16.mxu1 %v2706_v44 }
 0x244   : > { %2504 = vmatpush3.bf16.msra.mxu0 %v2679_v57 }
 0x245   : > { %2505 = vmatprep.subr.bf16.mxu0 %v2706_v44 }
 0x246   : > { %2480 = vmatpush3.bf16.msra.mxu1 %v2678_v54 }
 0x247   : > { %2481 = vmatprep.subr.bf16.mxu1 %v2706_v44 }
 0x248   : > { %2506 = vmatpush3.bf16.msra.mxu0 %v2681_v59 }
 0x249   : > { %2507 = vmatprep.subr.bf16.mxu0 %v2706_v44 }
 0x24a   : > { %2482 = vmatpush3.bf16.msra.mxu1 %v2680_v56 }
 0x24b   : > { %2483 = vmatprep.subr.bf16.mxu1 %v2706_v44 }
 0x24c   : > { %2508 = vmatpush3.bf16.msra.mxu0 %v2683_v60  ;;  %v2446_v60 = vld [vmem:[%s3338_s10] ss:$0 sm:$0xff] }
 0x24d   : > { %2509 = vmatprep.subr.bf16.mxu0 %v2706_v44 }
 0x24e   : > { %2484 = vmatpush3.bf16.msra.mxu1 %v2682_v58 }
 0x24f   : > { %2485 = vmatprep.subr.bf16.mxu1 %v2706_v44 }
 0x250   : > { %2510 = vmatpush3.bf16.msra.mxu0 %v2685_v62 }
 0x251   : > { %2511 = vmatprep.subr.bf16.mxu0 %v2706_v44 }
 0x252   : > { %2486 = vmatpush3.bf16.msra.mxu1 %v2684_v61 }
 0x253   : > { %2487 = vmatprep.subr.bf16.mxu1 %v2706_v44 }
 0x254   : > { %2512 = vmatpush3.bf16.msra.mxu0 %v2687_v0 }
 0x256   : > { %2488 = vmatpush3.bf16.msra.mxu1 %v2686_v63 }
 0x257   : > { %2489 = vmatprep.subr.bf16.mxu1 %v2706_v44 }
 0x25a   : > { %2490 = vmatpush3.bf16.msra.mxu1 %v2688_v1 }
 0x25b   : > { %2491 = vmatprep.subr.bf16.mxu1 %v2706_v44 }
 0x25e   : > { %2492 = vmatpush3.bf16.msra.mxu1 %v2689_v2 }
 0x25f   : > { %2517 = vmatprep.subr.bf16.mxu1 %v2706_v44 }
 0x2ba   : > { %v1201_v3 = vpop.f32.mrb[8].mxu0 }
 0x2bb   : > { %v1203_v4 = vpop.f32.mrb[9].mxu0 }
 0x2bc   : > { %v1204_v5 = vpop.f32.mrb[10].mxu0 }
 0x2bd   : > { %v1205_v6 = vpop.f32.mrb[11].mxu0 }
 0x2c4   : > { %v1098_v7 = vpop.f32.mrb[4].mxu1 }
 0x2c5   : > { %v1202_v8 = vadd.f32 %v1201_v3, %v1098_v7  ;;  %v1100_v9 = vpop.f32.mrb[5].mxu1 }
 0x2c6   : > { %v1101_v10 = vpop.f32.mrb[6].mxu1 }
 0x2c7   : > { %v1102_v11 = vpop.f32.mrb[7].mxu1 }
 0x2e2   : > { %v1500_v12 = vpop.f32.mrb[12].mxu0 }
 0x2e3   : > { %v1502_v13 = vpop.f32.mrb[13].mxu0 }
 0x2e4   : > { %v1503_v14 = vpop.f32.mrb[14].mxu0 }
 0x2e5   : > { %v1504_v15 = vpop.f32.mrb[15].mxu0 }
 0x2ec   : > { %v1330_v16 = vpop.f32.mrb[8].mxu1 }
 0x2ed   : > { %v1336_v17 = vadd.f32 %v1330_v16, %v1202_v8  ;;  %v1332_v18 = vpop.f32.mrb[9].mxu1 }
 0x2ee   : > { %v1333_v19 = vpop.f32.mrb[10].mxu1 }
 0x2ef   : > { %v1334_v20 = vpop.f32.mrb[11].mxu1 }
 0x30a   : > { %v1745_v21 = vpop.f32.mrb[16].mxu0 }
 0x30b   : > { %v1747_v22 = vpop.f32.mrb[17].mxu0 }
 0x30c   : > { %v1748_v23 = vpop.f32.mrb[18].mxu0 }
 0x30d   : > { %v1749_v24 = vpop.f32.mrb[19].mxu0 }
 0x314   : > { %v1613_v25 = vpop.f32.mrb[12].mxu1 }
 0x315   : > { %v1614_v26 = vadd.f32 %v1613_v25, %v1500_v12  ;;  %v1615_v27 = vpop.f32.mrb[13].mxu1 }
 0x316   : > { %v1616_v28 = vpop.f32.mrb[14].mxu1 }
 0x317   : > { %v1751_v29 = vadd.f32 %v1745_v21, %v1614_v26  ;;  %v1617_v30 = vpop.f32.mrb[15].mxu1 }
 0x319   : > { %v1752_v32 = vadd.f32 %v1751_v29, %v1336_v17 }
 0x31b   : > { %v1760_v33 = vadd.f32 %v2389_v31, %v1752_v32 }
 0x31d   : > { %v1761_v34 = vmax.f32 %v1760_v33, 0.0 }
 0x31f   : > { %v1762_v35 = vpack.c.bf16 %v1761_v34, %v1761_v34 }
 0x321   : > { %2514 = vmatmul.mubr.bf16.vlgmr.msra.gmra.mrb[20].mxu0 %v1762_v35  ;;  %v1799_v36 = vshll.u32 %v1762_v35, 16  ;;  %v1797_v37 = vshrl.u32 %v1762_v35, 16  ;;  %v1998_v49 = vrot.slane %v1762_v35, 1 }
 0x323   : > { %v1801_v38 = vrot.slane %v1799_v36, 1 }
 0x325   : > { %v1802_v40 = vor.u32 %v1801_v38, %v1797_v37 }
 0x327   : > { %2494 = vmatmul.mubr.bf16.vlgmr.msra.gmra.mrb[16].mxu1 %v1802_v40 }
 0x328   : > { %2518 = vmatpush3.bf16.msra.mxu1 %v2690_v39  ;;  %2533 = vmatprep.mubr.msk.bf16.mxu1 %vm2709_vm4, %v2706_v44 }
 0x329   : > { %2519 = vmatprep.subr.bf16.mxu1 %v2706_v44 }
 0x32c   : > { %2520 = vmatpush3.bf16.msra.mxu1 %v2691_v41 }
 0x32d   : > { %2521 = vmatprep.subr.bf16.mxu1 %v2706_v44 }
 0x330   : > { %2522 = vmatpush3.bf16.msra.mxu1 %v2692_v42 }
 0x331   : > { %2523 = vmatprep.subr.bf16.mxu1 %v2706_v44 }
 0x334   : > { %2524 = vmatpush3.bf16.msra.mxu1 %v2693_v43 }
 0x335   : > { %2525 = vmatprep.subr.bf16.mxu1 %v2706_v44 }
 0x338   : > { %2526 = vmatpush3.bf16.msra.mxu1 %v2694_v45 }
 0x339   : > { %2527 = vmatprep.subr.bf16.mxu1 %v2706_v44 }
 0x33c   : > { %2528 = vmatpush3.bf16.msra.mxu1 %v2695_v46 }
 0x33d   : > { %2529 = vmatprep.subr.bf16.mxu1 %v2706_v44 }
 0x340   : > { %2530 = vmatpush3.bf16.msra.mxu1 %v2696_v47 }
 0x341   : > { %2531 = vmatprep.subr.bf16.mxu1 %v2706_v44 }
 0x344   : > { %2532 = vmatpush3.bf16.msra.mxu1 %v2697_v48 }
 0x347   : > { %2534 = vmatmul.mubr.bf16.vlgmr.msra.gmra.mrb[20].mxu1 %v1998_v49 }
 0x3f4   : > { %v1974_v51 = vpop.f32.mrb[20].mxu0 }
 0x3f5   : > { %v2515_v52 = vpop.f32.mrb[21].mxu0 }
 0x3f6   : > { %v1977_v53 = vpop.f32.mrb[22].mxu0 }
 0x3f7   : > { %v2516_v50 = vpop.f32.mrb[23].mxu0 }
 0x3fa   : > { %v1886_v54 = vpop.f32.mrb[16].mxu1 }
 0x3fb   : > { %v1975_v55 = vadd.f32 %v1974_v51, %v1886_v54  ;;  %v2495_v56 = vpop.f32.mrb[17].mxu1 }
 0x3fc   : > { %v1889_v57 = vpop.f32.mrb[18].mxu1 }
 0x3fd   : > { %v2496_v58 = vpop.f32.mrb[19].mxu1 }
 0x41a   : > { %v2082_v59 = vpop.f32.mrb[20].mxu1 }
 0x41b   : > { %v2088_v61 = vadd.f32 %v2082_v59, %v1975_v55  ;;  %v2535_v44 = vpop.f32.mrb[21].mxu1 }
 0x41c   : > { %v2085_v62 = vpop.f32.mrb[22].mxu1 }
 0x41d   : > { %v2096_v63 = vadd.f32 %v2446_v60, %v2088_v61  ;;  %v2536_v0 = vpop.f32.mrb[23].mxu1 }
 0x41f   : > { %2098 = vst.msk [vmem:[%s404_s21] sm:$0x3f] %vm2097_vm5, %v2096_v63 }
 0x420 PF: > { %s21_s17 = sadd.s32 1, %s2704_s17  }
 0x421   : > { %p18_p4 = scmp.ge.s32.totalorder %s21_s17, 4  }
 0x423   :  { %20 = sbr.rel (!%p18_p4) target bundleno = 1 (0x1), region = 104 }

// kernel: tile.86
= control target key start
LH: loop header
LB: loop body
LE: loop exit
PB: predicated region body
PF: predicated region fallthrough
CT: control target
= control target key end

     0   :  { %s28_s0 = inlined_call_operand.vmem [shape: f32[8], index: 0, kind: input, shape index: {}]   ;;  %s29_s1 = inlined_call_operand.vmem [shape: f32[12,8], index: 1, kind: output, shape index: {}]  }
   0x1   :  { %v4_v0 = vld [vmem:[%s28_s0] ss:$0 sm:$0xff] }
   0x2   :  { %5 = vst [vmem:[%s29_s1] sm:$0xff] %v4_v0  ;;  %8 = vst [vmem:[%s29_s1 + $0x8] sm:$0xff] %v4_v0 }

// kernel: tile.87
= control target key start
LH: loop header
LB: loop body
LE: loop exit
PB: predicated region body
PF: predicated region fallthrough
CT: control target
= control target key end

     0   :  { %s99_s10 = smov 88   ;;  %s100_s11 = smov 72   ;;  %vm3_vm0 = vcmask 64512   ;;  %vm9_vm1 = vcmask 786112   ;;  %vm15_vm2 = vcmask 720512   ;;  %vm21_vm3 = vcmask 654912   ;;  %s159_s0 = inlined_call_operand.vmem [shape: f32[12,8], index: 0, kind: input, shape index: {}]   ;;  %s160_s1 = inlined_call_operand.vmem [shape: f32[1,96], index: 1, kind: output, shape index: {}]  }
   0x1   :  { %v77_v0 = vld [vmem:[%s159_s0 + $0xb] sm:$0x1]   ;;  %v79_v1 = vld [vmem:[%s159_s0 + $0x9] sm:$0x1]   ;;  %v78_v2 = vld [vmem:[%s159_s0 + $0xa] sm:$0x1]  }
   0x2   :  { %7 = vrot.lane.b32.xlu0 %v77_v0, %s99_s10  ;;  %19 = vrot.lane.b32.xlu1 %v79_v1, %s100_s11  ;;  %v80_v3 = vld [vmem:[%s159_s0 + $0x8] sm:$0x1]   ;;  %s101_s16 = smov 80   ;;  %s102_s17 = smov 64   ;;  %v81_v4 = vld [vmem:[%s159_s0 + $0x7] sm:$0x1]  }
   0x3   :  { %v2_v5 = vld [vmem:[%s159_s0] sm:$0x1]   ;;  %v82_v6 = vld [vmem:[%s159_s0 + $0x6] sm:$0x1]   ;;  %s103_s24 = smov 56   ;;  %s104_s25 = smov 48  }
   0x4   :  { %4 = vst.msk [vmem:[#allocation0] sm:$0x1] %vm3_vm0, %v2_v5   ;;  %v83_v7 = vld [vmem:[%s159_s0 + $0x5] sm:$0x1]   ;;  %v84_v8 = vld [vmem:[%s159_s0 + $0x4] sm:$0x1]  }
   0x5   :  { %s105_s30 = smov 40   ;;  %s106_s2 = smov 32   ;;  %v85_v9 = vld [vmem:[%s159_s0 + $0x3] sm:$0x1]   ;;  %v86_v10 = vld [vmem:[%s159_s0 + $0x2] sm:$0x1]  }
   0x6   :  { %13 = vrot.lane.b32.xlu0 %v78_v2, %s101_s16  ;;  %25 = vrot.lane.b32.xlu1 %v80_v3, %s102_s17  ;;  %s107_s7 = smov 24   ;;  %s108_s8 = smov 16   ;;  %v87_v11 = vld [vmem:[%s159_s0 + $0x1] sm:$0x1]   ;;  %vm27_vm4 = vcmask 589312   ;;  %vm33_vm5 = vcmask 523712  }
   0x7   :  { %s109_s0 = smov 8   ;;  %vm39_vm6 = vcmask 458112   ;;  %vm45_vm7 = vcmask 392512   ;;  %vm51_vm8 = vcmask 326912   ;;  %vm57_vm9 = vcmask 261312  }
   0x8   :  { %vm63_vm10 = vcmask 195712   ;;  %vm69_vm11 = vcmask 130112  }
   0xa   :  { %31 = vrot.lane.b32.xlu0 %v81_v4, %s103_s24  ;;  %37 = vrot.lane.b32.xlu1 %v82_v6, %s104_s25 }
   0xe   :  { %43 = vrot.lane.b32.xlu0 %v83_v7, %s105_s30  ;;  %49 = vrot.lane.b32.xlu1 %v84_v8, %s106_s2 }
  0x12   :  { %55 = vrot.lane.b32.xlu0 %v85_v9, %s107_s7  ;;  %61 = vrot.lane.b32.xlu1 %v86_v10, %s108_s8 }
  0x16   :  { %67 = vrot.lane.b32.xlu0 %v87_v11, %s109_s0 }
  0x74   :  { %v8_v12 = vpop.permute.xlu0 %7   ;;  %v20_v13 = vpop.permute.xlu1 %19  }
  0x75   :  { %10 = vst.msk [vmem:[#allocation0] sm:$0x1] %vm9_vm1, %v8_v12  }
  0x78   :  { %v14_v14 = vpop.permute.xlu0 %13   ;;  %v26_v15 = vpop.permute.xlu1 %25  }
  0x79   :  { %16 = vst.msk [vmem:[#allocation0] sm:$0x1] %vm15_vm2, %v14_v14  }
  0x7a   :  { %22 = vst.msk [vmem:[#allocation0] sm:$0x1] %vm21_vm3, %v20_v13  }
  0x7b   :  { %28 = vst.msk [vmem:[#allocation0] sm:$0x1] %vm27_vm4, %v26_v15  }
  0x7c   :  { %v32_v16 = vpop.permute.xlu0 %31   ;;  %v38_v17 = vpop.permute.xlu1 %37  }
  0x7d   :  { %34 = vst.msk [vmem:[#allocation0] sm:$0x1] %vm33_vm5, %v32_v16  }
  0x7e   :  { %40 = vst.msk [vmem:[#allocation0] sm:$0x1] %vm39_vm6, %v38_v17  }
  0x80   :  { %v44_v18 = vpop.permute.xlu0 %43   ;;  %v50_v19 = vpop.permute.xlu1 %49  }
  0x81   :  { %46 = vst.msk [vmem:[#allocation0] sm:$0x1] %vm45_vm7, %v44_v18  }
  0x82   :  { %52 = vst.msk [vmem:[#allocation0] sm:$0x1] %vm51_vm8, %v50_v19  }
  0x84   :  { %v56_v20 = vpop.permute.xlu0 %55   ;;  %v62_v21 = vpop.permute.xlu1 %61  }
  0x85   :  { %58 = vst.msk [vmem:[#allocation0] sm:$0x1] %vm57_vm9, %v56_v20  }
  0x86   :  { %64 = vst.msk [vmem:[#allocation0] sm:$0x1] %vm63_vm10, %v62_v21  }
  0x88   :  { %v68_v22 = vpop.permute.xlu0 %67  }
  0x89   :  { %70 = vst.msk [vmem:[#allocation0] sm:$0x1] %vm69_vm11, %v68_v22  }
  0x90   :  { %v74_v23 = vld [vmem:[#allocation0] sm:$0x1] }
  0x91   :  { %76 = vst [vmem:[%s160_s1] sm:$0x1] %v74_v23 }

// kernel: tile.90
= control target key start
LH: loop header
LB: loop body
LE: loop exit
PB: predicated region body
PF: predicated region fallthrough
CT: control target
= control target key end

     0   :  { %s28_s0 = inlined_call_operand.vmem [shape: f32[8], index: 0, kind: input, shape index: {}]   ;;  %s29_s1 = inlined_call_operand.vmem [shape: f32[10,8], index: 1, kind: output, shape index: {}]  }
   0x1   :  { %v4_v0 = vld [vmem:[%s28_s0] ss:$0 sm:$0xff] }
   0x2   :  { %5 = vst [vmem:[%s29_s1] sm:$0xff] %v4_v0  ;;  %8 = vst [vmem:[%s29_s1 + $0x8] sm:$0xff] %v4_v0 }

// kernel: tile.91
= control target key start
LH: loop header
LB: loop body
LE: loop exit
PB: predicated region body
PF: predicated region fallthrough
CT: control target
= control target key end

     0   :  { %s83_s10 = smov 72   ;;  %s84_s11 = smov 56   ;;  %vm3_vm0 = vcmask 64512   ;;  %vm9_vm1 = vcmask 654912   ;;  %vm15_vm2 = vcmask 589312   ;;  %vm21_vm3 = vcmask 523712   ;;  %s135_s0 = inlined_call_operand.vmem [shape: f32[10,8], index: 0, kind: input, shape index: {}]   ;;  %s136_s1 = inlined_call_operand.vmem [shape: f32[1,80], index: 1, kind: output, shape index: {}]  }
   0x1   :  { %v65_v0 = vld [vmem:[%s135_s0 + $0x9] sm:$0x1]   ;;  %v67_v1 = vld [vmem:[%s135_s0 + $0x7] sm:$0x1]   ;;  %v66_v2 = vld [vmem:[%s135_s0 + $0x8] sm:$0x1]  }
   0x2   :  { %7 = vrot.lane.b32.xlu0 %v65_v0, %s83_s10  ;;  %19 = vrot.lane.b32.xlu1 %v67_v1, %s84_s11  ;;  %v68_v3 = vld [vmem:[%s135_s0 + $0x6] sm:$0x1]   ;;  %v2_v4 = vld [vmem:[%s135_s0] sm:$0x1]   ;;  %s85_s18 = smov 64   ;;  %s86_s19 = smov 48  }
   0x3   :  { %v69_v5 = vld [vmem:[%s135_s0 + $0x5] sm:$0x1]   ;;  %v70_v6 = vld [vmem:[%s135_s0 + $0x4] sm:$0x1]   ;;  %4 = vst.msk [vmem:[#allocation0] sm:$0x1] %vm3_vm0, %v2_v4  }
   0x4   :  { %s87_s24 = smov 40   ;;  %s88_s25 = smov 32   ;;  %v71_v7 = vld [vmem:[%s135_s0 + $0x3] sm:$0x1]   ;;  %v72_v8 = vld [vmem:[%s135_s0 + $0x2] sm:$0x1]  }
   0x5   :  { %s89_s30 = smov 24   ;;  %s90_s2 = smov 16   ;;  %v73_v9 = vld [vmem:[%s135_s0 + $0x1] sm:$0x1]   ;;  %vm27_vm4 = vcmask 458112   ;;  %vm33_vm5 = vcmask 392512  }
   0x6   :  { %13 = vrot.lane.b32.xlu0 %v66_v2, %s85_s18  ;;  %25 = vrot.lane.b32.xlu1 %v68_v3, %s86_s19  ;;  %s91_s0 = smov 8   ;;  %vm39_vm6 = vcmask 326912   ;;  %vm45_vm7 = vcmask 261312   ;;  %vm51_vm8 = vcmask 195712   ;;  %vm57_vm9 = vcmask 130112  }
   0xa   :  { %31 = vrot.lane.b32.xlu0 %v69_v5, %s87_s24  ;;  %37 = vrot.lane.b32.xlu1 %v70_v6, %s88_s25 }
   0xe   :  { %43 = vrot.lane.b32.xlu0 %v71_v7, %s89_s30  ;;  %49 = vrot.lane.b32.xlu1 %v72_v8, %s90_s2 }
  0x12   :  { %55 = vrot.lane.b32.xlu0 %v73_v9, %s91_s0 }
  0x74   :  { %v8_v10 = vpop.permute.xlu0 %7   ;;  %v20_v11 = vpop.permute.xlu1 %19  }
  0x75   :  { %10 = vst.msk [vmem:[#allocation0] sm:$0x1] %vm9_vm1, %v8_v10  }
  0x78   :  { %v14_v12 = vpop.permute.xlu0 %13   ;;  %v26_v13 = vpop.permute.xlu1 %25  }
  0x79   :  { %16 = vst.msk [vmem:[#allocation0] sm:$0x1] %vm15_vm2, %v14_v12  }
  0x7a   :  { %22 = vst.msk [vmem:[#allocation0] sm:$0x1] %vm21_vm3, %v20_v11  }
  0x7b   :  { %28 = vst.msk [vmem:[#allocation0] sm:$0x1] %vm27_vm4, %v26_v13  }
  0x7c   :  { %v32_v14 = vpop.permute.xlu0 %31   ;;  %v38_v15 = vpop.permute.xlu1 %37  }
  0x7d   :  { %34 = vst.msk [vmem:[#allocation0] sm:$0x1] %vm33_vm5, %v32_v14  }
  0x7e   :  { %40 = vst.msk [vmem:[#allocation0] sm:$0x1] %vm39_vm6, %v38_v15  }
  0x80   :  { %v44_v16 = vpop.permute.xlu0 %43   ;;  %v50_v17 = vpop.permute.xlu1 %49  }
  0x81   :  { %46 = vst.msk [vmem:[#allocation0] sm:$0x1] %vm45_vm7, %v44_v16  }
  0x82   :  { %52 = vst.msk [vmem:[#allocation0] sm:$0x1] %vm51_vm8, %v50_v17  }
  0x84   :  { %v56_v18 = vpop.permute.xlu0 %55  }
  0x85   :  { %58 = vst.msk [vmem:[#allocation0] sm:$0x1] %vm57_vm9, %v56_v18  }
  0x8c   :  { %v62_v19 = vld [vmem:[#allocation0] sm:$0x1] }
  0x8d   :  { %64 = vst [vmem:[%s136_s1] sm:$0x1] %v62_v19 }

// kernel: tile.94
= control target key start
LH: loop header
LB: loop body
LE: loop exit
PB: predicated region body
PF: predicated region fallthrough
CT: control target
= control target key end

     0   :  { %s22_s0 = inlined_call_operand.vmem [shape: f32[8], index: 0, kind: input, shape index: {}]   ;;  %s23_s1 = inlined_call_operand.vmem [shape: f32[8,8], index: 1, kind: output, shape index: {}]  }
   0x1   :  { %v4_v0 = vld [vmem:[%s22_s0] ss:$0 sm:$0xff] }
   0x2   :  { %5 = vst [vmem:[%s23_s1] sm:$0xff] %v4_v0 }

// kernel: tile.95
= control target key start
LH: loop header
LB: loop body
LE: loop exit
PB: predicated region body
PF: predicated region fallthrough
CT: control target
= control target key end

     0   :  { %s67_s10 = smov 56   ;;  %s68_s11 = smov 40   ;;  %vm3_vm0 = vcmask 64512   ;;  %vm9_vm1 = vcmask 523712   ;;  %vm15_vm2 = vcmask 458112   ;;  %vm21_vm3 = vcmask 392512   ;;  %s111_s0 = inlined_call_operand.vmem [shape: f32[8,8], index: 0, kind: input, shape index: {}]   ;;  %s112_s1 = inlined_call_operand.vmem [shape: f32[1,64], index: 1, kind: output, shape index: {}]  }
   0x1   :  { %v53_v0 = vld [vmem:[%s111_s0 + $0x7] sm:$0x1]   ;;  %v55_v1 = vld [vmem:[%s111_s0 + $0x5] sm:$0x1]   ;;  %v54_v2 = vld [vmem:[%s111_s0 + $0x6] sm:$0x1]  }
   0x2   :  { %7 = vrot.lane.b32.xlu0 %v53_v0, %s67_s10  ;;  %19 = vrot.lane.b32.xlu1 %v55_v1, %s68_s11  ;;  %v56_v3 = vld [vmem:[%s111_s0 + $0x4] sm:$0x1]   ;;  %v2_v4 = vld [vmem:[%s111_s0] sm:$0x1]   ;;  %s69_s18 = smov 48   ;;  %s70_s19 = smov 32  }
   0x3   :  { %4 = vst.msk [vmem:[#allocation0] sm:$0x1] %vm3_vm0, %v2_v4   ;;  %v57_v5 = vld [vmem:[%s111_s0 + $0x3] sm:$0x1]   ;;  %v58_v6 = vld [vmem:[%s111_s0 + $0x2] sm:$0x1]  }
   0x4   :  { %s71_s24 = smov 24   ;;  %s72_s25 = smov 16   ;;  %v59_v7 = vld [vmem:[%s111_s0 + $0x1] sm:$0x1]   ;;  %vm27_vm4 = vcmask 326912   ;;  %vm33_vm5 = vcmask 261312  }
   0x5   :  { %s73_s0 = smov 8   ;;  %vm39_vm6 = vcmask 195712   ;;  %vm45_vm7 = vcmask 130112  }
   0x6   :  { %13 = vrot.lane.b32.xlu0 %v54_v2, %s69_s18  ;;  %25 = vrot.lane.b32.xlu1 %v56_v3, %s70_s19 }
   0xa   :  { %31 = vrot.lane.b32.xlu0 %v57_v5, %s71_s24  ;;  %37 = vrot.lane.b32.xlu1 %v58_v6, %s72_s25 }
   0xe   :  { %43 = vrot.lane.b32.xlu0 %v59_v7, %s73_s0 }
  0x74   :  { %v8_v8 = vpop.permute.xlu0 %7   ;;  %v20_v9 = vpop.permute.xlu1 %19  }
  0x75   :  { %10 = vst.msk [vmem:[#allocation0] sm:$0x1] %vm9_vm1, %v8_v8  }
  0x78   :  { %v14_v10 = vpop.permute.xlu0 %13   ;;  %v26_v11 = vpop.permute.xlu1 %25  }
  0x79   :  { %16 = vst.msk [vmem:[#allocation0] sm:$0x1] %vm15_vm2, %v14_v10  }
  0x7a   :  { %22 = vst.msk [vmem:[#allocation0] sm:$0x1] %vm21_vm3, %v20_v9  }
  0x7b   :  { %28 = vst.msk [vmem:[#allocation0] sm:$0x1] %vm27_vm4, %v26_v11  }
  0x7c   :  { %v32_v12 = vpop.permute.xlu0 %31   ;;  %v38_v13 = vpop.permute.xlu1 %37  }
  0x7d   :  { %34 = vst.msk [vmem:[#allocation0] sm:$0x1] %vm33_vm5, %v32_v12  }
  0x7e   :  { %40 = vst.msk [vmem:[#allocation0] sm:$0x1] %vm39_vm6, %v38_v13  }
  0x80   :  { %v44_v14 = vpop.permute.xlu0 %43  }
  0x81   :  { %46 = vst.msk [vmem:[#allocation0] sm:$0x1] %vm45_vm7, %v44_v14  }
  0x88   :  { %v50_v15 = vld [vmem:[#allocation0] sm:$0x1] }
  0x89   :  { %52 = vst [vmem:[%s112_s1] sm:$0x1] %v50_v15 }

// kernel: _lambda_.9
= control target key start
LH: loop header
LB: loop body
LE: loop exit
PB: predicated region body
PF: predicated region fallthrough
CT: control target
= control target key end

     0   :  { %18 = vsyncpa [#allocation3], 0  ;;  %s3014_s0 = inlined_call_operand.vmem [shape: f32[2,6,96], index: 0, kind: input, shape index: {}]   ;;  %s3015_s1 = inlined_call_operand.vmem [shape: f32[2,44,352], index: 1, kind: input, shape index: {}]   ;;  %s3016_s2 = inlined_call_operand.vmem [shape: f32[12,6], index: 2, kind: input, shape index: {}]   ;;  %s3017_s3 = inlined_call_operand.vmem [shape: f32[12,6], index: 3, kind: input, shape index: {}]   ;;  %s3018_s4 = inlined_call_operand.vmem [shape: bf16[2,96,96], index: 4, kind: input, shape index: {}]   ;;  %s3019_s5 = inlined_call_operand.vmem [shape: f32[1,96], index: 5, kind: input, shape index: {}]   ;;  %s3020_s6 = inlined_call_operand.vmem [shape: bf16[3,96,80], index: 6, kind: input, shape index: {}]   ;;  %s3021_s7 = inlined_call_operand.vmem [shape: bf16[3,96,80], index: 7, kind: input, shape index: {}]   ;;  %s3022_s8 = inlined_call_operand.vmem [shape: f32[1,80], index: 8, kind: input, shape index: {}]   ;;  %s3023_s9 = inlined_call_operand.vmem [shape: bf16[3,80,64], index: 9, kind: input, shape index: {}]   ;;  %s3024_s10 = inlined_call_operand.vmem [shape: f32[1,64], index: 10, kind: input, shape index: {}]   ;;  %s3025_s11 = inlined_call_operand.vmem [shape: bf16[64,8], index: 11, kind: input, shape index: {}]   ;;  %s3026_s12 = inlined_call_operand.vmem [shape: f32[1,8], index: 12, kind: input, shape index: {}]   ;;  %s3027_s13 = inlined_call_operand.hbm [shape: f32[2,8,8], index: 13, kind: output, shape index: {}]  }
   0x1   :  { %20 = vsyncpa [#allocation3 + $0x1], 0  ;;  %s2564_s25 = smov 0   ;;  %s2566_s26 = smov 0  }
   0x2   :  { %s2568_s27 = smov 0   ;;  %s2570_s28 = smov 0  }
   0x3 LB: > { %3031 = sst [smem:[#allocation5_spill]] %s2485_s27  ;;  %s2585_s29 = sadd.s32 4294967295, %s2489_s28   ;;  %s2489_s28 = sphi %s2570_s28, %s3036_s28   ;;  %s2485_s27 = sphi %s2568_s27, %s3038_s27   ;;  %s2481_s26 = sphi %s2566_s26, %s3040_s26   ;;  %s2477_s25 = sphi %s2564_s25, %s3039_s25  }
   0x4   : > { %s1859_s30 = sadd.s32 4294967294, %s2489_s28   ;;  %s2589_s14 = sadd.s32 1, %s2489_s28  }
   0x5   : > { %3032 = sst [smem:[#allocation6_spill]] %s2589_s14  ;;  %s316_s15 = sadd.s32 1, %s2485_s27 }
   0x6   : > { %s313_s16 = ssub.s32 %s2489_s28, %s2589_s14  ;;  %p326_p0 = scmp.ne.s32.totalorder %s2485_s27, %s2481_s26 }
   0x7   : > { %p314_p1 = scmp.eq.s32.totalorder %s313_s16, 0  ;;  %p327_p2 = scmp.eq.s32.totalorder %s2585_s29, 1 }
   0x8   : > { %p332_p3 = scmp.ne.s32.totalorder %s2481_s26, %s2477_s25  ;;  %p333_p4 = scmp.eq.s32.totalorder %s1859_s30, 1 }
   0x9   : > { %s2600_s17 = scalar_select %p314_p1, %s2485_s27, %s316_s15  }
   0xa   : > { %p2602_p5 = por %p327_p2, %p326_p0  ;;  %p2606_p6 = por %p333_p4, %p332_p3 }
   0xb   : > { %3033 = sst [smem:[#allocation7_spill]] %s2600_s17  ;;  %p1862_p7 = scmp.ge.s32.totalorder %s2489_s28, 1 }
   0xc   : > { %p399_p8 = scmp.lt.s32.totalorder %s2489_s28, 3 }
   0xe   : > { %p400_p9 = pnand %p1862_p7, %p399_p8 }
   0xf   : > { %v2360_v0 = vld [vmem:[%s3018_s4 + $0x30] sm:$0xff] (!%p400_p9)   ;;  %v2491_v1 = vmov (!%p400_p9), 0.0   ;;  %v2361_v2 = vld [vmem:[%s3018_s4 + $0x38] sm:$0xff] (!%p400_p9)   ;;  %v2362_v3 = vld [vmem:[%s3018_s4] sm:$0xff] (!%p400_p9)   ;;  %vm2492_vm0 = vmmov (!%p400_p9), 0   ;;  %p447_p10 = scmp.lt.s32.totalorder (!%p400_p9), %s2585_s29, 1 }
  0x10   : > { %403 = sbr.rel (%p400_p9) target bundleno = 1231 (0x4cf), region = 72  ;;  %2140 = vmatprep.subr.bf16.mxu1 (!%p400_p9), %v2491_v1  ;;  %2124 = vmatprep.subr.bf16.mxu0 (!%p400_p9), %v2491_v1  ;;  %v2364_v4 = vld [vmem:[%s3018_s4 + $0x8] sm:$0xff] (!%p400_p9)   ;;  %v2363_v5 = vld [vmem:[%s3018_s4 + $0x40] sm:$0xff] (!%p400_p9)   ;;  %v2366_v6 = vld [vmem:[%s3018_s4 + $0x10] sm:$0xff] (!%p400_p9)   ;;  %vm507_vm1 = vcmask (!%p400_p9), 785408   ;;  %vm644_vm2 = vcmask (!%p400_p9), 48128  }
  0x11   : > { %2141 = vmatpush3.bf16.msra.mxu1 (!%p400_p9), %v2360_v0  ;;  %2152 = vmatprep.mubr.msk.bf16.mxu1 (!%p400_p9), %vm2492_vm0, %v2491_v1  ;;  %v2365_v7 = vld [vmem:[%s3018_s4 + $0x48] sm:$0xff] (!%p400_p9)   ;;  %v2367_v8 = vld [vmem:[%s3018_s4 + $0x50] sm:$0xff] (!%p400_p9)   ;;  %v2368_v9 = vld [vmem:[%s3018_s4 + $0x18] sm:$0xff] (!%p400_p9)   ;;  %vm651_vm3 = vcmask (!%p400_p9), 1045504   ;;  %vm1476_vm4 = vcmask (!%p400_p9), 654336   ;;  %vm1728_vm5 = vcmask (!%p400_p9), 523264  }
  0x12   : > { %2142 = vmatprep.subr.bf16.mxu1 (!%p400_p9), %v2491_v1  ;;  %2136 = vmatprep.mubr.msk.bf16.mxu0 (!%p400_p9), %vm2492_vm0, %v2491_v1  ;;  %v2370_v10 = vld [vmem:[%s3018_s4 + $0x20] sm:$0xff] (!%p400_p9)   ;;  %v2369_v11 = vld [vmem:[%s3018_s4 + $0x58] sm:$0xff] (!%p400_p9)   ;;  %v2371_v13 = vld [vmem:[%s3018_s4 + $0x28] sm:$0xff] (!%p400_p9)   ;;  %s2036_s24 = sshll.u32 (!%p400_p9), %s2585_s29, 7  ;;  %vm1772_vm6 = vcmask (!%p400_p9), 64512  }
  0x13   : > { %2125 = vmatpush3.bf16.msra.mxu0 (!%p400_p9), %v2362_v3  ;;  %v642_v15 = vld [vmem:[%s3017_s3] sm:$0xff] (!%p400_p9)  ;;  %v2374_v16 = vld [vmem:[%s3020_s6 + $0x30] sm:$0xff] (!%p400_p9)   ;;  %v2376_v17 = vld [vmem:[%s3020_s6 + $0x38] sm:$0xff] (!%p400_p9)   ;;  %s2972_s27 = scalar_lea.hbm (!%p400_p9), %s3027_s13, %s2036_s24 }
  0x14   : > { %2126 = vmatprep.subr.bf16.mxu0 (!%p400_p9), %v2491_v1  ;;  %v2378_v18 = vld [vmem:[%s3020_s6 + $0x40] sm:$0xff] (!%p400_p9)   ;;  %v643_v20 = vld [vmem:[%s3017_s3 + $0x8] sm:$0xf] (!%p400_p9)  ;;  %v2375_v32 = vld [vmem:[%s3020_s6 + $0x10] sm:$0xff] (!%p400_p9)  }
  0x15   : > { %2143 = vmatpush3.bf16.msra.mxu1 (!%p400_p9), %v2361_v2  ;;  %v640_v22 = vld [vmem:[%s3016_s2] sm:$0xff] (!%p400_p9)  ;;  %v641_v29 = vld [vmem:[%s3016_s2 + $0x8] sm:$0xf] (!%p400_p9)  ;;  %v2377_v33 = vld [vmem:[%s3020_s6 + $0x18] sm:$0xff] (!%p400_p9)  }
  0x16   : > { %2144 = vmatprep.subr.bf16.mxu1 (!%p400_p9), %v2491_v1  ;;  %v2372_v30 = vld [vmem:[%s3020_s6] sm:$0xff] (!%p400_p9)   ;;  %v2373_v31 = vld [vmem:[%s3020_s6 + $0x8] sm:$0xff] (!%p400_p9)   ;;  %v2382_v37 = vld [vmem:[%s3020_s6 + $0x50] sm:$0xff] (!%p400_p9)  }
  0x17   : > { %s2637_s22 = scalar_select %p447_p10, %s2585_s29, 1  ;;  %2127 = vmatpush3.bf16.msra.mxu0 %v2364_v4  ;;  %v2379_v34 = vld [vmem:[%s3020_s6 + $0x20] sm:$0xff]   ;;  %v2380_v35 = vld [vmem:[%s3020_s6 + $0x48] sm:$0xff]   ;;  %v2383_v38 = vld [vmem:[%s3020_s6 + $0x58] sm:$0xff]  }
  0x18   : > { %2128 = vmatprep.subr.bf16.mxu0 %v2491_v1  ;;  %v2381_v36 = vld [vmem:[%s3020_s6 + $0x28] sm:$0xff]   ;;  %v1898_v39 = vld [vmem:[%s3019_s5] ss:$0 sm:$0xff]  ;;  %v2385_v44 = vld [vmem:[%s3021_s7 + $0x30] sm:$0xff]  }
  0x19   : > { %2145 = vmatpush3.bf16.msra.mxu1 %v2363_v5  ;;  %s1864_s16 = sshll.u32 %s2637_s22, 3  ;;  %s2318_s20 = smul.u32 144, %s2637_s22  ;;  %v2387_v47 = vld [vmem:[%s3021_s7 + $0x38] sm:$0xff]   ;;  %v2384_v50 = vld [vmem:[%s3020_s6 + $0x60] sm:$0xff]   ;;  %v2386_v55 = vld [vmem:[%s3020_s6 + $0x68] sm:$0xff]  }
  0x1a   : > { %2146 = vmatprep.subr.bf16.mxu1 %v2491_v1  ;;  %s450_s14 = scalar_lea.vmem %s3014_s0, %s1864_s16  ;;  %v2389_v54 = vld [vmem:[%s3021_s7 + $0x40] sm:$0xff]   ;;  %v2391_v57 = vld [vmem:[%s3021_s7 + $0x48] sm:$0xff]   ;;  %v2388_v58 = vld [vmem:[%s3020_s6 + $0x70] sm:$0xff]  }
  0x1b   : > { %2129 = vmatpush3.bf16.msra.mxu0 %v2366_v6  ;;  %v457_v12 = vld [vmem:[%s450_s14] sm:$0x3f]  ;;  %s455_s16 = scalar_lea.vmem %s3015_s1, %s2318_s20  ;;  %v2393_v60 = vld [vmem:[%s3021_s7 + $0x50] sm:$0xff]   ;;  %v2390_v61 = vld [vmem:[%s3020_s6 + $0x78] sm:$0xff]   ;;  %s444_s14 = sand.u32 1, %s2481_s26  }
  0x1c   : > { %2130 = vmatprep.subr.bf16.mxu0 %v2491_v1  ;;  %v458_v14 = vpack.c.bf16 %v457_v12, %v457_v12  ;;  %v823_v52 = vld [vmem:[%s455_s16 + $0x38] sm:$0xff]  ;;  %v824_v53 = vld [vmem:[%s455_s16 + $0x50] sm:$0xf]  ;;  %v2392_v2 = vld [vmem:[%s3020_s6 + $0x80] sm:$0xff]   ;;  %s1863_s16 = sshll.u32 %s444_s14, 3  ;;  %s1775_s29 = scalar_lea.sflag [#allocation3], %s444_s14 }
  0x1d   : > { %2147 = vmatpush3.bf16.msra.mxu1 %v2365_v7  ;;  %v2779_v56 = vpack.c.bf16 %v824_v53, %v823_v52  ;;  %v2395_v0 = vld [vmem:[%s3021_s7 + $0x58] sm:$0xff]   ;;  %v2397_v4 = vld [vmem:[%s3021_s7 + $0x60] sm:$0xff]   ;;  %v2394_v5 = vld [vmem:[%s3020_s6 + $0x88] sm:$0xff]   ;;  %s446_s30 = scalar_lea.vmem [#allocation2], %s1863_s16  ;;  %s2493_s16 = smov [#allocation2]  }
  0x1e   : > { %2148 = vmatprep.subr.bf16.mxu1 %v2491_v1  ;;  %v2399_v6 = vld [vmem:[%s3021_s7 + $0x68] sm:$0xff]   ;;  %v2396_v7 = vld [vmem:[%s3021_s7] sm:$0xff]   ;;  %v2400_v12 = vld [vmem:[%s3021_s7 + $0x10] sm:$0xff]   ;;  %s1788_s15 = sshll.u32 %s446_s30, 4  ;;  %s2431_s22 = sshll.u32 %s2493_s16, 4  ;;  %s2974_s15 = int_to_ptr.vmem [resolvable:$true] %s1788_s15  ;;  %s2432_s22 = int_to_ptr.vmem [resolvable:$false] %s2431_s22 }
  0x1f   : > { %2131 = vmatpush3.bf16.msra.mxu0 %v2368_v9  ;;  %v1143_v59 = vshll.u32 %v2779_v56, 16  ;;  %v1141_v62 = vshrl.u32 %v2779_v56, 16  ;;  %v2401_v9 = vld [vmem:[%s3021_s7 + $0x70] sm:$0xff]   ;;  %s2427_s17 = scalar_lea.vmem %s2974_s15, 128  ;;  %s2433_s23 = scalar_lea.vmem %s2432_s22, 256 }
  0x20   : > { %2132 = vmatprep.subr.bf16.mxu0 %v2491_v1  ;;  %p2428_p11 = scmp.ne.s32.totalorder %s2974_s15, %s2427_s17  ;;  %p2434_p0 = scmp.lt.s32.totalorder %s2974_s15, %s2432_s22 }
  0x21   : > { %2149 = vmatpush3.bf16.msra.mxu1 %v2367_v8  ;;  %v1145_v63 = vrot.slane %v1143_v59, 1  ;;  %p2435_p1 = scmp.lt.s32.totalorder %s2433_s23, %s2427_s17 }
  0x22   : > { %2150 = vmatprep.subr.bf16.mxu1 %v2491_v1  ;;  %p2429_p12 = pnand %p2428_p11, %p2602_p5 }
  0x23   : > { %2133 = vmatpush3.bf16.msra.mxu0 %v2370_v10  ;;  %v1146_v3 = vor.u32 %v1145_v63, %v1141_v62  ;;  %v2398_v10 = vld [vmem:[%s3021_s7 + $0x8] sm:$0xff]   ;;  %p2436_p2 = por %p2435_p1, %p2434_p0 }
  0x24   : > { %2134 = vmatprep.subr.bf16.mxu0 %v2491_v1  ;;  %p2430_p13 = pneg %p2429_p12 }
  0x25   : > { %2151 = vmatpush3.bf16.msra.mxu1 %v2369_v11  ;;  %v2403_v11 = vld [vmem:[%s3021_s7 + $0x78] sm:$0xff]  }
  0x26   : > { %2166 = vmatprep.subr.bf16.mxu1 %v2491_v1  ;;  %p2437_p3 = pnand %p2436_p2, %p2430_p13 }
  0x27   : > { %2135 = vmatpush3.bf16.msra.mxu0 %v2371_v13  ;;  %v2405_v13 = vld [vmem:[%s3021_s7 + $0x80] sm:$0xff]  }
  0x28   : > { %2153 = vmatmul.mubr.msk.bf16.vlgmr.msra.gmra.mrb[0].mxu1 %vm507_vm1, %v458_v14 }
  0x29   : > { %2178 = vmatprep.mubr.msk.bf16.mxu1 %vm2492_vm0, %v2491_v1  ;;  %2167 = vmatpush3.bf16.msra.mxu1 %v2374_v16  ;;  %v2404_v16 = vld [vmem:[%s3021_s7 + $0x20] sm:$0xff]  }
  0x2a   : > { %2137 = vmatmul.mubr.msk.bf16.vlgmr.msra.gmra.mrb[0].mxu0 %vm507_vm1, %v458_v14  ;;  %2168 = vmatprep.subr.bf16.mxu1 %v2491_v1  ;;  %v2402_v14 = vld [vmem:[%s3021_s7 + $0x18] sm:$0xff]  }
  0x2b   : > { %2158 = vmatprep.mubr.msk.f32.mxu0 %vm644_vm2, %v642_v15  ;;  %v2407_v15 = vld [vmem:[%s3021_s7 + $0x88] sm:$0xff]  }
  0x2d   : > { %2169 = vmatpush3.bf16.msra.mxu1 %v2376_v17  ;;  %v1320_v17 = vrot.slane %v2779_v56, 1 }
  0x2e   : > { %2170 = vmatprep.subr.bf16.mxu1 %v2491_v1 }
  0x31   : > { %2171 = vmatpush3.bf16.msra.mxu1 %v2378_v18  ;;  %v2406_v18 = vld [vmem:[%s3021_s7 + $0x28] sm:$0xff]  }
  0x32   : > { %2172 = vmatprep.subr.bf16.mxu1 %v2491_v1 }
  0x35   : > { %2173 = vmatpush3.bf16.msra.mxu1 %v2380_v35 }
  0x36   : > { %2174 = vmatprep.subr.bf16.mxu1 %v2491_v1 }
  0x39   : > { %2175 = vmatpush3.bf16.msra.mxu1 %v2382_v37 }
  0x3a   : > { %2176 = vmatprep.subr.bf16.mxu1 %v2491_v1 }
  0x3d   : > { %2177 = vmatpush3.bf16.msra.mxu1 %v2383_v38 }
  0x3e   : > { %2198 = vmatprep.subr.bf16.mxu1 %v2491_v1 }
  0xfb   : > { %v634_v19 = vpop.f32.mrb[0].mxu1 }
  0xfc   : > { %v2154_v21 = vpop.f32.mrb[1].mxu1  ;;  %2156 = vmatprep.subr.msk.mxu0 %vm651_vm3, %v634_v19 }
  0xfd   : > { %v637_v23 = vpop.f32.mrb[2].mxu1  ;;  %2157 = vmatpush3.msk.msra.mxu0 %vm651_vm3, %v634_v19  ;;  %v545_v24 = vpop.f32.mrb[0].mxu0  ;;  %v2408_v19 = vld [vmem:[%s3023_s9] sm:$0xff]   ;;  %v2410_v21 = vld [vmem:[%s3023_s9 + $0x28] sm:$0xff]  }
  0xfe   : > { %v2155_v25 = vpop.f32.mrb[3].mxu1  ;;  %2159 = vmatmul.mubr.msk.f32.vlgmr.msra.gmra.mrb[4].mxu0 %vm644_vm2, %v643_v20  ;;  %v2138_v26 = vpop.f32.mrb[1].mxu0  ;;  %2161 = vmatprep.subr.msk.mxu0 %vm651_vm3, %v545_v24  ;;  %v2409_v20 = vld [vmem:[%s3023_s9 + $0x8] sm:$0xff]   ;;  %v2412_v23 = vld [vmem:[%s3023_s9 + $0x30] sm:$0xff]  }
  0xff   : > { %v548_v27 = vpop.f32.mrb[2].mxu0  ;;  %2162 = vmatpush3.msk.msra.mxu0 %vm651_vm3, %v545_v24  ;;  %2163 = vmatprep.mubr.msk.f32.mxu0 %vm644_vm2, %v640_v22  ;;  %v2411_v22 = vld [vmem:[%s3023_s9 + $0x10] sm:$0xff]   ;;  %v2413_v24 = vld [vmem:[%s3023_s9 + $0x18] sm:$0xff]   ;;  %v2415_v26 = vld [vmem:[%s3023_s9 + $0x20] sm:$0xff]  }
 0x100   : > { %v2139_v28 = vpop.f32.mrb[3].mxu0  ;;  %2182 = vmatprep.subr.bf16.mxu0 %v2491_v1  ;;  %v2414_v25 = vld [vmem:[%s3023_s9 + $0x38] sm:$0xff]   ;;  %v2416_v27 = vld [vmem:[%s3023_s9 + $0x40] sm:$0xff]  }
 0x101   : > { %v2417_v28 = vld [vmem:[%s3023_s9 + $0x48] sm:$0xff]  }
 0x106   : > { %2164 = vmatmul.mubr.msk.f32.vlgmr.msra.gmra.mrb[4].mxu0 %vm644_vm2, %v641_v29 }
 0x107   : > { %2183 = vmatpush3.bf16.msra.mxu0 %v2372_v30  ;;  %2194 = vmatprep.mubr.msk.bf16.mxu0 %vm2492_vm0, %v2491_v1 }
 0x108   : > { %2184 = vmatprep.subr.bf16.mxu0 %v2491_v1 }
 0x10b   : > { %2185 = vmatpush3.bf16.msra.mxu0 %v2373_v31 }
 0x10c   : > { %2186 = vmatprep.subr.bf16.mxu0 %v2491_v1 }
 0x10f   : > { %2187 = vmatpush3.bf16.msra.mxu0 %v2375_v32 }
 0x110   : > { %2188 = vmatprep.subr.bf16.mxu0 %v2491_v1 }
 0x113   : > { %2189 = vmatpush3.bf16.msra.mxu0 %v2377_v33 }
 0x114   : > { %2190 = vmatprep.subr.bf16.mxu0 %v2491_v1 }
 0x117   : > { %2191 = vmatpush3.bf16.msra.mxu0 %v2379_v34 }
 0x118   : > { %2192 = vmatprep.subr.bf16.mxu0 %v2491_v1 }
 0x11b   : > { %2193 = vmatpush3.bf16.msra.mxu0 %v2381_v36 }
 0x11c   : > { %2214 = vmatprep.subr.bf16.mxu0 %v2491_v1 }
 0x1d9   : > { %v2165_v40 = vpop.f32.mrb[4].mxu0 }
 0x1da   : > { %v822_v41 = vadd.f32 %v2165_v40, %v1898_v39  ;;  %v805_v42 = vpop.f32.mrb[5].mxu0 }
 0x1db   : > { %v821_v43 = vadd.f32 %v1898_v39, %v805_v42 }
 0x1dd   : > { %v2751_v45 = vpack.c.bf16 %v822_v41, %v821_v43 }
 0x1df   : > { %v854_v46 = vshll.u32 %v2751_v45, 16  ;;  %2195 = vmatmul.mubr.msk.bf16.vlgmr.msra.gmra.mrb[8].mxu0 %vm507_vm1, %v2751_v45  ;;  %v852_v48 = vshrl.u32 %v2751_v45, 16  ;;  %v1031_v8 = vrot.slane %v2751_v45, 1 }
 0x1e0   : > { %2215 = vmatpush3.bf16.msra.mxu0 %v2385_v44  ;;  %2226 = vmatprep.mubr.msk.bf16.mxu0 %vm2492_vm0, %v2491_v1 }
 0x1e1   : > { %v856_v49 = vrot.slane %v854_v46, 1  ;;  %2216 = vmatprep.subr.bf16.mxu0 %v2491_v1 }
 0x1e3   : > { %v857_v51 = vor.u32 %v856_v49, %v852_v48 }
 0x1e4   : > { %2217 = vmatpush3.bf16.msra.mxu0 %v2387_v47 }
 0x1e5   : > { %2179 = vmatmul.mubr.msk.bf16.vlgmr.msra.gmra.mrb[4].mxu1 %vm507_vm1, %v857_v51  ;;  %2218 = vmatprep.subr.bf16.mxu0 %v2491_v1 }
 0x1e6   : > { %2199 = vmatpush3.bf16.msra.mxu1 %v2384_v50  ;;  %2210 = vmatprep.mubr.msk.bf16.mxu1 %vm2492_vm0, %v2491_v1 }
 0x1e7   : > { %2200 = vmatprep.subr.bf16.mxu1 %v2491_v1 }
 0x1e8   : > { %2219 = vmatpush3.bf16.msra.mxu0 %v2389_v54 }
 0x1e9   : > { %2220 = vmatprep.subr.bf16.mxu0 %v2491_v1 }
 0x1ea   : > { %2201 = vmatpush3.bf16.msra.mxu1 %v2386_v55 }
 0x1eb   : > { %2202 = vmatprep.subr.bf16.mxu1 %v2491_v1 }
 0x1ec   : > { %2221 = vmatpush3.bf16.msra.mxu0 %v2391_v57 }
 0x1ed   : > { %2222 = vmatprep.subr.bf16.mxu0 %v2491_v1 }
 0x1ee   : > { %2203 = vmatpush3.bf16.msra.mxu1 %v2388_v58 }
 0x1ef   : > { %2204 = vmatprep.subr.bf16.mxu1 %v2491_v1 }
 0x1f0   : > { %2223 = vmatpush3.bf16.msra.mxu0 %v2393_v60  ;;  %v1989_v60 = vld [vmem:[%s3022_s8] ss:$0 sm:$0xff] }
 0x1f1   : > { %2224 = vmatprep.subr.bf16.mxu0 %v2491_v1 }
 0x1f2   : > { %2205 = vmatpush3.bf16.msra.mxu1 %v2390_v61 }
 0x1f3   : > { %2206 = vmatprep.subr.bf16.mxu1 %v2491_v1 }
 0x1f4   : > { %2225 = vmatpush3.bf16.msra.mxu0 %v2395_v0 }
 0x1f5   : > { %2246 = vmatprep.subr.bf16.mxu0 %v2491_v1 }
 0x1f6   : > { %2207 = vmatpush3.bf16.msra.mxu1 %v2392_v2 }
 0x1f7   : > { %2208 = vmatprep.subr.bf16.mxu1 %v2491_v1  ;;  %2227 = vmatmul.mubr.msk.bf16.vlgmr.msra.gmra.mrb[12].mxu0 %vm507_vm1, %v1146_v3 }
 0x1f8   : > { %2247 = vmatpush3.bf16.msra.mxu0 %v2397_v4  ;;  %2258 = vmatprep.mubr.msk.bf16.mxu0 %vm2492_vm0, %v2491_v1 }
 0x1f9   : > { %2248 = vmatprep.subr.bf16.mxu0 %v2491_v1 }
 0x1fa   : > { %2209 = vmatpush3.bf16.msra.mxu1 %v2394_v5 }
 0x1fb   : > { %2230 = vmatprep.subr.bf16.mxu1 %v2491_v1 }
 0x1fc   : > { %2249 = vmatpush3.bf16.msra.mxu0 %v2399_v6 }
 0x1fd   : > { %2211 = vmatmul.mubr.msk.bf16.vlgmr.msra.gmra.mrb[8].mxu1 %vm507_vm1, %v1031_v8  ;;  %2250 = vmatprep.subr.bf16.mxu0 %v2491_v1 }
 0x1fe   : > { %2231 = vmatpush3.bf16.msra.mxu1 %v2396_v7  ;;  %2242 = vmatprep.mubr.msk.bf16.mxu1 %vm2492_vm0, %v2491_v1 }
 0x1ff   : > { %2232 = vmatprep.subr.bf16.mxu1 %v2491_v1 }
 0x200   : > { %2251 = vmatpush3.bf16.msra.mxu0 %v2401_v9 }
 0x201   : > { %2252 = vmatprep.subr.bf16.mxu0 %v2491_v1 }
 0x202   : > { %2233 = vmatpush3.bf16.msra.mxu1 %v2398_v10  ;;  %v2418_v10 = vld [vmem:[%s3023_s9 + $0x50] sm:$0xff]  }
 0x203   : > { %2234 = vmatprep.subr.bf16.mxu1 %v2491_v1 }
 0x204   : > { %2253 = vmatpush3.bf16.msra.mxu0 %v2403_v11 }
 0x205   : > { %2254 = vmatprep.subr.bf16.mxu0 %v2491_v1 }
 0x206   : > { %2235 = vmatpush3.bf16.msra.mxu1 %v2400_v12  ;;  %v2419_v12 = vld [vmem:[%s3023_s9 + $0x58] sm:$0xff]  }
 0x207   : > { %2236 = vmatprep.subr.bf16.mxu1 %v2491_v1 }
 0x208   : > { %2255 = vmatpush3.bf16.msra.mxu0 %v2405_v13  ;;  %v2420_v13 = vld [vmem:[%s3023_s9 + $0x60] sm:$0xff]  }
 0x209   : > { %2256 = vmatprep.subr.bf16.mxu0 %v2491_v1 }
 0x20a   : > { %2237 = vmatpush3.bf16.msra.mxu1 %v2402_v14  ;;  %v2421_v14 = vld [vmem:[%s3023_s9 + $0x68] sm:$0xff]  }
 0x20b   : > { %2238 = vmatprep.subr.bf16.mxu1 %v2491_v1 }
 0x20c   : > { %2257 = vmatpush3.bf16.msra.mxu0 %v2407_v15  ;;  %v2422_v15 = vld [vmem:[%s3023_s9 + $0x70] sm:$0xff]  }
 0x20d   : > { %2276 = vmatprep.subr.bf16.mxu0 %v2491_v1 }
 0x20e   : > { %2239 = vmatpush3.bf16.msra.mxu1 %v2404_v16 }
 0x20f   : > { %2240 = vmatprep.subr.bf16.mxu1 %v2491_v1  ;;  %2259 = vmatmul.mubr.msk.bf16.vlgmr.msra.gmra.mrb[16].mxu0 %vm507_vm1, %v1320_v17  ;;  %v2423_v17 = vld [vmem:[%s3025_s11] sm:$0xff]  }
 0x210   : > { %2286 = vmatprep.mubr.msk.bf16.mxu0 %vm2492_vm0, %v2491_v1  ;;  %2277 = vmatpush3.bf16.msra.mxu0 %v2408_v19  ;;  %v2425_v19 = vld [vmem:[%s3025_s11 + $0x10] sm:$0xff]  }
 0x211   : > { %2278 = vmatprep.subr.bf16.mxu0 %v2491_v1 }
 0x212   : > { %2241 = vmatpush3.bf16.msra.mxu1 %v2406_v18  ;;  %v2424_v18 = vld [vmem:[%s3025_s11 + $0x8] sm:$0xff]  }
 0x213   : > { %2262 = vmatprep.subr.bf16.mxu1 %v2491_v1 }
 0x214   : > { %2279 = vmatpush3.bf16.msra.mxu0 %v2409_v20  ;;  %v2426_v20 = vld [vmem:[%s3025_s11 + $0x18] sm:$0xff]  }
 0x215   : > { %2243 = vmatmul.mubr.msk.bf16.vlgmr.msra.gmra.mrb[12].mxu1 %vm507_vm1, %v2779_v56  ;;  %2280 = vmatprep.subr.bf16.mxu0 %v2491_v1 }
 0x216   : > { %2272 = vmatprep.mubr.msk.bf16.mxu1 %vm2492_vm0, %v2491_v1  ;;  %2263 = vmatpush3.bf16.msra.mxu1 %v2410_v21 }
 0x217   : > { %2264 = vmatprep.subr.bf16.mxu1 %v2491_v1 }
 0x218   : > { %2281 = vmatpush3.bf16.msra.mxu0 %v2411_v22 }
 0x219   : > { %2282 = vmatprep.subr.bf16.mxu0 %v2491_v1 }
 0x21a   : > { %2265 = vmatpush3.bf16.msra.mxu1 %v2412_v23 }
 0x21b   : > { %2266 = vmatprep.subr.bf16.mxu1 %v2491_v1 }
 0x21c   : > { %2283 = vmatpush3.bf16.msra.mxu0 %v2413_v24 }
 0x21d   : > { %2284 = vmatprep.subr.bf16.mxu0 %v2491_v1 }
 0x21e   : > { %2267 = vmatpush3.bf16.msra.mxu1 %v2414_v25 }
 0x21f   : > { %2268 = vmatprep.subr.bf16.mxu1 %v2491_v1 }
 0x220   : > { %2285 = vmatpush3.bf16.msra.mxu0 %v2415_v26 }
 0x221   : > { %2304 = vmatprep.subr.bf16.mxu0 %v2491_v1 }
 0x222   : > { %2269 = vmatpush3.bf16.msra.mxu1 %v2416_v27 }
 0x223   : > { %2270 = vmatprep.subr.bf16.mxu1 %v2491_v1 }
 0x226   : > { %2271 = vmatpush3.bf16.msra.mxu1 %v2417_v28 }
 0x227   : > { %2290 = vmatprep.subr.bf16.mxu1 %v2491_v1 }
 0x2b2   : > { %v1010_v29 = vpop.f32.mrb[8].mxu0 }
 0x2b3   : > { %v2196_v30 = vpop.f32.mrb[9].mxu0 }
 0x2b4   : > { %v1013_v31 = vpop.f32.mrb[10].mxu0 }
 0x2b5   : > { %v2197_v32 = vpop.f32.mrb[11].mxu0 }
 0x2b8   : > { %v931_v33 = vpop.f32.mrb[4].mxu1 }
 0x2b9   : > { %v1011_v34 = vadd.f32 %v1010_v29, %v931_v33  ;;  %v2180_v35 = vpop.f32.mrb[5].mxu1 }
 0x2ba   : > { %v934_v36 = vpop.f32.mrb[6].mxu1 }
 0x2bb   : > { %v1014_v37 = vadd.f32 %v1013_v31, %v934_v36  ;;  %v2181_v38 = vpop.f32.mrb[7].mxu1 }
 0x2ca   : > { %v1220_v39 = vpop.f32.mrb[12].mxu0 }
 0x2cb   : > { %v2228_v40 = vpop.f32.mrb[13].mxu0 }
 0x2cc   : > { %v1223_v41 = vpop.f32.mrb[14].mxu0 }
 0x2cd   : > { %v2229_v42 = vpop.f32.mrb[15].mxu0 }
 0x2d0   : > { %v1105_v43 = vpop.f32.mrb[8].mxu1 }
 0x2d1   : > { %v1112_v44 = vadd.f32 %v1105_v43, %v1011_v34  ;;  %v2212_v45 = vpop.f32.mrb[9].mxu1 }
 0x2d2   : > { %v1108_v46 = vpop.f32.mrb[10].mxu1 }
 0x2d3   : > { %v1113_v47 = vadd.f32 %v1108_v46, %v1014_v37  ;;  %v2213_v48 = vpop.f32.mrb[11].mxu1  ;;  %v2029_v37 = vld [vmem:[%s3026_s12] ss:$0 sm:$0xff] }
 0x2e2   : > { %v1394_v49 = vpop.f32.mrb[16].mxu0 }
 0x2e3   : > { %v2260_v50 = vpop.f32.mrb[17].mxu0 }
 0x2e4   : > { %v1397_v51 = vpop.f32.mrb[18].mxu0 }
 0x2e5   : > { %v2261_v52 = vpop.f32.mrb[19].mxu0 }
 0x2e8   : > { %v1299_v53 = vpop.f32.mrb[12].mxu1 }
 0x2e9   : > { %v1300_v54 = vadd.f32 %v1299_v53, %v1220_v39  ;;  %v2244_v55 = vpop.f32.mrb[13].mxu1 }
 0x2ea   : > { %v1302_v56 = vpop.f32.mrb[14].mxu1 }
 0x2eb   : > { %v1303_v57 = vadd.f32 %v1302_v56, %v1223_v41  ;;  %v1401_v58 = vadd.f32 %v1394_v49, %v1300_v54  ;;  %v2245_v59 = vpop.f32.mrb[15].mxu1 }
 0x2ed   : > { %v1403_v61 = vadd.f32 %v1401_v58, %v1112_v44  ;;  %v1402_v62 = vadd.f32 %v1397_v51, %v1303_v57 }
 0x2ef   : > { %v1412_v63 = vadd.f32 %v1989_v60, %v1403_v61  ;;  %v1404_v0 = vadd.f32 %v1402_v62, %v1113_v47 }
 0x2f1   : > { %v1414_v2 = vmax.f32 %v1412_v63, 0.0  ;;  %v1413_v3 = vadd.f32 %v1989_v60, %v1404_v0 }
 0x2f3   : > { %v1416_v4 = vpack.c.bf16 %v1414_v2, %v1414_v2  ;;  %v1415_v5 = vmax.f32 %v1413_v3, 0.0 }
 0x2f5   : > { %v1427_v6 = vpack.c.bf16 %v1415_v5, %v1414_v2  ;;  %2287 = vmatmul.mubr.msk.bf16.vlgmr.msra.gmra.mrb[20].mxu0 %vm1476_vm4, %v1416_v4 }
 0x2f6   : > { %2312 = vmatprep.mubr.msk.bf16.mxu0 %vm2492_vm0, %v2491_v1  ;;  %2305 = vmatpush3.bf16.msra.mxu0 %v2423_v17 }
 0x2f7   : > { %v1442_v7 = vshll.u32 %v1427_v6, 16  ;;  %v1440_v8 = vshrl.u32 %v1427_v6, 16  ;;  %v1605_v16 = vrot.slane %v1427_v6, 1  ;;  %2306 = vmatprep.subr.bf16.mxu0 %v2491_v1 }
 0x2f9   : > { %v1444_v9 = vrot.slane %v1442_v7, 1 }
 0x2fa   : > { %2307 = vmatpush3.bf16.msra.mxu0 %v2424_v18 }
 0x2fb   : > { %v1445_v11 = vor.u32 %v1444_v9, %v1440_v8  ;;  %2308 = vmatprep.subr.bf16.mxu0 %v2491_v1 }
 0x2fd   : > { %2273 = vmatmul.mubr.msk.bf16.vlgmr.msra.gmra.mrb[16].mxu1 %vm1476_vm4, %v1445_v11 }
 0x2fe   : > { %2291 = vmatpush3.bf16.msra.mxu1 %v2418_v10  ;;  %2300 = vmatprep.mubr.msk.bf16.mxu1 %vm2492_vm0, %v2491_v1 }
 0x2ff   : > { %2292 = vmatprep.subr.bf16.mxu1 %v2491_v1  ;;  %2309 = vmatpush3.bf16.msra.mxu0 %v2425_v19 }
 0x300   : > { %2310 = vmatprep.subr.bf16.mxu0 %v2491_v1 }
 0x302   : > { %2293 = vmatpush3.bf16.msra.mxu1 %v2419_v12 }
 0x303   : > { %2294 = vmatprep.subr.bf16.mxu1 %v2491_v1  ;;  %2311 = vmatpush3.bf16.msra.mxu0 %v2426_v20 }
 0x306   : > { %2295 = vmatpush3.bf16.msra.mxu1 %v2420_v13 }
 0x307   : > { %2296 = vmatprep.subr.bf16.mxu1 %v2491_v1 }
 0x30a   : > { %2297 = vmatpush3.bf16.msra.mxu1 %v2421_v14 }
 0x30b   : > { %2298 = vmatprep.subr.bf16.mxu1 %v2491_v1  ;;  %v2028_v1 = vld [vmem:[%s3024_s10] ss:$0 sm:$0xff] }
 0x30e   : > { %2299 = vmatpush3.bf16.msra.mxu1 %v2422_v15 }
 0x311   : > { %2301 = vmatmul.mubr.msk.bf16.vlgmr.msra.gmra.mrb[20].mxu1 %vm1476_vm4, %v1605_v16 }
 0x3c8   : > { %v1587_v21 = vpop.f32.mrb[20].mxu0 }
 0x3c9   : > { %v2288_v22 = vpop.f32.mrb[21].mxu0 }
 0x3ca   : > { %v1590_v23 = vpop.f32.mrb[22].mxu0 }
 0x3cb   : > { %v2289_v24 = vpop.f32.mrb[23].mxu0 }
 0x3d0   : > { %v1514_v25 = vpop.f32.mrb[16].mxu1 }
 0x3d1   : > { %v1588_v26 = vadd.f32 %v1587_v21, %v1514_v25  ;;  %v2274_v27 = vpop.f32.mrb[17].mxu1 }
 0x3d2   : > { %v1517_v28 = vpop.f32.mrb[18].mxu1 }
 0x3d3   : > { %v2275_v29 = vpop.f32.mrb[19].mxu1 }
 0x3e4   : > { %v1673_v30 = vpop.f32.mrb[20].mxu1 }
 0x3e5   : > { %v1679_v31 = vadd.f32 %v1673_v30, %v1588_v26  ;;  %v2302_v32 = vpop.f32.mrb[21].mxu1 }
 0x3e6   : > { %v1676_v33 = vpop.f32.mrb[22].mxu1 }
 0x3e7   : > { %v1687_v34 = vadd.f32 %v2028_v1, %v1679_v31  ;;  %v2303_v35 = vpop.f32.mrb[23].mxu1 }
 0x3e9   : > { %v1688_v36 = vpack.c.bf16 %v1687_v34, %v1687_v34 }
 0x3eb   : > { %2313 = vmatmul.mubr.msk.bf16.vlgmr.msra.gmra.mrb[24].mxu0 %vm1728_vm5, %v1688_v36 }
 0x4be   : > { %v1766_v38 = vpop.f32.mrb[24].mxu0 }
 0x4bf   : > { %v1767_v39 = vadd.f32 %v2029_v37, %v1766_v38  ;;  %v2314_v40 = vpop.f32.mrb[25].mxu0 }
 0x4c0   : > { %v1769_v41 = vpop.f32.mrb[26].mxu0 }
 0x4c1   : > { %v2315_v42 = vpop.f32.mrb[27].mxu0  ;;  %1773 = vst.msk [vmem:[%s446_s30] sm:$0xff] %vm1772_vm6, %v1767_v39 }
 0x4c2   : > { %2440 = shalt.err (!%p2437_p3)
}
 0x4c3   : > { %s2441_s14 = scalar_lea.hbm %s2972_s27, 128  ;;  %s2445_s20 = scalar_lea.hbm %s3027_s13, 256 }
 0x4c4   : > { %p2442_p4 = scmp.ne.s32.totalorder %s2972_s27, %s2441_s14  ;;  %p2446_p9 = scmp.lt.u32.totalorder %s2972_s27, %s3027_s13 }
 0x4c5   : > { %p2447_p10 = scmp.lt.u32.totalorder %s2445_s20, %s2441_s14  ;;  %p2449_p12 = scmp.lt.u32.totalorder %s2441_s14, %s2972_s27 }
 0x4c6   : > { %p2443_p7 = pnand %p2442_p4, %p2602_p5 }
 0x4c7   : > { %p2448_p11 = por %p2447_p10, %p2446_p9 }
 0x4c8   : > { %p2444_p8 = pneg %p2443_p7 }
 0x4c9   : > { %p2450_p13 = por %p2449_p12, %p2448_p11 }
 0x4cb   : > { %p2451_p0 = pnand %p2450_p13, %p2444_p8 }
 0x4cd   : > { %2454 = shalt.err (!%p2451_p0)
}
 0x4ce   : > { %2319 = dma.vmem_to_hbm [thread:$0]  (%p2602_p5), %s2974_s15, 128, %s2972_s27, %s1775_s29  }
 0x4cf PF: > { %p2325_p1 = scmp.ge.s32.totalorder %s2489_s28, 2  ;;  %s1800_s17 = sand.u32 1, %s2477_s25  }
 0x4d0   : > { %s1801_s22 = scalar_lea.sflag [#allocation3], %s1800_s17 }
 0x4d1   : > { %p2322_p2 = pnand %p2325_p1, %p2606_p6 }
 0x4d3   : > { %2472 = dma.done.wait (!%p2322_p2), %s1801_s22, 128  }
 0x4d4   : > { %2474 = vsyncadd (!%p2322_p2), %s1801_s22, 4294967168  ;;  %s3036_s28 = sld [smem:[#allocation6_spill]]  ;;  %s3037_s23 = sld [smem:[#allocation5_spill]] }
 0x4d5   : > { %s3038_s27 = sld [smem:[#allocation7_spill]]  ;;  %s3039_s25 = smov %s2481_s26 }
 0x4da   : > { %p23_p3 = scmp.ge.s32.totalorder %s3036_s28, 4   ;;  %s3040_s26 = smov %s3037_s23 }
 0x4dc   :  { %25 = sbr.rel (!%p23_p3) target bundleno = 3 (0x3), region = 117 }
 0x4e3   :  { %1806 = vsyncpa [#allocation3], 1 }
 0x4e4   :  { %1808 = vsyncpa [#allocation3 + $0x1], 1 }

</bundles_post_ra>
